<compile_context>
chip_gen: v6e
topology: v6e:2x2x1
jax: 0.10.0
libtpu: 0.0.40
codegen_flags: <defaults>
</compile_context>

<pallas_src>
import jax
import jax.numpy as jnp
from jax.experimental import pallas as pl
from jax.experimental.pallas import tpu as pltpu


# --------------------------------------------------------------------------- #
# Fused generator kernel
# --------------------------------------------------------------------------- #

def _leaky(y):
    return jnp.where(y > 0, y, 0.2 * y)


def _shift(x, dy, dx):
    """Value of x[m+dy, n+dx] (zero outside the image), flattened to (H*W, C)."""
    H, W, C = x.shape
    if dy > 0:
        x = jnp.concatenate([x[dy:], jnp.zeros((dy, W, C), x.dtype)], axis=0)
    elif dy < 0:
        x = jnp.concatenate([jnp.zeros((-dy, W, C), x.dtype), x[:dy]], axis=0)
    if dx > 0:
        x = jnp.concatenate([x[:, dx:], jnp.zeros((H, dx, C), x.dtype)], axis=1)
    elif dx < 0:
        x = jnp.concatenate([jnp.zeros((H, -dx, C), x.dtype), x[:, :dx]], axis=1)
    return x.reshape(H * W, C)


def generator_kernel(x_ref, fcw_ref, fcb_ref,
                     w0_ref, b0_ref, w1_ref, b1_ref, w2_ref, b2_ref,
                     wf_ref, bf_ref, o_ref):
    # ---- Linear + LeakyReLU (weight columns pre-permuted to NHWC order) ----
    xb = x_ref[0].astype(jnp.bfloat16)                                 # (1, L)
    y = jnp.dot(xb, fcw_ref[...], preferred_element_type=jnp.float32)  # (1, 4096)
    y = _leaky(y + fcb_ref[...])
    h = y.astype(jnp.bfloat16).reshape(4, 4, 256)                      # NHWC

    # ---- 3 x [ConvTranspose2d(k3, s2, p1, op1) + LeakyReLU], subpixel form ----
    for w_ref, b_ref in ((w0_ref, b0_ref), (w1_ref, b1_ref), (w2_ref, b2_ref)):
        H, W, _ = h.shape
        Co = w_ref.shape[1] // 4
        # Augmented input: [x(m,n) | x(m,n+1) | x(m+1,n) | x(m+1,n+1)]
        v = jnp.concatenate(
            [_shift(h, 0, 0), _shift(h, 0, 1), _shift(h, 1, 0), _shift(h, 1, 1)],
            axis=-1)                                                   # (H*W, 4*Ci)
        yl = jnp.dot(v, w_ref[...], preferred_element_type=jnp.float32)
        yl = _leaky(yl + b_ref[...]).astype(jnp.bfloat16)              # (H*W, 4*Co)
        # Column blocks are the output-pixel parities [ee | eo | oe | oo];
        # interleave them back into a (2H, 2W, Co) image.
        top = yl[:, :2 * Co].reshape(H, 2 * W, Co)                     # even rows
        bot = yl[:, 2 * Co:].reshape(H, 2 * W, Co)                     # odd rows
        h = jnp.stack([top, bot], axis=1).reshape(2 * H, 2 * W, Co)

    # ---- Conv2d(128 -> 3, k3, p1) + Tanh, channel-major (lane-dense) output ----
    H, W, Ci = h.shape                                                 # (32, 32, 128)
    taps = [_shift(h, dy, dx) for dy in (-1, 0, 1) for dx in (-1, 0, 1)]
    vf = jnp.concatenate(taps, axis=-1)                                # (1024, 9*Ci)
    out_t = jax.lax.dot_general(
        wf_ref[...], vf, (((1,), (1,)), ((), ())),
        preferred_element_type=jnp.float32)                            # (3, 1024)
    out_t = jnp.tanh(out_t + bf_ref[...])
    o_ref[...] = out_t.reshape(1, 3, H * W).astype(o_ref.dtype)


def cifar10g_forward(x, kp):
    B, L = x.shape

    def full(shape):
        return pl.BlockSpec(shape, lambda n: (0,) * len(shape))

    out = pl.pallas_call(
        generator_kernel,
        out_shape=jax.ShapeDtypeStruct((B, 3, 32 * 32), jnp.float32),
        grid=(B,),
        in_specs=[
            pl.BlockSpec((1, 1, L), lambda n: (n, 0, 0)),   # latent vector
            full((L, 4096)), full((1, 4096)),               # linear
            full((4 * 256, 4 * 128)), full((1, 4 * 128)),   # ct0
            full((4 * 128, 4 * 128)), full((1, 4 * 128)),   # ct1
            full((4 * 128, 4 * 128)), full((1, 4 * 128)),   # ct2
            full((3, 9 * 128)), full((3, 1)),               # final conv
        ],
        out_specs=pl.BlockSpec((1, 3, 32 * 32), lambda n: (n, 0, 0)),
        compiler_params=pltpu.CompilerParams(
            dimension_semantics=("parallel",),
            vmem_limit_bytes=32 * 1024 * 1024),
    )(x.reshape(B, 1, L), kp["fc_w"], kp["fc_b"],
      kp["w0"], kp["b0"], kp["w1"], kp["b1"], kp["w2"], kp["b2"],
      kp["wf"], kp["bf"])
    return out.reshape(B, 3, 32, 32)                                   # NCHW


# --------------------------------------------------------------------------- #
# Parameter construction (PyTorch layout) and one-time kernel-layout prep
# --------------------------------------------------------------------------- #

def init_params(key, latent_size):
    """Deterministic PyTorch-shaped params (uniform, fan-in scaled, bf16-rounded)."""
    ks = jax.random.split(key, 10)

    def u(k, shape, fan_in):
        bound = 1.0 / jnp.sqrt(jnp.float32(fan_in))
        w = jax.random.uniform(k, shape, jnp.float32, -bound, bound)
        # round to the bf16 grid so kernel and reference share exact values
        return w.astype(jnp.bfloat16).astype(jnp.float32)

    p = {"lin_w": u(ks[0], (4096, latent_size), latent_size),
         "lin_b": u(ks[1], (4096,), latent_size)}
    for i, (ci, co) in enumerate([(256, 128), (128, 128), (128, 128)]):
        fan = ci * 9
        p[f"ct{i}_w"] = u(ks[2 + 2 * i], (ci, co, 3, 3), fan)   # ConvT: (Cin,Cout,3,3)
        p[f"ct{i}_b"] = u(ks[3 + 2 * i], (co,), fan)
    p["conv_w"] = u(ks[8], (3, 128, 3, 3), 128 * 9)             # Conv: (Cout,Cin,3,3)
    p["conv_b"] = u(ks[9], (3,), 128 * 9)
    return p


def _make_wbig(w_t):
    """ConvTranspose2d weight (Ci, Co, 3, 3) -> (4*Ci, 4*Co) subpixel matrix.

    Row blocks: inputs [x(m,n), x(m,n+1), x(m+1,n), x(m+1,n+1)];
    column blocks: output phases [(ev,ev), (ev,od), (od,ev), (od,od)],
    using out[2i - 1 + k] relation of ConvTranspose2d(s=2, p=1, op=1).
    """
    ci, co = w_t.shape[0], w_t.shape[1]
    wt = jnp.transpose(w_t, (2, 3, 0, 1))                       # (ky, kx, Ci, Co)
    z = jnp.zeros((ci, co), w_t.dtype)
    rows = [
        jnp.concatenate([wt[1, 1], wt[1, 2], wt[2, 1], wt[2, 2]], axis=1),
        jnp.concatenate([z,        wt[1, 0], z,        wt[2, 0]], axis=1),
        jnp.concatenate([z,        z,        wt[0, 1], wt[0, 2]], axis=1),
        jnp.concatenate([z,        z,        z,        wt[0, 0]], axis=1),
    ]
    return jnp.concatenate(rows, axis=0)                        # (4*Ci, 4*Co)


def prepare_kernel_params(p):
    L = p["lin_w"].shape[1]
    # Permute linear output columns so the 4096-wide result is already NHWC-flat.
    fc_w = (p["lin_w"].T.reshape(L, 256, 4, 4)
            .transpose(0, 2, 3, 1).reshape(L, 4096))
    fc_b = p["lin_b"].reshape(256, 4, 4).transpose(1, 2, 0).reshape(1, 4096)
    kp = {"fc_w": fc_w.astype(jnp.bfloat16), "fc_b": fc_b.astype(jnp.float32)}
    for i in range(3):
        kp[f"w{i}"] = _make_wbig(p[f"ct{i}_w"]).astype(jnp.bfloat16)
        kp[f"b{i}"] = jnp.tile(p[f"ct{i}_b"], 4).reshape(1, -1).astype(jnp.float32)
    # Final conv weight, channel-major: (3, 9*128) with tap order (ky, kx) row-major.
    kp["wf"] = (jnp.transpose(p["conv_w"], (0, 2, 3, 1))
                .reshape(3, 9 * 128).astype(jnp.bfloat16))
    kp["bf"] = p["conv_b"].reshape(3, 1).astype(jnp.float32)
    return kp


# --------------------------------------------------------------------------- #
# Pure-XLA reference (PyTorch semantics, f32) for validation
# --------------------------------------------------------------------------- #

def reference_forward(x, p):
    B = x.shape[0]
    hp = jax.lax.Precision.HIGHEST
    h = jnp.dot(x, p["lin_w"].T, precision=hp) + p["lin_b"]
    h = jnp.where(h > 0, h, 0.2 * h)
    h = h.reshape(B, 256, 4, 4).transpose(0, 2, 3, 1)           # NHWC
    dn = ("NHWC", "HWIO", "NHWC")
    for i in range(3):
        w = p[f"ct{i}_w"]                                       # (Ci, Co, 3, 3)
        w_hwio = jnp.transpose(w[:, :, ::-1, ::-1], (2, 3, 0, 1))
        h = jax.lax.conv_general_dilated(
            h, w_hwio, window_strides=(1, 1), padding=((1, 2), (1, 2)),
            lhs_dilation=(2, 2), dimension_numbers=dn, precision=hp)
        h = h + p[f"ct{i}_b"].reshape(1, 1, 1, -1)
        h = jnp.where(h > 0, h, 0.2 * h)
    wf = jnp.transpose(p["conv_w"], (2, 3, 1, 0))               # HWIO
    h = jax.lax.conv_general_dilated(
        h, wf, window_strides=(1, 1), padding=((1, 1), (1, 1)),
        dimension_numbers=dn, precision=hp)
    h = jnp.tanh(h + p["conv_b"].reshape(1, 1, 1, -1))
    return h.transpose(0, 3, 1, 2)                              # NCHW


# --------------------------------------------------------------------------- #

if __name__ == "__main__":
    latent_size, batch = 32, 2
    key = jax.random.PRNGKey(0)
    k_param, k_x = jax.random.split(key)
    params = init_params(k_param, latent_size)
    kparams = prepare_kernel_params(params)
    x = jax.random.normal(k_x, (batch, latent_size), jnp.float32)

    out = jax.jit(cifar10g_forward)(x, kparams)
    out = jax.block_until_ready(out)

    assert out.shape == (batch, 3, 32, 32), out.shape
    assert bool(jnp.all(jnp.isfinite(out)))
    assert bool(jnp.all(jnp.abs(out) <= 1.0 + 1e-6))            # tanh range

    ref = reference_forward(x, params)
    err = float(jnp.max(jnp.abs(out - ref)))
    assert err < 6e-2, f"kernel deviates from reference: max|diff|={err}"
    print("KERNEL_OK")
</pallas_src>

<mosaic_0001>
module attributes {stable_mosaic.version = 11 : i64} {
  func.func @generator_kernel(%arg0: i32, %arg1: memref<1x1x32xf32, #tpu.memory_space<vmem>>, %arg2: memref<32x4096xbf16, #tpu.memory_space<vmem>>, %arg3: memref<1x4096xf32, #tpu.memory_space<vmem>>, %arg4: memref<1024x512xbf16, #tpu.memory_space<vmem>>, %arg5: memref<1x512xf32, #tpu.memory_space<vmem>>, %arg6: memref<512x512xbf16, #tpu.memory_space<vmem>>, %arg7: memref<1x512xf32, #tpu.memory_space<vmem>>, %arg8: memref<512x512xbf16, #tpu.memory_space<vmem>>, %arg9: memref<1x512xf32, #tpu.memory_space<vmem>>, %arg10: memref<3x1152xbf16, #tpu.memory_space<vmem>>, %arg11: memref<3x1xf32, #tpu.memory_space<vmem>>, %arg12: memref<1x3x1024xf32, #tpu.memory_space<vmem>>) attributes {dimension_semantics = [#tpu.dimension_semantics<parallel>], iteration_bounds = array<i64: 2>, scalar_prefetch = 0 : i64, scratch_operands = 0 : i64, tpu.core_type = #tpu.core_type<tc>, window_params = [{transform_indices = @transform_0, window_bounds = array<i64: 1, 1, 32>}, {pipeline_mode = #tpu.pipeline_mode<synchronous>, transform_indices = @transform_1, window_bounds = array<i64: 32, 4096>}, {pipeline_mode = #tpu.pipeline_mode<synchronous>, transform_indices = @transform_2, window_bounds = array<i64: 1, 4096>}, {pipeline_mode = #tpu.pipeline_mode<synchronous>, transform_indices = @transform_3, window_bounds = array<i64: 1024, 512>}, {pipeline_mode = #tpu.pipeline_mode<synchronous>, transform_indices = @transform_4, window_bounds = array<i64: 1, 512>}, {pipeline_mode = #tpu.pipeline_mode<synchronous>, transform_indices = @transform_5, window_bounds = array<i64: 512, 512>}, {pipeline_mode = #tpu.pipeline_mode<synchronous>, transform_indices = @transform_6, window_bounds = array<i64: 1, 512>}, {pipeline_mode = #tpu.pipeline_mode<synchronous>, transform_indices = @transform_7, window_bounds = array<i64: 512, 512>}, {pipeline_mode = #tpu.pipeline_mode<synchronous>, transform_indices = @transform_8, window_bounds = array<i64: 1, 512>}, {pipeline_mode = #tpu.pipeline_mode<synchronous>, transform_indices = @transform_9, window_bounds = array<i64: 3, 1152>}, {pipeline_mode = #tpu.pipeline_mode<synchronous>, transform_indices = @transform_10, window_bounds = array<i64: 3, 1>}, {transform_indices = @transform_11, window_bounds = array<i64: 1, 3, 1024>}]} {
    %c0 = arith.constant 0 : index
    %c0_0 = arith.constant 0 : index
    %c0_1 = arith.constant 0 : index
    %0 = vector.load %arg1[%c0, %c0_0, %c0_1] : memref<1x1x32xf32, #tpu.memory_space<vmem>>, vector<1x1x32xf32>
    %1 = vector.shape_cast %0 : vector<1x1x32xf32> to vector<1x32xf32>
    %2 = arith.truncf %1 : vector<1x32xf32> to vector<1x32xbf16>
    %c0_2 = arith.constant 0 : index
    %c0_3 = arith.constant 0 : index
    %3 = vector.load %arg2[%c0_2, %c0_3] : memref<32x4096xbf16, #tpu.memory_space<vmem>>, vector<32x4096xbf16>
    %cst = arith.constant dense<0.000000e+00> : vector<1x4096xf32>
    %4 = tpu.matmul %2, %3, %cst {dimension_numbers = #tpu.dot_dimension_numbers<[1], [0], [0], [1], [0, 0, 1, 1], [], []>} : vector<1x32xbf16>, vector<32x4096xbf16>, vector<1x4096xf32> -> vector<1x4096xf32>
    %c0_4 = arith.constant 0 : index
    %c0_5 = arith.constant 0 : index
    %5 = vector.load %arg3[%c0_4, %c0_5] : memref<1x4096xf32, #tpu.memory_space<vmem>>, vector<1x4096xf32>
    %6 = arith.addf %4, %5 : vector<1x4096xf32>
    %cst_6 = arith.constant 0.000000e+00 : f32
    %7 = vector.broadcast %cst_6 : f32 to vector<1x4096xf32>
    %8 = arith.cmpf ogt, %6, %7 : vector<1x4096xf32>
    %cst_7 = arith.constant 2.000000e-01 : f32
    %9 = vector.broadcast %cst_7 : f32 to vector<1x4096xf32>
    %10 = arith.mulf %9, %6 : vector<1x4096xf32>
    %11 = arith.select %8, %6, %10 : vector<1x4096xi1>, vector<1x4096xf32>
    %12 = arith.truncf %11 : vector<1x4096xf32> to vector<1x4096xbf16>
    %13 = vector.shape_cast %12 : vector<1x4096xbf16> to vector<4x4x256xbf16>
    %14 = vector.shape_cast %13 : vector<4x4x256xbf16> to vector<16x256xbf16>
    %15 = vector.extract_strided_slice %13 {offsets = [0, 1, 0], sizes = [4, 3, 256], strides = [1, 1, 1]} : vector<4x4x256xbf16> to vector<4x3x256xbf16>
    %cst_8 = arith.constant 0.000000e+00 : bf16
    %16 = vector.broadcast %cst_8 : bf16 to vector<4x1x256xbf16>
    %17 = tpu.concatenate %15, %16 in 1 : vector<4x3x256xbf16>, vector<4x1x256xbf16> -> vector<4x4x256xbf16>
    %18 = vector.shape_cast %17 : vector<4x4x256xbf16> to vector<16x256xbf16>
    %19 = vector.extract_strided_slice %13 {offsets = [1, 0, 0], sizes = [3, 4, 256], strides = [1, 1, 1]} : vector<4x4x256xbf16> to vector<3x4x256xbf16>
    %cst_9 = arith.constant 0.000000e+00 : bf16
    %20 = vector.broadcast %cst_9 : bf16 to vector<1x4x256xbf16>
    %21 = tpu.concatenate %19, %20 in 0 : vector<3x4x256xbf16>, vector<1x4x256xbf16> -> vector<4x4x256xbf16>
    %22 = vector.shape_cast %21 : vector<4x4x256xbf16> to vector<16x256xbf16>
    %23 = vector.extract_strided_slice %13 {offsets = [1, 0, 0], sizes = [3, 4, 256], strides = [1, 1, 1]} : vector<4x4x256xbf16> to vector<3x4x256xbf16>
    %cst_10 = arith.constant 0.000000e+00 : bf16
    %24 = vector.broadcast %cst_10 : bf16 to vector<1x4x256xbf16>
    %25 = tpu.concatenate %23, %24 in 0 : vector<3x4x256xbf16>, vector<1x4x256xbf16> -> vector<4x4x256xbf16>
    %26 = vector.extract_strided_slice %25 {offsets = [0, 1, 0], sizes = [4, 3, 256], strides = [1, 1, 1]} : vector<4x4x256xbf16> to vector<4x3x256xbf16>
    %cst_11 = arith.constant 0.000000e+00 : bf16
    %27 = vector.broadcast %cst_11 : bf16 to vector<4x1x256xbf16>
    %28 = tpu.concatenate %26, %27 in 1 : vector<4x3x256xbf16>, vector<4x1x256xbf16> -> vector<4x4x256xbf16>
    %29 = vector.shape_cast %28 : vector<4x4x256xbf16> to vector<16x256xbf16>
    %30 = tpu.concatenate %14, %18, %22, %29 in 1 : vector<16x256xbf16>, vector<16x256xbf16>, vector<16x256xbf16>, vector<16x256xbf16> -> vector<16x1024xbf16>
    %c0_12 = arith.constant 0 : index
    %c0_13 = arith.constant 0 : index
    %31 = vector.load %arg4[%c0_12, %c0_13] : memref<1024x512xbf16, #tpu.memory_space<vmem>>, vector<1024x512xbf16>
    %cst_14 = arith.constant dense<0.000000e+00> : vector<16x512xf32>
    %32 = tpu.matmul %30, %31, %cst_14 {dimension_numbers = #tpu.dot_dimension_numbers<[1], [0], [0], [1], [0, 0, 1, 1], [], []>} : vector<16x1024xbf16>, vector<1024x512xbf16>, vector<16x512xf32> -> vector<16x512xf32>
    %c0_15 = arith.constant 0 : index
    %c0_16 = arith.constant 0 : index
    %33 = vector.load %arg5[%c0_15, %c0_16] : memref<1x512xf32, #tpu.memory_space<vmem>>, vector<1x512xf32>
    %34 = vector.broadcast %33 : vector<1x512xf32> to vector<16x512xf32>
    %35 = arith.addf %32, %34 : vector<16x512xf32>
    %cst_17 = arith.constant 0.000000e+00 : f32
    %36 = vector.broadcast %cst_17 : f32 to vector<16x512xf32>
    %37 = arith.cmpf ogt, %35, %36 : vector<16x512xf32>
    %cst_18 = arith.constant 2.000000e-01 : f32
    %38 = vector.broadcast %cst_18 : f32 to vector<16x512xf32>
    %39 = arith.mulf %38, %35 : vector<16x512xf32>
    %40 = arith.select %37, %35, %39 : vector<16x512xi1>, vector<16x512xf32>
    %41 = arith.truncf %40 : vector<16x512xf32> to vector<16x512xbf16>
    %42 = vector.extract_strided_slice %41 {offsets = [0, 0], sizes = [16, 256], strides = [1, 1]} : vector<16x512xbf16> to vector<16x256xbf16>
    %43 = vector.shape_cast %42 : vector<16x256xbf16> to vector<4x8x128xbf16>
    %44 = vector.extract_strided_slice %41 {offsets = [0, 256], sizes = [16, 256], strides = [1, 1]} : vector<16x512xbf16> to vector<16x256xbf16>
    %45 = vector.shape_cast %44 : vector<16x256xbf16> to vector<4x8x128xbf16>
    %46 = vector.shape_cast %43 : vector<4x8x128xbf16> to vector<4x1x8x128xbf16>
    %47 = vector.shape_cast %45 : vector<4x8x128xbf16> to vector<4x1x8x128xbf16>
    %48 = tpu.concatenate %46, %47 in 1 : vector<4x1x8x128xbf16>, vector<4x1x8x128xbf16> -> vector<4x2x8x128xbf16>
    %49 = vector.shape_cast %48 : vector<4x2x8x128xbf16> to vector<8x8x128xbf16>
    %50 = vector.shape_cast %49 : vector<8x8x128xbf16> to vector<64x128xbf16>
    %51 = vector.extract_strided_slice %49 {offsets = [0, 1, 0], sizes = [8, 7, 128], strides = [1, 1, 1]} : vector<8x8x128xbf16> to vector<8x7x128xbf16>
    %cst_19 = arith.constant 0.000000e+00 : bf16
    %52 = vector.broadcast %cst_19 : bf16 to vector<8x1x128xbf16>
    %53 = tpu.concatenate %51, %52 in 1 : vector<8x7x128xbf16>, vector<8x1x128xbf16> -> vector<8x8x128xbf16>
    %54 = vector.shape_cast %53 : vector<8x8x128xbf16> to vector<64x128xbf16>
    %55 = vector.extract_strided_slice %49 {offsets = [1, 0, 0], sizes = [7, 8, 128], strides = [1, 1, 1]} : vector<8x8x128xbf16> to vector<7x8x128xbf16>
    %cst_20 = arith.constant 0.000000e+00 : bf16
    %56 = vector.broadcast %cst_20 : bf16 to vector<1x8x128xbf16>
    %57 = tpu.concatenate %55, %56 in 0 : vector<7x8x128xbf16>, vector<1x8x128xbf16> -> vector<8x8x128xbf16>
    %58 = vector.shape_cast %57 : vector<8x8x128xbf16> to vector<64x128xbf16>
    %59 = vector.extract_strided_slice %49 {offsets = [1, 0, 0], sizes = [7, 8, 128], strides = [1, 1, 1]} : vector<8x8x128xbf16> to vector<7x8x128xbf16>
    %cst_21 = arith.constant 0.000000e+00 : bf16
    %60 = vector.broadcast %cst_21 : bf16 to vector<1x8x128xbf16>
    %61 = tpu.concatenate %59, %60 in 0 : vector<7x8x128xbf16>, vector<1x8x128xbf16> -> vector<8x8x128xbf16>
    %62 = vector.extract_strided_slice %61 {offsets = [0, 1, 0], sizes = [8, 7, 128], strides = [1, 1, 1]} : vector<8x8x128xbf16> to vector<8x7x128xbf16>
    %cst_22 = arith.constant 0.000000e+00 : bf16
    %63 = vector.broadcast %cst_22 : bf16 to vector<8x1x128xbf16>
    %64 = tpu.concatenate %62, %63 in 1 : vector<8x7x128xbf16>, vector<8x1x128xbf16> -> vector<8x8x128xbf16>
    %65 = vector.shape_cast %64 : vector<8x8x128xbf16> to vector<64x128xbf16>
    %66 = tpu.concatenate %50, %54, %58, %65 in 1 : vector<64x128xbf16>, vector<64x128xbf16>, vector<64x128xbf16>, vector<64x128xbf16> -> vector<64x512xbf16>
    %c0_23 = arith.constant 0 : index
    %c0_24 = arith.constant 0 : index
    %67 = vector.load %arg6[%c0_23, %c0_24] : memref<512x512xbf16, #tpu.memory_space<vmem>>, vector<512x512xbf16>
    %cst_25 = arith.constant dense<0.000000e+00> : vector<64x512xf32>
    %68 = tpu.matmul %66, %67, %cst_25 {dimension_numbers = #tpu.dot_dimension_numbers<[1], [0], [0], [1], [0, 0, 1, 1], [], []>} : vector<64x512xbf16>, vector<512x512xbf16>, vector<64x512xf32> -> vector<64x512xf32>
    %c0_26 = arith.constant 0 : index
    %c0_27 = arith.constant 0 : index
    %69 = vector.load %arg7[%c0_26, %c0_27] : memref<1x512xf32, #tpu.memory_space<vmem>>, vector<1x512xf32>
    %70 = vector.broadcast %69 : vector<1x512xf32> to vector<64x512xf32>
    %71 = arith.addf %68, %70 : vector<64x512xf32>
    %cst_28 = arith.constant 0.000000e+00 : f32
    %72 = vector.broadcast %cst_28 : f32 to vector<64x512xf32>
    %73 = arith.cmpf ogt, %71, %72 : vector<64x512xf32>
    %cst_29 = arith.constant 2.000000e-01 : f32
    %74 = vector.broadcast %cst_29 : f32 to vector<64x512xf32>
    %75 = arith.mulf %74, %71 : vector<64x512xf32>
    %76 = arith.select %73, %71, %75 : vector<64x512xi1>, vector<64x512xf32>
    %77 = arith.truncf %76 : vector<64x512xf32> to vector<64x512xbf16>
    %78 = vector.extract_strided_slice %77 {offsets = [0, 0], sizes = [64, 256], strides = [1, 1]} : vector<64x512xbf16> to vector<64x256xbf16>
    %79 = vector.shape_cast %78 : vector<64x256xbf16> to vector<8x16x128xbf16>
    %80 = vector.extract_strided_slice %77 {offsets = [0, 256], sizes = [64, 256], strides = [1, 1]} : vector<64x512xbf16> to vector<64x256xbf16>
    %81 = vector.shape_cast %80 : vector<64x256xbf16> to vector<8x16x128xbf16>
    %82 = vector.shape_cast %79 : vector<8x16x128xbf16> to vector<8x1x16x128xbf16>
    %83 = vector.shape_cast %81 : vector<8x16x128xbf16> to vector<8x1x16x128xbf16>
    %84 = tpu.concatenate %82, %83 in 1 : vector<8x1x16x128xbf16>, vector<8x1x16x128xbf16> -> vector<8x2x16x128xbf16>
    %85 = vector.shape_cast %84 : vector<8x2x16x128xbf16> to vector<16x16x128xbf16>
    %86 = vector.shape_cast %85 : vector<16x16x128xbf16> to vector<256x128xbf16>
    %87 = vector.extract_strided_slice %85 {offsets = [0, 1, 0], sizes = [16, 15, 128], strides = [1, 1, 1]} : vector<16x16x128xbf16> to vector<16x15x128xbf16>
    %cst_30 = arith.constant 0.000000e+00 : bf16
    %88 = vector.broadcast %cst_30 : bf16 to vector<16x1x128xbf16>
    %89 = tpu.concatenate %87, %88 in 1 : vector<16x15x128xbf16>, vector<16x1x128xbf16> -> vector<16x16x128xbf16>
    %90 = vector.shape_cast %89 : vector<16x16x128xbf16> to vector<256x128xbf16>
    %91 = vector.extract_strided_slice %85 {offsets = [1, 0, 0], sizes = [15, 16, 128], strides = [1, 1, 1]} : vector<16x16x128xbf16> to vector<15x16x128xbf16>
    %cst_31 = arith.constant 0.000000e+00 : bf16
    %92 = vector.broadcast %cst_31 : bf16 to vector<1x16x128xbf16>
    %93 = tpu.concatenate %91, %92 in 0 : vector<15x16x128xbf16>, vector<1x16x128xbf16> -> vector<16x16x128xbf16>
    %94 = vector.shape_cast %93 : vector<16x16x128xbf16> to vector<256x128xbf16>
    %95 = vector.extract_strided_slice %85 {offsets = [1, 0, 0], sizes = [15, 16, 128], strides = [1, 1, 1]} : vector<16x16x128xbf16> to vector<15x16x128xbf16>
    %cst_32 = arith.constant 0.000000e+00 : bf16
    %96 = vector.broadcast %cst_32 : bf16 to vector<1x16x128xbf16>
    %97 = tpu.concatenate %95, %96 in 0 : vector<15x16x128xbf16>, vector<1x16x128xbf16> -> vector<16x16x128xbf16>
    %98 = vector.extract_strided_slice %97 {offsets = [0, 1, 0], sizes = [16, 15, 128], strides = [1, 1, 1]} : vector<16x16x128xbf16> to vector<16x15x128xbf16>
    %cst_33 = arith.constant 0.000000e+00 : bf16
    %99 = vector.broadcast %cst_33 : bf16 to vector<16x1x128xbf16>
    %100 = tpu.concatenate %98, %99 in 1 : vector<16x15x128xbf16>, vector<16x1x128xbf16> -> vector<16x16x128xbf16>
    %101 = vector.shape_cast %100 : vector<16x16x128xbf16> to vector<256x128xbf16>
    %102 = tpu.concatenate %86, %90, %94, %101 in 1 : vector<256x128xbf16>, vector<256x128xbf16>, vector<256x128xbf16>, vector<256x128xbf16> -> vector<256x512xbf16>
    %c0_34 = arith.constant 0 : index
    %c0_35 = arith.constant 0 : index
    %103 = vector.load %arg8[%c0_34, %c0_35] : memref<512x512xbf16, #tpu.memory_space<vmem>>, vector<512x512xbf16>
    %cst_36 = arith.constant dense<0.000000e+00> : vector<256x512xf32>
    %104 = tpu.matmul %102, %103, %cst_36 {dimension_numbers = #tpu.dot_dimension_numbers<[1], [0], [0], [1], [0, 0, 1, 1], [], []>} : vector<256x512xbf16>, vector<512x512xbf16>, vector<256x512xf32> -> vector<256x512xf32>
    %c0_37 = arith.constant 0 : index
    %c0_38 = arith.constant 0 : index
    %105 = vector.load %arg9[%c0_37, %c0_38] : memref<1x512xf32, #tpu.memory_space<vmem>>, vector<1x512xf32>
    %106 = vector.broadcast %105 : vector<1x512xf32> to vector<256x512xf32>
    %107 = arith.addf %104, %106 : vector<256x512xf32>
    %cst_39 = arith.constant 0.000000e+00 : f32
    %108 = vector.broadcast %cst_39 : f32 to vector<256x512xf32>
    %109 = arith.cmpf ogt, %107, %108 : vector<256x512xf32>
    %cst_40 = arith.constant 2.000000e-01 : f32
    %110 = vector.broadcast %cst_40 : f32 to vector<256x512xf32>
    %111 = arith.mulf %110, %107 : vector<256x512xf32>
    %112 = arith.select %109, %107, %111 : vector<256x512xi1>, vector<256x512xf32>
    %113 = arith.truncf %112 : vector<256x512xf32> to vector<256x512xbf16>
    %114 = vector.extract_strided_slice %113 {offsets = [0, 0], sizes = [256, 256], strides = [1, 1]} : vector<256x512xbf16> to vector<256x256xbf16>
    %115 = vector.shape_cast %114 : vector<256x256xbf16> to vector<16x32x128xbf16>
    %116 = vector.extract_strided_slice %113 {offsets = [0, 256], sizes = [256, 256], strides = [1, 1]} : vector<256x512xbf16> to vector<256x256xbf16>
    %117 = vector.shape_cast %116 : vector<256x256xbf16> to vector<16x32x128xbf16>
    %118 = vector.shape_cast %115 : vector<16x32x128xbf16> to vector<16x1x32x128xbf16>
    %119 = vector.shape_cast %117 : vector<16x32x128xbf16> to vector<16x1x32x128xbf16>
    %120 = tpu.concatenate %118, %119 in 1 : vector<16x1x32x128xbf16>, vector<16x1x32x128xbf16> -> vector<16x2x32x128xbf16>
    %121 = vector.shape_cast %120 : vector<16x2x32x128xbf16> to vector<32x32x128xbf16>
    %cst_41 = arith.constant 0.000000e+00 : bf16
    %122 = vector.broadcast %cst_41 : bf16 to vector<1x32x128xbf16>
    %123 = vector.extract_strided_slice %121 {offsets = [0, 0, 0], sizes = [31, 32, 128], strides = [1, 1, 1]} : vector<32x32x128xbf16> to vector<31x32x128xbf16>
    %124 = tpu.concatenate %122, %123 in 0 : vector<1x32x128xbf16>, vector<31x32x128xbf16> -> vector<32x32x128xbf16>
    %cst_42 = arith.constant 0.000000e+00 : bf16
    %125 = vector.broadcast %cst_42 : bf16 to vector<32x1x128xbf16>
    %126 = vector.extract_strided_slice %124 {offsets = [0, 0, 0], sizes = [32, 31, 128], strides = [1, 1, 1]} : vector<32x32x128xbf16> to vector<32x31x128xbf16>
    %127 = tpu.concatenate %125, %126 in 1 : vector<32x1x128xbf16>, vector<32x31x128xbf16> -> vector<32x32x128xbf16>
    %128 = vector.shape_cast %127 : vector<32x32x128xbf16> to vector<1024x128xbf16>
    %cst_43 = arith.constant 0.000000e+00 : bf16
    %129 = vector.broadcast %cst_43 : bf16 to vector<1x32x128xbf16>
    %130 = vector.extract_strided_slice %121 {offsets = [0, 0, 0], sizes = [31, 32, 128], strides = [1, 1, 1]} : vector<32x32x128xbf16> to vector<31x32x128xbf16>
    %131 = tpu.concatenate %129, %130 in 0 : vector<1x32x128xbf16>, vector<31x32x128xbf16> -> vector<32x32x128xbf16>
    %132 = vector.shape_cast %131 : vector<32x32x128xbf16> to vector<1024x128xbf16>
    %cst_44 = arith.constant 0.000000e+00 : bf16
    %133 = vector.broadcast %cst_44 : bf16 to vector<1x32x128xbf16>
    %134 = vector.extract_strided_slice %121 {offsets = [0, 0, 0], sizes = [31, 32, 128], strides = [1, 1, 1]} : vector<32x32x128xbf16> to vector<31x32x128xbf16>
    %135 = tpu.concatenate %133, %134 in 0 : vector<1x32x128xbf16>, vector<31x32x128xbf16> -> vector<32x32x128xbf16>
    %136 = vector.extract_strided_slice %135 {offsets = [0, 1, 0], sizes = [32, 31, 128], strides = [1, 1, 1]} : vector<32x32x128xbf16> to vector<32x31x128xbf16>
    %cst_45 = arith.constant 0.000000e+00 : bf16
    %137 = vector.broadcast %cst_45 : bf16 to vector<32x1x128xbf16>
    %138 = tpu.concatenate %136, %137 in 1 : vector<32x31x128xbf16>, vector<32x1x128xbf16> -> vector<32x32x128xbf16>
    %139 = vector.shape_cast %138 : vector<32x32x128xbf16> to vector<1024x128xbf16>
    %cst_46 = arith.constant 0.000000e+00 : bf16
    %140 = vector.broadcast %cst_46 : bf16 to vector<32x1x128xbf16>
    %141 = vector.extract_strided_slice %121 {offsets = [0, 0, 0], sizes = [32, 31, 128], strides = [1, 1, 1]} : vector<32x32x128xbf16> to vector<32x31x128xbf16>
    %142 = tpu.concatenate %140, %141 in 1 : vector<32x1x128xbf16>, vector<32x31x128xbf16> -> vector<32x32x128xbf16>
    %143 = vector.shape_cast %142 : vector<32x32x128xbf16> to vector<1024x128xbf16>
    %144 = vector.shape_cast %121 : vector<32x32x128xbf16> to vector<1024x128xbf16>
    %145 = vector.extract_strided_slice %121 {offsets = [0, 1, 0], sizes = [32, 31, 128], strides = [1, 1, 1]} : vector<32x32x128xbf16> to vector<32x31x128xbf16>
    %cst_47 = arith.constant 0.000000e+00 : bf16
    %146 = vector.broadcast %cst_47 : bf16 to vector<32x1x128xbf16>
    %147 = tpu.concatenate %145, %146 in 1 : vector<32x31x128xbf16>, vector<32x1x128xbf16> -> vector<32x32x128xbf16>
    %148 = vector.shape_cast %147 : vector<32x32x128xbf16> to vector<1024x128xbf16>
    %149 = vector.extract_strided_slice %121 {offsets = [1, 0, 0], sizes = [31, 32, 128], strides = [1, 1, 1]} : vector<32x32x128xbf16> to vector<31x32x128xbf16>
    %cst_48 = arith.constant 0.000000e+00 : bf16
    %150 = vector.broadcast %cst_48 : bf16 to vector<1x32x128xbf16>
    %151 = tpu.concatenate %149, %150 in 0 : vector<31x32x128xbf16>, vector<1x32x128xbf16> -> vector<32x32x128xbf16>
    %cst_49 = arith.constant 0.000000e+00 : bf16
    %152 = vector.broadcast %cst_49 : bf16 to vector<32x1x128xbf16>
    %153 = vector.extract_strided_slice %151 {offsets = [0, 0, 0], sizes = [32, 31, 128], strides = [1, 1, 1]} : vector<32x32x128xbf16> to vector<32x31x128xbf16>
    %154 = tpu.concatenate %152, %153 in 1 : vector<32x1x128xbf16>, vector<32x31x128xbf16> -> vector<32x32x128xbf16>
    %155 = vector.shape_cast %154 : vector<32x32x128xbf16> to vector<1024x128xbf16>
    %156 = vector.extract_strided_slice %121 {offsets = [1, 0, 0], sizes = [31, 32, 128], strides = [1, 1, 1]} : vector<32x32x128xbf16> to vector<31x32x128xbf16>
    %cst_50 = arith.constant 0.000000e+00 : bf16
    %157 = vector.broadcast %cst_50 : bf16 to vector<1x32x128xbf16>
    %158 = tpu.concatenate %156, %157 in 0 : vector<31x32x128xbf16>, vector<1x32x128xbf16> -> vector<32x32x128xbf16>
    %159 = vector.shape_cast %158 : vector<32x32x128xbf16> to vector<1024x128xbf16>
    %160 = vector.extract_strided_slice %121 {offsets = [1, 0, 0], sizes = [31, 32, 128], strides = [1, 1, 1]} : vector<32x32x128xbf16> to vector<31x32x128xbf16>
    %cst_51 = arith.constant 0.000000e+00 : bf16
    %161 = vector.broadcast %cst_51 : bf16 to vector<1x32x128xbf16>
    %162 = tpu.concatenate %160, %161 in 0 : vector<31x32x128xbf16>, vector<1x32x128xbf16> -> vector<32x32x128xbf16>
    %163 = vector.extract_strided_slice %162 {offsets = [0, 1, 0], sizes = [32, 31, 128], strides = [1, 1, 1]} : vector<32x32x128xbf16> to vector<32x31x128xbf16>
    %cst_52 = arith.constant 0.000000e+00 : bf16
    %164 = vector.broadcast %cst_52 : bf16 to vector<32x1x128xbf16>
    %165 = tpu.concatenate %163, %164 in 1 : vector<32x31x128xbf16>, vector<32x1x128xbf16> -> vector<32x32x128xbf16>
    %166 = vector.shape_cast %165 : vector<32x32x128xbf16> to vector<1024x128xbf16>
    %167 = tpu.concatenate %128, %132, %139, %143, %144, %148, %155, %159, %166 in 1 : vector<1024x128xbf16>, vector<1024x128xbf16>, vector<1024x128xbf16>, vector<1024x128xbf16>, vector<1024x128xbf16>, vector<1024x128xbf16>, vector<1024x128xbf16>, vector<1024x128xbf16>, vector<1024x128xbf16> -> vector<1024x1152xbf16>
    %c0_53 = arith.constant 0 : index
    %c0_54 = arith.constant 0 : index
    %168 = vector.load %arg10[%c0_53, %c0_54] : memref<3x1152xbf16, #tpu.memory_space<vmem>>, vector<3x1152xbf16>
    %cst_55 = arith.constant dense<0.000000e+00> : vector<3x1024xf32>
    %169 = tpu.matmul %168, %167, %cst_55 {dimension_numbers = #tpu.dot_dimension_numbers<[1], [1], [0], [0], [0, 0, 1, 0], [], []>} : vector<3x1152xbf16>, vector<1024x1152xbf16>, vector<3x1024xf32> -> vector<3x1024xf32>
    %c0_56 = arith.constant 0 : index
    %c0_57 = arith.constant 0 : index
    %170 = vector.load %arg11[%c0_56, %c0_57] : memref<3x1xf32, #tpu.memory_space<vmem>>, vector<3x1xf32>
    %171 = vector.broadcast %170 : vector<3x1xf32> to vector<3x1024xf32>
    %172 = arith.addf %169, %171 : vector<3x1024xf32>
    %173 = math.tanh %172 : vector<3x1024xf32>
    %174 = vector.shape_cast %173 : vector<3x1024xf32> to vector<1x3x1024xf32>
    %c0_58 = arith.constant 0 : index
    %c0_59 = arith.constant 0 : index
    %c0_60 = arith.constant 0 : index
    %175 = vector.load %arg12[%c0_58, %c0_59, %c0_60] : memref<1x3x1024xf32, #tpu.memory_space<vmem>>, vector<1x3x1024xf32>
    tpu.vector_store %arg12[%c0_58, %c0_59, %c0_60], %174 {strides = array<i32>} : memref<1x3x1024xf32, #tpu.memory_space<vmem>>, vector<1x3x1024xf32>,
    return
  }
  func.func @transform_0(%arg0: i32) -> (i32, i32, i32) {
    %c0_i32 = arith.constant 0 : i32
    %c0_i32_0 = arith.constant 0 : i32
    %c0_i32_1 = arith.constant 0 : i32
    return %arg0, %c0_i32, %c0_i32_0 : i32, i32, i32
  }
  func.func @transform_1(%arg0: i32) -> (i32, i32) {
    %c0_i32 = arith.constant 0 : i32
    %c0_i32_0 = arith.constant 0 : i32
    %c0_i32_1 = arith.constant 0 : i32
    return %c0_i32, %c0_i32_0 : i32, i32
  }
  func.func @transform_2(%arg0: i32) -> (i32, i32) {
    %c0_i32 = arith.constant 0 : i32
    %c0_i32_0 = arith.constant 0 : i32
    %c0_i32_1 = arith.constant 0 : i32
    return %c0_i32, %c0_i32_0 : i32, i32
  }
  func.func @transform_3(%arg0: i32) -> (i32, i32) {
    %c0_i32 = arith.constant 0 : i32
    %c0_i32_0 = arith.constant 0 : i32
    %c0_i32_1 = arith.constant 0 : i32
    return %c0_i32, %c0_i32_0 : i32, i32
  }
  func.func @transform_4(%arg0: i32) -> (i32, i32) {
    %c0_i32 = arith.constant 0 : i32
    %c0_i32_0 = arith.constant 0 : i32
    %c0_i32_1 = arith.constant 0 : i32
    return %c0_i32, %c0_i32_0 : i32, i32
  }
  func.func @transform_5(%arg0: i32) -> (i32, i32) {
    %c0_i32 = arith.constant 0 : i32
    %c0_i32_0 = arith.constant 0 : i32
    %c0_i32_1 = arith.constant 0 : i32
    return %c0_i32, %c0_i32_0 : i32, i32
  }
  func.func @transform_6(%arg0: i32) -> (i32, i32) {
    %c0_i32 = arith.constant 0 : i32
    %c0_i32_0 = arith.constant 0 : i32
    %c0_i32_1 = arith.constant 0 : i32
    return %c0_i32, %c0_i32_0 : i32, i32
  }
  func.func @transform_7(%arg0: i32) -> (i32, i32) {
    %c0_i32 = arith.constant 0 : i32
    %c0_i32_0 = arith.constant 0 : i32
    %c0_i32_1 = arith.constant 0 : i32
    return %c0_i32, %c0_i32_0 : i32, i32
  }
  func.func @transform_8(%arg0: i32) -> (i32, i32) {
    %c0_i32 = arith.constant 0 : i32
    %c0_i32_0 = arith.constant 0 : i32
    %c0_i32_1 = arith.constant 0 : i32
    return %c0_i32, %c0_i32_0 : i32, i32
  }
  func.func @transform_9(%arg0: i32) -> (i32, i32) {
    %c0_i32 = arith.constant 0 : i32
    %c0_i32_0 = arith.constant 0 : i32
    %c0_i32_1 = arith.constant 0 : i32
    return %c0_i32, %c0_i32_0 : i32, i32
  }
  func.func @transform_10(%arg0: i32) -> (i32, i32) {
    %c0_i32 = arith.constant 0 : i32
    %c0_i32_0 = arith.constant 0 : i32
    %c0_i32_1 = arith.constant 0 : i32
    return %c0_i32, %c0_i32_0 : i32, i32
  }
  func.func @transform_11(%arg0: i32) -> (i32, i32, i32) {
    %c0_i32 = arith.constant 0 : i32
    %c0_i32_0 = arith.constant 0 : i32
    %c0_i32_1 = arith.constant 0 : i32
    return %arg0, %c0_i32, %c0_i32_0 : i32, i32, i32
  }
}

</mosaic_0001>

<bundles_post_ra>
// kernel: cifar10g_forward.1
= control target key start
LH: loop header
LB: loop body
LE: loop exit
PB: predicated region body
PF: predicated region fallthrough
CT: control target
= control target key end

     0   :  { %16 = vsyncpa [#allocation3], 0  ;;  %s15571_s0 = inlined_call_operand.vmem [shape: f32[2,1,32], index: 0, kind: input, shape index: {}]   ;;  %s15572_s1 = inlined_call_operand.hbm [shape: bf16[32,4096], index: 1, kind: input, shape index: {}]   ;;  %s15573_s2 = inlined_call_operand.hbm [shape: f32[1,4096], index: 2, kind: input, shape index: {}]   ;;  %s15574_s3 = inlined_call_operand.hbm [shape: bf16[1024,512], index: 3, kind: input, shape index: {}]   ;;  %s15575_s4 = inlined_call_operand.vmem [shape: f32[1,512], index: 4, kind: input, shape index: {}]   ;;  %s15576_s5 = inlined_call_operand.hbm [shape: bf16[512,512], index: 5, kind: input, shape index: {}]   ;;  %s15577_s6 = inlined_call_operand.hbm [shape: f32[1,512], index: 6, kind: input, shape index: {}]   ;;  %s15578_s7 = inlined_call_operand.hbm [shape: bf16[512,512], index: 7, kind: input, shape index: {}]   ;;  %s15579_s8 = inlined_call_operand.hbm [shape: f32[1,512], index: 8, kind: input, shape index: {}]   ;;  %s15580_s9 = inlined_call_operand.vmem [shape: bf16[3,1152], index: 9, kind: input, shape index: {}]   ;;  %s15581_s10 = inlined_call_operand.vmem [shape: f32[3,1], index: 10, kind: input, shape index: {}]   ;;  %s15582_s11 = inlined_call_operand.vmem [shape: f32[2,3,1024], index: 11, kind: output, shape index: {}]  }
   0x1   :  { %17 = vsyncpa [#allocation5], 0 }
   0x2   :  { %18 = vsyncpa [#allocation8], 0 }
   0x3   :  { %19 = vsyncpa [#allocation11], 0  ;;  %s12255_s17 = smov 0  }
   0x4 LB: > { %s12181_s18 = smov [#allocation4]   ;;  %s12261_s20 = sadd.s32 4294967295, %s12179_s17   ;;  %s12179_s17 = sphi %s12255_s17, %s25_s17  }
   0x5   : > { %s318_s19 = sshll.u32 %s12181_s18, 4  ;;  %p10298_p0 = scmp.ge.s32.totalorder %s12179_s17, 1  ;;  %s319_s19 = int_to_ptr.vmem [resolvable:$true] %s318_s19 }
   0x6   : > { %p292_p1 = scmp.lt.s32.totalorder %s12179_s17, 3  ;;  %p11151_p2 = scmp.eq.s32.totalorder %s12261_s20, 0 }
   0x7   : > { %s12182_s22 = smov [#allocation7]   ;;  %s12183_s25 = smov [#allocation10]  }
   0x8   : > { %p12266_p3 = pnand %p10298_p0, %p292_p1  ;;  %s344_s23 = sshll.u32 %s12182_s22, 4  ;;  %s12272_s23 = int_to_ptr.vmem [resolvable:$true] %s344_s23 }
   0x9   : > { %s368_s26 = sshll.u32 %s12183_s25, 4  ;;  %s12184_s27 = smov [#allocation2]   ;;  %s12280_s26 = int_to_ptr.vmem [resolvable:$true] %s368_s26 }
   0xa   : > { %p11129_p4 = pneg %p12266_p3  ;;  %s12282_s28 = sshll.u32 %s12184_s27, 4  ;;  %s305_s28 = int_to_ptr.vmem [resolvable:$true] %s12282_s28 }
   0xb   : > { %s11986_s30 = scalar_lea.vmem %s319_s19, 512  ;;  %p11994_p10 = scmp.lt.s32.totalorder %s319_s19, %s319_s19 }
   0xc   : > { %p12276_p5 = pnand %p11151_p2, %p11129_p4  ;;  %p11987_p7 = scmp.ne.s32.totalorder %s319_s19, %s11986_s30 }
   0xd   : > { %p11995_p11 = scmp.lt.s32.totalorder %s11986_s30, %s11986_s30 }
   0xe   : > { %p12286_p6 = pneg %p12276_p5 }
   0xf   : > { %p11996_p12 = por %p11995_p11, %p11994_p10 }
  0x10   : > { %p11989_p8 = pnand %p11987_p7, %p12286_p6 }
  0x12   : > { %p11990_p9 = pneg %p11989_p8 }
  0x14   : > { %p11997_p13 = pnand %p11996_p12, %p11990_p9 }
  0x16   : > { %12000 = shalt.err (!%p11997_p13)
}
  0x17   : > { %11135 = dma.hbm_to_vmem [thread:$0]  (!%p12276_p5), %s15573_s2, 512, %s319_s19, [#allocation5]  }
  0x18   : > { %s12012_s14 = scalar_lea.vmem %s12272_s23, 16384  ;;  %p12020_p7 = scmp.lt.s32.totalorder %s12272_s23, %s12272_s23 }
  0x19   : > { %p12013_p0 = scmp.ne.s32.totalorder %s12272_s23, %s12012_s14  ;;  %p12021_p8 = scmp.lt.s32.totalorder %s12012_s14, %s12012_s14 }
  0x1b   : > { %p12015_p1 = pnand %p12013_p0, %p12286_p6  ;;  %p12022_p9 = por %p12021_p8, %p12020_p7 }
  0x1d   : > { %p12016_p4 = pneg %p12015_p1 }
  0x1f   : > { %p12023_p10 = pnand %p12022_p9, %p12016_p4 }
  0x21   : > { %12026 = shalt.err (!%p12023_p10)
}
  0x22   : > { %s12185_s15 = smov 256   ;;  %s12186_s16 = smov 16  }
  0x23   : > { %11141 = dma.hbm_to_vmem [thread:$0]  (!%p12276_p5), %s15576_s5, 16384, %s12272_s23, [#allocation8], %s12185_s15, %s12185_s15, %s12186_s16  }
  0x24   : > { %s12038_s22 = scalar_lea.vmem %s12280_s26, 16384  ;;  %p12046_p0 = scmp.lt.s32.totalorder %s12280_s26, %s12280_s26 }
  0x25   : > { %p12039_p11 = scmp.ne.s32.totalorder %s12280_s26, %s12038_s22  ;;  %p12047_p1 = scmp.lt.s32.totalorder %s12038_s22, %s12038_s22 }
  0x27   : > { %p12041_p12 = pnand %p12039_p11, %p12286_p6  ;;  %p12048_p4 = por %p12047_p1, %p12046_p0 }
  0x29   : > { %p12042_p13 = pneg %p12041_p12 }
  0x2b   : > { %p12049_p7 = pnand %p12048_p4, %p12042_p13 }
  0x2d   : > { %12052 = shalt.err (!%p12049_p7)
}
  0x2e   : > { %11147 = dma.hbm_to_vmem [thread:$0]  (!%p12276_p5), %s15578_s7, 16384, %s12280_s26, [#allocation11], %s12185_s15, %s12185_s15, %s12186_s16  }
  0x2f   : > { %s12064_s23 = scalar_lea.vmem %s305_s28, 8192  ;;  %p12072_p11 = scmp.lt.s32.totalorder %s305_s28, %s305_s28 }
  0x30   : > { %p12065_p8 = scmp.ne.s32.totalorder %s305_s28, %s12064_s23  ;;  %p12073_p12 = scmp.lt.s32.totalorder %s12064_s23, %s12064_s23 }
  0x32   : > { %p12067_p9 = pnand %p12065_p8, %p12286_p6  ;;  %p12074_p13 = por %p12073_p12, %p12072_p11 }
  0x34   : > { %p12068_p10 = pneg %p12067_p9 }
  0x36   : > { %p12075_p0 = pnand %p12074_p13, %p12068_p10 }
  0x38   : > { %12078 = shalt.err (!%p12075_p0)
}
  0x39   : > { %s12187_s30 = smov 2048   ;;  %s12188_s12 = smov 128  }
  0x3a   : > { %11132 = dma.hbm_to_vmem [thread:$0]  (!%p12276_p5), %s15572_s1, 8192, %s305_s28, [#allocation3], %s12187_s30, %s12187_s30, %s12188_s12  }
  0x3b   : > { %s12189_s26 = smov [#allocation6]   ;;  %s12190_s19 = smov [#allocation9]  }
  0x3c   : > { %s328_s18 = sshll.u32 %s12189_s26, 4  ;;  %s358_s22 = sshll.u32 %s12190_s19, 4  ;;  %s329_s18 = int_to_ptr.vmem [resolvable:$true] %s328_s18  ;;  %s359_s22 = int_to_ptr.vmem [resolvable:$true] %s358_s22 }
  0x3d   : > { %s12090_s25 = scalar_lea.vmem %s329_s18, 32768  ;;  %p12098_p8 = scmp.lt.s32.totalorder %s329_s18, %s329_s18 }
  0x3e   : > { %p12091_p1 = scmp.ne.s32.totalorder %s329_s18, %s12090_s25  ;;  %p12099_p9 = scmp.lt.s32.totalorder %s12090_s25, %s12090_s25 }
  0x40   : > { %p12093_p4 = pnand %p12091_p1, %p12286_p6  ;;  %p12100_p10 = por %p12099_p9, %p12098_p8 }
  0x42   : > { %p12094_p7 = pneg %p12093_p4 }
  0x44   : > { %p12101_p11 = pnand %p12100_p10, %p12094_p7 }
  0x46   : > { %12104 = shalt.err (!%p12101_p11)
}
  0x47   : > { %11138 = dma.hbm_to_vmem [thread:$0]  (!%p12276_p5), %s15574_s3, 32768, %s329_s18, [#allocation5], %s12185_s15, %s12185_s15, %s12186_s16  }
  0x48   : > { %s12116_s23 = scalar_lea.vmem %s359_s22, 64  ;;  %p12124_p1 = scmp.lt.s32.totalorder %s359_s22, %s359_s22 }
  0x49   : > { %p12117_p12 = scmp.ne.s32.totalorder %s359_s22, %s12116_s23  ;;  %p12125_p4 = scmp.lt.s32.totalorder %s12116_s23, %s12116_s23 }
  0x4b   : > { %p12119_p13 = pnand %p12117_p12, %p12286_p6  ;;  %p12126_p7 = por %p12125_p4, %p12124_p1 }
  0x4d   : > { %p12120_p0 = pneg %p12119_p13 }
  0x4f   : > { %p12127_p8 = pnand %p12126_p7, %p12120_p0 }
  0x51   : > { %12130 = shalt.err (!%p12127_p8)
}
  0x52   : > { %11144 = dma.hbm_to_vmem [thread:$0]  (!%p12276_p5), %s15577_s6, 64, %s359_s22, [#allocation8]  }
  0x53   : > { %s12191_s13 = smov [#allocation12]  }
  0x54   : > { %s382_s15 = sshll.u32 %s12191_s13, 4  ;;  %s383_s15 = int_to_ptr.vmem [resolvable:$true] %s382_s15 }
  0x55   : > { %s12142_s16 = scalar_lea.vmem %s383_s15, 64  ;;  %p12150_p12 = scmp.lt.s32.totalorder %s383_s15, %s383_s15 }
  0x56   : > { %p12143_p9 = scmp.ne.s32.totalorder %s383_s15, %s12142_s16  ;;  %p12151_p13 = scmp.lt.s32.totalorder %s12142_s16, %s12142_s16 }
  0x58   : > { %p12145_p10 = pnand %p12143_p9, %p12286_p6  ;;  %p12152_p1 = por %p12151_p13, %p12150_p12 }
  0x5a   : > { %p12146_p11 = pneg %p12145_p10 }
  0x5c   : > { %p12153_p0 = pnand %p12152_p1, %p12146_p11 }
  0x5e   : > { %12156 = shalt.err (!%p12153_p0)
}
  0x5f   : > { %11150 = dma.hbm_to_vmem [thread:$0]  (!%p12276_p5), %s15579_s8, 64, %s383_s15, [#allocation11]  }
  0x60   : > { %407 = sbr.rel (%p12266_p3) target bundleno = 2827 (0xb0b), region = 64 }
  0x65   : > { %12162 = dma.done.wait (%p11151_p2), [#allocation3], 8192  }
  0x66   : > { %12164 = vsyncadd (%p11151_p2), [#allocation3], 4294959104 }
  0x67   : > { %12166 = dma.done.wait (%p11151_p2), [#allocation5], 33280  }
  0x68   : > { %12168 = vsyncadd (%p11151_p2), [#allocation5], 4294934016 }
  0x69   : > { %12170 = dma.done.wait (%p11151_p2), [#allocation8], 16448  }
  0x6a   : > { %12172 = vsyncadd (%p11151_p2), [#allocation8], 4294950848 }
  0x6b   : > { %12174 = dma.done.wait (%p11151_p2), [#allocation11], 16448  }
  0x6c   : > { %12176 = vsyncadd (%p11151_p2), [#allocation11], 4294950848  ;;  %p469_p3 = scmp.lt.s32.totalorder %s12261_s20, 1  ;;  %v15583_v0 = vmov 0   ;;  %v512_v1 = vld [vmem:[#allocation2 + $0x100] sm:$0xff]  ;;  %v513_v3 = vld [vmem:[#allocation2 + $0x108] sm:$0xff] }
  0x6d   : > { %1068 = vmatprep.mubr.bf16.mxu0 %v15583_v0  ;;  %1109 = vmatprep.mubr.bf16.mxu1 %v15583_v0  ;;  %v528_v2 = vld [vmem:[#allocation2 + $0x180] sm:$0xff]  ;;  %v529_v5 = vld [vmem:[#allocation2 + $0x188] sm:$0xff]  ;;  %v514_v15 = vld [vmem:[#allocation2 + $0x110] sm:$0xff]  ;;  %vm1032_vm0 = vcmask 261120   ;;  %vm1820_vm1 = vsmask.f32 256 }
  0x6e   : > { %11187 = vset.pattern.permute.xlu0 %v15583_v0  ;;  %s16068_s20 = smov (!%p469_p3, %s12261_s20), 1  ;;  %v10350_v4 = vcombine.high %v512_v1, %v528_v2  ;;  %v10349_v6 = vcombine.low %v512_v1, %v528_v2  ;;  %v480_v7 = vld [vmem:[#allocation2] sm:$0xff]  ;;  %v10352_v9 = vcombine.high %v513_v3, %v529_v5  ;;  %v10351_v10 = vcombine.low %v513_v3, %v529_v5  ;;  %v481_v12 = vld [vmem:[#allocation2 + $0x8] sm:$0xff]  ;;  %v530_v16 = vld [vmem:[#allocation2 + $0x190] sm:$0xff] }
  0x6f   : > { %v496_v8 = vld [vmem:[#allocation2 + $0x80] sm:$0xff]  ;;  %s471_s29 = scalar_lea.vmem %s15571_s0, %s16068_s20  ;;  %v497_v13 = vld [vmem:[#allocation2 + $0x88] sm:$0xff]  ;;  %v515_v17 = vld [vmem:[#allocation2 + $0x118] sm:$0xff]  ;;  %v10354_v22 = vcombine.high %v514_v15, %v530_v16  ;;  %v10353_v29 = vcombine.low %v514_v15, %v530_v16  ;;  %vm1825_vm2 = vsmask.f32 770  ;;  %vm2230_vm7 = vcmask 1041408  }
  0x70   : > { %v10318_v11 = vcombine.high %v480_v7, %v496_v8  ;;  %1048 = vmatprep.subr.bf16.mxu0 %v10350_v4  ;;  %v10320_v14 = vcombine.high %v481_v12, %v497_v13  ;;  %1089 = vmatprep.subr.bf16.mxu1 %v10352_v9  ;;  %v10317_v18 = vcombine.low %v480_v7, %v496_v8  ;;  %v478_v19 = vld [vmem:[%s471_s29] sm:$0x1]  ;;  %v531_v20 = vld [vmem:[#allocation2 + $0x198] sm:$0xff]  ;;  %v482_v24 = vld [vmem:[#allocation2 + $0x10] sm:$0xff]  ;;  %vm2231_vm8 = vsmask.f32 1280 }
  0x71   : > { %1049 = vmatpush1.bf16.msra.mxu0 %v10349_v6  ;;  %1090 = vmatpush1.bf16.msra.mxu1 %v10351_v10  ;;  %v10319_v21 = vcombine.low %v481_v12, %v497_v13  ;;  %v10356_v23 = vcombine.high %v515_v17, %v531_v20  ;;  %v498_v25 = vld [vmem:[#allocation2 + $0x90] sm:$0xff]  ;;  %v12388_v26 = vpack.c.bf16 %v478_v19, %v478_v19  ;;  %v483_v27 = vld [vmem:[#allocation2 + $0x18] sm:$0xff]  ;;  %v516_v33 = vld [vmem:[#allocation2 + $0x120] sm:$0xff]  ;;  %vm1828_vm9 = vsmask.f32 1284  ;;  %s11028_s15 = sshll.u32 %s16068_s20, 5 }
  0x72   : > { %1050 = vmatprep.subr.bf16.mxu0 %v10318_v11  ;;  %1091 = vmatprep.subr.bf16.mxu1 %v10320_v14  ;;  %v499_v28 = vld [vmem:[#allocation2 + $0x98] sm:$0xff]  ;;  %v10355_v30 = vcombine.low %v515_v17, %v531_v20  ;;  %v10322_v31 = vcombine.high %v482_v24, %v498_v25  ;;  %v532_v34 = vld [vmem:[#allocation2 + $0x1a0] sm:$0xff]  ;;  %v517_v35 = vld [vmem:[#allocation2 + $0x128] sm:$0xff]  ;;  %v10321_v37 = vcombine.low %v482_v24, %v498_v25  ;;  %vm1834_vm10 = vsmask.f32 1798  ;;  %s14887_s26 = scalar_lea.vmem %s15582_s11, %s11028_s15 }
  0x73   : > { %v10324_v32 = vcombine.high %v483_v27, %v499_v28  ;;  %v533_v36 = vld [vmem:[#allocation2 + $0x1a8] sm:$0xff]  ;;  %v10323_v38 = vcombine.low %v483_v27, %v499_v28  ;;  %v10358_v39 = vcombine.high %v516_v33, %v532_v34  ;;  %v484_v41 = vld [vmem:[#allocation2 + $0x20] sm:$0xff]  ;;  %v10357_v45 = vcombine.low %v516_v33, %v532_v34  ;;  %v518_v49 = vld [vmem:[#allocation2 + $0x130] sm:$0xff] }
  0x74   : > { %v10360_v40 = vcombine.high %v517_v35, %v533_v36  ;;  %v500_v42 = vld [vmem:[#allocation2 + $0xa0] sm:$0xff]  ;;  %v485_v43 = vld [vmem:[#allocation2 + $0x28] sm:$0xff]  ;;  %v10359_v46 = vcombine.low %v517_v35, %v533_v36  ;;  %v534_v50 = vld [vmem:[#allocation2 + $0x1b0] sm:$0xff] }
  0x75   : > { %1051 = vmatpush1.bf16.msra.mxu0 %v10317_v18  ;;  %1092 = vmatpush1.bf16.msra.mxu1 %v10319_v21  ;;  %v501_v44 = vld [vmem:[#allocation2 + $0xa8] sm:$0xff]  ;;  %v10326_v47 = vcombine.high %v484_v41, %v500_v42  ;;  %v519_v51 = vld [vmem:[#allocation2 + $0x138] sm:$0xff]  ;;  %v10325_v53 = vcombine.low %v484_v41, %v500_v42  ;;  %v486_v54 = vld [vmem:[#allocation2 + $0x30] sm:$0xff]  ;;  %v10362_v56 = vcombine.high %v518_v49, %v534_v50 }
  0x76   : > { %1130 = vmatprep.subr.bf16.mxu0 %v10354_v22  ;;  %1171 = vmatprep.subr.bf16.mxu1 %v10356_v23  ;;  %v10328_v48 = vcombine.high %v485_v43, %v501_v44  ;;  %v535_v52 = vld [vmem:[#allocation2 + $0x1b8] sm:$0xff]  ;;  %v10327_v55 = vcombine.low %v485_v43, %v501_v44  ;;  %v502_v57 = vld [vmem:[#allocation2 + $0xb0] sm:$0xff]  ;;  %v10361_v61 = vcombine.low %v518_v49, %v534_v50  ;;  %v520_v62 = vld [vmem:[#allocation2 + $0x140] sm:$0xff] }
  0x77   : > { %v487_v58 = vld [vmem:[#allocation2 + $0x38] sm:$0xff]  ;;  %v10364_v60 = vcombine.high %v519_v51, %v535_v52  ;;  %v536_v63 = vld [vmem:[#allocation2 + $0x1c0] sm:$0xff]  ;;  %v10363_v1 = vcombine.low %v519_v51, %v535_v52  ;;  %v10330_v2 = vcombine.high %v486_v54, %v502_v57  ;;  %v521_v3 = vld [vmem:[#allocation2 + $0x148] sm:$0xff]  ;;  %v10329_v6 = vcombine.low %v486_v54, %v502_v57 }
  0x78   : > { %10381 = vmatmul.mubr.msk.bf16.vlgmr.msra.gmra.mxu0 %vm1032_vm0, %v12388_v26  ;;  %10382 = vmatmul.mubr.msk.bf16.vlgmr.msra.gmra.mxu1 %vm1032_vm0, %v12388_v26  ;;  %v503_v59 = vld [vmem:[#allocation2 + $0xb8] sm:$0xff]  ;;  %v537_v4 = vld [vmem:[#allocation2 + $0x1c8] sm:$0xff]  ;;  %v488_v7 = vld [vmem:[#allocation2 + $0x40] sm:$0xff]  ;;  %v10366_v10 = vcombine.high %v520_v62, %v536_v63  ;;  %v10365_v14 = vcombine.low %v520_v62, %v536_v63 }
  0x79   : > { %1131 = vmatpush1.bf16.msra.mxu0 %v10353_v29  ;;  %1172 = vmatpush1.bf16.msra.mxu1 %v10355_v30  ;;  %v10332_v5 = vcombine.high %v487_v58, %v503_v59  ;;  %v504_v8 = vld [vmem:[#allocation2 + $0xc0] sm:$0xff]  ;;  %v10331_v9 = vcombine.low %v487_v58, %v503_v59  ;;  %v489_v11 = vld [vmem:[#allocation2 + $0x48] sm:$0xff]  ;;  %v10368_v13 = vcombine.high %v521_v3, %v537_v4  ;;  %v522_v15 = vld [vmem:[#allocation2 + $0x150] sm:$0xff] }
  0x7a   : > { %1132 = vmatprep.subr.bf16.mxu0 %v10322_v31  ;;  %1173 = vmatprep.subr.bf16.mxu1 %v10324_v32  ;;  %v505_v12 = vld [vmem:[#allocation2 + $0xc8] sm:$0xff]  ;;  %v538_v16 = vld [vmem:[#allocation2 + $0x1d0] sm:$0xff]  ;;  %v10367_v17 = vcombine.low %v521_v3, %v537_v4  ;;  %v10334_v18 = vcombine.high %v488_v7, %v504_v8  ;;  %v523_v19 = vld [vmem:[#allocation2 + $0x158] sm:$0xff]  ;;  %v10333_v22 = vcombine.low %v488_v7, %v504_v8 }
  0x7b   : > { %1150 = vmatprep.mubr.bf16.mxu0 %v15583_v0  ;;  %1191 = vmatprep.mubr.bf16.mxu1 %v15583_v0  ;;  %v539_v20 = vld [vmem:[#allocation2 + $0x1d8] sm:$0xff]  ;;  %v10336_v21 = vcombine.high %v489_v11, %v505_v12  ;;  %v490_v23 = vld [vmem:[#allocation2 + $0x50] sm:$0xff]  ;;  %v10335_v25 = vcombine.low %v489_v11, %v505_v12  ;;  %v10370_v27 = vcombine.high %v522_v15, %v538_v16  ;;  %v524_v32 = vld [vmem:[#allocation2 + $0x160] sm:$0xff] }
  0x7c   : > { %v506_v24 = vld [vmem:[#allocation2 + $0xd0] sm:$0xff]  ;;  %v491_v28 = vld [vmem:[#allocation2 + $0x58] sm:$0xff]  ;;  %v10372_v30 = vcombine.high %v523_v19, %v539_v20  ;;  %v10369_v31 = vcombine.low %v522_v15, %v538_v16  ;;  %v540_v33 = vld [vmem:[#allocation2 + $0x1e0] sm:$0xff]  ;;  %v10371_v34 = vcombine.low %v523_v19, %v539_v20 }
  0x7d   : > { %1133 = vmatpush1.bf16.msra.mxu0 %v10321_v37  ;;  %1174 = vmatpush1.bf16.msra.mxu1 %v10323_v38  ;;  %v507_v29 = vld [vmem:[#allocation2 + $0xd8] sm:$0xff]  ;;  %v10338_v35 = vcombine.high %v490_v23, %v506_v24  ;;  %v525_v36 = vld [vmem:[#allocation2 + $0x168] sm:$0xff]  ;;  %v508_v41 = vld [vmem:[#allocation2 + $0xe0] sm:$0xff]  ;;  %v10374_v43 = vcombine.high %v524_v32, %v540_v33 }
  0x7e   : > { %1212 = vmatprep.subr.bf16.mxu0 %v10358_v39  ;;  %1253 = vmatprep.subr.bf16.mxu1 %v10360_v40  ;;  %v541_v37 = vld [vmem:[#allocation2 + $0x1e8] sm:$0xff]  ;;  %v10340_v38 = vcombine.high %v491_v28, %v507_v29  ;;  %v10337_v39 = vcombine.low %v490_v23, %v506_v24  ;;  %v492_v40 = vld [vmem:[#allocation2 + $0x60] sm:$0xff]  ;;  %v10339_v42 = vcombine.low %v491_v28, %v507_v29  ;;  %v542_v49 = vld [vmem:[#allocation2 + $0x1f0] sm:$0xff] }
  0x7f   : > { %v493_v44 = vld [vmem:[#allocation2 + $0x68] sm:$0xff]  ;;  %v10375_v50 = vcombine.low %v525_v36, %v541_v37  ;;  %v10342_v51 = vcombine.high %v492_v40, %v508_v41  ;;  %v527_v52 = vld [vmem:[#allocation2 + $0x178] sm:$0xff]  ;;  %v510_v57 = vld [vmem:[#allocation2 + $0xf0] sm:$0xff] }
  0x80   : > { %10383 = vmatmul.mubr.msk.bf16.vlgmr.msra.gmra.mxu0 %vm1032_vm0, %v12388_v26  ;;  %10384 = vmatmul.mubr.msk.bf16.vlgmr.msra.gmra.mxu1 %vm1032_vm0, %v12388_v26  ;;  %v11188_v7 = vld [vmem:[#allocation6 + $0xe0] ss:$16 sps:$4 sm:$0xff]   ;;  %v11193_v8 = vld [vmem:[#allocation6 + $0x2e4] ss:$16 sps:$4 sm:$0xff]   ;;  %vm12572_vm15 = vmand %vm2230_vm7, %vm2231_vm8 }
  0x81   : > { %1213 = vmatpush1.bf16.msra.mxu0 %v10357_v45  ;;  %1254 = vmatpush1.bf16.msra.mxu1 %v10359_v46  ;;  %v509_v45 = vld [vmem:[#allocation2 + $0xe8] sm:$0xff]  ;;  %v10376_v46 = vcombine.high %v525_v36, %v541_v37  ;;  %v11194_v11 = vld [vmem:[#allocation6 + $0xc0] ss:$16 sps:$4 sm:$0xff]   ;;  %v11199_v12 = vld [vmem:[#allocation6 + $0x2c4] ss:$16 sps:$4 sm:$0xff]  }
  0x82   : > { %1214 = vmatprep.subr.bf16.mxu0 %v10326_v47  ;;  %1255 = vmatprep.subr.bf16.mxu1 %v10328_v48  ;;  %v10373_v47 = vcombine.low %v524_v32, %v540_v33  ;;  %v526_v48 = vld [vmem:[#allocation2 + $0x170] sm:$0xff]  ;;  %v10344_v54 = vcombine.high %v493_v44, %v509_v45  ;;  %v10343_v58 = vcombine.low %v493_v44, %v509_v45 }
  0x83   : > { %1232 = vmatprep.mubr.bf16.mxu0 %v15583_v0  ;;  %1273 = vmatprep.mubr.bf16.mxu1 %v15583_v0  ;;  %v10378_v59 = vcombine.high %v526_v48, %v542_v49  ;;  %v10377_v63 = vcombine.low %v526_v48, %v542_v49  ;;  %v11200_v15 = vld [vmem:[#allocation6 + $0xa0] ss:$16 sps:$4 sm:$0xff]   ;;  %v11211_v19 = vld [vmem:[#allocation6 + $0x284] ss:$16 sps:$4 sm:$0xff]  }
  0x84   : > { %v11203_v16 = vld [vmem:[#allocation6 + $0x2a0] ss:$16 sps:$4 sm:$0xff]   ;;  %v11217_v23 = vld [vmem:[#allocation6 + $0x264] ss:$16 sps:$4 sm:$0xff]  }
  0x85   : > { %1215 = vmatpush1.bf16.msra.mxu0 %v10325_v53  ;;  %1256 = vmatpush1.bf16.msra.mxu1 %v10327_v55  ;;  %v543_v53 = vld [vmem:[#allocation2 + $0x1f8] sm:$0xff]  ;;  %v10341_v55 = vcombine.low %v492_v40, %v508_v41  ;;  %v11209_v20 = vld [vmem:[#allocation6 + $0x280] ss:$16 sps:$4 sm:$0xff]   ;;  %v11223_v28 = vld [vmem:[#allocation6 + $0x244] ss:$16 sps:$4 sm:$0xff]  }
  0x86   : > { %1294 = vmatprep.subr.bf16.mxu0 %v10362_v56  ;;  %1335 = vmatprep.subr.bf16.mxu1 %v10364_v60  ;;  %v494_v56 = vld [vmem:[#allocation2 + $0x70] sm:$0xff]  ;;  %v495_v60 = vld [vmem:[#allocation2 + $0x78] sm:$0xff]  ;;  %v10380_v62 = vcombine.high %v527_v52, %v543_v53 }
  0x87   : > { %v10345_v4 = vcombine.low %v494_v56, %v510_v57  ;;  %v11215_v24 = vld [vmem:[#allocation6 + $0x260] ss:$16 sps:$4 sm:$0xff]   ;;  %v11229_v32 = vld [vmem:[#allocation6 + $0x224] ss:$16 sps:$4 sm:$0xff]  }
  0x88   : > { %10385 = vmatmul.mubr.msk.bf16.vlgmr.msra.gmra.mxu0 %vm1032_vm0, %v12388_v26  ;;  %10386 = vmatmul.mubr.msk.bf16.vlgmr.msra.gmra.mxu1 %vm1032_vm0, %v12388_v26  ;;  %v11221_v29 = vld [vmem:[#allocation6 + $0x240] ss:$16 sps:$4 sm:$0xff]   ;;  %v11235_v36 = vld [vmem:[#allocation6 + $0x204] ss:$16 sps:$4 sm:$0xff]  }
  0x89   : > { %1295 = vmatpush1.bf16.msra.mxu0 %v10361_v61  ;;  %1336 = vmatpush1.bf16.msra.mxu1 %v10363_v1  ;;  %v511_v61 = vld [vmem:[#allocation2 + $0xf8] sm:$0xff]  ;;  %v10379_v1 = vcombine.low %v527_v52, %v543_v53  ;;  %v11227_v33 = vld [vmem:[#allocation6 + $0x220] ss:$16 sps:$4 sm:$0xff]   ;;  %v11241_v40 = vld [vmem:[#allocation6 + $0x3e4] ss:$16 sps:$4 sm:$0xff]  }
  0x8a   : > { %1296 = vmatprep.subr.bf16.mxu0 %v10330_v2  ;;  %1337 = vmatprep.subr.bf16.mxu1 %v10332_v5  ;;  %v10346_v2 = vcombine.high %v494_v56, %v510_v57  ;;  %v10348_v3 = vcombine.high %v495_v60, %v511_v61  ;;  %v10347_v5 = vcombine.low %v495_v60, %v511_v61  ;;  %v11233_v37 = vld [vmem:[#allocation6 + $0x200] ss:$16 sps:$4 sm:$0xff]   ;;  %v11247_v44 = vld [vmem:[#allocation6 + $0x3c4] ss:$16 sps:$4 sm:$0xff]  }
  0x8b   : > { %1314 = vmatprep.mubr.bf16.mxu0 %v15583_v0  ;;  %1355 = vmatprep.mubr.bf16.mxu1 %v15583_v0  ;;  %v11239_v41 = vld [vmem:[#allocation6 + $0x3e0] ss:$16 sps:$4 sm:$0xff]   ;;  %v11253_v48 = vld [vmem:[#allocation6 + $0x3a4] ss:$16 sps:$4 sm:$0xff]  }
  0x8c   : > { %v11245_v45 = vld [vmem:[#allocation6 + $0x3c0] ss:$16 sps:$4 sm:$0xff]   ;;  %v11259_v52 = vld [vmem:[#allocation6 + $0x384] ss:$16 sps:$4 sm:$0xff]  }
  0x8d   : > { %1297 = vmatpush1.bf16.msra.mxu0 %v10329_v6  ;;  %1338 = vmatpush1.bf16.msra.mxu1 %v10331_v9  ;;  %v11190_v6 = vld [vmem:[#allocation6 + $0xe4] ss:$16 sps:$4 sm:$0xff]   ;;  %v11191_v9 = vld [vmem:[#allocation6 + $0x2e0] ss:$16 sps:$4 sm:$0xff]  }
  0x8e   : > { %1376 = vmatprep.subr.bf16.mxu0 %v10366_v10  ;;  %1417 = vmatprep.subr.bf16.mxu1 %v10368_v13  ;;  %v11196_v10 = vld [vmem:[#allocation6 + $0xc4] ss:$16 sps:$4 sm:$0xff]   ;;  %v11197_v13 = vld [vmem:[#allocation6 + $0x2c0] ss:$16 sps:$4 sm:$0xff]  }
  0x8f   : > { %v11251_v49 = vld [vmem:[#allocation6 + $0x3a0] ss:$16 sps:$4 sm:$0xff]   ;;  %v11265_v56 = vld [vmem:[#allocation6 + $0x364] ss:$16 sps:$4 sm:$0xff]  }
  0x90   : > { %10387 = vmatmul.mubr.msk.bf16.vlgmr.msra.gmra.mxu0 %vm1032_vm0, %v12388_v26  ;;  %10388 = vmatmul.mubr.msk.bf16.vlgmr.msra.gmra.mxu1 %vm1032_vm0, %v12388_v26  ;;  %v11257_v53 = vld [vmem:[#allocation6 + $0x380] ss:$16 sps:$4 sm:$0xff]   ;;  %v11271_v60 = vld [vmem:[#allocation6 + $0x344] ss:$16 sps:$4 sm:$0xff]  }
  0x91   : > { %1377 = vmatpush1.bf16.msra.mxu0 %v10365_v14  ;;  %1418 = vmatpush1.bf16.msra.mxu1 %v10367_v17  ;;  %v11202_v14 = vld [vmem:[#allocation6 + $0xa4] ss:$16 sps:$4 sm:$0xff]   ;;  %v11263_v57 = vld [vmem:[#allocation6 + $0x360] ss:$16 sps:$4 sm:$0xff]  }
  0x92   : > { %1378 = vmatprep.subr.bf16.mxu0 %v10334_v18  ;;  %1419 = vmatprep.subr.bf16.mxu1 %v10336_v21  ;;  %v11208_v17 = vld [vmem:[#allocation6 + $0x84] ss:$16 sps:$4 sm:$0xff]   ;;  %v11206_v18 = vld [vmem:[#allocation6 + $0x80] ss:$16 sps:$4 sm:$0xff]  }
  0x93   : > { %1396 = vmatprep.mubr.bf16.mxu0 %v15583_v0  ;;  %1437 = vmatprep.mubr.bf16.mxu1 %v15583_v0  ;;  %v11214_v21 = vld [vmem:[#allocation6 + $0x64] ss:$16 sps:$4 sm:$0xff]   ;;  %v11269_v61 = vld [vmem:[#allocation6 + $0x340] ss:$16 sps:$4 sm:$0xff]  }
  0x95   : > { %1379 = vmatpush1.bf16.msra.mxu0 %v10333_v22  ;;  %1420 = vmatpush1.bf16.msra.mxu1 %v10335_v25  ;;  %v11212_v22 = vld [vmem:[#allocation6 + $0x60] ss:$16 sps:$4 sm:$0xff]   ;;  %v11220_v25 = vld [vmem:[#allocation6 + $0x44] ss:$16 sps:$4 sm:$0xff]  }
  0x96   : > { %1458 = vmatprep.subr.bf16.mxu0 %v10370_v27  ;;  %1499 = vmatprep.subr.bf16.mxu1 %v10372_v30  ;;  %v11218_v27 = vld [vmem:[#allocation6 + $0x40] ss:$16 sps:$4 sm:$0xff]   ;;  %v11226_v30 = vld [vmem:[#allocation6 + $0x24] ss:$16 sps:$4 sm:$0xff]  }
  0x98   : > { %10389 = vmatmul.mubr.msk.bf16.vlgmr.msra.gmra.mxu0 %vm1032_vm0, %v12388_v26  ;;  %10390 = vmatmul.mubr.msk.bf16.vlgmr.msra.gmra.mxu1 %vm1032_vm0, %v12388_v26 }
  0x99   : > { %1459 = vmatpush1.bf16.msra.mxu0 %v10369_v31  ;;  %1500 = vmatpush1.bf16.msra.mxu1 %v10371_v34  ;;  %v11224_v31 = vld [vmem:[#allocation6 + $0x20] ss:$16 sps:$4 sm:$0xff]   ;;  %v11232_v34 = vld [vmem:[#allocation6 + $0x4] ss:$16 sps:$4 sm:$0xff]  }
  0x9a   : > { %1460 = vmatprep.subr.bf16.mxu0 %v10338_v35  ;;  %1501 = vmatprep.subr.bf16.mxu1 %v10340_v38  ;;  %v11230_v35 = vld [vmem:[#allocation6] ss:$16 sps:$4 sm:$0xff]   ;;  %v11238_v38 = vld [vmem:[#allocation6 + $0x1e4] ss:$16 sps:$4 sm:$0xff]  }
  0x9b   : > { %1478 = vmatprep.mubr.bf16.mxu0 %v15583_v0  ;;  %1519 = vmatprep.mubr.bf16.mxu1 %v15583_v0 }
  0x9d   : > { %1461 = vmatpush1.bf16.msra.mxu0 %v10337_v39  ;;  %1502 = vmatpush1.bf16.msra.mxu1 %v10339_v42  ;;  %v11236_v39 = vld [vmem:[#allocation6 + $0x1e0] ss:$16 sps:$4 sm:$0xff]   ;;  %v11244_v42 = vld [vmem:[#allocation6 + $0x1c4] ss:$16 sps:$4 sm:$0xff]  }
  0x9e   : > { %1540 = vmatprep.subr.bf16.mxu0 %v10374_v43  ;;  %1581 = vmatprep.subr.bf16.mxu1 %v10376_v46  ;;  %v11242_v43 = vld [vmem:[#allocation6 + $0x1c0] ss:$16 sps:$4 sm:$0xff]   ;;  %v11250_v46 = vld [vmem:[#allocation6 + $0x1a4] ss:$16 sps:$4 sm:$0xff]  }
  0xa0   : > { %10391 = vmatmul.mubr.msk.bf16.vlgmr.msra.gmra.mxu0 %vm1032_vm0, %v12388_v26  ;;  %10392 = vmatmul.mubr.msk.bf16.vlgmr.msra.gmra.mxu1 %vm1032_vm0, %v12388_v26 }
  0xa1   : > { %1541 = vmatpush1.bf16.msra.mxu0 %v10373_v47  ;;  %1582 = vmatpush1.bf16.msra.mxu1 %v10375_v50  ;;  %v11248_v47 = vld [vmem:[#allocation6 + $0x1a0] ss:$16 sps:$4 sm:$0xff]   ;;  %v11256_v50 = vld [vmem:[#allocation6 + $0x184] ss:$16 sps:$4 sm:$0xff]  }
  0xa2   : > { %1542 = vmatprep.subr.bf16.mxu0 %v10342_v51  ;;  %1583 = vmatprep.subr.bf16.mxu1 %v10344_v54  ;;  %v11254_v51 = vld [vmem:[#allocation6 + $0x180] ss:$16 sps:$4 sm:$0xff]   ;;  %v11262_v54 = vld [vmem:[#allocation6 + $0x164] ss:$16 sps:$4 sm:$0xff]  }
  0xa3   : > { %1560 = vmatprep.mubr.bf16.mxu0 %v15583_v0  ;;  %1601 = vmatprep.mubr.bf16.mxu1 %v15583_v0 }
  0xa5   : > { %1543 = vmatpush1.bf16.msra.mxu0 %v10341_v55  ;;  %1584 = vmatpush1.bf16.msra.mxu1 %v10343_v58  ;;  %v11260_v55 = vld [vmem:[#allocation6 + $0x160] ss:$16 sps:$4 sm:$0xff]  }
  0xa6   : > { %1622 = vmatprep.subr.bf16.mxu0 %v10378_v59  ;;  %1663 = vmatprep.subr.bf16.mxu1 %v10380_v62  ;;  %v11266_v58 = vld [vmem:[#allocation6 + $0x140] ss:$16 sps:$4 sm:$0xff]   ;;  %v11268_v59 = vld [vmem:[#allocation6 + $0x144] ss:$16 sps:$4 sm:$0xff]  }
  0xa7   : > { %v11274_v62 = vld [vmem:[#allocation6 + $0x124] ss:$16 sps:$4 sm:$0xff]  }
  0xa8   : > { %10393 = vmatmul.mubr.msk.bf16.vlgmr.msra.gmra.mxu0 %vm1032_vm0, %v12388_v26  ;;  %10394 = vmatmul.mubr.msk.bf16.vlgmr.msra.gmra.mxu1 %vm1032_vm0, %v12388_v26 }
  0xa9   : > { %1623 = vmatpush1.bf16.msra.mxu0 %v10377_v63  ;;  %1664 = vmatpush1.bf16.msra.mxu1 %v10379_v1  ;;  %v11272_v63 = vld [vmem:[#allocation6 + $0x120] ss:$16 sps:$4 sm:$0xff]   ;;  %v11277_v1 = vld [vmem:[#allocation6 + $0x324] ss:$16 sps:$4 sm:$0xff]  }
  0xaa   : > { %1624 = vmatprep.subr.bf16.mxu0 %v10346_v2  ;;  %1665 = vmatprep.subr.bf16.mxu1 %v10348_v3  ;;  %v11275_v2 = vld [vmem:[#allocation6 + $0x320] ss:$16 sps:$4 sm:$0xff]   ;;  %v11280_v3 = vld [vmem:[#allocation6 + $0x104] ss:$16 sps:$4 sm:$0xff]  }
  0xab   : > { %1642 = vmatprep.mubr.bf16.mxu0 %v15583_v0  ;;  %1683 = vmatprep.mubr.bf16.mxu1 %v15583_v0 }
  0xad   : > { %1625 = vmatpush1.bf16.msra.mxu0 %v10345_v4  ;;  %1666 = vmatpush1.bf16.msra.mxu1 %v10347_v5  ;;  %v11283_v4 = vld [vmem:[#allocation6 + $0x304] ss:$16 sps:$4 sm:$0xff]   ;;  %v11278_v5 = vld [vmem:[#allocation6 + $0x100] ss:$16 sps:$4 sm:$0xff]  }
  0xae   : > { %3964 = vmatprep.subr.bf16.mxu0 %v11190_v6  ;;  %4007 = vmatprep.subr.bf16.mxu1 %v11193_v8  ;;  %v11281_v6 = vld [vmem:[#allocation6 + $0x300] ss:$16 sps:$4 sm:$0xff]   ;;  %v11289_v8 = vld [vmem:[#allocation6 + $0x6e4] ss:$16 sps:$4 sm:$0xff]  }
  0xb0   : > { %10395 = vmatmul.mubr.msk.bf16.vlgmr.msra.gmra.mxu0 %vm1032_vm0, %v12388_v26  ;;  %10396 = vmatmul.mubr.msk.bf16.vlgmr.msra.gmra.mxu1 %vm1032_vm0, %v12388_v26  ;;  %v11205_v26 = vld [vmem:[#allocation6 + $0x2a4] ss:$16 sps:$4 sm:$0xff]  }
  0xb1   : > { %3965 = vmatpush1.bf16.msra.mxu0 %v11188_v7  ;;  %4008 = vmatpush1.bf16.msra.mxu1 %v11191_v9  ;;  %v11286_v7 = vld [vmem:[#allocation6 + $0x4e4] ss:$16 sps:$4 sm:$0xff]   ;;  %v872_v9 = vlaneseq }
  0xb2   : > { %3966 = vmatprep.subr.bf16.mxu0 %v11196_v10  ;;  %4009 = vmatprep.subr.bf16.mxu1 %v11199_v12 }
  0xb3   : > { %v12436_v10 = vshrl.u32 %v872_v9, 7 }
  0xb5   : > { %3967 = vmatpush1.bf16.msra.mxu0 %v11194_v11  ;;  %4010 = vmatpush1.bf16.msra.mxu1 %v11197_v13  ;;  %v12193_v11 = vmov 1966171168   ;;  %v12438_v13 = vld [vmem:[#allocation4] sm:$0xff] }
  0xb6   : > { %3968 = vmatprep.subr.bf16.mxu0 %v11202_v14  ;;  %4011 = vmatprep.subr.bf16.mxu1 %v11205_v26  ;;  %v1957_v12 = vunpack.c.l.s4 %v12193_v11  ;;  %v12441_v14 = vsub.s32 0, %v12436_v10  ;;  %v12447_v26 = vsub.s32 1, %v12436_v10 }
  0xb9   : > { %3969 = vmatpush1.bf16.msra.mxu0 %v11200_v15  ;;  %4012 = vmatpush1.bf16.msra.mxu1 %v11203_v16  ;;  %v12444_v15 = vsub.s32 2, %v12436_v10  ;;  %v12450_v16 = vsub.s32 3, %v12436_v10 }
  0xba   : > { %3970 = vmatprep.subr.bf16.mxu0 %v11208_v17  ;;  %4013 = vmatprep.subr.bf16.mxu1 %v11211_v19  ;;  %v1958_v17 = vunpack.c.0.s8 %v1957_v12  ;;  %v12456_v19 = vsub.s32 6, %v12436_v10 }
  0xbd   : > { %3971 = vmatpush1.bf16.msra.mxu0 %v11206_v18  ;;  %4014 = vmatpush1.bf16.msra.mxu1 %v11209_v20  ;;  %v12453_v18 = vsub.s32 4, %v12436_v10  ;;  %v12459_v20 = vsub.s32 5, %v12436_v10 }
  0xbe   : > { %3972 = vmatprep.subr.bf16.mxu0 %v11214_v21  ;;  %4015 = vmatprep.subr.bf16.mxu1 %v11217_v23  ;;  %v12462_v21 = vsub.s32 7, %v12436_v10  ;;  %v875_v23 = vrot.slane %v12438_v13, %v12441_v14 }
  0xc1   : > { %3973 = vmatpush1.bf16.msra.mxu0 %v11212_v22  ;;  %4016 = vmatpush1.bf16.msra.mxu1 %v11215_v24  ;;  %v12464_v22 = vld [vmem:[#allocation4 + $0x8] sm:$0xff]  ;;  %v883_v24 = vrot.slane %v12438_v13, %v12444_v15 }
  0xc2   : > { %3974 = vmatprep.subr.bf16.mxu0 %v11220_v25  ;;  %4017 = vmatprep.subr.bf16.mxu1 %v11223_v28  ;;  %v879_v25 = vrot.slane %v12438_v13, %v12447_v26  ;;  %v12474_v28 = vld [vmem:[#allocation4 + $0x10] sm:$0xff] }
  0xc5   : > { %3975 = vmatpush1.bf16.msra.mxu0 %v11218_v27  ;;  %4018 = vmatpush1.bf16.msra.mxu1 %v11221_v29  ;;  %v887_v27 = vrot.slane %v12438_v13, %v12450_v16  ;;  %v12477_v29 = vsub.s32 %v1958_v17, %v12436_v10 }
  0xc6   : > { %3976 = vmatprep.subr.bf16.mxu0 %v11226_v30  ;;  %4019 = vmatprep.subr.bf16.mxu1 %v11229_v32  ;;  %v891_v30 = vrot.slane %v12438_v13, %v12453_v18  ;;  %v895_v32 = vrot.slane %v12438_v13, %v12459_v20 }
  0xc9   : > { %3977 = vmatpush1.bf16.msra.mxu0 %v11224_v31  ;;  %4020 = vmatpush1.bf16.msra.mxu1 %v11227_v33  ;;  %v899_v31 = vrot.slane %v12438_v13, %v12456_v19  ;;  %v903_v33 = vrot.slane %v12438_v13, %v12462_v21 }
  0xca   : > { %3978 = vmatprep.subr.bf16.mxu0 %v11232_v34  ;;  %4021 = vmatprep.subr.bf16.mxu1 %v11235_v36  ;;  %v907_v34 = vrot.slane %v12464_v22, %v12441_v14  ;;  %v911_v36 = vrot.slane %v12464_v22, %v12447_v26 }
  0xcd   : > { %3979 = vmatpush1.bf16.msra.mxu0 %v11230_v35  ;;  %4022 = vmatpush1.bf16.msra.mxu1 %v11233_v37  ;;  %v915_v35 = vrot.slane %v12464_v22, %v12444_v15  ;;  %v12493_v37 = vld [vmem:[#allocation4 + $0x18] sm:$0xff] }
  0xce   : > { %3980 = vmatprep.subr.bf16.mxu0 %v11238_v38  ;;  %4023 = vmatprep.subr.bf16.mxu1 %v11241_v40  ;;  %v919_v38 = vrot.slane %v12464_v22, %v12450_v16  ;;  %v931_v40 = vrot.slane %v12464_v22, %v12456_v19 }
  0xd1   : > { %3981 = vmatpush2.bf16.msra.mxu0 %v11236_v39  ;;  %4024 = vmatpush2.bf16.msra.mxu1 %v11239_v41  ;;  %v923_v39 = vrot.slane %v12464_v22, %v12453_v18  ;;  %v927_v41 = vrot.slane %v12464_v22, %v12459_v20 }
  0xd2   : > { %3982 = vmatprep.subr.bf16.mxu0 %v11244_v42  ;;  %4025 = vmatprep.subr.bf16.mxu1 %v11247_v44  ;;  %v939_v44 = vrot.slane %v12474_v28, %v12441_v14 }
  0xd5   : > { %3983 = vmatpush2.bf16.msra.mxu0 %v11242_v43  ;;  %4026 = vmatpush2.bf16.msra.mxu1 %v11245_v45  ;;  %v935_v43 = vrot.slane %v12464_v22, %v12462_v21  ;;  %v947_v45 = vrot.slane %v12474_v28, %v12444_v15 }
  0xd6   : > { %3984 = vmatprep.subr.bf16.mxu0 %v11250_v46  ;;  %4027 = vmatprep.subr.bf16.mxu1 %v11253_v48  ;;  %v943_v46 = vrot.slane %v12474_v28, %v12447_v26 }
  0xd9   : > { %3985 = vmatpush2.bf16.msra.mxu0 %v11248_v47  ;;  %4028 = vmatpush2.bf16.msra.mxu1 %v11251_v49  ;;  %v951_v49 = vrot.slane %v12474_v28, %v12450_v16 }
  0xda   : > { %3986 = vmatprep.subr.bf16.mxu0 %v11256_v50  ;;  %4029 = vmatprep.subr.bf16.mxu1 %v11259_v52  ;;  %v955_v50 = vrot.slane %v12474_v28, %v12453_v18 }
  0xdd   : > { %3987 = vmatpush2.bf16.msra.mxu0 %v11254_v51  ;;  %4030 = vmatpush2.bf16.msra.mxu1 %v11257_v53  ;;  %v963_v51 = vrot.slane %v12474_v28, %v12456_v19 }
  0xde   : > { %3988 = vmatprep.subr.bf16.mxu0 %v11262_v54  ;;  %4031 = vmatprep.subr.bf16.mxu1 %v11265_v56  ;;  %v959_v54 = vrot.slane %v12474_v28, %v12459_v20  ;;  %v971_v56 = vrot.slane %v12493_v37, %v12441_v14 }
  0xe1   : > { %3989 = vmatpush2.bf16.msra.mxu0 %v11260_v55  ;;  %4032 = vmatpush2.bf16.msra.mxu1 %v11263_v57  ;;  %v967_v55 = vrot.slane %v12474_v28, %v12462_v21 }
  0xe2   : > { %3990 = vmatprep.subr.bf16.mxu0 %v11268_v59  ;;  %4033 = vmatprep.subr.bf16.mxu1 %v11271_v60  ;;  %v979_v60 = vrot.slane %v12493_v37, %v12444_v15 }
  0xe5   : > { %3991 = vmatpush2.bf16.msra.mxu0 %v11266_v58  ;;  %4034 = vmatpush2.bf16.msra.mxu1 %v11269_v61 }
  0xe6   : > { %3992 = vmatprep.subr.bf16.mxu0 %v11274_v62  ;;  %4035 = vmatprep.subr.bf16.mxu1 %v11277_v1  ;;  %v975_v1 = vrot.slane %v12493_v37, %v12447_v26 }
  0xe9   : > { %3993 = vmatpush2.bf16.msra.mxu0 %v11272_v63  ;;  %4036 = vmatpush2.bf16.msra.mxu1 %v11275_v2 }
  0xea   : > { %3994 = vmatprep.subr.bf16.mxu0 %v11280_v3  ;;  %4037 = vmatprep.subr.bf16.mxu1 %v11283_v4 }
  0xed   : > { %3995 = vmatpush2.bf16.msra.mxu0 %v11278_v5  ;;  %4038 = vmatpush2.bf16.msra.mxu1 %v11281_v6 }
  0xee   : > { %4050 = vmatprep.subr.bf16.mxu0 %v11286_v7  ;;  %4093 = vmatprep.subr.bf16.mxu1 %v11289_v8 }
 0x138   : > { %v1070_v42 = vpop.f32.mrf.mxu0  ;;  %v1111_v48 = vpop.f32.mrf.mxu1 }
 0x139   : > { %v1071_v47 = vadd.f32 %v1070_v42, %v875_v23  ;;  %v1112_v52 = vadd.f32 %v1111_v48, %v883_v24 }
 0x13a   : > { %v1072_v53 = vpop.f32.mrf.mxu0  ;;  %v1113_v59 = vpop.f32.mrf.mxu1 }
 0x13b   : > { %vm1692_vm3 = vcmp.gt.f32.partialorder %v1071_v47, 0.0  ;;  %v1724_v57 = vmul.f32 0.2, %v1071_v47  ;;  %v1073_v58 = vadd.f32 %v1072_v53, %v879_v25  ;;  %vm1694_vm4 = vcmp.gt.f32.partialorder %v1112_v52, 0.0 }
 0x13c   : > { %v1726_v61 = vmul.f32 0.2, %v1112_v52  ;;  %v1114_v62 = vadd.f32 %v1113_v59, %v887_v27  ;;  %v1074_v63 = vpop.f32.mrf.mxu0  ;;  %v1115_v4 = vpop.f32.mrf.mxu1 }
 0x13d   : > { %v1756_v2 = vsel %vm1692_vm3, %v1071_v47, %v1724_v57  ;;  %vm1693_vm5 = vcmp.gt.f32.partialorder %v1073_v58, 0.0  ;;  %v1725_v3 = vmul.f32 0.2, %v1073_v58 }
 0x13e   : > { %v1788_v6 = vpack.c.bf16 %v1756_v2, %v1756_v2  ;;  %v1758_v7 = vsel %vm1694_vm4, %v1112_v52, %v1726_v61  ;;  %vm1695_vm6 = vcmp.gt.f32.partialorder %v1114_v62, 0.0  ;;  %v1727_v8 = vmul.f32 0.2, %v1114_v62  ;;  %v1075_v9 = vpop.f32.mrf.mxu0  ;;  %v1116_v17 = vpop.f32.mrf.mxu1 }
 0x13f   : > { %v1790_v11 = vpack.c.bf16 %v1758_v7, %v1758_v7  ;;  %v1757_v12 = vsel %vm1693_vm5, %v1073_v58, %v1725_v3 }
 0x140   : > { %v1821_v25 = vsel %vm1820_vm1, %v1788_v6, 0  ;;  %v1789_v27 = vpack.c.bf16 %v1757_v12, %v1757_v12  ;;  %v10397_v42 = vpack.c.bf16 %v1757_v12, %v1756_v2  ;;  %v1759_v47 = vsel %vm1695_vm6, %v1114_v62, %v1727_v8  ;;  %v1152_v48 = vpop.f32.mrf.mxu0  ;;  %v1193_v59 = vpop.f32.mrf.mxu1 }
 0x141   : > { %v1823_v52 = vshll.u32 %v1790_v11, 16  ;;  %v1791_v53 = vpack.c.bf16 %v1759_v47, %v1759_v47  ;;  %v10398_v57 = vpack.c.bf16 %v1759_v47, %v1758_v7  ;;  %v1153_v58 = vadd.f32 %v1152_v48, %v891_v30 }
 0x142   : > { %v1836_v61 = vsel %vm1820_vm1, %v1789_v27, 0  ;;  %v12539_v63 = vrot.slane %v10397_v42, %v12477_v29  ;;  %v1194_v2 = vadd.f32 %v1193_v59, %v899_v31  ;;  %v1154_v62 = vpop.f32.mrf.mxu0  ;;  %v1195_v30 = vpop.f32.mrf.mxu1  ;;  %v12194_v27 = vmov 1983009808  }
 0x143   : > { %v1826_v3 = vsel %vm1825_vm2, %v1823_v52, %v1821_v25  ;;  %v1838_v4 = vshll.u32 %v1791_v53, 16  ;;  %v12546_v6 = vrot.slane %v10398_v57, %v12477_v29  ;;  %vm1696_vm11 = vcmp.gt.f32.partialorder %v1153_v58, 0.0 }
 0x144   : > { %v1728_v7 = vmul.f32 0.2, %v1153_v58  ;;  %vm1698_vm12 = vcmp.gt.f32.partialorder %v1194_v2, 0.0  ;;  %v1730_v8 = vmul.f32 0.2, %v1194_v2  ;;  %v1155_v9 = vadd.f32 %v1154_v62, %v895_v32  ;;  %v1156_v11 = vpop.f32.mrf.mxu0  ;;  %v1197_v25 = vpop.f32.mrf.mxu1 }
 0x145   : > { %v1840_v31 = vsel %vm1825_vm2, %v1838_v4, %v1836_v61  ;;  %v1984_v12 = vcombine.low %v12539_v63, %v12546_v6  ;;  %v1196_v17 = vadd.f32 %v1195_v30, %v903_v33  ;;  %v2251_v42 = vunpack.c.l.s4 %v12194_v27 }
 0x146   : > { %v1760_v47 = vsel %vm1696_vm11, %v1153_v58, %v1728_v7  ;;  %v1762_v48 = vsel %vm1698_vm12, %v1194_v2, %v1730_v8  ;;  %vm1697_vm13 = vcmp.gt.f32.partialorder %v1155_v9, 0.0  ;;  %v1729_v52 = vmul.f32 0.2, %v1155_v9  ;;  %v1157_v53 = vpop.f32.mrf.mxu0  ;;  %v1198_v59 = vpop.f32.mrf.mxu1 }
 0x147   : > { %v1792_v57 = vpack.c.bf16 %v1760_v47, %v1760_v47  ;;  %v1794_v32 = vpack.c.bf16 %v1762_v48, %v1762_v48  ;;  %vm1699_vm14 = vcmp.gt.f32.partialorder %v1196_v17, 0.0  ;;  %v12558_v61 = vrot.slane %v15583_v0, 1 }
 0x148   : > { %v1761_v62 = vsel %vm1697_vm13, %v1155_v9, %v1729_v52  ;;  %v1731_v4 = vmul.f32 0.2, %v1196_v17  ;;  %v1234_v11 = vpop.f32.mrf.mxu0  ;;  %v1275_v8 = vpop.f32.mrf.mxu1 }
 0x149   : > { %15738 = vst [vmem:[#allocation17_spill] sm:$0xff] %v12558_v61  ;;  %v1827_v58 = vrot.slane %v1792_v57, 7  ;;  %v1830_v2 = vrot.slane %v1794_v32, 7  ;;  %v1793_v30 = vpack.c.bf16 %v1761_v62, %v1761_v62  ;;  %v10399_v7 = vpack.c.bf16 %v1761_v62, %v1760_v47 }
 0x14a   : > { %v1763_v25 = vsel %vm1699_vm14, %v1196_v17, %v1731_v4  ;;  %v1235_v27 = vadd.f32 %v1234_v11, %v907_v34  ;;  %v1276_v9 = vadd.f32 %v1275_v8, %v915_v35  ;;  %v1236_v52 = vpop.f32.mrf.mxu0  ;;  %v2252_v57 = vunpack.c.0.s8 %v2251_v42  ;;  %v1277_v59 = vpop.f32.mrf.mxu1 }
 0x14b   : > { %v1829_v47 = vsel %vm1828_vm9, %v1827_v58, %v1826_v3  ;;  %v1832_v32 = vshll.u32 %v1830_v2, 16  ;;  %v1841_v17 = vrot.slane %v1793_v30, 7  ;;  %v12580_v34 = vsel %vm12572_vm15, %v12558_v61, 0 }
 0x14c   : > { %v1795_v62 = vpack.c.bf16 %v1763_v25, %v1763_v25  ;;  %v10400_v35 = vpack.c.bf16 %v1763_v25, %v1762_v48  ;;  %vm1700_vm0 = vcmp.gt.f32.partialorder %v1235_v27, 0.0  ;;  %v1732_v4 = vmul.f32 0.2, %v1235_v27  ;;  %v1238_v11 = vpop.f32.mrf.mxu0  ;;  %v1279_v3 = vpop.f32.mrf.mxu1 }
 0x14d   : > { %v1835_v8 = vsel %vm1834_vm10, %v1832_v32, %v1829_v47  ;;  %v1976_v33 = vrot.slane %v10399_v7, %v12477_v29  ;;  %vm1702_vm3 = vcmp.gt.f32.partialorder %v1276_v9, 0.0  ;;  %v1734_v42 = vmul.f32 0.2, %v1276_v9 }
 0x14e   : > { %v2169_v58 = vshll.u32 %v1835_v8, 16  ;;  %v1842_v2 = vsel %vm1828_vm9, %v1841_v17, %v1840_v31  ;;  %v1843_v30 = vrot.slane %v1795_v62, 7  ;;  %v1983_v13 = vrot.slane %v10400_v35, %v12477_v29  ;;  %v1239_v24 = vpop.f32.mrf.mxu0  ;;  %v1280_v25 = vpop.f32.mrf.mxu1 }
 0x14f   : > { %v1764_v23 = vsel %vm1700_vm0, %v1235_v27, %v1732_v4  ;;  %v12586_v5 = vsel %vm1702_vm3, %v1276_v9, %v1734_v42  ;;  %v1237_v48 = vadd.f32 %v1236_v52, %v911_v36  ;;  %v1278_v7 = vadd.f32 %v1277_v59, %v919_v38 }
 0x150   : > { %v2171_v47 = vrot.slane %v2169_v58, 1  ;;  %v1845_v32 = vshll.u32 %v1843_v30, 16  ;;  %v1796_v11 = vpack.c.bf16 %v1764_v23, %v1764_v23  ;;  %v1316_v31 = vpop.f32.mrf.mxu0  ;;  %v12595_v17 = vsub.s32 %v2252_v57, %v12436_v10  ;;  %v1357_v62 = vpop.f32.mrf.mxu1 }
 0x151   : > { %v1985_v24 = vcombine.low %v1976_v33, %v1983_v13  ;;  %v1798_v27 = vpack.c.bf16 %v12586_v5, %v12586_v5  ;;  %vm1701_vm4 = vcmp.gt.f32.partialorder %v1237_v48, 0.0  ;;  %v1733_v9 = vmul.f32 0.2, %v1237_v48 }
 0x152   : > { %v2167_v36 = vshrl.u32 %v1835_v8, 16  ;;  %v12600_v52 = vsel %vm1834_vm10, %v1845_v32, %v1842_v2  ;;  %v1318_v38 = vpop.f32.mrf.mxu0  ;;  %v12604_v59 = vcombine.low %v15583_v0, %v15583_v0  ;;  %v2330_v10 = vcombine.low %v12580_v34, %v12580_v34  ;;  %v1359_v35 = vpop.f32.mrf.mxu1 }
 0x153   : > { %v2176_v13 = vshll.u32 %v12600_v52, 16  ;;  %v1850_v33 = vshll.u32 %v1798_v27, 16  ;;  %v1765_v57 = vsel %vm1701_vm4, %v1237_v48, %v1733_v9  ;;  %vm1703_vm5 = vcmp.gt.f32.partialorder %v1278_v7, 0.0 }
 0x154   : > { %v12613_v4 = vrot.slane %v1984_v12, %v12477_v29  ;;  %v12615_v8 = vor.u32 %v2171_v47, %v2167_v36  ;;  %v1848_v42 = vsel %vm1820_vm1, %v1796_v11, 0  ;;  %v1735_v3 = vmul.f32 0.2, %v1278_v7  ;;  %v1320_v58 = vpop.f32.mrf.mxu0  ;;  %v1361_v6 = vpop.f32.mrf.mxu1 }
 0x155   : > { %v12619_v2 = vrot.slane %v1985_v24, %v12477_v29  ;;  %v1797_v30 = vpack.c.bf16 %v1765_v57, %v1765_v57  ;;  %v1317_v48 = vadd.f32 %v1316_v31, %v923_v39  ;;  %v1358_v63 = vadd.f32 %v1357_v62, %v931_v40 }
 0x156   : > { %v2174_v12 = vshrl.u32 %v12600_v52, 16  ;;  %v10401_v25 = vpack.c.bf16 %v1765_v57, %v1764_v23  ;;  %v1767_v47 = vsel %vm1703_vm5, %v1278_v7, %v1735_v3  ;;  %v1319_v32 = vadd.f32 %v1318_v38, %v927_v41  ;;  %v1321_v11 = vpop.f32.mrf.mxu0  ;;  %v1362_v39 = vpop.f32.mrf.mxu1 }
 0x157   : > { %v12631_v24 = vrot.slane %v2176_v13, 1  ;;  %v1852_v27 = vsel %vm1825_vm2, %v1850_v33, %v1848_v42  ;;  %v1799_v9 = vpack.c.bf16 %v1767_v47, %v1767_v47  ;;  %vm1704_vm6 = vcmp.gt.f32.partialorder %v1317_v48, 0.0 }
 0x158   : > { %v10402_v31 = vpack.c.bf16 %v1767_v47, %v12586_v5  ;;  %v1736_v40 = vmul.f32 0.2, %v1317_v48  ;;  %vm1706_vm7 = vcmp.gt.f32.partialorder %v1358_v63, 0.0  ;;  %v1738_v62 = vmul.f32 0.2, %v1358_v63  ;;  %v1398_v36 = vpop.f32.mrf.mxu0  ;;  %v1439_v38 = vpop.f32.mrf.mxu1 }
 0x159   : > { %v1860_v23 = vsel %vm1820_vm1, %v1797_v30, 0  ;;  %vm1705_vm8 = vcmp.gt.f32.partialorder %v1319_v32, 0.0  ;;  %v1737_v7 = vmul.f32 0.2, %v1319_v32  ;;  %v1360_v41 = vadd.f32 %v1359_v35, %v935_v43 }
 0x15a   : > { %v1768_v13 = vsel %vm1704_vm6, %v1317_v48, %v1736_v40  ;;  %v1770_v33 = vsel %vm1706_vm7, %v1358_v63, %v1738_v62  ;;  %v1399_v57 = vadd.f32 %v1398_v36, %v939_v44  ;;  %v1440_v5 = vadd.f32 %v1439_v38, %v947_v45  ;;  %v1400_v42 = vpop.f32.mrf.mxu0  ;;  %v1441_v47 = vpop.f32.mrf.mxu1 }
 0x15b   : > { %v2011_v3 = vrot.slane %v10401_v25, %v12477_v29  ;;  %v1862_v58 = vshll.u32 %v1799_v9, 16  ;;  %v1800_v30 = vpack.c.bf16 %v1768_v13, %v1768_v13  ;;  %v1802_v6 = vpack.c.bf16 %v1770_v33, %v1770_v33 }
 0x15c   : > { %v2018_v22 = vrot.slane %v10402_v31, %v12477_v29  ;;  %v1769_v43 = vsel %vm1705_vm8, %v1319_v32, %v1737_v7  ;;  %vm1707_vm11 = vcmp.gt.f32.partialorder %v1360_v41, 0.0  ;;  %v1739_v35 = vmul.f32 0.2, %v1360_v41  ;;  %v1402_v48 = vpop.f32.mrf.mxu0  ;;  %v1443_v39 = vpop.f32.mrf.mxu1 }
 0x15d   : > { %v1853_v63 = vrot.slane %v1800_v30, 7  ;;  %v1855_v11 = vrot.slane %v1802_v6, 7  ;;  %v1801_v44 = vpack.c.bf16 %v1769_v43, %v1769_v43  ;;  %vm1708_vm12 = vcmp.gt.f32.partialorder %v1399_v57, 0.0 }
 0x15e   : > { %v10403_v40 = vpack.c.bf16 %v1769_v43, %v1768_v13  ;;  %v1771_v45 = vsel %vm1707_vm11, %v1360_v41, %v1739_v35  ;;  %v1740_v62 = vmul.f32 0.2, %v1399_v57  ;;  %vm1710_vm13 = vcmp.gt.f32.partialorder %v1440_v5, 0.0  ;;  %v1403_v25 = vpop.f32.mrf.mxu0  ;;  %v1444_v31 = vpop.f32.mrf.mxu1 }
 0x15f   : > { %v1854_v9 = vsel %vm1828_vm9, %v1853_v63, %v1852_v27  ;;  %v1857_v36 = vshll.u32 %v1855_v11, 16  ;;  %v1865_v38 = vrot.slane %v1801_v44, 7  ;;  %v1803_v0 = vpack.c.bf16 %v1771_v45, %v1771_v45 }
 0x160   : > { %v2025_v32 = vrot.slane %v10403_v40, %v12477_v29  ;;  %v10404_v7 = vpack.c.bf16 %v1771_v45, %v1770_v33  ;;  %v12649_v48 = vsel %vm1708_vm12, %v1399_v57, %v1740_v62  ;;  %v1742_v30 = vmul.f32 0.2, %v1440_v5  ;;  %v1480_v6 = vpop.f32.mrf.mxu0  ;;  %v1521_v35 = vpop.f32.mrf.mxu1 }
 0x161   : > { %v1864_v39 = vsel %vm1825_vm2, %v1862_v58, %v1860_v23  ;;  %v2033_v13 = vcombine.low %v2011_v3, %v2018_v22  ;;  %v12653_v41 = vsel %vm1834_vm10, %v1857_v36, %v1854_v9  ;;  %v1867_v43 = vrot.slane %v1803_v0, 7 }
 0x162   : > { %v1866_v27 = vsel %vm1828_vm9, %v1865_v38, %v1864_v39  ;;  %v2032_v63 = vrot.slane %v10404_v7, %v12477_v29  ;;  %v1804_v11 = vpack.c.bf16 %v12649_v48, %v12649_v48  ;;  %v1774_v33 = vsel %vm1710_vm13, %v1440_v5, %v1742_v30  ;;  %v1482_v57 = vpop.f32.mrf.mxu0  ;;  %v1523_v0 = vpop.f32.mrf.mxu1 }
 0x163   : > { %v2183_v44 = vshll.u32 %v12653_v41, 16  ;;  %v1869_v40 = vshll.u32 %v1867_v43, 16  ;;  %v1806_v23 = vpack.c.bf16 %v1774_v33, %v1774_v33  ;;  %v1401_v3 = vadd.f32 %v1400_v42, %v943_v46 }
 0x164   : > { %v2000_v58 = vcombine.low %v12613_v4, %v12619_v2  ;;  %v2034_v22 = vcombine.low %v2025_v32, %v2032_v63  ;;  %v1442_v45 = vadd.f32 %v1441_v47, %v951_v49  ;;  %v1481_v5 = vadd.f32 %v1480_v6, %v955_v50  ;;  %v1484_v62 = vpop.f32.mrf.mxu0  ;;  %v1525_v9 = vpop.f32.mrf.mxu1 }
 0x165   : > { %v12675_v25 = vor.u32 %v12631_v24, %v2174_v12  ;;  %v12678_v46 = vsel %vm1834_vm10, %v1869_v40, %v1866_v27  ;;  %vm1709_vm14 = vcmp.gt.f32.partialorder %v1401_v3, 0.0  ;;  %v1741_v42 = vmul.f32 0.2, %v1401_v3 }
 0x166   : > { %v12681_v36 = vrot.slane %v2033_v13, %v12477_v29  ;;  %v2181_v49 = vshrl.u32 %v12653_v41, 16  ;;  %v1874_v47 = vshll.u32 %v1806_v23, 16  ;;  %vm1711_vm0 = vcmp.gt.f32.partialorder %v1442_v45, 0.0  ;;  %v1485_v50 = vpop.f32.mrf.mxu0  ;;  %v1526_v31 = vpop.f32.mrf.mxu1 }
 0x167   : > { %v12684_v38 = vrot.slane %v2183_v44, 1  ;;  %v1872_v52 = vsel %vm1820_vm1, %v1804_v11, 0  ;;  %v1773_v12 = vsel %vm1709_vm14, %v1401_v3, %v1741_v42  ;;  %v1743_v24 = vmul.f32 0.2, %v1442_v45 }
 0x168   : > { %v12688_v32 = vrot.slane %v2034_v22, %v12477_v29  ;;  %v2190_v7 = vshll.u32 %v12678_v46, 16  ;;  %v1805_v30 = vpack.c.bf16 %v1773_v12, %v1773_v12  ;;  %vm1712_vm3 = vcmp.gt.f32.partialorder %v1481_v5, 0.0  ;;  %v1562_v6 = vpop.f32.mrf.mxu0  ;;  %v1603_v63 = vpop.f32.mrf.mxu1 }
 0x169   : > { %v1775_v39 = vsel %vm1711_vm0, %v1442_v45, %v1743_v24  ;;  %v1744_v13 = vmul.f32 0.2, %v1481_v5  ;;  %v1522_v43 = vadd.f32 %v1521_v35, %v963_v51  ;;  %v1483_v27 = vadd.f32 %v1482_v57, %v959_v54 }
 0x16a   : > { %v1876_v11 = vsel %vm1825_vm2, %v1874_v47, %v1872_v52  ;;  %v10405_v44 = vpack.c.bf16 %v1773_v12, %v12649_v48  ;;  %v1807_v40 = vpack.c.bf16 %v1775_v39, %v1775_v39  ;;  %v10406_v23 = vpack.c.bf16 %v1775_v39, %v1774_v33  ;;  %v1564_v3 = vpop.f32.mrf.mxu0  ;;  %v1605_v42 = vpop.f32.mrf.mxu1 }
 0x16b   : > { %v1884_v22 = vsel %vm1820_vm1, %v1805_v30, 0  ;;  %v1776_v45 = vsel %vm1712_vm3, %v1481_v5, %v1744_v13  ;;  %vm1714_vm4 = vcmp.gt.f32.partialorder %v1522_v43, 0.0  ;;  %v1746_v62 = vmul.f32 0.2, %v1522_v43 }
 0x16c   : > { %v1886_v9 = vshll.u32 %v1807_v40, 16  ;;  %v1808_v51 = vpack.c.bf16 %v1776_v45, %v1776_v45  ;;  %vm1713_vm5 = vcmp.gt.f32.partialorder %v1483_v27, 0.0  ;;  %v1745_v35 = vmul.f32 0.2, %v1483_v27  ;;  %v1566_v50 = vpop.f32.mrf.mxu0  ;;  %v1607_v5 = vpop.f32.mrf.mxu1 }
 0x16d   : > { %v1778_v54 = vsel %vm1714_vm4, %v1522_v43, %v1746_v62  ;;  %v1524_v57 = vadd.f32 %v1523_v0, %v967_v55  ;;  %v1563_v48 = vadd.f32 %v1562_v6, %v971_v56  ;;  %v1604_v33 = vadd.f32 %v1603_v63, %v979_v60 }
 0x16e   : > { %v2060_v47 = vrot.slane %v10405_v44, %v12477_v29  ;;  %v2067_v52 = vrot.slane %v10406_v23, %v12477_v29  ;;  %v1877_v12 = vrot.slane %v1808_v51, 7  ;;  %v1810_v24 = vpack.c.bf16 %v1778_v54, %v1778_v54  ;;  %v1567_v31 = vpop.f32.mrf.mxu0  ;;  %v1608_v0 = vpop.f32.mrf.mxu1 }
 0x16f   : > { %v1888_v30 = vsel %vm1825_vm2, %v1886_v9, %v1884_v22  ;;  %v1777_v28 = vsel %vm1713_vm5, %v1483_v27, %v1745_v35  ;;  %vm1715_vm6 = vcmp.gt.f32.partialorder %v1524_v57, 0.0  ;;  %v1747_v55 = vmul.f32 0.2, %v1524_v57 }
 0x170   : > { %v1878_v56 = vsel %vm1828_vm9, %v1877_v12, %v1876_v11  ;;  %v1879_v6 = vrot.slane %v1810_v24, 7  ;;  %v1809_v39 = vpack.c.bf16 %v1777_v28, %v1777_v28  ;;  %vm1716_vm7 = vcmp.gt.f32.partialorder %v1563_v48, 0.0  ;;  %v1644_v60 = vpop.f32.mrf.mxu0  ;;  %v1685_v44 = vpop.f32.mrf.mxu1 }
 0x171   : > { %v10407_v13 = vpack.c.bf16 %v1777_v28, %v1776_v45  ;;  %v1779_v43 = vsel %vm1715_vm6, %v1524_v57, %v1747_v55  ;;  %v1748_v63 = vmul.f32 0.2, %v1563_v48  ;;  %vm1718_vm8 = vcmp.gt.f32.partialorder %v1604_v33, 0.0 }
 0x172   : > { %v1881_v40 = vshll.u32 %v1879_v6, 16  ;;  %v1889_v23 = vrot.slane %v1809_v39, 7  ;;  %v1811_v62 = vpack.c.bf16 %v1779_v43, %v1779_v43  ;;  %v10408_v51 = vpack.c.bf16 %v1779_v43, %v1778_v54  ;;  %v1646_v22 = vpop.f32.mrf.mxu0  ;;  %v1687_v50 = vpop.f32.mrf.mxu1 }
 0x173   : > { %v2074_v27 = vrot.slane %v10407_v13, %v12477_v29  ;;  %v1780_v9 = vsel %vm1716_vm7, %v1563_v48, %v1748_v63  ;;  %v1750_v35 = vmul.f32 0.2, %v1604_v33  ;;  %v1565_v11 = vadd.f32 %v1564_v3, %v975_v1 }
 0x174   : > { %v2082_v5 = vcombine.low %v2060_v47, %v2067_v52  ;;  %v12718_v45 = vsel %vm1834_vm10, %v1881_v40, %v1878_v56  ;;  %v1891_v57 = vrot.slane %v1811_v62, 7  ;;  %v2081_v12 = vrot.slane %v10408_v51, %v12477_v29  ;;  %v1648_v24 = vpop.f32.mrf.mxu0  ;;  %v1689_v55 = vpop.f32.mrf.mxu1 }
 0x175   : > { %v2197_v54 = vshll.u32 %v12718_v45, 16  ;;  %v1890_v31 = vsel %vm1828_vm9, %v1889_v23, %v1888_v30  ;;  %v1812_v28 = vpack.c.bf16 %v1780_v9, %v1780_v9  ;;  %v1782_v48 = vsel %vm1718_vm8, %v1604_v33, %v1750_v35 }
 0x176   : > { %v1893_v0 = vshll.u32 %v1891_v57, 16  ;;  %v2083_v6 = vcombine.low %v2074_v27, %v2081_v12  ;;  %v1814_v1 = vpack.c.bf16 %v1782_v48, %v1782_v48  ;;  %vm1717_vm11 = vcmp.gt.f32.partialorder %v1565_v11, 0.0  ;;  %v1649_v3 = vpop.f32.mrf.mxu0  ;;  %v1690_v30 = vpop.f32.mrf.mxu1 }
 0x177   : > { %v2049_v47 = vcombine.low %v12681_v36, %v12688_v32  ;;  %v2188_v52 = vshrl.u32 %v12678_v46, 16  ;;  %v1749_v56 = vmul.f32 0.2, %v1565_v11  ;;  %v15741_v39 = vrot.slane %v12493_v37, %v12450_v16 }
 0x178   : > { %v12732_v33 = vrot.slane %v2190_v7, 1  ;;  %v12735_v43 = vrot.slane %v2082_v5, %v12477_v29  ;;  %v12738_v63 = vsel %vm1834_vm10, %v1893_v0, %v1890_v31  ;;  %v15742_v36 = vrot.slane %v12493_v37, %v12453_v18 }
 0x179   : > { %v1606_v13 = vadd.f32 %v1605_v42, %v15741_v39  ;;  %v2195_v40 = vshrl.u32 %v12718_v45, 16  ;;  %v12744_v23 = vrot.slane %v2197_v54, 1  ;;  %v1896_v42 = vsel %vm1820_vm1, %v1812_v28, 0 }
 0x17a   : > { %v1645_v32 = vadd.f32 %v1644_v60, %v15742_v36  ;;  %v1781_v62 = vsel %vm1717_vm11, %v1565_v11, %v1749_v56  ;;  %v12748_v7 = vrot.slane %v2083_v6, %v12477_v29  ;;  %v2202_v51 = vshrl.u32 %v12738_v63, 16 }
 0x17b   : > { %v1898_v27 = vshll.u32 %v1814_v1, 16  ;;  %vm1719_vm12 = vcmp.gt.f32.partialorder %v1606_v13, 0.0  ;;  %v2204_v35 = vshll.u32 %v12738_v63, 16  ;;  %v1751_v5 = vmul.f32 0.2, %v1606_v13 }
 0x17c   : > { %vm1720_vm13 = vcmp.gt.f32.partialorder %v1645_v32, 0.0  ;;  %v1752_v18 = vmul.f32 0.2, %v1645_v32  ;;  %v1813_v60 = vpack.c.bf16 %v1781_v62, %v1781_v62  ;;  %v10409_v57 = vpack.c.bf16 %v1781_v62, %v1780_v9 }
 0x17d   : > { %v15743_v12 = vrot.slane %v12493_v37, %v12456_v19  ;;  %v15744_v11 = vrot.slane %v12493_v37, %v12459_v20  ;;  %v1783_v31 = vsel %vm1719_vm12, %v1606_v13, %v1751_v5  ;;  %v15745_v55 = vrot.slane %v12493_v37, %v12462_v21 }
 0x17e   : > { %v1784_v28 = vsel %vm1720_vm13, %v1645_v32, %v1752_v18  ;;  %v10413_v6 = vpack.i.b16 %v2049_v47, %v2000_v58  ;;  %v1815_v1 = vpack.c.bf16 %v1783_v31, %v1783_v31  ;;  %v10410_v9 = vpack.c.bf16 %v1783_v31, %v1782_v48 }
 0x17f   : > { %v1686_v24 = vadd.f32 %v1685_v44, %v15743_v12  ;;  %v1647_v54 = vadd.f32 %v1646_v22, %v15744_v11  ;;  %v1688_v0 = vadd.f32 %v1687_v50, %v15745_v55  ;;  %v1816_v3 = vpack.c.bf16 %v1784_v28, %v1784_v28 }
 0x180   : > { %v2098_v19 = vcombine.low %v12735_v43, %v12748_v7  ;;  %v1900_v22 = vsel %vm1825_vm2, %v1898_v27, %v1896_v42  ;;  %v2109_v56 = vrot.slane %v10409_v57, %v12477_v29  ;;  %v2116_v37 = vrot.slane %v10410_v9, %v12477_v29 }
 0x181   : > { %vm1722_vm14 = vcmp.gt.f32.partialorder %v1686_v24, 0.0  ;;  %v1754_v44 = vmul.f32 0.2, %v1686_v24  ;;  %vm1721_vm0 = vcmp.gt.f32.partialorder %v1647_v54, 0.0  ;;  %v1753_v20 = vmul.f32 0.2, %v1647_v54 }
 0x182   : > { %vm1723_vm3 = vcmp.gt.f32.partialorder %v1688_v0, 0.0  ;;  %v1755_v21 = vmul.f32 0.2, %v1688_v0  ;;  %v1901_v4 = vrot.slane %v1816_v3, 7  ;;  %v1908_v50 = vsel %vm1820_vm1, %v1813_v60, 0 }
 0x183   : > { %v1786_v2 = vsel %vm1722_vm14, %v1686_v24, %v1754_v44  ;;  %v1785_v58 = vsel %vm1721_vm0, %v1647_v54, %v1753_v20  ;;  %v1910_v48 = vshll.u32 %v1815_v1, 16  ;;  %v2153_v39 = vunpack.c.l.b16 %v10413_v6 }
 0x184   : > { %v1818_v47 = vpack.c.bf16 %v1786_v2, %v1786_v2  ;;  %v1817_v13 = vpack.c.bf16 %v1785_v58, %v1785_v58  ;;  %v10411_v30 = vpack.c.bf16 %v1785_v58, %v1784_v28  ;;  %v1787_v43 = vsel %vm1723_vm3, %v1688_v0, %v1755_v21 }
 0x185   : > { %v2154_v36 = vunpack.c.h.b16 %v10413_v6  ;;  %v2206_v32 = vrot.slane %v2204_v35, 1  ;;  %v1819_v62 = vpack.c.bf16 %v1787_v43, %v1787_v43  ;;  %v10412_v7 = vpack.c.bf16 %v1787_v43, %v1786_v2 }
 0x186   : > { %v1903_v42 = vrot.slane %v1818_v47, 7  ;;  %v2131_v27 = vcombine.low %v2109_v56, %v2116_v37  ;;  %v1902_v5 = vsel %vm1828_vm9, %v1901_v4, %v1900_v22  ;;  %v1913_v18 = vrot.slane %v1817_v13, 7 }
 0x187   : > { %v2123_v57 = vrot.slane %v10411_v30, %v12477_v29  ;;  %v1912_v12 = vsel %vm1825_vm2, %v1910_v48, %v1908_v50  ;;  %v1915_v24 = vrot.slane %v1819_v62, 7  ;;  %v2130_v11 = vrot.slane %v10412_v7, %v12477_v29 }
 0x188   : > { %v1905_v60 = vshll.u32 %v1903_v42, 16  ;;  %v1914_v54 = vsel %vm1828_vm9, %v1913_v18, %v1912_v12  ;;  %v2155_v31 = vpack.i.b16 %v2154_v36, %v2153_v39  ;;  %v2186_v35 = vor.u32 %v12684_v38, %v2181_v49 }
 0x189   : > { %v2193_v28 = vor.u32 %v12732_v33, %v2188_v52  ;;  %v1917_v0 = vshll.u32 %v1915_v24, 16  ;;  %v2132_v6 = vcombine.low %v2123_v57, %v2130_v11  ;;  %v2207_v1 = vor.u32 %v2206_v32, %v2202_v51 }
 0x18a   : > { %v1907_v55 = vsel %vm1834_vm10, %v1905_v60, %v1902_v5  ;;  %v2139_v9 = vrot.slane %v2131_v27, %v12477_v29  ;;  %v2200_v44 = vor.u32 %v12744_v23, %v2195_v40  ;;  %v2234_v49 = vsel %vm12572_vm15, %v12675_v25, 0 }
 0x18b   : > { %v2211_v3 = vshll.u32 %v1907_v55, 16  ;;  %v2209_v38 = vshrl.u32 %v1907_v55, 16  ;;  %v1919_v20 = vsel %vm1834_vm10, %v1917_v0, %v1914_v54  ;;  %v2146_v52 = vrot.slane %v2132_v6, %v12477_v29  ;;  %v11284_v0 = vld [vmem:[#allocation6 + $0x4e0] ss:$16 sps:$4 sm:$0xff]  }
 0x18c   : > { %v2236_v33 = vsel %vm12572_vm15, %v2193_v28, 0  ;;  %v2218_v22 = vshll.u32 %v1919_v20, 16  ;;  %v2233_v56 = vsel %vm12572_vm15, %v12615_v8, 0  ;;  %v2235_v40 = vsel %vm12572_vm15, %v2186_v35, 0 }
 0x18d   : > { %v2213_v51 = vrot.slane %v2211_v3, 1  ;;  %v2147_v23 = vcombine.low %v2139_v9, %v2146_v52  ;;  %v2238_v25 = vsel %vm12572_vm15, %v2207_v1, 0  ;;  %v2249_v21 = vcombine.low %v2233_v56, %v2234_v49  ;;  %v11292_v52 = vld [vmem:[#allocation6 + $0x4c4] ss:$16 sps:$4 sm:$0xff]   ;;  %v11290_v56 = vld [vmem:[#allocation6 + $0x4c0] ss:$16 sps:$4 sm:$0xff]  }
 0x18e   : > { %v2257_v37 = vcombine.low %v2235_v40, %v2236_v33  ;;  %v2216_v4 = vshrl.u32 %v1919_v20, 16  ;;  %v2220_v29 = vrot.slane %v2218_v22, 1  ;;  %v2237_v50 = vsel %vm12572_vm15, %v2200_v44, 0  ;;  %v11295_v22 = vld [vmem:[#allocation6 + $0x6c4] ss:$16 sps:$4 sm:$0xff]  }
 0x18f   : > { %v2214_v2 = vor.u32 %v2213_v51, %v2209_v38  ;;  %v10414_v58 = vpack.i.b16 %v2147_v23, %v2098_v19  ;;  %v2296_v48 = vcombine.low %v12718_v45, %v12738_v63  ;;  %v2319_v8 = vrot.slane %v12604_v59, %v12595_v17  ;;  %v11287_v38 = vld [vmem:[#allocation6 + $0x6e0] ss:$16 sps:$4 sm:$0xff]   ;;  %v11298_v23 = vld [vmem:[#allocation6 + $0x4a4] ss:$16 sps:$4 sm:$0xff]  }
 0x190   : > { %v2221_v47 = vor.u32 %v2220_v29, %v2216_v4  ;;  %v2265_v39 = vcombine.low %v2237_v50, %v2238_v25  ;;  %v2288_v13 = vcombine.low %v12653_v41, %v12678_v46  ;;  %v2337_v30 = vrot.slane %v2330_v10, %v12595_v17  ;;  %v11293_v25 = vld [vmem:[#allocation6 + $0x6c0] ss:$16 sps:$4 sm:$0xff]   ;;  %v11304_v4 = vld [vmem:[#allocation6 + $0x484] ss:$16 sps:$4 sm:$0xff]  }
 0x191   : > { %v2156_v19 = vunpack.c.l.b16 %v2155_v31  ;;  %v2160_v43 = vunpack.c.l.b16 %v10414_v58  ;;  %v2161_v36 = vunpack.c.h.b16 %v10414_v58  ;;  %v2264_v32 = vrot.slane %v2257_v37, %v12595_v17  ;;  %v11296_v37 = vld [vmem:[#allocation6 + $0x4a0] ss:$16 sps:$4 sm:$0xff]   ;;  %v11310_v50 = vld [vmem:[#allocation6 + $0x464] ss:$16 sps:$4 sm:$0xff]  }
 0x192   : > { %v2239_v45 = vsel %vm12572_vm15, %v2214_v2, 0  ;;  %v2240_v59 = vsel %vm12572_vm15, %v2221_v47, 0  ;;  %v2303_v63 = vrot.slane %v2296_v48, %v12595_v17  ;;  %v2304_v42 = vcombine.low %v1907_v55, %v1919_v20  ;;  %v11299_v29 = vld [vmem:[#allocation6 + $0x6a0] ss:$16 sps:$4 sm:$0xff]   ;;  %v11307_v2 = vld [vmem:[#allocation6 + $0x684] ss:$16 sps:$4 sm:$0xff]  }
 0x193   : > { %v2157_v41 = vunpack.c.h.b16 %v2155_v31  ;;  %v2162_v46 = vpack.i.b16 %v2161_v36, %v2160_v43  ;;  %v2256_v62 = vrot.slane %v2249_v21, %v12595_v17  ;;  %v2273_v34 = vcombine.low %v2239_v45, %v2240_v59  ;;  %v11301_v21 = vld [vmem:[#allocation6 + $0x6a4] ss:$16 sps:$4 sm:$0xff]   ;;  %v11302_v58 = vld [vmem:[#allocation6 + $0x480] ss:$16 sps:$4 sm:$0xff]  }
 0x194   : > { %v2272_v10 = vrot.slane %v2265_v39, %v12595_v17  ;;  %v2295_v7 = vrot.slane %v2288_v13, %v12595_v17  ;;  %v2311_v27 = vrot.slane %v2304_v42, %v12595_v17  ;;  %v11305_v48 = vld [vmem:[#allocation6 + $0x680] ss:$16 sps:$4 sm:$0xff]   ;;  %v11316_v39 = vld [vmem:[#allocation6 + $0x444] ss:$16 sps:$4 sm:$0xff]   ;;  %vm4348_vm7 = vsmask.f32 2312 }
 0x195   : > { %v2163_v5 = vunpack.c.l.b16 %v2162_v46  ;;  %v2164_v18 = vunpack.c.h.b16 %v2162_v46  ;;  %v2280_v57 = vrot.slane %v2273_v34, %v12595_v17  ;;  %v2346_v53 = vcombine.low %v2256_v62, %v2264_v32  ;;  %v11308_v47 = vld [vmem:[#allocation6 + $0x460] ss:$16 sps:$4 sm:$0xff]   ;;  %v11322_v43 = vld [vmem:[#allocation6 + $0x424] ss:$16 sps:$4 sm:$0xff]  }
 0x196   : > { %v2366_v12 = vcombine.low %v2295_v7, %v2303_v63  ;;  %v2367_v60 = vcombine.low %v2311_v27, %v2319_v8  ;;  %v2158_v24 = vpack.i.b16 %v2157_v41, %v2156_v19  ;;  %v2386_v28 = vcombine.low %v2264_v32, %v2272_v10  ;;  %v11313_v8 = vld [vmem:[#allocation6 + $0x664] ss:$16 sps:$4 sm:$0xff]   ;;  %v11311_v13 = vld [vmem:[#allocation6 + $0x660] ss:$16 sps:$4 sm:$0xff]  }
 0x197   : > { %v2165_v11 = vpack.i.b16 %v2164_v18, %v2163_v5  ;;  %v2347_v54 = vcombine.low %v2272_v10, %v2280_v57  ;;  %v2387_v31 = vcombine.low %v2280_v57, %v2337_v30  ;;  %v2354_v1 = vrot.slane %v2346_v53, %v12595_v17  ;;  %v11319_v30 = vld [vmem:[#allocation6 + $0x644] ss:$16 sps:$4 sm:$0xff]   ;;  %v11314_v19 = vld [vmem:[#allocation6 + $0x440] ss:$16 sps:$4 sm:$0xff]  }
 0x198   : > { %v12824_v35 = vrot.slane %v2367_v60, %v12595_v17  ;;  %v12833_v3 = vrot.slane %v2366_v12, %v12595_v17  ;;  %v12849_v51 = vrot.slane %v2386_v28, %v12595_v17  ;;  %v11317_v36 = vld [vmem:[#allocation6 + $0x640] ss:$16 sps:$4 sm:$0xff]   ;;  %v11325_v32 = vld [vmem:[#allocation6 + $0x624] ss:$16 sps:$4 sm:$0xff]   ;;  %vm4353_vm8 = vsmask.f32 2826 }
 0x199   : > { %v12826_v55 = vcombine.high %v2158_v24, %v2165_v11  ;;  %v12828_v6 = vcombine.low %v2158_v24, %v2165_v11  ;;  %v2361_v9 = vrot.slane %v2347_v54, %v12595_v17  ;;  %v12836_v44 = vrot.slane %v2387_v31, %v12595_v17  ;;  %v11320_v45 = vld [vmem:[#allocation6 + $0x420] ss:$16 sps:$4 sm:$0xff]   ;;  %v11328_v59 = vld [vmem:[#allocation6 + $0x404] ss:$16 sps:$4 sm:$0xff]  }
 0x19a   : > { %v12846_v33 = vcombine.high %v12833_v3, %v12824_v35  ;;  %v11323_v63 = vld [vmem:[#allocation6 + $0x620] ss:$16 sps:$4 sm:$0xff]   ;;  %v11331_v42 = vld [vmem:[#allocation6 + $0x604] ss:$16 sps:$4 sm:$0xff]   ;;  %vm4359_vm11 = vsmask.f32 3340 }
 0x19b   : > { %3996 = vmatprep.mubr.bf16.mxu0 %v12826_v55  ;;  %v12839_v49 = vcombine.high %v2354_v1, %v2361_v9  ;;  %v12841_v20 = vcombine.low %v2354_v1, %v2361_v9  ;;  %v12856_v40 = vcombine.high %v12849_v51, %v12836_v44  ;;  %v11326_v41 = vld [vmem:[#allocation6 + $0x400] ss:$16 sps:$4 sm:$0xff]   ;;  %v11334_v46 = vld [vmem:[#allocation6 + $0x5e4] ss:$16 sps:$4 sm:$0xff]   ;;  %vm4362_vm12 = vsmask.f32 3854 }
 0x19c   : > { %3997 = vmatmul.mubr.bf16.vlgmr.msra.gmra.mxu0 %v12828_v6  ;;  %v11329_v62 = vld [vmem:[#allocation6 + $0x600] ss:$16 sps:$4 sm:$0xff]   ;;  %v11337_v34 = vld [vmem:[#allocation6 + $0x7e4] ss:$16 sps:$4 sm:$0xff]   ;;  %vm4592_vm13 = vcmask 1043456  }
 0x19d   : > { %4051 = vmatpush1.bf16.msra.mxu0 %v11284_v0  ;;  %4039 = vmatprep.mubr.bf16.mxu1 %v12839_v49  ;;  %v11332_v10 = vld [vmem:[#allocation6 + $0x5e0] ss:$16 sps:$4 sm:$0xff]   ;;  %v11340_v7 = vld [vmem:[#allocation6 + $0x5c4] ss:$16 sps:$4 sm:$0xff]   ;;  %vm4593_vm14 = vsmask.f32 3328 }
 0x19e   : > { %4082 = vmatprep.mubr.bf16.mxu0 %v12846_v33  ;;  %4040 = vmatmul.mubr.bf16.vlgmr.msra.gmra.mxu1 %v12841_v20  ;;  %v11335_v27 = vld [vmem:[#allocation6 + $0x7e0] ss:$16 sps:$4 sm:$0xff]   ;;  %v11343_v5 = vld [vmem:[#allocation6 + $0x7c4] ss:$16 sps:$4 sm:$0xff]  }
 0x19f   : > { %4094 = vmatpush1.bf16.msra.mxu1 %v11287_v38  ;;  %4052 = vmatprep.subr.bf16.mxu0 %v11292_v52  ;;  %v11338_v18 = vld [vmem:[#allocation6 + $0x5c0] ss:$16 sps:$4 sm:$0xff]   ;;  %v11346_v57 = vld [vmem:[#allocation6 + $0x5a4] ss:$16 sps:$4 sm:$0xff]  }
 0x1a0   : > { %4125 = vmatprep.mubr.bf16.mxu1 %v12856_v40  ;;  %4095 = vmatprep.subr.bf16.mxu1 %v11295_v22  ;;  %v11341_v53 = vld [vmem:[#allocation6 + $0x7c0] ss:$16 sps:$4 sm:$0xff]   ;;  %v11349_v12 = vld [vmem:[#allocation6 + $0x7a4] ss:$16 sps:$4 sm:$0xff]  }
 0x1a1   : > { %4053 = vmatpush1.bf16.msra.mxu0 %v11290_v56  ;;  %v11344_v60 = vld [vmem:[#allocation6 + $0x5a0] ss:$16 sps:$4 sm:$0xff]   ;;  %v11352_v24 = vld [vmem:[#allocation6 + $0x584] ss:$16 sps:$4 sm:$0xff]  }
 0x1a2   : > { %4054 = vmatprep.subr.bf16.mxu0 %v11298_v23  ;;  %v11347_v11 = vld [vmem:[#allocation6 + $0x7a0] ss:$16 sps:$4 sm:$0xff]   ;;  %v11355_v54 = vld [vmem:[#allocation6 + $0x784] ss:$16 sps:$4 sm:$0xff]  }
 0x1a3   : > { %4096 = vmatpush1.bf16.msra.mxu1 %v11293_v25  ;;  %v11350_v31 = vld [vmem:[#allocation6 + $0x580] ss:$16 sps:$4 sm:$0xff]   ;;  %v11358_v28 = vld [vmem:[#allocation6 + $0x564] ss:$16 sps:$4 sm:$0xff]  }
 0x1a4   : > { %4097 = vmatprep.subr.bf16.mxu1 %v11301_v21  ;;  %v11353_v0 = vld [vmem:[#allocation6 + $0x780] ss:$16 sps:$4 sm:$0xff]   ;;  %v11361_v1 = vld [vmem:[#allocation6 + $0x764] ss:$16 sps:$4 sm:$0xff]  }
 0x1a5   : > { %4055 = vmatpush1.bf16.msra.mxu0 %v11296_v37  ;;  %v11356_v9 = vld [vmem:[#allocation6 + $0x560] ss:$16 sps:$4 sm:$0xff]   ;;  %v11364_v38 = vld [vmem:[#allocation6 + $0x544] ss:$16 sps:$4 sm:$0xff]  }
 0x1a6   : > { %4056 = vmatprep.subr.bf16.mxu0 %v11304_v4  ;;  %v11359_v52 = vld [vmem:[#allocation6 + $0x760] ss:$16 sps:$4 sm:$0xff]   ;;  %v11367_v22 = vld [vmem:[#allocation6 + $0x744] ss:$16 sps:$4 sm:$0xff]  }
 0x1a7   : > { %4098 = vmatpush1.bf16.msra.mxu1 %v11299_v29  ;;  %v11362_v56 = vld [vmem:[#allocation6 + $0x540] ss:$16 sps:$4 sm:$0xff]   ;;  %v11370_v23 = vld [vmem:[#allocation6 + $0x524] ss:$16 sps:$4 sm:$0xff]  }
 0x1a8   : > { %4099 = vmatprep.subr.bf16.mxu1 %v11307_v2  ;;  %v11365_v25 = vld [vmem:[#allocation6 + $0x740] ss:$16 sps:$4 sm:$0xff]   ;;  %v11373_v21 = vld [vmem:[#allocation6 + $0x724] ss:$16 sps:$4 sm:$0xff]  }
 0x1a9   : > { %4057 = vmatpush1.bf16.msra.mxu0 %v11302_v58  ;;  %v11368_v37 = vld [vmem:[#allocation6 + $0x520] ss:$16 sps:$4 sm:$0xff]   ;;  %v11376_v4 = vld [vmem:[#allocation6 + $0x504] ss:$16 sps:$4 sm:$0xff]  }
 0x1aa   : > { %4058 = vmatprep.subr.bf16.mxu0 %v11310_v50  ;;  %v11371_v29 = vld [vmem:[#allocation6 + $0x720] ss:$16 sps:$4 sm:$0xff]   ;;  %v11379_v2 = vld [vmem:[#allocation6 + $0x704] ss:$16 sps:$4 sm:$0xff]   ;;  %v11382_v50 = vld [vmem:[#allocation6 + $0xec] ss:$16 sps:$4 sm:$0xff]  }
 0x1ab   : > { %4100 = vmatpush1.bf16.msra.mxu1 %v11305_v48  ;;  %v11374_v58 = vld [vmem:[#allocation6 + $0x500] ss:$16 sps:$4 sm:$0xff]  }
 0x1ac   : > { %4101 = vmatprep.subr.bf16.mxu1 %v11313_v8  ;;  %v11377_v48 = vld [vmem:[#allocation6 + $0x700] ss:$16 sps:$4 sm:$0xff]   ;;  %v11385_v8 = vld [vmem:[#allocation6 + $0x2ec] ss:$16 sps:$4 sm:$0xff]  }
 0x1ad   : > { %4059 = vmatpush1.bf16.msra.mxu0 %v11308_v47  ;;  %v11380_v47 = vld [vmem:[#allocation6 + $0xe8] ss:$16 sps:$4 sm:$0xff]  }
 0x1ae   : > { %4060 = vmatprep.subr.bf16.mxu0 %v11316_v39  ;;  %v12861_v39 = vcombine.low %v12833_v3, %v12824_v35  ;;  %v11394_v35 = vld [vmem:[#allocation6 + $0xac] ss:$16 sps:$4 sm:$0xff]   ;;  %v11389_v3 = vld [vmem:[#allocation6 + $0x2c8] ss:$16 sps:$4 sm:$0xff]  }
 0x1af   : > { %4102 = vmatpush1.bf16.msra.mxu1 %v11311_v13  ;;  %v11388_v13 = vld [vmem:[#allocation6 + $0xcc] ss:$16 sps:$4 sm:$0xff]  }
 0x1b0   : > { %4103 = vmatprep.subr.bf16.mxu1 %v11319_v30  ;;  %v11383_v30 = vld [vmem:[#allocation6 + $0x2e8] ss:$16 sps:$4 sm:$0xff]  }
 0x1b1   : > { %4061 = vmatpush1.bf16.msra.mxu0 %v11314_v19  ;;  %v12866_v19 = vcombine.low %v12849_v51, %v12836_v44  ;;  %v11400_v44 = vld [vmem:[#allocation6 + $0x8c] ss:$16 sps:$4 sm:$0xff]   ;;  %v11395_v51 = vld [vmem:[#allocation6 + $0x2a8] ss:$16 sps:$4 sm:$0xff]  }
 0x1b2   : > { %4062 = vmatprep.subr.bf16.mxu0 %v11322_v43  ;;  %v11391_v43 = vld [vmem:[#allocation6 + $0x2cc] ss:$16 sps:$4 sm:$0xff]  }
 0x1b3   : > { %4104 = vmatpush1.bf16.msra.mxu1 %v11317_v36  ;;  %v11386_v36 = vld [vmem:[#allocation6 + $0xc8] ss:$16 sps:$4 sm:$0xff]  }
 0x1b4   : > { %4105 = vmatprep.subr.bf16.mxu1 %v11325_v32  ;;  %v11397_v32 = vld [vmem:[#allocation6 + $0x2ac] ss:$16 sps:$4 sm:$0xff]  }
 0x1b5   : > { %4063 = vmatpush1.bf16.msra.mxu0 %v11320_v45  ;;  %v11392_v45 = vld [vmem:[#allocation6 + $0xa8] ss:$16 sps:$4 sm:$0xff]  }
 0x1b6   : > { %4064 = vmatprep.subr.bf16.mxu0 %v11328_v59  ;;  %v11403_v59 = vld [vmem:[#allocation6 + $0x28c] ss:$16 sps:$4 sm:$0xff]  }
 0x1b7   : > { %4106 = vmatpush1.bf16.msra.mxu1 %v11323_v63  ;;  %v11406_v63 = vld [vmem:[#allocation6 + $0x6c] ss:$16 sps:$4 sm:$0xff]  }
 0x1b8   : > { %4107 = vmatprep.subr.bf16.mxu1 %v11331_v42  ;;  %v11401_v42 = vld [vmem:[#allocation6 + $0x288] ss:$16 sps:$4 sm:$0xff]  }
 0x1b9   : > { %4065 = vmatpush1.bf16.msra.mxu0 %v11326_v41  ;;  %v11409_v41 = vld [vmem:[#allocation6 + $0x26c] ss:$16 sps:$4 sm:$0xff]  }
 0x1ba   : > { %4066 = vmatprep.subr.bf16.mxu0 %v11334_v46  ;;  %v11412_v46 = vld [vmem:[#allocation6 + $0x4c] ss:$16 sps:$4 sm:$0xff]  }
 0x1bb   : > { %4108 = vmatpush1.bf16.msra.mxu1 %v11329_v62  ;;  %v11407_v62 = vld [vmem:[#allocation6 + $0x268] ss:$16 sps:$4 sm:$0xff]  }
 0x1bc   : > { %4109 = vmatprep.subr.bf16.mxu1 %v11337_v34  ;;  %v11415_v34 = vld [vmem:[#allocation6 + $0x24c] ss:$16 sps:$4 sm:$0xff]  }
 0x1bd   : > { %4067 = vmatpush2.bf16.msra.mxu0 %v11332_v10  ;;  %v11410_v10 = vld [vmem:[#allocation6 + $0x48] ss:$16 sps:$4 sm:$0xff]  }
 0x1be   : > { %4068 = vmatprep.subr.bf16.mxu0 %v11340_v7  ;;  %v11418_v7 = vld [vmem:[#allocation6 + $0x2c] ss:$16 sps:$4 sm:$0xff]  }
 0x1bf   : > { %4110 = vmatpush2.bf16.msra.mxu1 %v11335_v27  ;;  %v11413_v27 = vld [vmem:[#allocation6 + $0x248] ss:$16 sps:$4 sm:$0xff]  }
 0x1c0   : > { %4111 = vmatprep.subr.bf16.mxu1 %v11343_v5  ;;  %v11421_v5 = vld [vmem:[#allocation6 + $0x22c] ss:$16 sps:$4 sm:$0xff]  }
 0x1c1   : > { %4069 = vmatpush2.bf16.msra.mxu0 %v11338_v18  ;;  %v11416_v18 = vld [vmem:[#allocation6 + $0x28] ss:$16 sps:$4 sm:$0xff]  }
 0x1c2   : > { %4070 = vmatprep.subr.bf16.mxu0 %v11346_v57  ;;  %v11424_v57 = vld [vmem:[#allocation6 + $0xc] ss:$16 sps:$4 sm:$0xff]  }
 0x1c3   : > { %4112 = vmatpush2.bf16.msra.mxu1 %v11341_v53  ;;  %v11419_v53 = vld [vmem:[#allocation6 + $0x228] ss:$16 sps:$4 sm:$0xff]  }
 0x1c4   : > { %4113 = vmatprep.subr.bf16.mxu1 %v11349_v12  ;;  %v11427_v12 = vld [vmem:[#allocation6 + $0x20c] ss:$16 sps:$4 sm:$0xff]  }
 0x1c5   : > { %4071 = vmatpush2.bf16.msra.mxu0 %v11344_v60  ;;  %v11422_v60 = vld [vmem:[#allocation6 + $0x8] ss:$16 sps:$4 sm:$0xff]  }
 0x1c6   : > { %4072 = vmatprep.subr.bf16.mxu0 %v11352_v24  ;;  %v11430_v24 = vld [vmem:[#allocation6 + $0x1ec] ss:$16 sps:$4 sm:$0xff]  }
 0x1c7   : > { %4114 = vmatpush2.bf16.msra.mxu1 %v11347_v11  ;;  %v11425_v11 = vld [vmem:[#allocation6 + $0x208] ss:$16 sps:$4 sm:$0xff]  }
 0x1c8   : > { %4115 = vmatprep.subr.bf16.mxu1 %v11355_v54  ;;  %v11433_v54 = vld [vmem:[#allocation6 + $0x3ec] ss:$16 sps:$4 sm:$0xff]  }
 0x1c9   : > { %4073 = vmatpush2.bf16.msra.mxu0 %v11350_v31  ;;  %v11428_v31 = vld [vmem:[#allocation6 + $0x1e8] ss:$16 sps:$4 sm:$0xff]  }
 0x1ca   : > { %4074 = vmatprep.subr.bf16.mxu0 %v11358_v28  ;;  %v11436_v28 = vld [vmem:[#allocation6 + $0x1cc] ss:$16 sps:$4 sm:$0xff]  }
 0x1cb   : > { %4116 = vmatpush2.bf16.msra.mxu1 %v11353_v0  ;;  %v11431_v0 = vld [vmem:[#allocation6 + $0x3e8] ss:$16 sps:$4 sm:$0xff]  }
 0x1cc   : > { %4117 = vmatprep.subr.bf16.mxu1 %v11361_v1  ;;  %v11439_v1 = vld [vmem:[#allocation6 + $0x3cc] ss:$16 sps:$4 sm:$0xff]  }
 0x1cd   : > { %4075 = vmatpush2.bf16.msra.mxu0 %v11356_v9  ;;  %v11434_v9 = vld [vmem:[#allocation6 + $0x1c8] ss:$16 sps:$4 sm:$0xff]  }
 0x1ce   : > { %4076 = vmatprep.subr.bf16.mxu0 %v11364_v38  ;;  %v11442_v38 = vld [vmem:[#allocation6 + $0x1ac] ss:$16 sps:$4 sm:$0xff]  }
 0x1cf   : > { %4118 = vmatpush2.bf16.msra.mxu1 %v11359_v52  ;;  %v11437_v52 = vld [vmem:[#allocation6 + $0x3c8] ss:$16 sps:$4 sm:$0xff]  }
 0x1d0   : > { %4119 = vmatprep.subr.bf16.mxu1 %v11367_v22  ;;  %v11445_v22 = vld [vmem:[#allocation6 + $0x3ac] ss:$16 sps:$4 sm:$0xff]  }
 0x1d1   : > { %4077 = vmatpush2.bf16.msra.mxu0 %v11362_v56  ;;  %v11440_v56 = vld [vmem:[#allocation6 + $0x1a8] ss:$16 sps:$4 sm:$0xff]  }
 0x1d2   : > { %4078 = vmatprep.subr.bf16.mxu0 %v11370_v23  ;;  %v11448_v23 = vld [vmem:[#allocation6 + $0x18c] ss:$16 sps:$4 sm:$0xff]  }
 0x1d3   : > { %4120 = vmatpush2.bf16.msra.mxu1 %v11365_v25  ;;  %v11443_v25 = vld [vmem:[#allocation6 + $0x3a8] ss:$16 sps:$4 sm:$0xff]  }
 0x1d4   : > { %4121 = vmatprep.subr.bf16.mxu1 %v11373_v21  ;;  %v11451_v21 = vld [vmem:[#allocation6 + $0x38c] ss:$16 sps:$4 sm:$0xff]  }
 0x1d5   : > { %4079 = vmatpush2.bf16.msra.mxu0 %v11368_v37  ;;  %v11446_v37 = vld [vmem:[#allocation6 + $0x188] ss:$16 sps:$4 sm:$0xff]  }
 0x1d6   : > { %4080 = vmatprep.subr.bf16.mxu0 %v11376_v4  ;;  %v11454_v4 = vld [vmem:[#allocation6 + $0x16c] ss:$16 sps:$4 sm:$0xff]  }
 0x1d7   : > { %4122 = vmatpush2.bf16.msra.mxu1 %v11371_v29  ;;  %v11449_v29 = vld [vmem:[#allocation6 + $0x388] ss:$16 sps:$4 sm:$0xff]  }
 0x1d8   : > { %4123 = vmatprep.subr.bf16.mxu1 %v11379_v2  ;;  %v11457_v2 = vld [vmem:[#allocation6 + $0x36c] ss:$16 sps:$4 sm:$0xff]  }
 0x1d9   : > { %4081 = vmatpush2.bf16.msra.mxu0 %v11374_v58  ;;  %v11452_v58 = vld [vmem:[#allocation6 + $0x168] ss:$16 sps:$4 sm:$0xff]  }
 0x1da   : > { %4136 = vmatprep.subr.bf16.mxu0 %v11382_v50  ;;  %v11460_v50 = vld [vmem:[#allocation6 + $0x14c] ss:$16 sps:$4 sm:$0xff]  }
 0x1db   : > { %4124 = vmatpush2.bf16.msra.mxu1 %v11377_v48  ;;  %v11455_v48 = vld [vmem:[#allocation6 + $0x368] ss:$16 sps:$4 sm:$0xff]  }
 0x1dc   : > { %4083 = vmatmul.mubr.bf16.vlgmr.msra.gmra.mxu0 %v12861_v39  ;;  %4179 = vmatprep.subr.bf16.mxu1 %v11385_v8  ;;  %v11463_v8 = vld [vmem:[#allocation6 + $0x34c] ss:$16 sps:$4 sm:$0xff]  }
 0x1dd   : > { %4137 = vmatpush1.bf16.msra.mxu0 %v11380_v47  ;;  %4168 = vmatprep.mubr.bf16.mxu0 %v12826_v55  ;;  %v11398_v55 = vld [vmem:[#allocation6 + $0x88] ss:$16 sps:$4 sm:$0xff]  }
 0x1de   : > { %4126 = vmatmul.mubr.bf16.vlgmr.msra.gmra.mxu1 %v12866_v19  ;;  %4138 = vmatprep.subr.bf16.mxu0 %v11388_v13  ;;  %v11458_v47 = vld [vmem:[#allocation6 + $0x148] ss:$16 sps:$4 sm:$0xff]   ;;  %v11466_v13 = vld [vmem:[#allocation6 + $0x12c] ss:$16 sps:$4 sm:$0xff]  }
 0x1df   : > { %4180 = vmatpush1.bf16.msra.mxu1 %v11383_v30  ;;  %4211 = vmatprep.mubr.bf16.mxu1 %v12839_v49  ;;  %v11404_v49 = vld [vmem:[#allocation6 + $0x68] ss:$16 sps:$4 sm:$0xff]  }
 0x1e0   : > { %4181 = vmatprep.subr.bf16.mxu1 %v11391_v43  ;;  %v11461_v30 = vld [vmem:[#allocation6 + $0x348] ss:$16 sps:$4 sm:$0xff]   ;;  %v11469_v43 = vld [vmem:[#allocation6 + $0x32c] ss:$16 sps:$4 sm:$0xff]  }
 0x1e1   : > { %4139 = vmatpush1.bf16.msra.mxu0 %v11386_v36  ;;  %v11464_v36 = vld [vmem:[#allocation6 + $0x128] ss:$16 sps:$4 sm:$0xff]  }
 0x1e2   : > { %4140 = vmatprep.subr.bf16.mxu0 %v11394_v35  ;;  %v11472_v35 = vld [vmem:[#allocation6 + $0x10c] ss:$16 sps:$4 sm:$0xff]  }
 0x1e3   : > { %4182 = vmatpush1.bf16.msra.mxu1 %v11389_v3  ;;  %v11467_v3 = vld [vmem:[#allocation6 + $0x328] ss:$16 sps:$4 sm:$0xff]  }
 0x1e4   : > { %4183 = vmatprep.subr.bf16.mxu1 %v11397_v32  ;;  %v11475_v32 = vld [vmem:[#allocation6 + $0x30c] ss:$16 sps:$4 sm:$0xff]  }
 0x1e5   : > { %4141 = vmatpush1.bf16.msra.mxu0 %v11392_v45  ;;  %v11470_v45 = vld [vmem:[#allocation6 + $0x108] ss:$16 sps:$4 sm:$0xff]  }
 0x1e6   : > { %4142 = vmatprep.subr.bf16.mxu0 %v11400_v44  ;;  %v11478_v44 = vld [vmem:[#allocation6 + $0x4ec] ss:$16 sps:$4 sm:$0xff]  }
 0x1e7   : > { %4184 = vmatpush1.bf16.msra.mxu1 %v11395_v51  ;;  %v11473_v51 = vld [vmem:[#allocation6 + $0x308] ss:$16 sps:$4 sm:$0xff]  }
 0x1e8   : > { %4185 = vmatprep.subr.bf16.mxu1 %v11403_v59  ;;  %v11481_v59 = vld [vmem:[#allocation6 + $0x6ec] ss:$16 sps:$4 sm:$0xff]  }
 0x1e9   : > { %4143 = vmatpush1.bf16.msra.mxu0 %v11398_v55  ;;  %v11476_v55 = vld [vmem:[#allocation6 + $0x4e8] ss:$16 sps:$4 sm:$0xff]  }
 0x1ea   : > { %4144 = vmatprep.subr.bf16.mxu0 %v11406_v63  ;;  %v11484_v63 = vld [vmem:[#allocation6 + $0x4cc] ss:$16 sps:$4 sm:$0xff]  }
 0x1eb   : > { %4186 = vmatpush1.bf16.msra.mxu1 %v11401_v42  ;;  %v11479_v42 = vld [vmem:[#allocation6 + $0x6e8] ss:$16 sps:$4 sm:$0xff]  }
 0x1ec   : > { %4187 = vmatprep.subr.bf16.mxu1 %v11409_v41  ;;  %v11487_v41 = vld [vmem:[#allocation6 + $0x6cc] ss:$16 sps:$4 sm:$0xff]  }
 0x1ed   : > { %4145 = vmatpush1.bf16.msra.mxu0 %v11404_v49  ;;  %v11482_v49 = vld [vmem:[#allocation6 + $0x4c8] ss:$16 sps:$4 sm:$0xff]  }
 0x1ee   : > { %4146 = vmatprep.subr.bf16.mxu0 %v11412_v46  ;;  %v11490_v46 = vld [vmem:[#allocation6 + $0x4ac] ss:$16 sps:$4 sm:$0xff]  }
 0x1ef   : > { %4188 = vmatpush1.bf16.msra.mxu1 %v11407_v62  ;;  %v11485_v62 = vld [vmem:[#allocation6 + $0x6c8] ss:$16 sps:$4 sm:$0xff]  }
 0x1f0   : > { %4189 = vmatprep.subr.bf16.mxu1 %v11415_v34  ;;  %v11493_v34 = vld [vmem:[#allocation6 + $0x6ac] ss:$16 sps:$4 sm:$0xff]  }
 0x1f1   : > { %4147 = vmatpush1.bf16.msra.mxu0 %v11410_v10  ;;  %v11488_v10 = vld [vmem:[#allocation6 + $0x4a8] ss:$16 sps:$4 sm:$0xff]  }
 0x1f2   : > { %4148 = vmatprep.subr.bf16.mxu0 %v11418_v7  ;;  %v11491_v7 = vld [vmem:[#allocation6 + $0x6a8] ss:$16 sps:$4 sm:$0xff]  }
 0x1f3   : > { %4190 = vmatpush1.bf16.msra.mxu1 %v11413_v27  ;;  %v11499_v27 = vld [vmem:[#allocation6 + $0x68c] ss:$16 sps:$4 sm:$0xff]  }
 0x1f4   : > { %4191 = vmatprep.subr.bf16.mxu1 %v11421_v5  ;;  %v11497_v5 = vld [vmem:[#allocation6 + $0x688] ss:$16 sps:$4 sm:$0xff]  }
 0x1f5   : > { %4149 = vmatpush1.bf16.msra.mxu0 %v11416_v18  ;;  %v11505_v18 = vld [vmem:[#allocation6 + $0x66c] ss:$16 sps:$4 sm:$0xff]  }
 0x1f6   : > { %4150 = vmatprep.subr.bf16.mxu0 %v11424_v57  ;;  %v11508_v57 = vld [vmem:[#allocation6 + $0x44c] ss:$16 sps:$4 sm:$0xff]  }
 0x1f7   : > { %4192 = vmatpush1.bf16.msra.mxu1 %v11419_v53  ;;  %v11503_v53 = vld [vmem:[#allocation6 + $0x668] ss:$16 sps:$4 sm:$0xff]  }
 0x1f8   : > { %4193 = vmatprep.subr.bf16.mxu1 %v11427_v12  ;;  %v11511_v12 = vld [vmem:[#allocation6 + $0x64c] ss:$16 sps:$4 sm:$0xff]  }
 0x1f9   : > { %4151 = vmatpush1.bf16.msra.mxu0 %v11422_v60  ;;  %v11506_v60 = vld [vmem:[#allocation6 + $0x448] ss:$16 sps:$4 sm:$0xff]  }
 0x1fa   : > { %4152 = vmatprep.subr.bf16.mxu0 %v11430_v24  ;;  %v11514_v24 = vld [vmem:[#allocation6 + $0x42c] ss:$16 sps:$4 sm:$0xff]  }
 0x1fb   : > { %4194 = vmatpush1.bf16.msra.mxu1 %v11425_v11  ;;  %v11509_v11 = vld [vmem:[#allocation6 + $0x648] ss:$16 sps:$4 sm:$0xff]  }
 0x1fc   : > { %4195 = vmatprep.subr.bf16.mxu1 %v11433_v54  ;;  %v11517_v54 = vld [vmem:[#allocation6 + $0x62c] ss:$16 sps:$4 sm:$0xff]  }
 0x1fd   : > { %4153 = vmatpush2.bf16.msra.mxu0 %v11428_v31  ;;  %v11512_v31 = vld [vmem:[#allocation6 + $0x428] ss:$16 sps:$4 sm:$0xff]  }
 0x1fe   : > { %4154 = vmatprep.subr.bf16.mxu0 %v11436_v28  ;;  %v11520_v28 = vld [vmem:[#allocation6 + $0x40c] ss:$16 sps:$4 sm:$0xff]  }
 0x1ff   : > { %4196 = vmatpush2.bf16.msra.mxu1 %v11431_v0  ;;  %v11515_v0 = vld [vmem:[#allocation6 + $0x628] ss:$16 sps:$4 sm:$0xff]  }
 0x200   : > { %4197 = vmatprep.subr.bf16.mxu1 %v11439_v1  ;;  %v11523_v1 = vld [vmem:[#allocation6 + $0x60c] ss:$16 sps:$4 sm:$0xff]  }
 0x201   : > { %4155 = vmatpush2.bf16.msra.mxu0 %v11434_v9  ;;  %v11518_v9 = vld [vmem:[#allocation6 + $0x408] ss:$16 sps:$4 sm:$0xff]  }
 0x202   : > { %4156 = vmatprep.subr.bf16.mxu0 %v11442_v38  ;;  %v11526_v38 = vld [vmem:[#allocation6 + $0x5ec] ss:$16 sps:$4 sm:$0xff]  }
 0x203   : > { %4198 = vmatpush2.bf16.msra.mxu1 %v11437_v52  ;;  %v11521_v52 = vld [vmem:[#allocation6 + $0x608] ss:$16 sps:$4 sm:$0xff]  }
 0x204   : > { %4199 = vmatprep.subr.bf16.mxu1 %v11445_v22  ;;  %v11529_v22 = vld [vmem:[#allocation6 + $0x7ec] ss:$16 sps:$4 sm:$0xff]  }
 0x205   : > { %4157 = vmatpush2.bf16.msra.mxu0 %v11440_v56  ;;  %v11524_v56 = vld [vmem:[#allocation6 + $0x5e8] ss:$16 sps:$4 sm:$0xff]  }
 0x206   : > { %4158 = vmatprep.subr.bf16.mxu0 %v11448_v23  ;;  %v11532_v23 = vld [vmem:[#allocation6 + $0x5cc] ss:$16 sps:$4 sm:$0xff]  }
 0x207   : > { %4200 = vmatpush2.bf16.msra.mxu1 %v11443_v25  ;;  %v11527_v25 = vld [vmem:[#allocation6 + $0x7e8] ss:$16 sps:$4 sm:$0xff]  }
 0x208   : > { %4201 = vmatprep.subr.bf16.mxu1 %v11451_v21  ;;  %v11535_v21 = vld [vmem:[#allocation6 + $0x7cc] ss:$16 sps:$4 sm:$0xff]  }
 0x209   : > { %4159 = vmatpush2.bf16.msra.mxu0 %v11446_v37  ;;  %v11530_v37 = vld [vmem:[#allocation6 + $0x5c8] ss:$16 sps:$4 sm:$0xff]  }
 0x20a   : > { %4160 = vmatprep.subr.bf16.mxu0 %v11454_v4  ;;  %v11538_v4 = vld [vmem:[#allocation6 + $0x5ac] ss:$16 sps:$4 sm:$0xff]  }
 0x20b   : > { %4202 = vmatpush2.bf16.msra.mxu1 %v11449_v29  ;;  %v11533_v29 = vld [vmem:[#allocation6 + $0x7c8] ss:$16 sps:$4 sm:$0xff]  }
 0x20c   : > { %4203 = vmatprep.subr.bf16.mxu1 %v11457_v2  ;;  %v11541_v2 = vld [vmem:[#allocation6 + $0x7ac] ss:$16 sps:$4 sm:$0xff]  }
 0x20d   : > { %4161 = vmatpush2.bf16.msra.mxu0 %v11452_v58  ;;  %v11536_v58 = vld [vmem:[#allocation6 + $0x5a8] ss:$16 sps:$4 sm:$0xff]  }
 0x20e   : > { %4162 = vmatprep.subr.bf16.mxu0 %v11460_v50  ;;  %v11544_v50 = vld [vmem:[#allocation6 + $0x58c] ss:$16 sps:$4 sm:$0xff]  }
 0x20f   : > { %4204 = vmatpush2.bf16.msra.mxu1 %v11455_v48  ;;  %v11539_v48 = vld [vmem:[#allocation6 + $0x7a8] ss:$16 sps:$4 sm:$0xff]  }
 0x210   : > { %4205 = vmatprep.subr.bf16.mxu1 %v11463_v8  ;;  %v11547_v8 = vld [vmem:[#allocation6 + $0x78c] ss:$16 sps:$4 sm:$0xff]  }
 0x211   : > { %4163 = vmatpush2.bf16.msra.mxu0 %v11458_v47  ;;  %v11542_v47 = vld [vmem:[#allocation6 + $0x588] ss:$16 sps:$4 sm:$0xff]  }
 0x212   : > { %4164 = vmatprep.subr.bf16.mxu0 %v11466_v13  ;;  %v11550_v13 = vld [vmem:[#allocation6 + $0x56c] ss:$16 sps:$4 sm:$0xff]  }
 0x213   : > { %4206 = vmatpush2.bf16.msra.mxu1 %v11461_v30  ;;  %v11545_v30 = vld [vmem:[#allocation6 + $0x788] ss:$16 sps:$4 sm:$0xff]  }
 0x214   : > { %4207 = vmatprep.subr.bf16.mxu1 %v11469_v43  ;;  %v11553_v43 = vld [vmem:[#allocation6 + $0x76c] ss:$16 sps:$4 sm:$0xff]  }
 0x215   : > { %4165 = vmatpush2.bf16.msra.mxu0 %v11464_v36  ;;  %v11548_v36 = vld [vmem:[#allocation6 + $0x568] ss:$16 sps:$4 sm:$0xff]  }
 0x216   : > { %4166 = vmatprep.subr.bf16.mxu0 %v11472_v35  ;;  %v11556_v35 = vld [vmem:[#allocation6 + $0x54c] ss:$16 sps:$4 sm:$0xff]  }
 0x217   : > { %4208 = vmatpush2.bf16.msra.mxu1 %v11467_v3  ;;  %v11551_v3 = vld [vmem:[#allocation6 + $0x768] ss:$16 sps:$4 sm:$0xff]  }
 0x218   : > { %4209 = vmatprep.subr.bf16.mxu1 %v11475_v32  ;;  %v11559_v32 = vld [vmem:[#allocation6 + $0x74c] ss:$16 sps:$4 sm:$0xff]  }
 0x219   : > { %4167 = vmatpush2.bf16.msra.mxu0 %v11470_v45  ;;  %v11554_v45 = vld [vmem:[#allocation6 + $0x548] ss:$16 sps:$4 sm:$0xff]  }
 0x21a   : > { %4222 = vmatprep.subr.bf16.mxu0 %v11478_v44  ;;  %v11562_v44 = vld [vmem:[#allocation6 + $0x52c] ss:$16 sps:$4 sm:$0xff]  }
 0x21b   : > { %4210 = vmatpush2.bf16.msra.mxu1 %v11473_v51  ;;  %v11557_v51 = vld [vmem:[#allocation6 + $0x748] ss:$16 sps:$4 sm:$0xff]  }
 0x21c   : > { %4169 = vmatmul.mubr.bf16.vlgmr.msra.gmra.mxu0 %v12828_v6  ;;  %4265 = vmatprep.subr.bf16.mxu1 %v11481_v59  ;;  %v11496_v6 = vld [vmem:[#allocation6 + $0x48c] ss:$16 sps:$4 sm:$0xff]  }
 0x21d   : > { %4223 = vmatpush1.bf16.msra.mxu0 %v11476_v55  ;;  %4254 = vmatprep.mubr.bf16.mxu0 %v12846_v33  ;;  %v11494_v33 = vld [vmem:[#allocation6 + $0x488] ss:$16 sps:$4 sm:$0xff]   ;;  %v11565_v59 = vld [vmem:[#allocation6 + $0x72c] ss:$16 sps:$4 sm:$0xff]  }
 0x21e   : > { %4212 = vmatmul.mubr.bf16.vlgmr.msra.gmra.mxu1 %v12841_v20  ;;  %4224 = vmatprep.subr.bf16.mxu0 %v11484_v63  ;;  %v11502_v20 = vld [vmem:[#allocation6 + $0x46c] ss:$16 sps:$4 sm:$0xff]   ;;  %v11560_v55 = vld [vmem:[#allocation6 + $0x528] ss:$16 sps:$4 sm:$0xff]  }
 0x21f   : > { %4266 = vmatpush1.bf16.msra.mxu1 %v11479_v42  ;;  %4297 = vmatprep.mubr.bf16.mxu1 %v12856_v40  ;;  %v11500_v40 = vld [vmem:[#allocation6 + $0x468] ss:$16 sps:$4 sm:$0xff]   ;;  %v11568_v63 = vld [vmem:[#allocation6 + $0x50c] ss:$16 sps:$4 sm:$0xff]  }
 0x220   : > { %4267 = vmatprep.subr.bf16.mxu1 %v11487_v41  ;;  %v11563_v42 = vld [vmem:[#allocation6 + $0x728] ss:$16 sps:$4 sm:$0xff]   ;;  %v11571_v41 = vld [vmem:[#allocation6 + $0x70c] ss:$16 sps:$4 sm:$0xff]  }
 0x221   : > { %4225 = vmatpush1.bf16.msra.mxu0 %v11482_v49  ;;  %v11566_v49 = vld [vmem:[#allocation6 + $0x508] ss:$16 sps:$4 sm:$0xff]  }
 0x222   : > { %4226 = vmatprep.subr.bf16.mxu0 %v11490_v46  ;;  %v11569_v46 = vld [vmem:[#allocation6 + $0x708] ss:$16 sps:$4 sm:$0xff]  }
 0x223   : > { %4268 = vmatpush1.bf16.msra.mxu1 %v11485_v62  ;;  %v11572_v62 = vld [vmem:[#allocation7 + $0xe0] ss:$16 sps:$4 sm:$0xff]  }
 0x224   : > { %4269 = vmatprep.subr.bf16.mxu1 %v11493_v34  ;;  %v11574_v34 = vld [vmem:[#allocation7 + $0xe4] ss:$16 sps:$4 sm:$0xff]  }
 0x225   : > { %4227 = vmatpush1.bf16.msra.mxu0 %v11488_v10  ;;  %v11575_v10 = vld [vmem:[#allocation7 + $0x2e0] ss:$16 sps:$4 sm:$0xff]  }
 0x226   : > { %4228 = vmatprep.subr.bf16.mxu0 %v11496_v6  ;;  %v11577_v6 = vld [vmem:[#allocation7 + $0x2e4] ss:$16 sps:$4 sm:$0xff]  }
 0x227   : > { %4270 = vmatpush1.bf16.msra.mxu1 %v11491_v7  ;;  %v11580_v7 = vld [vmem:[#allocation7 + $0xc4] ss:$16 sps:$4 sm:$0xff]  }
 0x228   : > { %4271 = vmatprep.subr.bf16.mxu1 %v11499_v27  ;;  %v11583_v27 = vld [vmem:[#allocation7 + $0x2c4] ss:$16 sps:$4 sm:$0xff]  }
 0x229   : > { %4229 = vmatpush1.bf16.msra.mxu0 %v11494_v33  ;;  %v11578_v33 = vld [vmem:[#allocation7 + $0xc0] ss:$16 sps:$4 sm:$0xff]  }
 0x22a   : > { %4230 = vmatprep.subr.bf16.mxu0 %v11502_v20  ;;  %v11581_v20 = vld [vmem:[#allocation7 + $0x2c0] ss:$16 sps:$4 sm:$0xff]  }
 0x22b   : > { %4272 = vmatpush1.bf16.msra.mxu1 %v11497_v5  ;;  %v11586_v5 = vld [vmem:[#allocation7 + $0xa4] ss:$16 sps:$4 sm:$0xff]  }
 0x22c   : > { %4273 = vmatprep.subr.bf16.mxu1 %v11505_v18  ;;  %v11589_v18 = vld [vmem:[#allocation7 + $0x2a4] ss:$16 sps:$4 sm:$0xff]  }
 0x22d   : > { %4231 = vmatpush1.bf16.msra.mxu0 %v11500_v40  ;;  %v11592_v40 = vld [vmem:[#allocation7 + $0x84] ss:$16 sps:$4 sm:$0xff]  }
 0x22e   : > { %4232 = vmatprep.subr.bf16.mxu0 %v11508_v57  ;;  %v11595_v57 = vld [vmem:[#allocation7 + $0x284] ss:$16 sps:$4 sm:$0xff]  }
 0x22f   : > { %4274 = vmatpush1.bf16.msra.mxu1 %v11503_v53  ;;  %v11590_v53 = vld [vmem:[#allocation7 + $0x80] ss:$16 sps:$4 sm:$0xff]  }
 0x230   : > { %4275 = vmatprep.subr.bf16.mxu1 %v11511_v12  ;;  %v11593_v12 = vld [vmem:[#allocation7 + $0x280] ss:$16 sps:$4 sm:$0xff]  }
 0x231   : > { %4233 = vmatpush1.bf16.msra.mxu0 %v11506_v60  ;;  %v11598_v60 = vld [vmem:[#allocation7 + $0x64] ss:$16 sps:$4 sm:$0xff]  }
 0x232   : > { %4234 = vmatprep.subr.bf16.mxu0 %v11514_v24  ;;  %v11601_v24 = vld [vmem:[#allocation7 + $0x264] ss:$16 sps:$4 sm:$0xff]  }
 0x233   : > { %4276 = vmatpush1.bf16.msra.mxu1 %v11509_v11  ;;  %v11596_v11 = vld [vmem:[#allocation7 + $0x60] ss:$16 sps:$4 sm:$0xff]  }
 0x234   : > { %4277 = vmatprep.subr.bf16.mxu1 %v11517_v54  ;;  %v11599_v54 = vld [vmem:[#allocation7 + $0x260] ss:$16 sps:$4 sm:$0xff]  }
 0x235   : > { %4235 = vmatpush1.bf16.msra.mxu0 %v11512_v31  ;;  %v11604_v31 = vld [vmem:[#allocation7 + $0x44] ss:$16 sps:$4 sm:$0xff]  }
 0x236   : > { %4236 = vmatprep.subr.bf16.mxu0 %v11520_v28  ;;  %v11607_v28 = vld [vmem:[#allocation7 + $0x244] ss:$16 sps:$4 sm:$0xff]  }
 0x237   : > { %4278 = vmatpush1.bf16.msra.mxu1 %v11515_v0  ;;  %v11602_v0 = vld [vmem:[#allocation7 + $0x40] ss:$16 sps:$4 sm:$0xff]  }
 0x238   : > { %4279 = vmatprep.subr.bf16.mxu1 %v11523_v1  ;;  %v11605_v1 = vld [vmem:[#allocation7 + $0x240] ss:$16 sps:$4 sm:$0xff]  }
 0x239   : > { %4237 = vmatpush1.bf16.msra.mxu0 %v11518_v9  ;;  %v11610_v9 = vld [vmem:[#allocation7 + $0x24] ss:$16 sps:$4 sm:$0xff]  }
 0x23a   : > { %4238 = vmatprep.subr.bf16.mxu0 %v11526_v38  ;;  %v11613_v38 = vld [vmem:[#allocation7 + $0x224] ss:$16 sps:$4 sm:$0xff]  }
 0x23b   : > { %4280 = vmatpush1.bf16.msra.mxu1 %v11521_v52  ;;  %v11608_v52 = vld [vmem:[#allocation7 + $0x20] ss:$16 sps:$4 sm:$0xff]  }
 0x23c   : > { %4281 = vmatprep.subr.bf16.mxu1 %v11529_v22  ;;  %v11611_v22 = vld [vmem:[#allocation7 + $0x220] ss:$16 sps:$4 sm:$0xff]  }
 0x23d   : > { %4239 = vmatpush2.bf16.msra.mxu0 %v11524_v56  ;;  %v11616_v56 = vld [vmem:[#allocation7 + $0x4] ss:$16 sps:$4 sm:$0xff]  }
 0x23e   : > { %4240 = vmatprep.subr.bf16.mxu0 %v11532_v23  ;;  %v11619_v23 = vld [vmem:[#allocation7 + $0x204] ss:$16 sps:$4 sm:$0xff]  }
 0x23f   : > { %4282 = vmatpush2.bf16.msra.mxu1 %v11527_v25  ;;  %v11614_v25 = vld [vmem:[#allocation7] ss:$16 sps:$4 sm:$0xff]  }
 0x240   : > { %4283 = vmatprep.subr.bf16.mxu1 %v11535_v21  ;;  %v11617_v21 = vld [vmem:[#allocation7 + $0x200] ss:$16 sps:$4 sm:$0xff]  }
 0x241   : > { %4241 = vmatpush2.bf16.msra.mxu0 %v11530_v37  ;;  %v11620_v37 = vld [vmem:[#allocation7 + $0x1e0] ss:$16 sps:$4 sm:$0xff]  }
 0x242   : > { %4242 = vmatprep.subr.bf16.mxu0 %v11538_v4  ;;  %v11622_v4 = vld [vmem:[#allocation7 + $0x1e4] ss:$16 sps:$4 sm:$0xff]  }
 0x243   : > { %4284 = vmatpush2.bf16.msra.mxu1 %v11533_v29  ;;  %v11623_v29 = vld [vmem:[#allocation7 + $0x3e0] ss:$16 sps:$4 sm:$0xff]  }
 0x244   : > { %4285 = vmatprep.subr.bf16.mxu1 %v11541_v2  ;;  %v11625_v2 = vld [vmem:[#allocation7 + $0x3e4] ss:$16 sps:$4 sm:$0xff]  }
 0x245   : > { %4243 = vmatpush2.bf16.msra.mxu0 %v11536_v58  ;;  %v11626_v58 = vld [vmem:[#allocation7 + $0x1c0] ss:$16 sps:$4 sm:$0xff]  }
 0x246   : > { %4244 = vmatprep.subr.bf16.mxu0 %v11544_v50  ;;  %v11628_v50 = vld [vmem:[#allocation7 + $0x1c4] ss:$16 sps:$4 sm:$0xff]  }
 0x247   : > { %4286 = vmatpush2.bf16.msra.mxu1 %v11539_v48  ;;  %v11629_v48 = vld [vmem:[#allocation7 + $0x3c0] ss:$16 sps:$4 sm:$0xff]  }
 0x248   : > { %4287 = vmatprep.subr.bf16.mxu1 %v11547_v8  ;;  %v11631_v8 = vld [vmem:[#allocation7 + $0x3c4] ss:$16 sps:$4 sm:$0xff]  }
 0x249   : > { %4245 = vmatpush2.bf16.msra.mxu0 %v11542_v47  ;;  %v11634_v47 = vld [vmem:[#allocation7 + $0x1a4] ss:$16 sps:$4 sm:$0xff]  }
 0x24a   : > { %4246 = vmatprep.subr.bf16.mxu0 %v11550_v13  ;;  %v11637_v13 = vld [vmem:[#allocation7 + $0x3a4] ss:$16 sps:$4 sm:$0xff]  }
 0x24b   : > { %4288 = vmatpush2.bf16.msra.mxu1 %v11545_v30  ;;  %v11632_v30 = vld [vmem:[#allocation7 + $0x1a0] ss:$16 sps:$4 sm:$0xff]  }
 0x24c   : > { %4289 = vmatprep.subr.bf16.mxu1 %v11553_v43  ;;  %v11635_v43 = vld [vmem:[#allocation7 + $0x3a0] ss:$16 sps:$4 sm:$0xff]  }
 0x24d   : > { %4247 = vmatpush2.bf16.msra.mxu0 %v11548_v36  ;;  %v11640_v36 = vld [vmem:[#allocation7 + $0x184] ss:$16 sps:$4 sm:$0xff]  }
 0x24e   : > { %4248 = vmatprep.subr.bf16.mxu0 %v11556_v35  ;;  %v11643_v35 = vld [vmem:[#allocation7 + $0x384] ss:$16 sps:$4 sm:$0xff]  }
 0x24f   : > { %4290 = vmatpush2.bf16.msra.mxu1 %v11551_v3  ;;  %v11638_v3 = vld [vmem:[#allocation7 + $0x180] ss:$16 sps:$4 sm:$0xff]  }
 0x250   : > { %4291 = vmatprep.subr.bf16.mxu1 %v11559_v32  ;;  %v11641_v32 = vld [vmem:[#allocation7 + $0x380] ss:$16 sps:$4 sm:$0xff]  }
 0x251   : > { %4249 = vmatpush2.bf16.msra.mxu0 %v11554_v45  ;;  %v11646_v45 = vld [vmem:[#allocation7 + $0x164] ss:$16 sps:$4 sm:$0xff]  }
 0x252   : > { %4250 = vmatprep.subr.bf16.mxu0 %v11562_v44  ;;  %v11649_v44 = vld [vmem:[#allocation7 + $0x364] ss:$16 sps:$4 sm:$0xff]  }
 0x253   : > { %4292 = vmatpush2.bf16.msra.mxu1 %v11557_v51  ;;  %v11644_v51 = vld [vmem:[#allocation7 + $0x160] ss:$16 sps:$4 sm:$0xff]  }
 0x254   : > { %4293 = vmatprep.subr.bf16.mxu1 %v11565_v59  ;;  %v11647_v59 = vld [vmem:[#allocation7 + $0x360] ss:$16 sps:$4 sm:$0xff]  }
 0x255   : > { %4251 = vmatpush2.bf16.msra.mxu0 %v11560_v55  ;;  %v11652_v55 = vld [vmem:[#allocation7 + $0x144] ss:$16 sps:$4 sm:$0xff]  }
 0x256   : > { %4252 = vmatprep.subr.bf16.mxu0 %v11568_v63  ;;  %v11655_v63 = vld [vmem:[#allocation7 + $0x344] ss:$16 sps:$4 sm:$0xff]  }
 0x257   : > { %4294 = vmatpush2.bf16.msra.mxu1 %v11563_v42  ;;  %v11650_v42 = vld [vmem:[#allocation7 + $0x140] ss:$16 sps:$4 sm:$0xff]  }
 0x258   : > { %4295 = vmatprep.subr.bf16.mxu1 %v11571_v41  ;;  %v11653_v41 = vld [vmem:[#allocation7 + $0x340] ss:$16 sps:$4 sm:$0xff]  }
 0x259   : > { %4253 = vmatpush2.bf16.msra.mxu0 %v11566_v49  ;;  %v11658_v49 = vld [vmem:[#allocation7 + $0x124] ss:$16 sps:$4 sm:$0xff]  }
 0x25a   : > { %5461 = vmatprep.subr.bf16.mxu0 %v11574_v34  ;;  %v11659_v34 = vld [vmem:[#allocation7 + $0x320] ss:$16 sps:$4 sm:$0xff]  }
 0x25b   : > { %4296 = vmatpush2.bf16.msra.mxu1 %v11569_v46  ;;  %v11661_v46 = vld [vmem:[#allocation7 + $0x324] ss:$16 sps:$4 sm:$0xff]  }
 0x25c   : > { %4255 = vmatmul.mubr.bf16.vlgmr.msra.gmra.mxu0 %v12861_v39  ;;  %5534 = vmatprep.subr.bf16.mxu1 %v11577_v6  ;;  %v11584_v39 = vld [vmem:[#allocation7 + $0xa0] ss:$16 sps:$4 sm:$0xff]   ;;  %v11667_v6 = vld [vmem:[#allocation7 + $0x304] ss:$16 sps:$4 sm:$0xff]  }
 0x25d   : > { %5462 = vmatpush1.bf16.msra.mxu0 %v11572_v62  ;;  %v11656_v62 = vld [vmem:[#allocation7 + $0x120] ss:$16 sps:$4 sm:$0xff]  }
 0x25e   : > { %4298 = vmatmul.mubr.bf16.vlgmr.msra.gmra.mxu1 %v12866_v19  ;;  %5463 = vmatprep.subr.bf16.mxu0 %v11580_v7  ;;  %v11587_v19 = vld [vmem:[#allocation7 + $0x2a0] ss:$16 sps:$4 sm:$0xff]  }
 0x25f   : > { %5535 = vmatpush1.bf16.msra.mxu1 %v11575_v10  ;;  %v11664_v10 = vld [vmem:[#allocation7 + $0x104] ss:$16 sps:$4 sm:$0xff]   ;;  %v11662_v7 = vld [vmem:[#allocation7 + $0x100] ss:$16 sps:$4 sm:$0xff]  }
 0x260   : > { %5536 = vmatprep.subr.bf16.mxu1 %v11583_v27  ;;  %v11665_v27 = vld [vmem:[#allocation7 + $0x300] ss:$16 sps:$4 sm:$0xff]  }
 0x261   : > { %5464 = vmatpush1.bf16.msra.mxu0 %v11578_v33  ;;  %v11670_v33 = vld [vmem:[#allocation7 + $0xec] ss:$16 sps:$4 sm:$0xff]  }
 0x262   : > { %5465 = vmatprep.subr.bf16.mxu0 %v11586_v5  ;;  %v3998_v5 = vpop.f32.mrf.mxu0 }
 0x263   : > { %5537 = vmatpush1.bf16.msra.mxu1 %v11581_v20  ;;  %v11673_v20 = vld [vmem:[#allocation7 + $0x2ec] ss:$16 sps:$4 sm:$0xff]  }
 0x264   : > { %5538 = vmatprep.subr.bf16.mxu1 %v11589_v18  ;;  %v4000_v18 = vpop.f32.mrf.mxu0 }
 0x265   : > { %5466 = vmatpush1.bf16.msra.mxu0 %v11584_v39  ;;  %v4041_v39 = vpop.f32.mrf.mxu1 }
 0x266   : > { %5467 = vmatprep.subr.bf16.mxu0 %v11592_v40 }
 0x267   : > { %5539 = vmatpush1.bf16.msra.mxu1 %v11587_v19  ;;  %v4002_v19 = vpop.f32.mrf.mxu0  ;;  %v4043_v40 = vpop.f32.mrf.mxu1 }
 0x268   : > { %5540 = vmatprep.subr.bf16.mxu1 %v11595_v57 }
 0x269   : > { %5468 = vmatpush1.bf16.msra.mxu0 %v11590_v53  ;;  %v4004_v57 = vpop.f32.mrf.mxu0  ;;  %v4045_v53 = vpop.f32.mrf.mxu1 }
 0x26a   : > { %5469 = vmatprep.subr.bf16.mxu0 %v11598_v60 }
 0x26b   : > { %5541 = vmatpush1.bf16.msra.mxu1 %v11593_v12  ;;  %v4047_v60 = vpop.f32.mrf.mxu1 }
 0x26c   : > { %5542 = vmatprep.subr.bf16.mxu1 %v11601_v24  ;;  %v12880_v24 = vld [vmem:[%s15575_s4] sm:$0xf] }
 0x26d   : > { %5470 = vmatpush1.bf16.msra.mxu0 %v11596_v11 }
 0x26e   : > { %5471 = vmatprep.subr.bf16.mxu0 %v11604_v31  ;;  %v2667_v31 = vrot.slane %v12880_v24, %v12441_v14 }
 0x26f   : > { %5543 = vmatpush1.bf16.msra.mxu1 %v11599_v54 }
 0x270   : > { %5544 = vmatprep.subr.bf16.mxu1 %v11607_v28  ;;  %v2671_v28 = vrot.slane %v12880_v24, %v12447_v26 }
 0x271   : > { %5472 = vmatpush1.bf16.msra.mxu0 %v11602_v0  ;;  %v4003_v0 = vadd.f32 %v4002_v19, %v2667_v31 }
 0x272   : > { %5473 = vmatprep.subr.bf16.mxu0 %v11610_v9 }
 0x273   : > { %5545 = vmatpush1.bf16.msra.mxu1 %v11605_v1 }
 0x274   : > { %5546 = vmatprep.subr.bf16.mxu1 %v11613_v38  ;;  %v4005_v38 = vadd.f32 %v4004_v57, %v2671_v28 }
 0x275   : > { %5474 = vmatpush1.bf16.msra.mxu0 %v11608_v52  ;;  %v3999_v52 = vadd.f32 %v3998_v5, %v2667_v31 }
 0x276   : > { %5475 = vmatprep.subr.bf16.mxu0 %v11616_v56  ;;  %v4046_v56 = vadd.f32 %v4045_v53, %v4003_v0 }
 0x277   : > { %5547 = vmatpush1.bf16.msra.mxu1 %v11611_v22  ;;  %v4001_v22 = vadd.f32 %v4000_v18, %v2671_v28 }
 0x278   : > { %5548 = vmatprep.subr.bf16.mxu1 %v11619_v23 }
 0x279   : > { %5476 = vmatpush1.bf16.msra.mxu0 %v11614_v25 }
 0x27a   : > { %5477 = vmatprep.subr.bf16.mxu0 %v11622_v4 }
 0x27b   : > { %5549 = vmatpush1.bf16.msra.mxu1 %v11617_v21  ;;  %v4048_v21 = vadd.f32 %v4047_v60, %v4005_v38  ;;  %v2675_v38 = vrot.slane %v12880_v24, %v12444_v15 }
 0x27c   : > { %5550 = vmatprep.subr.bf16.mxu1 %v11625_v2 }
 0x27d   : > { %5478 = vmatpush2.bf16.msra.mxu0 %v11620_v37  ;;  %v4042_v37 = vadd.f32 %v4041_v39, %v3999_v52 }
 0x27e   : > { %5479 = vmatprep.subr.bf16.mxu0 %v11628_v50 }
 0x27f   : > { %5551 = vmatpush2.bf16.msra.mxu1 %v11623_v29  ;;  %v4044_v29 = vadd.f32 %v4043_v40, %v4001_v22 }
 0x280   : > { %5552 = vmatprep.subr.bf16.mxu1 %v11631_v8 }
 0x281   : > { %5480 = vmatpush2.bf16.msra.mxu0 %v11626_v58 }
 0x282   : > { %5481 = vmatprep.subr.bf16.mxu0 %v11634_v47 }
 0x283   : > { %5553 = vmatpush2.bf16.msra.mxu1 %v11629_v48 }
 0x284   : > { %5554 = vmatprep.subr.bf16.mxu1 %v11637_v13 }
 0x285   : > { %5482 = vmatpush2.bf16.msra.mxu0 %v11632_v30 }
 0x286   : > { %5483 = vmatprep.subr.bf16.mxu0 %v11640_v36 }
 0x287   : > { %5555 = vmatpush2.bf16.msra.mxu1 %v11635_v43 }
 0x288   : > { %5556 = vmatprep.subr.bf16.mxu1 %v11643_v35 }
 0x289   : > { %5484 = vmatpush2.bf16.msra.mxu0 %v11638_v3 }
 0x28a   : > { %5485 = vmatprep.subr.bf16.mxu0 %v11646_v45 }
 0x28b   : > { %5557 = vmatpush2.bf16.msra.mxu1 %v11641_v32 }
 0x28c   : > { %5558 = vmatprep.subr.bf16.mxu1 %v11649_v44 }
 0x28d   : > { %5486 = vmatpush2.bf16.msra.mxu0 %v11644_v51 }
 0x28e   : > { %5487 = vmatprep.subr.bf16.mxu0 %v11652_v55 }
 0x28f   : > { %5559 = vmatpush2.bf16.msra.mxu1 %v11647_v59 }
 0x290   : > { %5560 = vmatprep.subr.bf16.mxu1 %v11655_v63 }
 0x291   : > { %5488 = vmatpush2.bf16.msra.mxu0 %v11650_v42 }
 0x292   : > { %5489 = vmatprep.subr.bf16.mxu0 %v11658_v49 }
 0x293   : > { %5561 = vmatpush2.bf16.msra.mxu1 %v11653_v41 }
 0x294   : > { %5562 = vmatprep.subr.bf16.mxu1 %v11661_v46 }
 0x295   : > { %5490 = vmatpush2.bf16.msra.mxu0 %v11656_v62 }
 0x296   : > { %5491 = vmatprep.subr.bf16.mxu0 %v11664_v10 }
 0x297   : > { %5563 = vmatpush2.bf16.msra.mxu1 %v11659_v34 }
 0x298   : > { %5564 = vmatprep.subr.bf16.mxu1 %v11667_v6 }
 0x299   : > { %5492 = vmatpush2.bf16.msra.mxu0 %v11662_v7 }
 0x29a   : > { %5607 = vmatprep.subr.bf16.mxu0 %v11670_v33 }
 0x29b   : > { %5565 = vmatpush2.bf16.msra.mxu1 %v11665_v27 }
 0x29c   : > { %5680 = vmatprep.subr.bf16.mxu1 %v11673_v20  ;;  %v4084_v12 = vpop.f32.mrf.mxu0 }
 0x29d   : > { %v4085_v58 = vadd.f32 %v4084_v12, %v4042_v37  ;;  %v2679_v37 = vrot.slane %v12880_v24, %v12450_v16 }
 0x29e   : > { %v4086_v11 = vpop.f32.mrf.mxu0  ;;  %v4127_v54 = vpop.f32.mrf.mxu1 }
 0x29f   : > { %v4087_v48 = vadd.f32 %v4086_v11, %v4044_v29  ;;  %v4128_v13 = vadd.f32 %v4127_v54, %v4085_v58 }
 0x2a0   : > { %v4088_v1 = vpop.f32.mrf.mxu0  ;;  %v4129_v9 = vpop.f32.mrf.mxu1 }
 0x2a1   : > { %v4089_v4 = vadd.f32 %v4088_v1, %v4046_v56  ;;  %v4130_v30 = vadd.f32 %v4129_v9, %v4087_v48  ;;  %v4316_v35 = vmul.f32 0.2, %v4128_v13  ;;  %vm4308_vm5 = vcmp.gt.f32.partialorder %v4128_v13, 0.0 }
 0x2a2   : > { %v4090_v23 = vpop.f32.mrf.mxu0  ;;  %v4131_v25 = vpop.f32.mrf.mxu1 }
 0x2a3   : > { %v4091_v2 = vadd.f32 %v4090_v23, %v4048_v21  ;;  %v4132_v8 = vadd.f32 %v4131_v25, %v4089_v4  ;;  %v4317_v3 = vmul.f32 0.2, %v4130_v30  ;;  %vm4309_vm6 = vcmp.gt.f32.partialorder %v4130_v30, 0.0 }
 0x2a4   : > { %v4133_v50 = vpop.f32.mrf.mxu1  ;;  %v4324_v44 = vsel %vm4308_vm5, %v4128_v13, %v4316_v35  ;;  %vm12966_vm5 = vmand %vm4592_vm13, %vm4593_vm14 }
 0x2a5   : > { %v4134_v47 = vadd.f32 %v4133_v50, %v4091_v2  ;;  %v4320_v43 = vmul.f32 0.2, %v4132_v8  ;;  %vm4312_vm15 = vcmp.gt.f32.partialorder %v4132_v8, 0.0  ;;  %v4325_v51 = vsel %vm4309_vm6, %v4130_v30, %v4317_v3 }
 0x2a6   : > { %vm6073_vm6 = vcmask 1047552  }
 0x2a7   : > { %v4321_v36 = vmul.f32 0.2, %v4134_v47  ;;  %vm4313_vm4 = vcmp.gt.f32.partialorder %v4134_v47, 0.0  ;;  %v4328_v32 = vsel %vm4312_vm15, %v4132_v8, %v4320_v43 }
 0x2a8   : > { %v12886_v59 = vpack.c.bf16 %v4328_v32, %v4324_v44 }
 0x2a9   : > { %v4329_v45 = vsel %vm4313_vm4, %v4134_v47, %v4321_v36 }
 0x2aa   : > { %v12888_v55 = vpack.c.bf16 %v4329_v45, %v4325_v51  ;;  %v4341_v63 = vrot.slane %v12886_v59, 7  ;;  %v4336_v49 = vsel %vm1820_vm1, %v12886_v59, 0  ;;  %v4364_v62 = vrot.slane %v12886_v59, 2 }
 0x2ab   : > { %v4371_v6 = vrot.slane %v12886_v59, 1  ;;  %v4355_v12 = vrot.slane %v12886_v59, 6  ;;  %v4388_v60 = vrot.slane %v12886_v59, 4  ;;  %v4395_v0 = vrot.slane %v12886_v59, 3 }
 0x2ac   : > { %v4338_v42 = vshll.u32 %v12888_v55, 16  ;;  %v4366_v41 = vrot.slane %v12888_v55, 2  ;;  %v4343_v46 = vshrl.u32 %v4341_v63, 16  ;;  %v4365_v27 = vsel %vm1820_vm1, %v4364_v62, 0 }
 0x2ad   : > { %v4346_v33 = vrot.slane %v12888_v55, 7  ;;  %v4373_v5 = vshrl.u32 %v4371_v6, 16  ;;  %v4390_v39 = vrot.slane %v12888_v55, 4  ;;  %v4376_v57 = vrot.slane %v12888_v55, 1 }
 0x2ae   : > { %v4340_v34 = vsel %vm1825_vm2, %v4338_v42, %v4336_v49  ;;  %v4368_v10 = vshll.u32 %v4366_v41, 16  ;;  %v4357_v52 = vshrl.u32 %v4355_v12, 16  ;;  %v4389_v56 = vsel %vm1820_vm1, %v4388_v60, 0 }
 0x2af   : > { %v4345_v7 = vsel %vm1828_vm9, %v4343_v46, %v4340_v34  ;;  %v4351_v54 = vshll.u32 %v4346_v33, 16  ;;  %v4392_v28 = vshll.u32 %v4390_v39, 16  ;;  %v4380_v25 = vshll.u32 %v4376_v57, 16 }
 0x2b0   : > { %v4370_v20 = vsel %vm1825_vm2, %v4368_v10, %v4365_v27  ;;  %v4347_v18 = vsel %vm1834_vm10, %v4346_v33, %v4345_v7  ;;  %v4397_v29 = vshrl.u32 %v4395_v0, 16  ;;  %v4361_v58 = vrot.slane %v12888_v55, 6 }
 0x2b1   : > { %v4375_v19 = vsel %vm1828_vm9, %v4373_v5, %v4370_v20  ;;  %v4349_v53 = vsel %vm4348_vm7, %v4341_v63, %v4347_v18  ;;  %v4394_v21 = vsel %vm1825_vm2, %v4392_v28, %v4389_v56  ;;  %v4384_v8 = vshrl.u32 %v12886_v59, 16 }
 0x2b2   : > { %v4377_v31 = vsel %vm1834_vm10, %v4376_v57, %v4375_v19  ;;  %v4354_v9 = vsel %vm4353_vm8, %v4351_v54, %v4349_v53  ;;  %v4399_v47 = vsel %vm1828_vm9, %v4397_v29, %v4394_v21  ;;  %v4400_v24 = vrot.slane %v12888_v55, 3 }
 0x2b3   : > { %v4378_v22 = vsel %vm4348_vm7, %v4371_v6, %v4377_v31  ;;  %v4360_v4 = vsel %vm4359_vm11, %v4357_v52, %v4354_v9  ;;  %v4414_v44 = vshll.u32 %v4361_v58, 16  ;;  %v4417_v46 = vrot.slane %v12886_v59, 5 }
 0x2b4   : > { %v4382_v50 = vsel %vm4353_vm8, %v4380_v25, %v4378_v22  ;;  %v12933_v30 = vsel %vm4362_vm12, %v4361_v58, %v4360_v4  ;;  %v4401_v3 = vsel %vm1834_vm10, %v4400_v24, %v4399_v47  ;;  %v4412_v20 = vsel %vm1820_vm1, %v4355_v12, 0 }
 0x2b5   : > { %v4386_v36 = vsel %vm4359_vm11, %v4384_v8, %v4382_v50  ;;  %v4531_v51 = vshll.u32 %v12933_v30, 16  ;;  %v4402_v7 = vsel %vm4348_vm7, %v4395_v0, %v4401_v3  ;;  %v4404_v5 = vshll.u32 %v4400_v24, 16 }
 0x2b6   : > { %v12941_v49 = vsel %vm4362_vm12, %v12888_v55, %v4386_v36  ;;  %v4408_v12 = vshrl.u32 %v4364_v62, 16  ;;  %v4529_v56 = vshrl.u32 %v12933_v30, 16  ;;  %v4422_v4 = vrot.slane %v12888_v55, 5 }
 0x2b7   : > { %v4533_v57 = vrot.slane %v4531_v51, 1  ;;  %v4545_v31 = vshll.u32 %v12941_v49, 16  ;;  %v4406_v28 = vsel %vm4353_vm8, %v4404_v5, %v4402_v7  ;;  %v4543_v21 = vshrl.u32 %v12941_v49, 16 }
 0x2b9   : > { %v12956_v50 = vor.u32 %v4533_v57, %v4529_v56  ;;  %v4547_v62 = vrot.slane %v4545_v31, 1 }
 0x2dc   : > { %v4170_v40 = vpop.f32.mrf.mxu0 }
 0x2dd   : > { %v4171_v48 = vadd.f32 %v4170_v40, %v2675_v38  ;;  %v4416_v40 = vsel %vm1825_vm2, %v4414_v44, %v4412_v20 }
 0x2de   : > { %v4213_v11 = vpop.f32.mrf.mxu1  ;;  %v4172_v1 = vpop.f32.mrf.mxu0 }
 0x2df   : > { %v4173_v43 = vadd.f32 %v4172_v1, %v2679_v37  ;;  %v4214_v32 = vadd.f32 %v4213_v11, %v4171_v48  ;;  %v4419_v1 = vshrl.u32 %v4417_v46, 16 }
 0x2e0   : > { %v4215_v23 = vpop.f32.mrf.mxu1  ;;  %v4174_v2 = vpop.f32.mrf.mxu0 }
 0x2e1   : > { %v4175_v45 = vadd.f32 %v4174_v2, %v2675_v38  ;;  %v4216_v34 = vadd.f32 %v4215_v23, %v4173_v43  ;;  %v4421_v23 = vsel %vm1828_vm9, %v4419_v1, %v4416_v40 }
 0x2e2   : > { %v4217_v13 = vpop.f32.mrf.mxu1  ;;  %v4176_v35 = vpop.f32.mrf.mxu0  ;;  %v4423_v47 = vsel %vm1834_vm10, %v4422_v4, %v4421_v23 }
 0x2e3   : > { %v4177_v10 = vadd.f32 %v4176_v35, %v2679_v37  ;;  %v4218_v18 = vadd.f32 %v4217_v13, %v4175_v45  ;;  %v4410_v37 = vsel %vm4359_vm11, %v4408_v12, %v4406_v28  ;;  %v4426_v35 = vshll.u32 %v4422_v4, 16 }
 0x2e4   : > { %v4219_v63 = vpop.f32.mrf.mxu1  ;;  %v12962_v24 = vsel %vm4362_vm12, %v4366_v41, %v4410_v37  ;;  %v4548_v45 = vor.u32 %v4547_v62, %v4543_v21  ;;  %v4424_v44 = vsel %vm4348_vm7, %v4417_v46, %v4423_v47 }
 0x2e5   : > { %v4220_v9 = vadd.f32 %v4219_v63, %v4177_v10  ;;  %v4559_v41 = vshll.u32 %v12962_v24, 16  ;;  %v4595_v10 = vsel %vm12966_vm5, %v12956_v50, 0 }
 0x2e6   : > { %v12993_v40 = vsel %vm12966_vm5, %v4548_v45, 0 }
 0x2e7   : > { %v4561_v57 = vrot.slane %v4559_v41, 1 }
 0x31c   : > { %v4256_v42 = vpop.f32.mrf.mxu0 }
 0x31d   : > { %v4257_v6 = vadd.f32 %v4256_v42, %v4214_v32 }
 0x31e   : > { %v4258_v27 = vpop.f32.mrf.mxu0  ;;  %v4299_v33 = vpop.f32.mrf.mxu1 }
 0x31f   : > { %v4259_v19 = vadd.f32 %v4258_v27, %v4216_v34  ;;  %v4300_v53 = vadd.f32 %v4299_v33, %v4257_v6  ;;  %v4430_v6 = vshrl.u32 %v4388_v60, 16  ;;  %v4428_v33 = vsel %vm4353_vm8, %v4426_v35, %v4424_v44 }
 0x320   : > { %v4260_v11 = vpop.f32.mrf.mxu0  ;;  %v4301_v54 = vpop.f32.mrf.mxu1 }
 0x321   : > { %v4261_v0 = vadd.f32 %v4260_v11, %v4218_v18  ;;  %v4302_v38 = vadd.f32 %v4301_v54, %v4259_v19  ;;  %v4318_v29 = vmul.f32 0.2, %v4300_v53  ;;  %vm4310_vm0 = vcmp.gt.f32.partialorder %v4300_v53, 0.0 }
 0x322   : > { %v4262_v52 = vpop.f32.mrf.mxu0  ;;  %v4303_v22 = vpop.f32.mrf.mxu1  ;;  %v4557_v19 = vshrl.u32 %v12962_v24, 16  ;;  %v4432_v31 = vsel %vm4359_vm11, %v4430_v6, %v4428_v33 }
 0x323   : > { %v4263_v25 = vadd.f32 %v4262_v52, %v4220_v9  ;;  %v4304_v2 = vadd.f32 %v4303_v22, %v4261_v0  ;;  %v4319_v48 = vmul.f32 0.2, %v4302_v38  ;;  %vm4311_vm3 = vcmp.gt.f32.partialorder %v4302_v38, 0.0 }
 0x324   : > { %v4305_v58 = vpop.f32.mrf.mxu1  ;;  %v4326_v3 = vsel %vm4310_vm0, %v4300_v53, %v4318_v29  ;;  %v4562_v4 = vor.u32 %v4561_v57, %v4557_v19 }
 0x325   : > { %v4306_v8 = vadd.f32 %v4305_v58, %v4263_v25  ;;  %vm4314_vm15 = vcmp.gt.f32.partialorder %v4304_v2, 0.0  ;;  %v4322_v13 = vmul.f32 0.2, %v4304_v2  ;;  %v4327_v51 = vsel %vm4311_vm3, %v4302_v38, %v4319_v48 }
 0x327   : > { %vm4315_vm4 = vcmp.gt.f32.partialorder %v4306_v8, 0.0  ;;  %v4323_v43 = vmul.f32 0.2, %v4306_v8  ;;  %v4330_v32 = vsel %vm4314_vm15, %v4304_v2, %v4322_v13  ;;  %v13014_v2 = vsel %vm4362_vm12, %v4390_v39, %v4432_v31 }
 0x328   : > { %v12971_v63 = vpack.c.bf16 %v4330_v32, %v4326_v3  ;;  %v4573_v31 = vshll.u32 %v13014_v2, 16 }
 0x329   : > { %v4331_v42 = vsel %vm4315_vm4, %v4306_v8, %v4323_v43 }
 0x32a   : > { %v12974_v34 = vpack.c.bf16 %v4331_v42, %v4327_v51  ;;  %v4439_v7 = vrot.slane %v12971_v63, 7  ;;  %v4451_v27 = vrot.slane %v12971_v63, 6  ;;  %v4458_v46 = vrot.slane %v12971_v63, 2 }
 0x32b   : > { %v4434_v59 = vsel %vm1820_vm1, %v12971_v63, 0  ;;  %v4465_v0 = vrot.slane %v12971_v63, 1  ;;  %v4482_v25 = vrot.slane %v12971_v63, 4  ;;  %v4489_v29 = vrot.slane %v12971_v63, 3 }
 0x32c   : > { %v4436_v20 = vshll.u32 %v12974_v34, 16  ;;  %v4444_v5 = vrot.slane %v12974_v34, 7  ;;  %v4460_v18 = vrot.slane %v12974_v34, 2  ;;  %v4441_v60 = vshrl.u32 %v4439_v7, 16 }
 0x32d   : > { %v4456_v11 = vrot.slane %v12974_v34, 6  ;;  %v4453_v1 = vshrl.u32 %v4451_v27, 16  ;;  %v4459_v9 = vsel %vm1820_vm1, %v4458_v46, 0  ;;  %v4470_v22 = vrot.slane %v12974_v34, 1 }
 0x32e   : > { %v4438_v53 = vsel %vm1825_vm2, %v4436_v20, %v4434_v59  ;;  %v4462_v54 = vshll.u32 %v4460_v18, 16  ;;  %v4448_v12 = vshll.u32 %v4444_v5, 16  ;;  %v4467_v23 = vshrl.u32 %v4465_v0, 16 }
 0x32f   : > { %v4443_v28 = vsel %vm1828_vm9, %v4441_v60, %v4438_v53  ;;  %v4484_v21 = vrot.slane %v12974_v34, 4  ;;  %v4506_v62 = vsel %vm1820_vm1, %v4451_v27, 0  ;;  %v4508_v13 = vshll.u32 %v4456_v11, 16 }
 0x330   : > { %v4445_v38 = vsel %vm1834_vm10, %v4444_v5, %v4443_v28  ;;  %v4464_v52 = vsel %vm1825_vm2, %v4462_v54, %v4459_v9  ;;  %v4494_v35 = vrot.slane %v12974_v34, 3  ;;  %v4474_v3 = vshll.u32 %v4470_v22, 16 }
 0x331   : > { %v4446_v56 = vsel %vm4348_vm7, %v4439_v7, %v4445_v38  ;;  %v4469_v48 = vsel %vm1828_vm9, %v4467_v23, %v4464_v52  ;;  %v4486_v8 = vshll.u32 %v4484_v21, 16  ;;  %v4483_v39 = vsel %vm1820_vm1, %v4482_v25, 0  ;;  %v11668_v52 = vld [vmem:[#allocation7 + $0xe8] ss:$16 sps:$4 sm:$0xff]  }
 0x332   : > { %v4450_v37 = vsel %vm4353_vm8, %v4448_v12, %v4446_v56  ;;  %v4471_v43 = vsel %vm1834_vm10, %v4470_v22, %v4469_v48  ;;  %v4491_v32 = vshrl.u32 %v4489_v29, 16  ;;  %v4478_v44 = vshrl.u32 %v12971_v63, 16  ;;  %v11671_v22 = vld [vmem:[#allocation7 + $0x2e8] ss:$16 sps:$4 sm:$0xff]  }
 0x333   : > { %v4455_v58 = vsel %vm4359_vm11, %v4453_v1, %v4450_v37  ;;  %v4472_v45 = vsel %vm4348_vm7, %v4465_v0, %v4471_v43  ;;  %v4488_v51 = vsel %vm1825_vm2, %v4486_v8, %v4483_v39  ;;  %v4511_v42 = vrot.slane %v12971_v63, 5  ;;  %v11677_v39 = vld [vmem:[#allocation7 + $0x2c8] ss:$16 sps:$4 sm:$0xff]   ;;  %v11682_v63 = vld [vmem:[#allocation7 + $0xac] ss:$16 sps:$4 sm:$0xff]  }
 0x334   : > { %v4457_v47 = vsel %vm4362_vm12, %v4456_v11, %v4455_v58  ;;  %v4476_v7 = vsel %vm4353_vm8, %v4474_v3, %v4472_v45  ;;  %v4493_v27 = vsel %vm1828_vm9, %v4491_v32, %v4488_v51  ;;  %v4510_v33 = vsel %vm1825_vm2, %v4508_v13, %v4506_v62  ;;  %v11676_v58 = vld [vmem:[#allocation7 + $0xcc] ss:$16 sps:$4 sm:$0xff]  }
 0x335   : > { %v4538_v55 = vshll.u32 %v4457_v47, 16  ;;  %v4536_v41 = vshrl.u32 %v4457_v47, 16  ;;  %v4480_v20 = vsel %vm4359_vm11, %v4478_v44, %v4476_v7  ;;  %v4495_v5 = vsel %vm1834_vm10, %v4494_v35, %v4493_v27  ;;  %v11679_v62 = vld [vmem:[#allocation7 + $0x2cc] ss:$16 sps:$4 sm:$0xff]   ;;  %v11680_v27 = vld [vmem:[#allocation7 + $0xa8] ss:$16 sps:$4 sm:$0xff]  }
 0x336   : > { %v4498_v19 = vshll.u32 %v4494_v35, 16  ;;  %v13038_v60 = vsel %vm4362_vm12, %v12974_v34, %v4480_v20  ;;  %v4496_v57 = vsel %vm4348_vm7, %v4489_v29, %v4495_v5  ;;  %v4513_v53 = vshrl.u32 %v4511_v42, 16 }
 0x337   : > { %v4540_v6 = vrot.slane %v4538_v55, 1  ;;  %v4552_v11 = vshll.u32 %v13038_v60, 16  ;;  %v4502_v54 = vshrl.u32 %v4458_v46, 16  ;;  %v4516_v28 = vrot.slane %v12974_v34, 5 }
 0x338   : > { %v4550_v9 = vshrl.u32 %v13038_v60, 16  ;;  %v4500_v0 = vsel %vm4353_vm8, %v4498_v19, %v4496_v57  ;;  %v4515_v38 = vsel %vm1828_vm9, %v4513_v53, %v4510_v33  ;;  %v13060_v37 = vcombine.low %v12933_v30, %v4457_v47  ;;  %v11683_v33 = vld [vmem:[#allocation7 + $0x2a8] ss:$16 sps:$4 sm:$0xff]   ;;  %v11691_v57 = vld [vmem:[#allocation7 + $0x28c] ss:$16 sps:$4 sm:$0xff]  }
 0x339   : > { %v4541_v59 = vor.u32 %v4540_v6, %v4536_v41  ;;  %v4554_v56 = vrot.slane %v4552_v11, 1  ;;  %v4504_v23 = vsel %vm4359_vm11, %v4502_v54, %v4500_v0  ;;  %v13063_v29 = vcombine.low %v4457_v47, %v12941_v49  ;;  %v11689_v54 = vld [vmem:[#allocation7 + $0x288] ss:$16 sps:$4 sm:$0xff]  }
 0x33a   : > { %v13068_v50 = vsel %vm4362_vm12, %v4460_v18, %v4504_v23  ;;  %v4575_v8 = vrot.slane %v4573_v31, 1  ;;  %v4520_v13 = vshll.u32 %v4516_v28, 16  ;;  %v4599_v47 = vsel %vm12966_vm5, %v4562_v4, 0  ;;  %v11674_v18 = vld [vmem:[#allocation7 + $0xc8] ss:$16 sps:$4 sm:$0xff]  }
 0x33b   : > { %v4596_v1 = vsel %vm12966_vm5, %v4541_v59, 0  ;;  %v4555_v48 = vor.u32 %v4554_v56, %v4550_v9  ;;  %v4566_v30 = vshll.u32 %v13068_v50, 16  ;;  %v4571_v43 = vshrl.u32 %v13014_v2, 16  ;;  %v11688_v59 = vld [vmem:[#allocation7 + $0x8c] ss:$16 sps:$4 sm:$0xff]  }
 0x33c   : > { %v13053_v12 = vcombine.low %v4595_v10, %v4596_v1  ;;  %v13056_v46 = vcombine.low %v4596_v1, %v12993_v40  ;;  %v4517_v10 = vsel %vm1834_vm10, %v4516_v28, %v4515_v38  ;;  %v4524_v55 = vshrl.u32 %v4482_v25, 16  ;;  %v11685_v25 = vld [vmem:[#allocation7 + $0x2ac] ss:$16 sps:$4 sm:$0xff]   ;;  %v11692_v9 = vld [vmem:[#allocation7 + $0x68] ss:$16 sps:$4 sm:$0xff]  }
 0x33d   : > { %v4518_v35 = vsel %vm4348_vm7, %v4511_v42, %v4517_v10  ;;  %v4598_v3 = vsel %vm12966_vm5, %v4555_v48, 0  ;;  %v4564_v32 = vshrl.u32 %v13068_v50, 16  ;;  %v4568_v45 = vrot.slane %v4566_v30, 1  ;;  %v11694_v28 = vld [vmem:[#allocation7 + $0x6c] ss:$16 sps:$4 sm:$0xff]  }
 0x33e   : > { %5493 = vmatprep.mubr.bf16.mxu0 %v13053_v12  ;;  %5566 = vmatprep.mubr.bf16.mxu1 %v13056_v46  ;;  %v4522_v44 = vsel %vm4353_vm8, %v4520_v13, %v4518_v35  ;;  %v13087_v4 = vcombine.low %v12993_v40, %v4598_v3  ;;  %v13089_v51 = vcombine.low %v4598_v3, %v4599_v47  ;;  %v11697_v1 = vld [vmem:[#allocation7 + $0x26c] ss:$16 sps:$4 sm:$0xff]   ;;  %v11695_v0 = vld [vmem:[#allocation7 + $0x268] ss:$16 sps:$4 sm:$0xff]   ;;  %vm6074_vm8 = vsmask.f32 7424 }
 0x33f   : > { %5494 = vmatmul.mubr.bf16.vlgmr.msra.gmra.mxu0 %v13060_v37  ;;  %5567 = vmatmul.mubr.bf16.vlgmr.msra.gmra.mxu1 %v13063_v29  ;;  %v4526_v42 = vsel %vm4359_vm11, %v4524_v55, %v4522_v44  ;;  %v4569_v41 = vor.u32 %v4568_v45, %v4564_v32  ;;  %v4576_v6 = vor.u32 %v4575_v8, %v4571_v43  ;;  %v11700_v23 = vld [vmem:[#allocation7 + $0x4c] ss:$16 sps:$4 sm:$0xff]   ;;  %v11698_v10 = vld [vmem:[#allocation7 + $0x48] ss:$16 sps:$4 sm:$0xff]   ;;  %vm13194_vm13 = vmand %vm6073_vm6, %vm6074_vm8 }
 0x340   : > { %5608 = vmatpush1.bf16.msra.mxu0 %v11668_v52  ;;  %5681 = vmatpush1.bf16.msra.mxu1 %v11671_v22  ;;  %v13095_v7 = vsel %vm4362_vm12, %v4484_v21, %v4526_v42  ;;  %v13104_v34 = vcombine.low %v12941_v49, %v13038_v60  ;;  %v13108_v21 = vcombine.low %v13038_v60, %v12962_v24  ;;  %v11686_v60 = vld [vmem:[#allocation7 + $0x88] ss:$16 sps:$4 sm:$0xff]   ;;  %v4603_v52 = vsel %vm12966_vm5, %v12558_v61, 0  ;;  %v11712_v43 = vld [vmem:[#allocation7 + $0xc] ss:$16 sps:$4 sm:$0xff]  }
 0x341   : > { %5609 = vmatprep.subr.bf16.mxu0 %v11676_v58  ;;  %5682 = vmatprep.subr.bf16.mxu1 %v11679_v62  ;;  %v4580_v40 = vshll.u32 %v13095_v7, 16  ;;  %v4600_v20 = vsel %vm12966_vm5, %v4569_v41, 0  ;;  %v4601_v19 = vsel %vm12966_vm5, %v4576_v6, 0  ;;  %v4578_v53 = vshrl.u32 %v13095_v7, 16  ;;  %v11703_v58 = vld [vmem:[#allocation7 + $0x24c] ss:$16 sps:$4 sm:$0xff]  }
 0x342   : > { %5503 = vmatprep.mubr.bf16.mxu0 %v13087_v4  ;;  %5576 = vmatprep.mubr.bf16.mxu1 %v13089_v51  ;;  %v13115_v11 = vcombine.low %v4599_v47, %v4600_v20  ;;  %v13117_v49 = vcombine.low %v4600_v20, %v4601_v19  ;;  %v13128_v22 = vcombine.low %v12962_v24, %v13068_v50  ;;  %v11701_v48 = vld [vmem:[#allocation7 + $0x248] ss:$16 sps:$4 sm:$0xff]   ;;  %v11706_v24 = vld [vmem:[#allocation7 + $0x2c] ss:$16 sps:$4 sm:$0xff]   ;;  %v15748_v47 = vmov 0  }
 0x343   : > { %v4582_v5 = vrot.slane %v4580_v40, 1  ;;  %v13132_v56 = vcombine.low %v13068_v50, %v13014_v2  ;;  %v11709_v50 = vld [vmem:[#allocation7 + $0x22c] ss:$16 sps:$4 sm:$0xff]   ;;  %v11704_v30 = vld [vmem:[#allocation7 + $0x28] ss:$16 sps:$4 sm:$0xff]   ;;  %v13144_v13 = vcombine.low %v13014_v2, %v13095_v7 }
 0x344   : > { %5610 = vmatpush1.bf16.msra.mxu0 %v11674_v18  ;;  %5683 = vmatpush1.bf16.msra.mxu1 %v11677_v39  ;;  %v11707_v8 = vld [vmem:[#allocation7 + $0x228] ss:$16 sps:$4 sm:$0xff]   ;;  %v13148_v18 = vcombine.low %v13095_v7, %v15748_v47  ;;  %v11715_v35 = vld [vmem:[#allocation7 + $0x20c] ss:$16 sps:$4 sm:$0xff]  }
 0x345   : > { %5611 = vmatprep.subr.bf16.mxu0 %v11682_v63  ;;  %5684 = vmatprep.subr.bf16.mxu1 %v11685_v25  ;;  %v4583_v31 = vor.u32 %v4582_v5, %v4578_v53  ;;  %v11710_v55 = vld [vmem:[#allocation7 + $0x8] ss:$16 sps:$4 sm:$0xff]   ;;  %v11718_v2 = vld [vmem:[#allocation7 + $0x1ec] ss:$16 sps:$4 sm:$0xff]  }
 0x346   : > { %v11713_v3 = vld [vmem:[#allocation7 + $0x208] ss:$16 sps:$4 sm:$0xff]   ;;  %v11721_v39 = vld [vmem:[#allocation7 + $0x3ec] ss:$16 sps:$4 sm:$0xff]  }
 0x347   : > { %5504 = vmatmul.mubr.bf16.gmra.mxu0 %v13104_v34  ;;  %5577 = vmatmul.mubr.bf16.gmra.mxu1 %v13108_v21  ;;  %v4602_v38 = vsel %vm12966_vm5, %v4583_v31, 0  ;;  %v11716_v32 = vld [vmem:[#allocation7 + $0x1e8] ss:$16 sps:$4 sm:$0xff]   ;;  %v11724_v44 = vld [vmem:[#allocation7 + $0x1cc] ss:$16 sps:$4 sm:$0xff]  }
 0x348   : > { %5612 = vmatpush1.bf16.msra.mxu0 %v11680_v27  ;;  %5685 = vmatpush1.bf16.msra.mxu1 %v11683_v33  ;;  %v13136_v62 = vcombine.low %v4601_v19, %v4602_v38  ;;  %v13138_v36 = vcombine.low %v4602_v38, %v4603_v52  ;;  %v11719_v45 = vld [vmem:[#allocation7 + $0x3e8] ss:$16 sps:$4 sm:$0xff]   ;;  %v11727_v63 = vld [vmem:[#allocation7 + $0x3cc] ss:$16 sps:$4 sm:$0xff]  }
 0x349   : > { %5513 = vmatprep.mubr.bf16.mxu0 %v13115_v11  ;;  %5586 = vmatprep.mubr.bf16.mxu1 %v13117_v49  ;;  %v11722_v25 = vld [vmem:[#allocation7 + $0x1c8] ss:$16 sps:$4 sm:$0xff]   ;;  %v11736_v7 = vld [vmem:[#allocation7 + $0x18c] ss:$16 sps:$4 sm:$0xff]  }
 0x34a   : > { %5613 = vmatprep.subr.bf16.mxu0 %v11688_v59  ;;  %5686 = vmatprep.subr.bf16.mxu1 %v11691_v57  ;;  %v11725_v42 = vld [vmem:[#allocation7 + $0x3c8] ss:$16 sps:$4 sm:$0xff]   ;;  %v11739_v40 = vld [vmem:[#allocation7 + $0x38c] ss:$16 sps:$4 sm:$0xff]  }
 0x34b   : > { %v11728_v41 = vld [vmem:[#allocation7 + $0x1a8] ss:$16 sps:$4 sm:$0xff]   ;;  %v11742_v20 = vld [vmem:[#allocation7 + $0x16c] ss:$16 sps:$4 sm:$0xff]  }
 0x34c   : > { %5614 = vmatpush1.bf16.msra.mxu0 %v11686_v60  ;;  %5687 = vmatpush1.bf16.msra.mxu1 %v11689_v54  ;;  %v11731_v6 = vld [vmem:[#allocation7 + $0x3a8] ss:$16 sps:$4 sm:$0xff]   ;;  %v11745_v5 = vld [vmem:[#allocation7 + $0x36c] ss:$16 sps:$4 sm:$0xff]  }
 0x34d   : > { %5615 = vmatprep.subr.bf16.mxu0 %v11694_v28  ;;  %5688 = vmatprep.subr.bf16.mxu1 %v11697_v1  ;;  %v11734_v27 = vld [vmem:[#allocation7 + $0x188] ss:$16 sps:$4 sm:$0xff]   ;;  %v11748_v57 = vld [vmem:[#allocation7 + $0x14c] ss:$16 sps:$4 sm:$0xff]  }
 0x34e   : > { %v11737_v33 = vld [vmem:[#allocation7 + $0x388] ss:$16 sps:$4 sm:$0xff]   ;;  %v11751_v53 = vld [vmem:[#allocation7 + $0x34c] ss:$16 sps:$4 sm:$0xff]  }
 0x34f   : > { %5514 = vmatmul.mubr.bf16.gmra.mxu0 %v13128_v22  ;;  %5587 = vmatmul.mubr.bf16.gmra.mxu1 %v13132_v56  ;;  %v11740_v19 = vld [vmem:[#allocation7 + $0x168] ss:$16 sps:$4 sm:$0xff]   ;;  %v11754_v31 = vld [vmem:[#allocation7 + $0x12c] ss:$16 sps:$4 sm:$0xff]  }
 0x350   : > { %5616 = vmatpush1.bf16.msra.mxu0 %v11692_v9  ;;  %5689 = vmatpush1.bf16.msra.mxu1 %v11695_v0  ;;  %v11743_v59 = vld [vmem:[#allocation7 + $0x368] ss:$16 sps:$4 sm:$0xff]   ;;  %v11757_v28 = vld [vmem:[#allocation7 + $0x32c] ss:$16 sps:$4 sm:$0xff]  }
 0x351   : > { %5523 = vmatprep.mubr.bf16.mxu0 %v13136_v62  ;;  %5596 = vmatprep.mubr.bf16.mxu1 %v13138_v36  ;;  %v11746_v60 = vld [vmem:[#allocation7 + $0x148] ss:$16 sps:$4 sm:$0xff]   ;;  %v11760_v0 = vld [vmem:[#allocation7 + $0x10c] ss:$16 sps:$4 sm:$0xff]  }
 0x352   : > { %5617 = vmatprep.subr.bf16.mxu0 %v11700_v23  ;;  %5690 = vmatprep.subr.bf16.mxu1 %v11703_v58  ;;  %v11749_v54 = vld [vmem:[#allocation7 + $0x348] ss:$16 sps:$4 sm:$0xff]   ;;  %v11763_v38 = vld [vmem:[#allocation7 + $0x30c] ss:$16 sps:$4 sm:$0xff]  }
 0x353   : > { %v11752_v1 = vld [vmem:[#allocation7 + $0x128] ss:$16 sps:$4 sm:$0xff]  }
 0x354   : > { %5618 = vmatpush1.bf16.msra.mxu0 %v11698_v10  ;;  %5691 = vmatpush1.bf16.msra.mxu1 %v11701_v48  ;;  %v11755_v9 = vld [vmem:[#allocation7 + $0x328] ss:$16 sps:$4 sm:$0xff]   ;;  %v11764_v10 = vld [vmem:[#allocation10 + $0xe0] ss:$16 sps:$4 sm:$0xff]  }
 0x355   : > { %5619 = vmatprep.subr.bf16.mxu0 %v11706_v24  ;;  %5692 = vmatprep.subr.bf16.mxu1 %v11709_v50  ;;  %v11758_v52 = vld [vmem:[#allocation7 + $0x108] ss:$16 sps:$4 sm:$0xff]   ;;  %v11767_v24 = vld [vmem:[#allocation10 + $0xc0] ss:$16 sps:$4 sm:$0xff]  }
 0x356   : > { %v11761_v23 = vld [vmem:[#allocation7 + $0x308] ss:$16 sps:$4 sm:$0xff]  }
 0x357   : > { %5524 = vmatmul.mubr.bf16.gmra.mxu0 %v13144_v13  ;;  %5597 = vmatmul.mubr.bf16.gmra.mxu1 %v13148_v18  ;;  %v11766_v58 = vld [vmem:[#allocation10 + $0xe4] ss:$16 sps:$4 sm:$0xff]  }
 0x358   : > { %5620 = vmatpush1.bf16.msra.mxu0 %v11704_v30  ;;  %5693 = vmatpush1.bf16.msra.mxu1 %v11707_v8  ;;  %v11769_v48 = vld [vmem:[#allocation10 + $0xc4] ss:$16 sps:$4 sm:$0xff]   ;;  %v11770_v30 = vld [vmem:[#allocation10 + $0xa0] ss:$16 sps:$4 sm:$0xff]  }
 0x359   : > { %5639 = vmatprep.mubr.bf16.mxu0 %v13053_v12  ;;  %5712 = vmatprep.mubr.bf16.mxu1 %v13056_v46  ;;  %v11730_v12 = vld [vmem:[#allocation7 + $0x1ac] ss:$16 sps:$4 sm:$0xff]   ;;  %v11772_v50 = vld [vmem:[#allocation10 + $0xa4] ss:$16 sps:$4 sm:$0xff]  }
 0x35a   : > { %5621 = vmatprep.subr.bf16.mxu0 %v11712_v43  ;;  %5694 = vmatprep.subr.bf16.mxu1 %v11715_v35  ;;  %v11733_v46 = vld [vmem:[#allocation7 + $0x3ac] ss:$16 sps:$4 sm:$0xff]   ;;  %v11775_v8 = vld [vmem:[#allocation10 + $0x84] ss:$16 sps:$4 sm:$0xff]   ;;  %v11812_v43 = vld [vmem:[#allocation10 + $0x2e0] ss:$16 sps:$4 sm:$0xff]  }
 0x35b   : > { %v11793_v35 = vld [vmem:[#allocation10 + $0x1c4] ss:$16 sps:$4 sm:$0xff]  }
 0x35c   : > { %5622 = vmatpush1.bf16.msra.mxu0 %v11710_v55  ;;  %5695 = vmatpush1.bf16.msra.mxu1 %v11713_v3  ;;  %v11815_v55 = vld [vmem:[#allocation10 + $0x2c0] ss:$16 sps:$4 sm:$0xff]   ;;  %v11817_v3 = vld [vmem:[#allocation10 + $0x2c4] ss:$16 sps:$4 sm:$0xff]  }
 0x35d   : > { %5623 = vmatprep.subr.bf16.mxu0 %v11718_v2  ;;  %5696 = vmatprep.subr.bf16.mxu1 %v11721_v39  ;;  %v11791_v2 = vld [vmem:[#allocation10 + $0x1c0] ss:$16 sps:$4 sm:$0xff]   ;;  %v11796_v39 = vld [vmem:[#allocation10 + $0x1a4] ss:$16 sps:$4 sm:$0xff]  }
 0x360   : > { %5624 = vmatpush2.bf16.msra.mxu0 %v11716_v32  ;;  %5697 = vmatpush2.bf16.msra.mxu1 %v11719_v45  ;;  %v11794_v32 = vld [vmem:[#allocation10 + $0x1a0] ss:$16 sps:$4 sm:$0xff]   ;;  %v11799_v45 = vld [vmem:[#allocation10 + $0x184] ss:$16 sps:$4 sm:$0xff]  }
 0x361   : > { %5625 = vmatprep.subr.bf16.mxu0 %v11724_v44  ;;  %5698 = vmatprep.subr.bf16.mxu1 %v11727_v63  ;;  %v11821_v44 = vld [vmem:[#allocation10 + $0x280] ss:$16 sps:$4 sm:$0xff]   ;;  %v11823_v63 = vld [vmem:[#allocation10 + $0x284] ss:$16 sps:$4 sm:$0xff]  }
 0x364   : > { %5626 = vmatpush2.bf16.msra.mxu0 %v11722_v25  ;;  %5699 = vmatpush2.bf16.msra.mxu1 %v11725_v42  ;;  %v11826_v25 = vld [vmem:[#allocation10 + $0x264] ss:$16 sps:$4 sm:$0xff]   ;;  %v11797_v42 = vld [vmem:[#allocation10 + $0x180] ss:$16 sps:$4 sm:$0xff]  }
 0x365   : > { %5627 = vmatprep.subr.bf16.mxu0 %v11730_v12  ;;  %5700 = vmatprep.subr.bf16.mxu1 %v11733_v46  ;;  %v11824_v12 = vld [vmem:[#allocation10 + $0x260] ss:$16 sps:$4 sm:$0xff]   ;;  %v11802_v46 = vld [vmem:[#allocation10 + $0x164] ss:$16 sps:$4 sm:$0xff]  }
 0x368   : > { %5628 = vmatpush2.bf16.msra.mxu0 %v11728_v41  ;;  %5701 = vmatpush2.bf16.msra.mxu1 %v11731_v6  ;;  %v11829_v41 = vld [vmem:[#allocation10 + $0x244] ss:$16 sps:$4 sm:$0xff]   ;;  %v11800_v6 = vld [vmem:[#allocation10 + $0x160] ss:$16 sps:$4 sm:$0xff]  }
 0x369   : > { %5629 = vmatprep.subr.bf16.mxu0 %v11736_v7  ;;  %5702 = vmatprep.subr.bf16.mxu1 %v11739_v40  ;;  %v11827_v7 = vld [vmem:[#allocation10 + $0x240] ss:$16 sps:$4 sm:$0xff]   ;;  %v11805_v40 = vld [vmem:[#allocation10 + $0x144] ss:$16 sps:$4 sm:$0xff]  }
 0x36c   : > { %5630 = vmatpush2.bf16.msra.mxu0 %v11734_v27  ;;  %5703 = vmatpush2.bf16.msra.mxu1 %v11737_v33  ;;  %v11832_v27 = vld [vmem:[#allocation10 + $0x224] ss:$16 sps:$4 sm:$0xff]   ;;  %v11803_v33 = vld [vmem:[#allocation10 + $0x140] ss:$16 sps:$4 sm:$0xff]  }
 0x36d   : > { %5631 = vmatprep.subr.bf16.mxu0 %v11742_v20  ;;  %5704 = vmatprep.subr.bf16.mxu1 %v11745_v5  ;;  %v11830_v20 = vld [vmem:[#allocation10 + $0x220] ss:$16 sps:$4 sm:$0xff]   ;;  %v11808_v5 = vld [vmem:[#allocation10 + $0x124] ss:$16 sps:$4 sm:$0xff]  }
 0x370   : > { %5632 = vmatpush2.bf16.msra.mxu0 %v11740_v19  ;;  %5705 = vmatpush2.bf16.msra.mxu1 %v11743_v59  ;;  %v11835_v19 = vld [vmem:[#allocation10 + $0x204] ss:$16 sps:$4 sm:$0xff]   ;;  %v11806_v59 = vld [vmem:[#allocation10 + $0x120] ss:$16 sps:$4 sm:$0xff]  }
 0x371   : > { %5633 = vmatprep.subr.bf16.mxu0 %v11748_v57  ;;  %5706 = vmatprep.subr.bf16.mxu1 %v11751_v53  ;;  %v11833_v57 = vld [vmem:[#allocation10 + $0x200] ss:$16 sps:$4 sm:$0xff]   ;;  %v11811_v53 = vld [vmem:[#allocation10 + $0x104] ss:$16 sps:$4 sm:$0xff]  }
 0x374   : > { %5634 = vmatpush2.bf16.msra.mxu0 %v11746_v60  ;;  %5707 = vmatpush2.bf16.msra.mxu1 %v11749_v54  ;;  %v11838_v60 = vld [vmem:[#allocation10 + $0x3e4] ss:$16 sps:$4 sm:$0xff]   ;;  %v11809_v54 = vld [vmem:[#allocation10 + $0x100] ss:$16 sps:$4 sm:$0xff]  }
 0x375   : > { %5635 = vmatprep.subr.bf16.mxu0 %v11754_v31  ;;  %5708 = vmatprep.subr.bf16.mxu1 %v11757_v28  ;;  %v11836_v31 = vld [vmem:[#allocation10 + $0x3e0] ss:$16 sps:$4 sm:$0xff]   ;;  %v11841_v28 = vld [vmem:[#allocation10 + $0x3c4] ss:$16 sps:$4 sm:$0xff]  }
 0x378   : > { %5636 = vmatpush2.bf16.msra.mxu0 %v11752_v1  ;;  %5709 = vmatpush2.bf16.msra.mxu1 %v11755_v9  ;;  %v11839_v1 = vld [vmem:[#allocation10 + $0x3c0] ss:$16 sps:$4 sm:$0xff]   ;;  %v11844_v9 = vld [vmem:[#allocation10 + $0x3a4] ss:$16 sps:$4 sm:$0xff]  }
 0x379   : > { %5637 = vmatprep.subr.bf16.mxu0 %v11760_v0  ;;  %5710 = vmatprep.subr.bf16.mxu1 %v11763_v38  ;;  %v11842_v0 = vld [vmem:[#allocation10 + $0x3a0] ss:$16 sps:$4 sm:$0xff]  }
 0x37a   : > { %v11845_v38 = vld [vmem:[#allocation10 + $0x380] ss:$16 sps:$4 sm:$0xff]  }
 0x37c   : > { %5638 = vmatpush2.bf16.msra.mxu0 %v11758_v52  ;;  %5711 = vmatpush2.bf16.msra.mxu1 %v11761_v23  ;;  %v11847_v52 = vld [vmem:[#allocation10 + $0x384] ss:$16 sps:$4 sm:$0xff]   ;;  %v11848_v23 = vld [vmem:[#allocation10 + $0x360] ss:$16 sps:$4 sm:$0xff]  }
 0x37d   : > { %6883 = vmatprep.subr.bf16.mxu0 %v11766_v58  ;;  %v11850_v58 = vld [vmem:[#allocation10 + $0x364] ss:$16 sps:$4 sm:$0xff]  }
 0x37f   : > { %5640 = vmatmul.mubr.bf16.vlgmr.msra.gmra.mxu0 %v13060_v37  ;;  %5713 = vmatmul.mubr.bf16.vlgmr.msra.gmra.mxu1 %v13063_v29  ;;  %v11773_v37 = vld [vmem:[#allocation10 + $0x80] ss:$16 sps:$4 sm:$0xff]   ;;  %v11778_v29 = vld [vmem:[#allocation10 + $0x64] ss:$16 sps:$4 sm:$0xff]  }
 0x380   : > { %5649 = vmatprep.mubr.bf16.mxu0 %v13087_v4  ;;  %5722 = vmatprep.mubr.bf16.mxu1 %v13089_v51  ;;  %v11776_v4 = vld [vmem:[#allocation10 + $0x60] ss:$16 sps:$4 sm:$0xff]   ;;  %v11781_v51 = vld [vmem:[#allocation10 + $0x44] ss:$16 sps:$4 sm:$0xff]  }
 0x381   : > { %6884 = vmatpush1.bf16.msra.mxu0 %v11764_v10  ;;  %v11851_v10 = vld [vmem:[#allocation10 + $0x340] ss:$16 sps:$4 sm:$0xff]  }
 0x382   : > { %6885 = vmatprep.subr.bf16.mxu0 %v11769_v48  ;;  %v11853_v48 = vld [vmem:[#allocation10 + $0x344] ss:$16 sps:$4 sm:$0xff]  }
 0x385   : > { %6886 = vmatpush1.bf16.msra.mxu0 %v11767_v24  ;;  %v11854_v24 = vld [vmem:[#allocation10 + $0x320] ss:$16 sps:$4 sm:$0xff]  }
 0x386   : > { %6887 = vmatprep.subr.bf16.mxu0 %v11772_v50  ;;  %v11856_v50 = vld [vmem:[#allocation10 + $0x324] ss:$16 sps:$4 sm:$0xff]  }
 0x387   : > { %5650 = vmatmul.mubr.bf16.gmra.mxu0 %v13104_v34  ;;  %5723 = vmatmul.mubr.bf16.gmra.mxu1 %v13108_v21  ;;  %v11779_v34 = vld [vmem:[#allocation10 + $0x40] ss:$16 sps:$4 sm:$0xff]   ;;  %v11784_v21 = vld [vmem:[#allocation10 + $0x24] ss:$16 sps:$4 sm:$0xff]  }
 0x388   : > { %5659 = vmatprep.mubr.bf16.mxu0 %v13115_v11  ;;  %5732 = vmatprep.mubr.bf16.mxu1 %v13117_v49  ;;  %v11782_v11 = vld [vmem:[#allocation10 + $0x20] ss:$16 sps:$4 sm:$0xff]   ;;  %v11787_v49 = vld [vmem:[#allocation10 + $0x4] ss:$16 sps:$4 sm:$0xff]  }
 0x389   : > { %6888 = vmatpush1.bf16.msra.mxu0 %v11770_v30  ;;  %v11857_v30 = vld [vmem:[#allocation10 + $0x300] ss:$16 sps:$4 sm:$0xff]  }
 0x38a   : > { %6889 = vmatprep.subr.bf16.mxu0 %v11775_v8  ;;  %v11859_v8 = vld [vmem:[#allocation10 + $0x304] ss:$16 sps:$4 sm:$0xff]  }
 0x38d   : > { %6890 = vmatpush1.bf16.msra.mxu0 %v11773_v37  ;;  %v11862_v37 = vld [vmem:[#allocation10 + $0xec] ss:$16 sps:$4 sm:$0xff]  }
 0x38e   : > { %6891 = vmatprep.subr.bf16.mxu0 %v11778_v29  ;;  %v11865_v29 = vld [vmem:[#allocation10 + $0x2ec] ss:$16 sps:$4 sm:$0xff]  }
 0x38f   : > { %5660 = vmatmul.mubr.bf16.gmra.mxu0 %v13128_v22  ;;  %5733 = vmatmul.mubr.bf16.gmra.mxu1 %v13132_v56  ;;  %v11785_v22 = vld [vmem:[#allocation10] ss:$16 sps:$4 sm:$0xff]   ;;  %v11790_v56 = vld [vmem:[#allocation10 + $0x1e4] ss:$16 sps:$4 sm:$0xff]  }
 0x390   : > { %5669 = vmatprep.mubr.bf16.mxu0 %v13136_v62  ;;  %5742 = vmatprep.mubr.bf16.mxu1 %v13138_v36  ;;  %v11814_v62 = vld [vmem:[#allocation10 + $0x2e4] ss:$16 sps:$4 sm:$0xff]   ;;  %v11788_v36 = vld [vmem:[#allocation10 + $0x1e0] ss:$16 sps:$4 sm:$0xff]  }
 0x391   : > { %6892 = vmatpush1.bf16.msra.mxu0 %v11776_v4  ;;  %7076 = vmatprep.subr.bf16.mxu1 %v11814_v62  ;;  %v13168_v4 = vld [vmem:[#allocation9] sm:$0xf] }
 0x392   : > { %6893 = vmatprep.subr.bf16.mxu0 %v11781_v51  ;;  %7077 = vmatpush1.bf16.msra.mxu1 %v11812_v43  ;;  %v13172_v51 = vrot.slane %v13168_v4, %v12441_v14 }
 0x393   : > { %7078 = vmatprep.subr.bf16.mxu1 %v11817_v3 }
 0x395   : > { %6894 = vmatpush1.bf16.msra.mxu0 %v11779_v34  ;;  %v13176_v34 = vrot.slane %v13168_v4, %v12447_v26 }
 0x396   : > { %6895 = vmatprep.subr.bf16.mxu0 %v11784_v21  ;;  %7079 = vmatpush1.bf16.msra.mxu1 %v11815_v55 }
 0x397   : > { %5670 = vmatmul.mubr.bf16.gmra.mxu0 %v13144_v13  ;;  %5743 = vmatmul.mubr.bf16.gmra.mxu1 %v13148_v18  ;;  %v11818_v13 = vld [vmem:[#allocation10 + $0x2a0] ss:$16 sps:$4 sm:$0xff]   ;;  %v11820_v18 = vld [vmem:[#allocation10 + $0x2a4] ss:$16 sps:$4 sm:$0xff]  }
 0x398   : > { %7080 = vmatprep.subr.bf16.mxu1 %v11820_v18 }
 0x399   : > { %6896 = vmatpush1.bf16.msra.mxu0 %v11782_v11 }
 0x39a   : > { %6897 = vmatprep.subr.bf16.mxu0 %v11787_v49  ;;  %7081 = vmatpush1.bf16.msra.mxu1 %v11818_v13 }
 0x39b   : > { %7082 = vmatprep.subr.bf16.mxu1 %v11823_v63 }
 0x39d   : > { %6898 = vmatpush1.bf16.msra.mxu0 %v11785_v22 }
 0x39e   : > { %6899 = vmatprep.subr.bf16.mxu0 %v11790_v56  ;;  %7083 = vmatpush1.bf16.msra.mxu1 %v11821_v44 }
 0x39f   : > { %7084 = vmatprep.subr.bf16.mxu1 %v11826_v25 }
 0x3a1   : > { %6900 = vmatpush2.bf16.msra.mxu0 %v11788_v36 }
 0x3a2   : > { %6901 = vmatprep.subr.bf16.mxu0 %v11793_v35  ;;  %7085 = vmatpush1.bf16.msra.mxu1 %v11824_v12 }
 0x3a3   : > { %7086 = vmatprep.subr.bf16.mxu1 %v11829_v41 }
 0x3a5   : > { %6902 = vmatpush2.bf16.msra.mxu0 %v11791_v2 }
 0x3a6   : > { %6903 = vmatprep.subr.bf16.mxu0 %v11796_v39  ;;  %7087 = vmatpush1.bf16.msra.mxu1 %v11827_v7 }
 0x3a7   : > { %7088 = vmatprep.subr.bf16.mxu1 %v11832_v27 }
 0x3a9   : > { %6904 = vmatpush2.bf16.msra.mxu0 %v11794_v32 }
 0x3aa   : > { %6905 = vmatprep.subr.bf16.mxu0 %v11799_v45  ;;  %7089 = vmatpush1.bf16.msra.mxu1 %v11830_v20 }
 0x3ab   : > { %7090 = vmatprep.subr.bf16.mxu1 %v11835_v19 }
 0x3ad   : > { %6906 = vmatpush2.bf16.msra.mxu0 %v11797_v42 }
 0x3ae   : > { %6907 = vmatprep.subr.bf16.mxu0 %v11802_v46  ;;  %7091 = vmatpush1.bf16.msra.mxu1 %v11833_v57 }
 0x3af   : > { %7092 = vmatprep.subr.bf16.mxu1 %v11838_v60 }
 0x3b1   : > { %6908 = vmatpush2.bf16.msra.mxu0 %v11800_v6 }
 0x3b2   : > { %6909 = vmatprep.subr.bf16.mxu0 %v11805_v40  ;;  %7093 = vmatpush2.bf16.msra.mxu1 %v11836_v31 }
 0x3b3   : > { %7094 = vmatprep.subr.bf16.mxu1 %v11841_v28 }
 0x3b5   : > { %6910 = vmatpush2.bf16.msra.mxu0 %v11803_v33 }
 0x3b6   : > { %6911 = vmatprep.subr.bf16.mxu0 %v11808_v5  ;;  %7095 = vmatpush2.bf16.msra.mxu1 %v11839_v1 }
 0x3b7   : > { %7096 = vmatprep.subr.bf16.mxu1 %v11844_v9 }
 0x3b9   : > { %6912 = vmatpush2.bf16.msra.mxu0 %v11806_v59 }
 0x3ba   : > { %6913 = vmatprep.subr.bf16.mxu0 %v11811_v53  ;;  %7097 = vmatpush2.bf16.msra.mxu1 %v11842_v0 }
 0x3bb   : > { %7098 = vmatprep.subr.bf16.mxu1 %v11847_v52 }
 0x3bd   : > { %6914 = vmatpush2.bf16.msra.mxu0 %v11809_v54 }
 0x3be   : > { %7099 = vmatpush2.bf16.msra.mxu1 %v11845_v38  ;;  %7269 = vmatprep.subr.bf16.mxu0 %v11862_v37 }
 0x3bf   : > { %7100 = vmatprep.subr.bf16.mxu1 %v11850_v58 }
 0x3c2   : > { %7101 = vmatpush2.bf16.msra.mxu1 %v11848_v23 }
 0x3c3   : > { %7102 = vmatprep.subr.bf16.mxu1 %v11853_v48 }
 0x3c6   : > { %7103 = vmatpush2.bf16.msra.mxu1 %v11851_v10 }
 0x3c7   : > { %7104 = vmatprep.subr.bf16.mxu1 %v11856_v50  ;;  %v16059_v50 = vmov 0  }
 0x3ca   : > { %7105 = vmatpush2.bf16.msra.mxu1 %v11854_v24 }
 0x3cb   : > { %7106 = vmatprep.subr.bf16.mxu1 %v11859_v8 }
 0x3ce   : > { %7107 = vmatpush2.bf16.msra.mxu1 %v11857_v30 }
 0x3cf   : > { %7462 = vmatprep.subr.bf16.mxu1 %v11865_v29 }
 0x3ff   : > { %v5495_v21 = vpop.f32.mrf.mxu0  ;;  %v5568_v11 = vpop.f32.mrf.mxu1 }
 0x400   : > { %v5496_v49 = vadd.f32 %v5495_v21, %v13172_v51 }
 0x401   : > { %v5497_v22 = vpop.f32.mrf.mxu0  ;;  %v5570_v43 = vpop.f32.mrf.mxu1 }
 0x402   : > { %v5569_v56 = vadd.f32 %v5568_v11, %v5496_v49  ;;  %v5498_v62 = vadd.f32 %v5497_v22, %v13176_v34 }
 0x403   : > { %v5499_v36 = vpop.f32.mrf.mxu0  ;;  %v5572_v35 = vpop.f32.mrf.mxu1 }
 0x404   : > { %v5785_v55 = vmul.f32 0.2, %v5569_v56  ;;  %v5571_v3 = vadd.f32 %v5570_v43, %v5498_v62  ;;  %v5500_v2 = vadd.f32 %v5499_v36, %v13172_v51  ;;  %vm5753_vm2 = vcmp.gt.f32.partialorder %v5569_v56, 0.0  ;;  %v11860_v43 = vld [vmem:[#allocation10 + $0xe8] ss:$16 sps:$4 sm:$0xff]  }
 0x405   : > { %v5501_v13 = vpop.f32.mrf.mxu0  ;;  %v5574_v18 = vpop.f32.mrf.mxu1 }
 0x406   : > { %vm5754_vm9 = vcmp.gt.f32.partialorder %v5571_v3, 0.0  ;;  %v5786_v39 = vmul.f32 0.2, %v5571_v3  ;;  %v5573_v32 = vadd.f32 %v5572_v35, %v5500_v2  ;;  %v5502_v45 = vadd.f32 %v5501_v13, %v13176_v34  ;;  %v11868_v35 = vld [vmem:[#allocation10 + $0xcc] ss:$16 sps:$4 sm:$0xff]  }
 0x407   : > { %v5505_v44 = vpop.f32.mrf.mxu0  ;;  %v5578_v63 = vpop.f32.mrf.mxu1  ;;  %v5817_v25 = vsel %vm5753_vm2, %v5569_v56, %v5785_v55 }
 0x408   : > { %v5818_v42 = vsel %vm5754_vm9, %v5571_v3, %v5786_v39  ;;  %v5789_v12 = vmul.f32 0.2, %v5573_v32  ;;  %v5506_v46 = vadd.f32 %v5505_v44, %v13172_v51  ;;  %vm5757_vm10 = vcmp.gt.f32.partialorder %v5573_v32, 0.0 }
 0x409   : > { %v13183_v41 = vpack.i.bf16 %v5818_v42, %v5817_v25  ;;  %v5575_v6 = vadd.f32 %v5574_v18, %v5502_v45  ;;  %v5507_v7 = vpop.f32.mrf.mxu0  ;;  %v5580_v40 = vpop.f32.mrf.mxu1  ;;  %v11866_v25 = vld [vmem:[#allocation10 + $0xc8] ss:$16 sps:$4 sm:$0xff]  }
 0x40a   : > { %v5579_v27 = vadd.f32 %v5578_v63, %v5506_v46  ;;  %v5508_v33 = vadd.f32 %v5507_v7, %v13176_v34  ;;  %v5821_v57 = vsel %vm5757_vm10, %v5573_v32, %v5789_v12  ;;  %v11874_v46 = vld [vmem:[#allocation10 + $0xac] ss:$16 sps:$4 sm:$0xff]  }
 0x40b   : > { %vm5758_vm7 = vcmp.gt.f32.partialorder %v5575_v6, 0.0  ;;  %v5790_v20 = vmul.f32 0.2, %v5575_v6  ;;  %v5509_v5 = vpop.f32.mrf.mxu0  ;;  %v5582_v19 = vpop.f32.mrf.mxu1  ;;  %v5948_v59 = vshll.u32 %v13183_v41, 16  ;;  %v5946_v9 = vshrl.u32 %v13183_v41, 16 }
 0x40c   : > { %v5793_v53 = vmul.f32 0.2, %v5579_v27  ;;  %v5581_v60 = vadd.f32 %v5580_v40, %v5508_v33  ;;  %v5510_v54 = vadd.f32 %v5509_v5, %v13172_v51  ;;  %vm5761_vm11 = vcmp.gt.f32.partialorder %v5579_v27, 0.0 }
 0x40d   : > { %v5822_v31 = vsel %vm5758_vm7, %v5575_v6, %v5790_v20  ;;  %v5511_v28 = vpop.f32.mrf.mxu0  ;;  %v5584_v1 = vpop.f32.mrf.mxu1  ;;  %v5950_v0 = vrot.slane %v5948_v59, 1 }
 0x40e   : > { %v13189_v38 = vpack.i.bf16 %v5822_v31, %v5821_v57  ;;  %vm5762_vm12 = vcmp.gt.f32.partialorder %v5581_v60, 0.0  ;;  %v5794_v52 = vmul.f32 0.2, %v5581_v60  ;;  %v5583_v23 = vadd.f32 %v5582_v19, %v5510_v54  ;;  %v11872_v54 = vld [vmem:[#allocation10 + $0xa8] ss:$16 sps:$4 sm:$0xff]  }
 0x40f   : > { %v5512_v58 = vadd.f32 %v5511_v28, %v13176_v34  ;;  %v5515_v10 = vpop.f32.mrf.mxu0  ;;  %v5588_v48 = vpop.f32.mrf.mxu1  ;;  %v5951_v24 = vor.u32 %v5950_v0, %v5946_v9  ;;  %v5825_v30 = vsel %vm5761_vm11, %v5579_v27, %v5793_v53 }
 0x410   : > { %v5826_v8 = vsel %vm5762_vm12, %v5581_v60, %v5794_v52  ;;  %v5516_v37 = vadd.f32 %v5515_v10, %v13172_v51  ;;  %v5797_v21 = vmul.f32 0.2, %v5583_v23  ;;  %vm5765_vm14 = vcmp.gt.f32.partialorder %v5583_v23, 0.0 }
 0x411   : > { %v13199_v29 = vpack.i.bf16 %v5826_v8, %v5825_v30  ;;  %v5585_v11 = vadd.f32 %v5584_v1, %v5512_v58  ;;  %v5517_v49 = vpop.f32.mrf.mxu0  ;;  %v5590_v22 = vpop.f32.mrf.mxu1  ;;  %v13204_v36 = vsel %vm13194_vm13, %v5951_v24, 0  ;;  %v11880_v1 = vld [vmem:[#allocation10 + $0x8c] ss:$16 sps:$4 sm:$0xff]   ;;  %v11878_v8 = vld [vmem:[#allocation10 + $0x88] ss:$16 sps:$4 sm:$0xff]  }
 0x412   : > { %v5589_v56 = vadd.f32 %v5588_v48, %v5516_v37  ;;  %v5518_v62 = vadd.f32 %v5517_v49, %v13176_v34  ;;  %6915 = vmatprep.mubr.bf16.mxu0 %v13204_v36  ;;  %v5829_v32 = vsel %vm5765_vm14, %v5583_v23, %v5797_v21 }
 0x413   : > { %vm5766_vm0 = vcmp.gt.f32.partialorder %v5585_v11, 0.0  ;;  %v5798_v55 = vmul.f32 0.2, %v5585_v11  ;;  %v5519_v3 = vpop.f32.mrf.mxu0  ;;  %v5592_v2 = vpop.f32.mrf.mxu1  ;;  %6916 = vmatmul.mubr.bf16.vlgmr.msra.gmra.mxu0 %v13183_v41 }
 0x414   : > { %v5801_v13 = vmul.f32 0.2, %v5589_v56  ;;  %v5591_v18 = vadd.f32 %v5590_v22, %v5518_v62  ;;  %v5520_v39 = vadd.f32 %v5519_v3, %v13172_v51  ;;  %vm5769_vm3 = vcmp.gt.f32.partialorder %v5589_v56, 0.0  ;;  %7270 = vmatpush1.bf16.msra.mxu0 %v11860_v43  ;;  %v11884_v3 = vld [vmem:[#allocation10 + $0x68] ss:$16 sps:$4 sm:$0xff]  }
 0x415   : > { %v5830_v45 = vsel %vm5766_vm0, %v5585_v11, %v5798_v55  ;;  %v5521_v44 = vpop.f32.mrf.mxu0  ;;  %v5594_v63 = vpop.f32.mrf.mxu1  ;;  %7271 = vmatprep.subr.bf16.mxu0 %v11868_v35  ;;  %v11886_v11 = vld [vmem:[#allocation10 + $0x6c] ss:$16 sps:$4 sm:$0xff]  }
 0x416   : > { %v13209_v42 = vpack.i.bf16 %v5830_v45, %v5829_v32  ;;  %vm5770_vm15 = vcmp.gt.f32.partialorder %v5591_v18, 0.0  ;;  %v5802_v12 = vmul.f32 0.2, %v5591_v18  ;;  %v5593_v6 = vadd.f32 %v5592_v2, %v5520_v39  ;;  %v11892_v2 = vld [vmem:[#allocation10 + $0x4c] ss:$16 sps:$4 sm:$0xff]  }
 0x417   : > { %v5522_v7 = vadd.f32 %v5521_v44, %v13176_v34  ;;  %v5525_v40 = vpop.f32.mrf.mxu0  ;;  %v5598_v27 = vpop.f32.mrf.mxu1  ;;  %v5833_v33 = vsel %vm5769_vm3, %v5589_v56, %v5801_v13  ;;  %v11890_v32 = vld [vmem:[#allocation10 + $0x48] ss:$16 sps:$4 sm:$0xff]  }
 0x418   : > { %v5834_v20 = vsel %vm5770_vm15, %v5591_v18, %v5802_v12  ;;  %v5526_v5 = vadd.f32 %v5525_v40, %v13172_v51  ;;  %v5805_v59 = vmul.f32 0.2, %v5593_v6  ;;  %7272 = vmatpush1.bf16.msra.mxu0 %v11866_v25  ;;  %vm5773_vm4 = vcmp.gt.f32.partialorder %v5593_v6, 0.0  ;;  %v11896_v44 = vld [vmem:[#allocation10 + $0x28] ss:$16 sps:$4 sm:$0xff]  }
 0x419   : > { %v13213_v19 = vpack.i.bf16 %v5834_v20, %v5833_v33  ;;  %v5595_v57 = vadd.f32 %v5594_v63, %v5522_v7  ;;  %v5527_v53 = vpop.f32.mrf.mxu0  ;;  %v5600_v60 = vpop.f32.mrf.mxu1  ;;  %7273 = vmatprep.subr.bf16.mxu0 %v11874_v46  ;;  %v11904_v63 = vld [vmem:[#allocation10 + $0xc] ss:$16 sps:$4 sm:$0xff]   ;;  %v11902_v25 = vld [vmem:[#allocation10 + $0x8] ss:$16 sps:$4 sm:$0xff]   ;;  %v13226_v20 = vrot.slane %v13168_v4, %v12444_v15 }
 0x41a   : > { %v5599_v31 = vadd.f32 %v5598_v27, %v5526_v5  ;;  %v5528_v28 = vadd.f32 %v5527_v53, %v13176_v34  ;;  %v5837_v48 = vsel %vm5773_vm4, %v5593_v6, %v5805_v59  ;;  %v11910_v12 = vld [vmem:[#allocation10 + $0x1ec] ss:$16 sps:$4 sm:$0xff]   ;;  %v11908_v46 = vld [vmem:[#allocation10 + $0x1e8] ss:$16 sps:$4 sm:$0xff]   ;;  %v13230_v59 = vrot.slane %v13168_v4, %v12450_v16 }
 0x41b   : > { %vm5774_vm5 = vcmp.gt.f32.partialorder %v5595_v57, 0.0  ;;  %v5806_v9 = vmul.f32 0.2, %v5595_v57  ;;  %v5529_v0 = vpop.f32.mrf.mxu0  ;;  %v5602_v10 = vpop.f32.mrf.mxu1  ;;  %v11916_v6 = vld [vmem:[#allocation10 + $0x1cc] ss:$16 sps:$4 sm:$0xff]  }
 0x41c   : > { %v5809_v52 = vmul.f32 0.2, %v5599_v31  ;;  %v5601_v23 = vadd.f32 %v5600_v60, %v5528_v28  ;;  %v5530_v58 = vadd.f32 %v5529_v0, %v13172_v51  ;;  %vm5777_vm2 = vcmp.gt.f32.partialorder %v5599_v31, 0.0  ;;  %7274 = vmatpush1.bf16.msra.mxu0 %v11872_v54  ;;  %v11914_v7 = vld [vmem:[#allocation10 + $0x1c8] ss:$16 sps:$4 sm:$0xff]  }
 0x41d   : > { %v5838_v24 = vsel %vm5774_vm5, %v5595_v57, %v5806_v9  ;;  %v5531_v30 = vpop.f32.mrf.mxu0  ;;  %7275 = vmatprep.subr.bf16.mxu0 %v11880_v1  ;;  %v5604_v62 = vpop.f32.mrf.mxu1  ;;  %v11922_v40 = vld [vmem:[#allocation10 + $0x1ac] ss:$16 sps:$4 sm:$0xff]   ;;  %v11920_v27 = vld [vmem:[#allocation10 + $0x1a8] ss:$16 sps:$4 sm:$0xff]  }
 0x41e   : > { %v13217_v37 = vpack.i.bf16 %v5838_v24, %v5837_v48  ;;  %vm5778_vm9 = vcmp.gt.f32.partialorder %v5601_v23, 0.0  ;;  %v5810_v21 = vmul.f32 0.2, %v5601_v23  ;;  %v5603_v49 = vadd.f32 %v5602_v10, %v5530_v58  ;;  %v11928_v33 = vld [vmem:[#allocation10 + $0x18c] ss:$16 sps:$4 sm:$0xff]  }
 0x41f   : > { %v5532_v22 = vadd.f32 %v5531_v30, %v13176_v34  ;;  %v5841_v43 = vsel %vm5777_vm2, %v5599_v31, %v5809_v52  ;;  %v11898_v34 = vld [vmem:[#allocation10 + $0x2c] ss:$16 sps:$4 sm:$0xff]   ;;  %v11926_v5 = vld [vmem:[#allocation10 + $0x188] ss:$16 sps:$4 sm:$0xff]  }
 0x420   : > { %v5842_v56 = vsel %vm5778_vm9, %v5601_v23, %v5810_v21  ;;  %v5813_v35 = vmul.f32 0.2, %v5603_v49  ;;  %7276 = vmatpush1.bf16.msra.mxu0 %v11878_v8  ;;  %vm5781_vm10 = vcmp.gt.f32.partialorder %v5603_v49, 0.0  ;;  %v11934_v57 = vld [vmem:[#allocation10 + $0x16c] ss:$16 sps:$4 sm:$0xff]  }
 0x421   : > { %v13220_v51 = vpack.i.bf16 %v5842_v56, %v5841_v43  ;;  %v5605_v55 = vadd.f32 %v5604_v62, %v5532_v22  ;;  %7277 = vmatprep.subr.bf16.mxu0 %v11886_v11  ;;  %v11932_v1 = vld [vmem:[#allocation10 + $0x168] ss:$16 sps:$4 sm:$0xff]   ;;  %v11940_v52 = vld [vmem:[#allocation10 + $0x14c] ss:$16 sps:$4 sm:$0xff]  }
 0x422   : > { %v5845_v18 = vsel %vm5781_vm10, %v5603_v49, %v5813_v35  ;;  %v11938_v8 = vld [vmem:[#allocation10 + $0x148] ss:$16 sps:$4 sm:$0xff]   ;;  %v11946_v49 = vld [vmem:[#allocation10 + $0x12c] ss:$16 sps:$4 sm:$0xff]  }
 0x423   : > { %vm5782_vm6 = vcmp.gt.f32.partialorder %v5605_v55, 0.0  ;;  %v5814_v13 = vmul.f32 0.2, %v5605_v55 }
 0x424   : > { %7278 = vmatpush1.bf16.msra.mxu0 %v11884_v3 }
 0x425   : > { %v5846_v39 = vsel %vm5782_vm6, %v5605_v55, %v5814_v13  ;;  %7279 = vmatprep.subr.bf16.mxu0 %v11892_v2  ;;  %v5962_v55 = vshll.u32 %v13189_v38, 16 }
 0x426   : > { %v13222_v45 = vpack.i.bf16 %v5846_v39, %v5845_v18 }
 0x428   : > { %7280 = vmatpush1.bf16.msra.mxu0 %v11890_v32  ;;  %v11944_v32 = vld [vmem:[#allocation10 + $0x128] ss:$16 sps:$4 sm:$0xff]  }
 0x429   : > { %7281 = vmatprep.subr.bf16.mxu0 %v11898_v34  ;;  %v11952_v34 = vld [vmem:[#allocation10 + $0x10c] ss:$16 sps:$4 sm:$0xff]  }
 0x42c   : > { %7282 = vmatpush1.bf16.msra.mxu0 %v11896_v44 }
 0x42d   : > { %7283 = vmatprep.subr.bf16.mxu0 %v11904_v63 }
 0x430   : > { %7284 = vmatpush1.bf16.msra.mxu0 %v11902_v25 }
 0x431   : > { %7285 = vmatprep.subr.bf16.mxu0 %v11910_v12 }
 0x434   : > { %7286 = vmatpush2.bf16.msra.mxu0 %v11908_v46 }
 0x435   : > { %7287 = vmatprep.subr.bf16.mxu0 %v11916_v6  ;;  %v5964_v6 = vrot.slane %v5962_v55, 1  ;;  %v11869_v55 = vld [vmem:[#allocation10 + $0x2c8] ss:$16 sps:$4 sm:$0xff]  }
 0x438   : > { %7288 = vmatpush2.bf16.msra.mxu0 %v11914_v7 }
 0x439   : > { %7289 = vmatprep.subr.bf16.mxu0 %v11922_v40 }
 0x43c   : > { %7290 = vmatpush2.bf16.msra.mxu0 %v11920_v27 }
 0x43d   : > { %7291 = vmatprep.subr.bf16.mxu0 %v11928_v33 }
 0x43f   : > { %v5641_v53 = vpop.f32.mrf.mxu0  ;;  %v5714_v60 = vpop.f32.mrf.mxu1 }
 0x440   : > { %v5642_v54 = vadd.f32 %v5641_v53, %v13226_v20  ;;  %7292 = vmatpush2.bf16.msra.mxu0 %v11926_v5  ;;  %v11950_v53 = vld [vmem:[#allocation10 + $0x108] ss:$16 sps:$4 sm:$0xff]  }
 0x441   : > { %v5643_v31 = vpop.f32.mrf.mxu0  ;;  %v5716_v28 = vpop.f32.mrf.mxu1  ;;  %7293 = vmatprep.subr.bf16.mxu0 %v11934_v57 }
 0x442   : > { %v5715_v9 = vadd.f32 %v5714_v60, %v5642_v54  ;;  %v5644_v0 = vadd.f32 %v5643_v31, %v13230_v59  ;;  %v5960_v31 = vshrl.u32 %v13189_v38, 16 }
 0x443   : > { %v5645_v23 = vpop.f32.mrf.mxu0  ;;  %v5718_v58 = vpop.f32.mrf.mxu1 }
 0x444   : > { %v5787_v10 = vmul.f32 0.2, %v5715_v9  ;;  %v5717_v4 = vadd.f32 %v5716_v28, %v5644_v0  ;;  %v5646_v48 = vadd.f32 %v5645_v23, %v13226_v20  ;;  %vm5755_vm7 = vcmp.gt.f32.partialorder %v5715_v9, 0.0  ;;  %7294 = vmatpush2.bf16.msra.mxu0 %v11932_v1 }
 0x445   : > { %v5647_v24 = vpop.f32.mrf.mxu0  ;;  %v5720_v30 = vpop.f32.mrf.mxu1  ;;  %7295 = vmatprep.subr.bf16.mxu0 %v11940_v52  ;;  %v5965_v52 = vor.u32 %v5964_v6, %v5960_v31 }
 0x446   : > { %vm5756_vm11 = vcmp.gt.f32.partialorder %v5717_v4, 0.0  ;;  %v5788_v21 = vmul.f32 0.2, %v5717_v4  ;;  %v5719_v11 = vadd.f32 %v5718_v58, %v5646_v48  ;;  %v5648_v22 = vadd.f32 %v5647_v24, %v13230_v59  ;;  %v11863_v24 = vld [vmem:[#allocation10 + $0x2e8] ss:$16 sps:$4 sm:$0xff]  }
 0x447   : > { %v5651_v43 = vpop.f32.mrf.mxu0  ;;  %v5724_v56 = vpop.f32.mrf.mxu1  ;;  %v5819_v62 = vsel %vm5755_vm7, %v5715_v9, %v5787_v10 }
 0x448   : > { %v5820_v35 = vsel %vm5756_vm11, %v5717_v4, %v5788_v21  ;;  %v5791_v2 = vmul.f32 0.2, %v5719_v11  ;;  %v5721_v13 = vadd.f32 %v5720_v30, %v5648_v22  ;;  %7296 = vmatpush2.bf16.msra.mxu0 %v11938_v8  ;;  %vm5759_vm12 = vcmp.gt.f32.partialorder %v5719_v11, 0.0  ;;  %v11871_v21 = vld [vmem:[#allocation10 + $0x2cc] ss:$16 sps:$4 sm:$0xff]  }
 0x449   : > { %v13237_v3 = vpack.i.bf16 %v5820_v35, %v5819_v62  ;;  %v5653_v18 = vpop.f32.mrf.mxu0  ;;  %v5726_v39 = vpop.f32.mrf.mxu1  ;;  %7297 = vmatprep.subr.bf16.mxu0 %v11946_v49  ;;  %v5652_v54 = vadd.f32 %v5651_v43, %v13226_v20  ;;  %v13274_v22 = vsel %vm13194_vm13, %v5965_v52, 0 }
 0x44a   : > { %vm5760_vm14 = vcmp.gt.f32.partialorder %v5721_v13, 0.0  ;;  %v5792_v44 = vmul.f32 0.2, %v5721_v13  ;;  %v5654_v46 = vadd.f32 %v5653_v18, %v13230_v59  ;;  %v5823_v7 = vsel %vm5759_vm12, %v5719_v11, %v5791_v2 }
 0x44b   : > { %v13239_v63 = vpop.f32.mrf.mxu0  ;;  %v13241_v25 = vpop.f32.mrf.mxu1  ;;  %v5955_v12 = vshll.u32 %v13237_v3, 16  ;;  %v5953_v5 = vshrl.u32 %v13237_v3, 16  ;;  %v5725_v4 = vadd.f32 %v5724_v56, %v5652_v54 }
 0x44c   : > { %v5824_v40 = vsel %vm5760_vm14, %v5721_v13, %v5792_v44  ;;  %7298 = vmatpush2.bf16.msra.mxu0 %v11944_v32  ;;  %v5727_v0 = vadd.f32 %v5726_v39, %v5654_v46  ;;  %v5976_v44 = vshll.u32 %v13199_v29, 16 }
 0x44d   : > { %v13245_v27 = vpop.f32.mrf.mxu0  ;;  %v13247_v33 = vpop.f32.mrf.mxu1  ;;  %v5957_v57 = vrot.slane %v5955_v12, 1  ;;  %v13250_v60 = vpack.i.bf16 %v5824_v40, %v5823_v7  ;;  %7299 = vmatprep.subr.bf16.mxu0 %v11952_v34  ;;  %v5795_v35 = vmul.f32 0.2, %v5725_v4  ;;  %vm5763_vm3 = vcmp.gt.f32.partialorder %v5725_v4, 0.0  ;;  %v11877_v34 = vld [vmem:[#allocation10 + $0x2ac] ss:$16 sps:$4 sm:$0xff]  }
 0x44e   : > { %v5796_v11 = vmul.f32 0.2, %v5727_v0  ;;  %vm5764_vm0 = vcmp.gt.f32.partialorder %v5727_v0, 0.0 }
 0x44f   : > { %v13254_v28 = vpop.f32.mrf.mxu0  ;;  %v13256_v1 = vpop.f32.mrf.mxu1  ;;  %v5958_v9 = vor.u32 %v5957_v57, %v5953_v5  ;;  %v5969_v23 = vshll.u32 %v13250_v60, 16  ;;  %v5967_v2 = vshrl.u32 %v13250_v60, 16 }
 0x450   : > { %7300 = vmatpush2.bf16.msra.mxu0 %v11950_v53  ;;  %v5828_v12 = vsel %vm5764_vm0, %v5727_v0, %v5796_v11  ;;  %v5827_v53 = vsel %vm5763_vm3, %v5725_v4, %v5795_v35  ;;  %v5978_v0 = vrot.slane %v5976_v44, 1 }
 0x451   : > { %v13259_v58 = vpop.f32.mrf.mxu0  ;;  %v13261_v10 = vpop.f32.mrf.mxu1  ;;  %v13265_v48 = vsel %vm13194_vm13, %v5958_v9, 0  ;;  %v5971_v43 = vrot.slane %v5969_v23, 1  ;;  %v11875_v9 = vld [vmem:[#allocation10 + $0x2a8] ss:$16 sps:$4 sm:$0xff]   ;;  %v13284_v52 = vpack.i.bf16 %v5828_v12, %v5827_v53 }
 0x452   : > { %6925 = vmatprep.mubr.bf16.mxu0 %v13265_v48  ;;  %7108 = vmatprep.mubr.bf16.mxu1 %v13265_v48 }
 0x453   : > { %v5665_v30 = vpop.f32.mrf.mxu0  ;;  %v5738_v8 = vpop.f32.mrf.mxu1  ;;  %6926 = vmatmul.mubr.bf16.gmra.mxu0 %v13237_v3  ;;  %7109 = vmatmul.mubr.bf16.vlgmr.msra.gmra.mxu1 %v13237_v3  ;;  %v5972_v6 = vor.u32 %v5971_v43, %v5967_v2  ;;  %v5658_v43 = vadd.f32 %v13245_v27, %v13230_v59  ;;  %v5656_v27 = vadd.f32 %v13239_v63, %v13226_v20  ;;  %v11887_v63 = vld [vmem:[#allocation10 + $0x268] ss:$16 sps:$4 sm:$0xff]  }
 0x454   : > { %v5666_v49 = vadd.f32 %v5665_v30, %v13226_v20  ;;  %6935 = vmatprep.mubr.bf16.mxu0 %v13274_v22  ;;  %7118 = vmatprep.mubr.bf16.mxu1 %v13274_v22  ;;  %v11883_v30 = vld [vmem:[#allocation10 + $0x28c] ss:$16 sps:$4 sm:$0xff]  }
 0x455   : > { %v5667_v56 = vpop.f32.mrf.mxu0  ;;  %v5740_v62 = vpop.f32.mrf.mxu1  ;;  %7463 = vmatpush1.bf16.msra.mxu1 %v11863_v24  ;;  %v13291_v4 = vsel %vm13194_vm13, %v5972_v6, 0 }
 0x456   : > { %v5739_v13 = vadd.f32 %v5738_v8, %v5666_v49  ;;  %v5668_v18 = vadd.f32 %v5667_v56, %v13230_v59  ;;  %7464 = vmatprep.subr.bf16.mxu1 %v11871_v21 }
 0x457   : > { %v5671_v39 = vpop.f32.mrf.mxu0  ;;  %v5744_v32 = vpop.f32.mrf.mxu1 }
 0x458   : > { %v5672_v46 = vadd.f32 %v5671_v39, %v13226_v20  ;;  %v5807_v7 = vmul.f32 0.2, %v5739_v13  ;;  %v5741_v40 = vadd.f32 %v5740_v62, %v5668_v18  ;;  %vm5775_vm15 = vcmp.gt.f32.partialorder %v5739_v13, 0.0  ;;  %v11881_v39 = vld [vmem:[#allocation10 + $0x288] ss:$16 sps:$4 sm:$0xff]  }
 0x459   : > { %v5673_v5 = vpop.f32.mrf.mxu0  ;;  %v5746_v57 = vpop.f32.mrf.mxu1  ;;  %7465 = vmatpush1.bf16.msra.mxu1 %v11869_v55  ;;  %v5974_v18 = vshrl.u32 %v13199_v29, 16 }
 0x45a   : > { %v5745_v54 = vadd.f32 %v5744_v32, %v5672_v46  ;;  %v5674_v31 = vadd.f32 %v5673_v5, %v13230_v59  ;;  %vm5776_vm4 = vcmp.gt.f32.partialorder %v5741_v40, 0.0  ;;  %v5808_v23 = vmul.f32 0.2, %v5741_v40  ;;  %7466 = vmatprep.subr.bf16.mxu1 %v11877_v34  ;;  %v11889_v34 = vld [vmem:[#allocation10 + $0x26c] ss:$16 sps:$4 sm:$0xff]  }
 0x45b   : > { %v5675_v24 = vpop.f32.mrf.mxu0  ;;  %v5748_v49 = vpop.f32.mrf.mxu1  ;;  %6936 = vmatmul.mubr.bf16.gmra.mxu0 %v13189_v38  ;;  %7119 = vmatmul.mubr.bf16.gmra.mxu1 %v13189_v38  ;;  %v5839_v56 = vsel %vm5775_vm15, %v5739_v13, %v5807_v7  ;;  %v5979_v6 = vor.u32 %v5978_v0, %v5974_v18  ;;  %v5983_v7 = vshll.u32 %v13284_v52, 16  ;;  %v11907_v18 = vld [vmem:[#allocation10 + $0x20c] ss:$16 sps:$4 sm:$0xff]  }
 0x45c   : > { %v5811_v8 = vmul.f32 0.2, %v5745_v54  ;;  %v5747_v21 = vadd.f32 %v5746_v57, %v5674_v31  ;;  %v5676_v11 = vadd.f32 %v5675_v24, %v13226_v20  ;;  %v5840_v62 = vsel %vm5776_vm4, %v5741_v40, %v5808_v23  ;;  %6945 = vmatprep.mubr.bf16.mxu0 %v13291_v4  ;;  %7128 = vmatprep.mubr.bf16.mxu1 %v13291_v4 }
 0x45d   : > { %vm5779_vm5 = vcmp.gt.f32.partialorder %v5745_v54, 0.0  ;;  %v5677_v35 = vpop.f32.mrf.mxu0  ;;  %v13298_v55 = vpack.i.bf16 %v5840_v62, %v5839_v56  ;;  %7467 = vmatpush1.bf16.msra.mxu1 %v11875_v9  ;;  %v5750_v46 = vpop.f32.mrf.mxu1  ;;  %v5731_v40 = vadd.f32 %v13247_v33, %v5658_v43  ;;  %v5729_v31 = vadd.f32 %v13241_v25, %v5656_v27 }
 0x45e   : > { %vm5780_vm2 = vcmp.gt.f32.partialorder %v5747_v21, 0.0  ;;  %v5812_v2 = vmul.f32 0.2, %v5747_v21  ;;  %v5749_v32 = vadd.f32 %v5748_v49, %v5676_v11  ;;  %v5678_v13 = vadd.f32 %v5677_v35, %v13230_v59  ;;  %7468 = vmatprep.subr.bf16.mxu1 %v11883_v30  ;;  %v11901_v49 = vld [vmem:[#allocation10 + $0x22c] ss:$16 sps:$4 sm:$0xff]  }
 0x45f   : > { %v5843_v44 = vsel %vm5779_vm5, %v5745_v54, %v5811_v8  ;;  %v11895_v54 = vld [vmem:[#allocation10 + $0x24c] ss:$16 sps:$4 sm:$0xff]   ;;  %v13313_v33 = vsel %vm13194_vm13, %v5979_v6, 0  ;;  %v5985_v23 = vrot.slane %v5983_v7, 1  ;;  %v5800_v24 = vmul.f32 0.2, %v5731_v40 }
 0x460   : > { %v5844_v12 = vsel %vm5780_vm2, %v5747_v21, %v5812_v2  ;;  %v5815_v57 = vmul.f32 0.2, %v5749_v32  ;;  %v5751_v53 = vadd.f32 %v5750_v46, %v5678_v13  ;;  %vm5783_vm9 = vcmp.gt.f32.partialorder %v5749_v32, 0.0  ;;  %v11893_v21 = vld [vmem:[#allocation10 + $0x248] ss:$16 sps:$4 sm:$0xff]  }
 0x461   : > { %v13306_v5 = vpack.i.bf16 %v5844_v12, %v5843_v44  ;;  %7469 = vmatpush1.bf16.msra.mxu1 %v11881_v39  ;;  %vm5768_vm6 = vcmp.gt.f32.partialorder %v5731_v40, 0.0  ;;  %v5981_v8 = vshrl.u32 %v13284_v52, 16  ;;  %v5799_v11 = vmul.f32 0.2, %v5729_v31  ;;  %v11899_v35 = vld [vmem:[#allocation10 + $0x228] ss:$16 sps:$4 sm:$0xff]  }
 0x462   : > { %vm5784_vm10 = vcmp.gt.f32.partialorder %v5751_v53, 0.0  ;;  %v5816_v9 = vmul.f32 0.2, %v5751_v53  ;;  %7470 = vmatprep.subr.bf16.mxu1 %v11889_v34  ;;  %v5847_v0 = vsel %vm5783_vm9, %v5749_v32, %v5815_v57  ;;  %vm5767_vm7 = vcmp.gt.f32.partialorder %v5729_v31, 0.0  ;;  %v11905_v44 = vld [vmem:[#allocation10 + $0x208] ss:$16 sps:$4 sm:$0xff]  }
 0x463   : > { %6946 = vmatmul.mubr.bf16.gmra.mxu0 %v13250_v60  ;;  %7129 = vmatmul.mubr.bf16.gmra.mxu1 %v13250_v60  ;;  %v5986_v43 = vor.u32 %v5985_v23, %v5981_v8  ;;  %v5990_v56 = vshll.u32 %v13209_v42, 16  ;;  %v5832_v62 = vsel %vm5768_vm6, %v5731_v40, %v5800_v24  ;;  %v5831_v2 = vsel %vm5767_vm7, %v5729_v31, %v5799_v11  ;;  %v11913_v46 = vld [vmem:[#allocation10 + $0x3ec] ss:$16 sps:$4 sm:$0xff]   ;;  %v11923_v24 = vld [vmem:[#allocation10 + $0x3a8] ss:$16 sps:$4 sm:$0xff]  }
 0x464   : > { %v5848_v30 = vsel %vm5784_vm10, %v5751_v53, %v5816_v9  ;;  %6955 = vmatprep.mubr.bf16.mxu0 %v13313_v33  ;;  %7138 = vmatprep.mubr.bf16.mxu1 %v13313_v33  ;;  %v13321_v39 = vpack.i.bf16 %v5832_v62, %v5831_v2  ;;  %v5664_v13 = vadd.f32 %v13259_v58, %v13230_v59  ;;  %v5988_v34 = vshrl.u32 %v13209_v42, 16  ;;  %v11911_v59 = vld [vmem:[#allocation10 + $0x3e8] ss:$16 sps:$4 sm:$0xff]   ;;  %v11919_v57 = vld [vmem:[#allocation10 + $0x3cc] ss:$16 sps:$4 sm:$0xff]  }
 0x465   : > { %v13317_v25 = vpack.i.bf16 %v5848_v30, %v5847_v0  ;;  %7471 = vmatpush1.bf16.msra.mxu1 %v11887_v63  ;;  %v13327_v27 = vsel %vm13194_vm13, %v5986_v43, 0  ;;  %v5992_v32 = vrot.slane %v5990_v56, 1  ;;  %v5662_v12 = vadd.f32 %v13254_v28, %v13226_v20  ;;  %v11925_v31 = vld [vmem:[#allocation10 + $0x3ac] ss:$16 sps:$4 sm:$0xff]   ;;  %v11929_v43 = vld [vmem:[#allocation10 + $0x388] ss:$16 sps:$4 sm:$0xff]  }
 0x466   : > { %7472 = vmatprep.subr.bf16.mxu1 %v11895_v54  ;;  %v5997_v7 = vshll.u32 %v13321_v39, 16  ;;  %v5737_v40 = vadd.f32 %v13261_v10, %v5664_v13  ;;  %v5995_v10 = vshrl.u32 %v13321_v39, 16  ;;  %v6004_v54 = vshll.u32 %v13213_v19, 16  ;;  %v11931_v30 = vld [vmem:[#allocation10 + $0x38c] ss:$16 sps:$4 sm:$0xff]  }
 0x467   : > { %v5993_v6 = vor.u32 %v5992_v32, %v5988_v34  ;;  %v5735_v58 = vadd.f32 %v13256_v1, %v5662_v12  ;;  %v11917_v1 = vld [vmem:[#allocation10 + $0x3c8] ss:$16 sps:$4 sm:$0xff]   ;;  %v11937_v56 = vld [vmem:[#allocation10 + $0x36c] ss:$16 sps:$4 sm:$0xff]  }
 0x468   : > { %v5999_v28 = vrot.slane %v5997_v7, 1  ;;  %v5804_v53 = vmul.f32 0.2, %v5737_v40  ;;  %vm5772_vm11 = vcmp.gt.f32.partialorder %v5737_v40, 0.0  ;;  %v6006_v11 = vrot.slane %v6004_v54, 1 }
 0x469   : > { %7473 = vmatpush1.bf16.msra.mxu1 %v11893_v21  ;;  %v13343_v20 = vsel %vm13194_vm13, %v5993_v6, 0  ;;  %v5803_v63 = vmul.f32 0.2, %v5735_v58  ;;  %vm5771_vm12 = vcmp.gt.f32.partialorder %v5735_v58, 0.0  ;;  %v11935_v2 = vld [vmem:[#allocation10 + $0x368] ss:$16 sps:$4 sm:$0xff]  }
 0x46a   : > { %7474 = vmatprep.subr.bf16.mxu1 %v11901_v49  ;;  %v6000_v9 = vor.u32 %v5999_v28, %v5995_v10  ;;  %v5836_v23 = vsel %vm5772_vm11, %v5737_v40, %v5804_v53  ;;  %v6002_v49 = vshrl.u32 %v13213_v19, 16  ;;  %v11949_v12 = vld [vmem:[#allocation10 + $0x32c] ss:$16 sps:$4 sm:$0xff]   ;;  %v6018_v6 = vshll.u32 %v13217_v37, 16  ;;  %v11947_v7 = vld [vmem:[#allocation10 + $0x328] ss:$16 sps:$4 sm:$0xff]  }
 0x46b   : > { %6956 = vmatmul.mubr.bf16.gmra.mxu0 %v13199_v29  ;;  %7139 = vmatmul.mubr.bf16.gmra.mxu1 %v13199_v29  ;;  %v5835_v0 = vsel %vm5771_vm12, %v5735_v58, %v5803_v63  ;;  %v11955_v40 = vld [vmem:[#allocation10 + $0x30c] ss:$16 sps:$4 sm:$0xff]   ;;  %v11953_v28 = vld [vmem:[#allocation10 + $0x308] ss:$16 sps:$4 sm:$0xff]   ;;  %v6025_v10 = vshll.u32 %v13298_v55, 16  ;;  %v6032_v54 = vshll.u32 %v13220_v51, 16 }
 0x46c   : > { %6965 = vmatprep.mubr.bf16.mxu0 %v13327_v27  ;;  %7148 = vmatprep.mubr.bf16.mxu1 %v13327_v27  ;;  %v13349_v8 = vpack.i.bf16 %v5836_v23, %v5835_v0  ;;  %v13355_v21 = vsel %vm13194_vm13, %v6000_v9, 0  ;;  %v6007_v62 = vor.u32 %v6006_v11, %v6002_v49  ;;  %v6020_v58 = vrot.slane %v6018_v6, 1 }
 0x46d   : > { %7475 = vmatpush1.bf16.msra.mxu1 %v11899_v35  ;;  %v6027_v63 = vrot.slane %v6025_v10, 1  ;;  %v6030_v0 = vshrl.u32 %v13220_v51, 16  ;;  %v6039_v11 = vshll.u32 %v13306_v5, 16  ;;  %v6051_v6 = vshrl.u32 %v13317_v25, 16 }
 0x46e   : > { %7476 = vmatprep.subr.bf16.mxu1 %v11907_v18  ;;  %v6011_v35 = vshll.u32 %v13349_v8, 16  ;;  %v11943_v18 = vld [vmem:[#allocation10 + $0x34c] ss:$16 sps:$4 sm:$0xff]   ;;  %v13365_v32 = vsel %vm13194_vm13, %v6007_v62, 0  ;;  %v6009_v34 = vshrl.u32 %v13349_v8, 16 }
 0x470   : > { %v6013_v13 = vrot.slane %v6011_v35, 1  ;;  %v6046_v35 = vshll.u32 %v13222_v45, 16 }
 0x471   : > { %7477 = vmatpush1.bf16.msra.mxu1 %v11905_v44  ;;  %v11941_v44 = vld [vmem:[#allocation10 + $0x348] ss:$16 sps:$4 sm:$0xff]  }
 0x472   : > { %7478 = vmatprep.subr.bf16.mxu1 %v11913_v46  ;;  %v6014_v46 = vor.u32 %v6013_v13, %v6009_v34  ;;  %v6044_v13 = vshrl.u32 %v13222_v45, 16 }
 0x473   : > { %6966 = vmatmul.mubr.bf16.gmra.mxu0 %v13284_v52  ;;  %7149 = vmatmul.mubr.bf16.gmra.mxu1 %v13284_v52 }
 0x474   : > { %6975 = vmatprep.mubr.bf16.mxu0 %v13343_v20  ;;  %7158 = vmatprep.mubr.bf16.mxu1 %v13343_v20 }
 0x475   : > { %7479 = vmatpush2.bf16.msra.mxu1 %v11911_v59  ;;  %v13375_v59 = vsel %vm13194_vm13, %v6014_v46, 0 }
 0x476   : > { %7480 = vmatprep.subr.bf16.mxu1 %v11919_v57  ;;  %v6016_v57 = vshrl.u32 %v13217_v37, 16 }
 0x478   : > { %v6021_v53 = vor.u32 %v6020_v58, %v6016_v57  ;;  %v13441_v58 = vsel %vm13194_vm13, %v12558_v61, 0 }
 0x479   : > { %7481 = vmatpush2.bf16.msra.mxu1 %v11917_v1  ;;  %15751 = vst [vmem:[#allocation18_spill] sm:$0xff] %v13441_v58 }
 0x47a   : > { %7482 = vmatprep.subr.bf16.mxu1 %v11925_v31  ;;  %v13385_v1 = vsel %vm13194_vm13, %v6021_v53, 0  ;;  %v6023_v31 = vshrl.u32 %v13298_v55, 16 }
 0x47b   : > { %6976 = vmatmul.mubr.bf16.gmra.mxu0 %v13209_v42  ;;  %7159 = vmatmul.mubr.bf16.gmra.mxu1 %v13209_v42 }
 0x47c   : > { %6985 = vmatprep.mubr.bf16.mxu0 %v13355_v21  ;;  %7168 = vmatprep.mubr.bf16.mxu1 %v13355_v21  ;;  %v6028_v9 = vor.u32 %v6027_v63, %v6023_v31 }
 0x47d   : > { %7483 = vmatpush2.bf16.msra.mxu1 %v11923_v24  ;;  %v6034_v24 = vrot.slane %v6032_v54, 1 }
 0x47e   : > { %7484 = vmatprep.subr.bf16.mxu1 %v11931_v30  ;;  %v13395_v23 = vsel %vm13194_vm13, %v6028_v9, 0 }
 0x47f   : > { %v6035_v30 = vor.u32 %v6034_v24, %v6030_v0 }
 0x481   : > { %7485 = vmatpush2.bf16.msra.mxu1 %v11929_v43  ;;  %v13405_v49 = vsel %vm13194_vm13, %v6035_v30, 0  ;;  %v6041_v43 = vrot.slane %v6039_v11, 1 }
 0x482   : > { %7486 = vmatprep.subr.bf16.mxu1 %v11937_v56  ;;  %v6037_v56 = vshrl.u32 %v13306_v5, 16 }
 0x483   : > { %6986 = vmatmul.mubr.bf16.gmra.mxu0 %v13321_v39  ;;  %7169 = vmatmul.mubr.bf16.gmra.mxu1 %v13321_v39 }
 0x484   : > { %6995 = vmatprep.mubr.bf16.mxu0 %v13365_v32  ;;  %7178 = vmatprep.mubr.bf16.mxu1 %v13365_v32  ;;  %v6042_v62 = vor.u32 %v6041_v43, %v6037_v56 }
 0x485   : > { %7487 = vmatpush2.bf16.msra.mxu1 %v11935_v2 }
 0x486   : > { %7488 = vmatprep.subr.bf16.mxu1 %v11943_v18  ;;  %v13415_v2 = vsel %vm13194_vm13, %v6042_v62, 0  ;;  %v6048_v18 = vrot.slane %v6046_v35, 1 }
 0x488   : > { %v6049_v34 = vor.u32 %v6048_v18, %v6044_v13 }
 0x489   : > { %7489 = vmatpush2.bf16.msra.mxu1 %v11941_v44  ;;  %v6053_v44 = vshll.u32 %v13317_v25, 16 }
 0x48a   : > { %7490 = vmatprep.subr.bf16.mxu1 %v11949_v12  ;;  %v13425_v12 = vsel %vm13194_vm13, %v6049_v34, 0 }
 0x48b   : > { %6996 = vmatmul.mubr.bf16.gmra.mxu0 %v13213_v19  ;;  %7179 = vmatmul.mubr.bf16.gmra.mxu1 %v13213_v19  ;;  %v6055_v46 = vrot.slane %v6053_v44, 1 }
 0x48c   : > { %7005 = vmatprep.mubr.bf16.mxu0 %v13375_v59  ;;  %7188 = vmatprep.mubr.bf16.mxu1 %v13375_v59 }
 0x48d   : > { %7491 = vmatpush2.bf16.msra.mxu1 %v11947_v7  ;;  %v6056_v7 = vor.u32 %v6055_v46, %v6051_v6 }
 0x48e   : > { %7492 = vmatprep.subr.bf16.mxu1 %v11955_v40 }
 0x48f   : > { %v13434_v40 = vsel %vm13194_vm13, %v6056_v7, 0 }
 0x491   : > { %7493 = vmatpush2.bf16.msra.mxu1 %v11953_v28 }
 0x493   : > { %7006 = vmatmul.mubr.bf16.gmra.mxu0 %v13349_v8  ;;  %7189 = vmatmul.mubr.bf16.gmra.mxu1 %v13349_v8 }
 0x494   : > { %7015 = vmatprep.mubr.bf16.mxu0 %v13385_v1  ;;  %7198 = vmatprep.mubr.bf16.mxu1 %v13385_v1 }
 0x49b   : > { %7016 = vmatmul.mubr.bf16.gmra.mxu0 %v13217_v37  ;;  %7199 = vmatmul.mubr.bf16.gmra.mxu1 %v13217_v37 }
 0x49c   : > { %7025 = vmatprep.mubr.bf16.mxu0 %v13395_v23  ;;  %7208 = vmatprep.mubr.bf16.mxu1 %v13395_v23 }
 0x4a3   : > { %7026 = vmatmul.mubr.bf16.gmra.mxu0 %v13298_v55  ;;  %7209 = vmatmul.mubr.bf16.gmra.mxu1 %v13298_v55 }
 0x4a4   : > { %7035 = vmatprep.mubr.bf16.mxu0 %v13405_v49  ;;  %7218 = vmatprep.mubr.bf16.mxu1 %v13405_v49 }
 0x4ab   : > { %7036 = vmatmul.mubr.bf16.gmra.mxu0 %v13220_v51  ;;  %7219 = vmatmul.mubr.bf16.gmra.mxu1 %v13220_v51 }
 0x4ac   : > { %7045 = vmatprep.mubr.bf16.mxu0 %v13415_v2  ;;  %7228 = vmatprep.mubr.bf16.mxu1 %v13415_v2 }
 0x4b3   : > { %7046 = vmatmul.mubr.bf16.gmra.mxu0 %v13306_v5  ;;  %7229 = vmatmul.mubr.bf16.gmra.mxu1 %v13306_v5 }
 0x4b4   : > { %7055 = vmatprep.mubr.bf16.mxu0 %v13425_v12  ;;  %7238 = vmatprep.mubr.bf16.mxu1 %v13425_v12 }
 0x4bb   : > { %7056 = vmatmul.mubr.bf16.gmra.mxu0 %v13222_v45  ;;  %7239 = vmatmul.mubr.bf16.gmra.mxu1 %v13222_v45 }
 0x4bc   : > { %7065 = vmatprep.mubr.bf16.mxu0 %v13434_v40  ;;  %7248 = vmatprep.mubr.bf16.mxu1 %v13434_v40 }
 0x4c3   : > { %7066 = vmatmul.mubr.bf16.gmra.mxu0 %v13317_v25  ;;  %7249 = vmatmul.mubr.bf16.gmra.mxu1 %v13317_v25 }
 0x4c4   : > { %7301 = vmatprep.mubr.bf16.mxu0 %v13204_v36  ;;  %7258 = vmatprep.mubr.bf16.mxu1 %v13441_v58 }
 0x4cb   : > { %7259 = vmatmul.mubr.bf16.gmra.mxu1 %v15748_v47  ;;  %7302 = vmatmul.mubr.bf16.vlgmr.msra.gmra.mxu0 %v13183_v41 }
 0x4cc   : > { %7311 = vmatprep.mubr.bf16.mxu0 %v13265_v48  ;;  %7494 = vmatprep.mubr.bf16.mxu1 %v13265_v48 }
 0x4d3   : > { %7312 = vmatmul.mubr.bf16.gmra.mxu0 %v13237_v3  ;;  %7495 = vmatmul.mubr.bf16.vlgmr.msra.gmra.mxu1 %v13237_v3  ;;  %v6917_v41 = vpop.f32.mrf.mxu0 }
 0x4d4   : > { %7321 = vmatprep.mubr.bf16.mxu0 %v13274_v22  ;;  %7504 = vmatprep.mubr.bf16.mxu1 %v13274_v22 }
 0x4db   : > { %7322 = vmatmul.mubr.bf16.gmra.mxu0 %v13189_v38  ;;  %7505 = vmatmul.mubr.bf16.gmra.mxu1 %v13189_v38  ;;  %v6919_v38 = vpop.f32.mrf.mxu0 }
 0x4dc   : > { %7331 = vmatprep.mubr.bf16.mxu0 %v13291_v4  ;;  %7514 = vmatprep.mubr.bf16.mxu1 %v13291_v4 }
 0x4dd   : > { %v6921_v36 = vpop.f32.mrf.mxu0 }
 0x4e3   : > { %7332 = vmatmul.mubr.bf16.gmra.mxu0 %v13250_v60  ;;  %7515 = vmatmul.mubr.bf16.gmra.mxu1 %v13250_v60  ;;  %v6923_v60 = vpop.f32.mrf.mxu0 }
 0x4e4   : > { %7341 = vmatprep.mubr.bf16.mxu0 %v13313_v33  ;;  %7524 = vmatprep.mubr.bf16.mxu1 %v13313_v33 }
 0x4eb   : > { %7342 = vmatmul.mubr.bf16.gmra.mxu0 %v13199_v29  ;;  %7525 = vmatmul.mubr.bf16.gmra.mxu1 %v13199_v29  ;;  %v13479_v29 = vld [vmem:[#allocation12] sm:$0xf] }
 0x4ec   : > { %7351 = vmatprep.mubr.bf16.mxu0 %v13327_v27  ;;  %7534 = vmatprep.mubr.bf16.mxu1 %v13327_v27  ;;  %v13491_v3 = vrot.slane %v13479_v29, %v12447_v26 }
 0x4ee   : > { %15752 = vst [vmem:[#allocation19_spill] sm:$0xff] %v13491_v3 }
 0x4f3   : > { %7352 = vmatmul.mubr.bf16.gmra.mxu0 %v13284_v52  ;;  %7535 = vmatmul.mubr.bf16.gmra.mxu1 %v13284_v52 }
 0x4f4   : > { %7361 = vmatprep.mubr.bf16.mxu0 %v13343_v20  ;;  %7544 = vmatprep.mubr.bf16.mxu1 %v13343_v20 }
 0x4fb   : > { %7362 = vmatmul.mubr.bf16.gmra.mxu0 %v13209_v42  ;;  %7545 = vmatmul.mubr.bf16.gmra.mxu1 %v13209_v42  ;;  %v13487_v42 = vrot.slane %v13479_v29, %v12441_v14 }
 0x4fc   : > { %7371 = vmatprep.mubr.bf16.mxu0 %v13355_v21  ;;  %7554 = vmatprep.mubr.bf16.mxu1 %v13355_v21 }
 0x4fd   : > { %v6918_v48 = vadd.f32 %v6917_v41, %v13487_v42  ;;  %v6922_v27 = vadd.f32 %v6921_v36, %v13487_v42 }
 0x503   : > { %7372 = vmatmul.mubr.bf16.gmra.mxu0 %v13321_v39  ;;  %7555 = vmatmul.mubr.bf16.gmra.mxu1 %v13321_v39 }
 0x504   : > { %7381 = vmatprep.mubr.bf16.mxu0 %v13365_v32  ;;  %7564 = vmatprep.mubr.bf16.mxu1 %v13365_v32  ;;  %v6924_v32 = vadd.f32 %v6923_v60, %v13491_v3 }
 0x50b   : > { %7382 = vmatmul.mubr.bf16.gmra.mxu0 %v13213_v19  ;;  %7565 = vmatmul.mubr.bf16.gmra.mxu1 %v13213_v19  ;;  %v6920_v19 = vadd.f32 %v6919_v38, %v13491_v3 }
 0x50c   : > { %7391 = vmatprep.mubr.bf16.mxu0 %v13375_v59  ;;  %7574 = vmatprep.mubr.bf16.mxu1 %v13375_v59 }
 0x513   : > { %v6927_v22 = vpop.f32.mrf.mxu0  ;;  %v7110_v52 = vpop.f32.mrf.mxu1  ;;  %7392 = vmatmul.mubr.bf16.gmra.mxu0 %v13349_v8  ;;  %7575 = vmatmul.mubr.bf16.gmra.mxu1 %v13349_v8 }
 0x514   : > { %v7111_v4 = vadd.f32 %v7110_v52, %v6918_v48  ;;  %7401 = vmatprep.mubr.bf16.mxu0 %v13385_v1  ;;  %7584 = vmatprep.mubr.bf16.mxu1 %v13385_v1  ;;  %v6928_v53 = vadd.f32 %v6927_v22, %v13487_v42 }
 0x515   : > { %v6929_v14 = vpop.f32.mrf.mxu0  ;;  %v7112_v33 = vpop.f32.mrf.mxu1 }
 0x516   : > { %v7783_v26 = vmul.f32 0.2, %v7111_v4  ;;  %v7113_v39 = vadd.f32 %v7112_v33, %v6920_v19  ;;  %vm7655_vm14 = vcmp.gt.f32.partialorder %v7111_v4, 0.0  ;;  %v6930_v11 = vadd.f32 %v6929_v14, %v13491_v3 }
 0x517   : > { %v6931_v20 = vpop.f32.mrf.mxu0  ;;  %v7114_v21 = vpop.f32.mrf.mxu1 }
 0x518   : > { %vm7656_vm0 = vcmp.gt.f32.partialorder %v7113_v39, 0.0  ;;  %v7784_v8 = vmul.f32 0.2, %v7113_v39  ;;  %v7115_v59 = vadd.f32 %v7114_v21, %v6922_v27  ;;  %v7911_v10 = vsel %vm7655_vm14, %v7111_v4, %v7783_v26 }
 0x519   : > { %v6933_v57 = vpop.f32.mrf.mxu0  ;;  %v7116_v28 = vpop.f32.mrf.mxu1  ;;  %v6932_v62 = vadd.f32 %v6931_v20, %v13487_v42 }
 0x51a   : > { %v7912_v1 = vsel %vm7656_vm0, %v7113_v39, %v7784_v8  ;;  %v7117_v63 = vadd.f32 %v7116_v28, %v6924_v32  ;;  %vm7659_vm3 = vcmp.gt.f32.partialorder %v7115_v59, 0.0  ;;  %v7787_v9 = vmul.f32 0.2, %v7115_v59 }
 0x51b   : > { %v13502_v31 = vpack.i.bf16 %v7912_v1, %v7911_v10  ;;  %v6937_v54 = vpop.f32.mrf.mxu0  ;;  %v7120_v24 = vpop.f32.mrf.mxu1  ;;  %7402 = vmatmul.mubr.bf16.gmra.mxu0 %v13217_v37  ;;  %7585 = vmatmul.mubr.bf16.gmra.mxu1 %v13217_v37  ;;  %v6934_v6 = vadd.f32 %v6933_v57, %v13491_v3  ;;  %vm8955_vm0 = vcmask 1040384  }
 0x51c   : > { %vm7660_vm15 = vcmp.gt.f32.partialorder %v7117_v63, 0.0  ;;  %v7788_v0 = vmul.f32 0.2, %v7117_v63  ;;  %v7121_v30 = vadd.f32 %v7120_v24, %v6928_v53  ;;  %7411 = vmatprep.mubr.bf16.mxu0 %v13395_v23  ;;  %7594 = vmatprep.mubr.bf16.mxu1 %v13395_v23  ;;  %v7915_v35 = vsel %vm7659_vm3, %v7115_v59, %v7787_v9 }
 0x51d   : > { %15753 = vst [vmem:[#allocation20_spill] sm:$0xff] %v13502_v31  ;;  %v6939_v43 = vpop.f32.mrf.mxu0  ;;  %v7122_v56 = vpop.f32.mrf.mxu1  ;;  %v6938_v48 = vadd.f32 %v6937_v54, %v13487_v42 }
 0x51e   : > { %v7916_v18 = vsel %vm7660_vm15, %v7117_v63, %v7788_v0  ;;  %v7791_v34 = vmul.f32 0.2, %v7121_v30  ;;  %v7123_v44 = vadd.f32 %v7122_v56, %v6930_v11  ;;  %vm7663_vm4 = vcmp.gt.f32.partialorder %v7121_v30, 0.0 }
 0x51f   : > { %v13510_v13 = vpack.i.bf16 %v7916_v18, %v7915_v35  ;;  %v6941_v37 = vpop.f32.mrf.mxu0  ;;  %v7124_v46 = vpop.f32.mrf.mxu1  ;;  %v6940_v14 = vadd.f32 %v6939_v43, %v13491_v3 }
 0x520   : > { %v7125_v7 = vadd.f32 %v7124_v46, %v6932_v62  ;;  %vm7664_vm5 = vcmp.gt.f32.partialorder %v7123_v44, 0.0  ;;  %v7792_v23 = vmul.f32 0.2, %v7123_v44  ;;  %v7919_v22 = vsel %vm7663_vm4, %v7121_v30, %v7791_v34  ;;  %vm13568_vm4 = vmand %vm8955_vm0, %vm1820_vm1 }
 0x521   : > { %15754 = vst [vmem:[#allocation21_spill] sm:$0xff] %v13510_v13  ;;  %v6943_v41 = vpop.f32.mrf.mxu0  ;;  %v7126_v38 = vpop.f32.mrf.mxu1  ;;  %v6942_v21 = vadd.f32 %v6941_v37, %v13487_v42 }
 0x522   : > { %v7795_v36 = vmul.f32 0.2, %v7125_v7  ;;  %v7127_v60 = vadd.f32 %v7126_v38, %v6934_v6  ;;  %v7920_v52 = vsel %vm7664_vm5, %v7123_v44, %v7792_v23  ;;  %vm7667_vm2 = vcmp.gt.f32.partialorder %v7125_v7, 0.0 }
 0x523   : > { %v6947_v19 = vpop.f32.mrf.mxu0  ;;  %v7130_v4 = vpop.f32.mrf.mxu1  ;;  %7412 = vmatmul.mubr.bf16.gmra.mxu0 %v13298_v55  ;;  %7595 = vmatmul.mubr.bf16.gmra.mxu1 %v13298_v55  ;;  %v13517_v33 = vpack.i.bf16 %v7920_v52, %v7919_v22 }
 0x524   : > { %vm7668_vm9 = vcmp.gt.f32.partialorder %v7127_v60, 0.0  ;;  %v7796_v26 = vmul.f32 0.2, %v7127_v60  ;;  %7421 = vmatprep.mubr.bf16.mxu0 %v13405_v49  ;;  %7604 = vmatprep.mubr.bf16.mxu1 %v13405_v49  ;;  %v7131_v39 = vadd.f32 %v7130_v4, %v6938_v48  ;;  %v7923_v32 = vsel %vm7667_vm2, %v7125_v7, %v7795_v36 }
 0x525   : > { %15755 = vst [vmem:[#allocation22_spill] sm:$0xff] %v13517_v33  ;;  %v6949_v27 = vpop.f32.mrf.mxu0  ;;  %v7132_v20 = vpop.f32.mrf.mxu1  ;;  %v8457_v63 = vshrl.u32 %v13517_v33, 16  ;;  %v6944_v49 = vadd.f32 %v6943_v41, %v13491_v3  ;;  %v6948_v9 = vadd.f32 %v6947_v19, %v13487_v42  ;;  %v8460_v30 = vshll.u32 %v13517_v33, 16 }
 0x526   : > { %v7924_v8 = vsel %vm7668_vm9, %v7127_v60, %v7796_v26  ;;  %v7133_v59 = vadd.f32 %v7132_v20, %v6940_v14  ;;  %vm7671_vm10 = vcmp.gt.f32.partialorder %v7131_v39, 0.0  ;;  %v7799_v55 = vmul.f32 0.2, %v7131_v39 }
 0x527   : > { %v13522_v57 = vpack.i.bf16 %v7924_v8, %v7923_v32  ;;  %v6951_v28 = vpop.f32.mrf.mxu0  ;;  %v7134_v53 = vpop.f32.mrf.mxu1  ;;  %v6950_v46 = vadd.f32 %v6949_v27, %v13491_v3  ;;  %v8459_v7 = vrot.slane %v8457_v63, 7  ;;  %v9000_v60 = vrot.slane %v8460_v30, 1 }
 0x528   : > { %vm7672_vm6 = vcmp.gt.f32.partialorder %v7133_v59, 0.0  ;;  %v7800_v10 = vmul.f32 0.2, %v7133_v59  ;;  %v7135_v1 = vadd.f32 %v7134_v53, %v6942_v21  ;;  %v7927_v11 = vsel %vm7671_vm10, %v7131_v39, %v7799_v55 }
 0x529   : > { %15756 = vst [vmem:[#allocation23_spill] sm:$0xff] %v13522_v57  ;;  %v6953_v54 = vpop.f32.mrf.mxu0  ;;  %v7136_v24 = vpop.f32.mrf.mxu1  ;;  %9327 = vmatprep.subr.bf16.mxu0 %v13522_v57  ;;  %v8464_v0 = vshrl.u32 %v13522_v57, 16  ;;  %v8467_v62 = vshll.u32 %v13522_v57, 16  ;;  %v6952_v48 = vadd.f32 %v6951_v28, %v13487_v42  ;;  %v9001_v55 = vor.u32 %v9000_v60, %v8457_v63 }
 0x52a   : > { %v7928_v43 = vsel %vm7672_vm6, %v7133_v59, %v7800_v10  ;;  %v7803_v56 = vmul.f32 0.2, %v7135_v1  ;;  %vm7675_vm7 = vcmp.gt.f32.partialorder %v7135_v1, 0.0  ;;  %v7137_v18 = vadd.f32 %v7136_v24, %v6944_v49 }
 0x52b   : > { %v13531_v35 = vpack.i.bf16 %v7928_v43, %v7927_v11  ;;  %v6957_v34 = vpop.f32.mrf.mxu0  ;;  %v7140_v44 = vpop.f32.mrf.mxu1  ;;  %7422 = vmatmul.mubr.bf16.gmra.mxu0 %v13220_v51  ;;  %7605 = vmatmul.mubr.bf16.gmra.mxu1 %v13220_v51  ;;  %v8466_v37 = vrot.slane %v8464_v0, 7  ;;  %v6954_v39 = vadd.f32 %v6953_v54, %v13491_v3  ;;  %v8462_v11 = vor.u32 %v8460_v30, %v8459_v7 }
 0x52c   : > { %v7141_v6 = vadd.f32 %v7140_v44, %v6948_v9  ;;  %7431 = vmatprep.mubr.bf16.mxu0 %v13415_v2  ;;  %7614 = vmatprep.mubr.bf16.mxu1 %v13415_v2  ;;  %vm7676_vm11 = vcmp.gt.f32.partialorder %v7137_v18, 0.0  ;;  %v7804_v23 = vmul.f32 0.2, %v7137_v18  ;;  %v7931_v22 = vsel %vm7675_vm7, %v7135_v1, %v7803_v56 }
 0x52d   : > { %v6959_v41 = vpop.f32.mrf.mxu0  ;;  %v7142_v38 = vpop.f32.mrf.mxu1  ;;  %v8469_v36 = vor.u32 %v8467_v62, %v8466_v37  ;;  %v9002_v2 = vrot.slane %v8467_v62, 1  ;;  %v6958_v28 = vadd.f32 %v6957_v34, %v13487_v42 }
 0x52e   : > { %v7807_v51 = vmul.f32 0.2, %v7141_v6  ;;  %v7143_v52 = vadd.f32 %v7142_v38, %v6950_v46  ;;  %v7932_v19 = vsel %vm7676_vm11, %v7137_v18, %v7804_v23  ;;  %vm7679_vm12 = vcmp.gt.f32.partialorder %v7141_v6, 0.0 }
 0x52f   : > { %v6961_v4 = vpop.f32.mrf.mxu0  ;;  %v7144_v14 = vpop.f32.mrf.mxu1  ;;  %v13541_v26 = vsel %vm1820_vm1, %v8459_v7, %v8469_v36  ;;  %v13544_v27 = vpack.i.bf16 %v7932_v19, %v7931_v22  ;;  %v13550_v59 = vor.u32 %v9002_v2, %v8464_v0  ;;  %v6960_v43 = vadd.f32 %v6959_v41, %v13491_v3 }
 0x530   : > { %15757 = vst [vmem:[#allocation24_spill] sm:$0xff] %v13541_v26  ;;  %vm7680_vm14 = vcmp.gt.f32.partialorder %v7143_v52, 0.0  ;;  %v7808_v20 = vmul.f32 0.2, %v7143_v52  ;;  %9328 = vmatpush1.bf16.xpose.msra.mxu0 %v13541_v26  ;;  %v7145_v21 = vadd.f32 %v7144_v14, %v6952_v48  ;;  %v7935_v53 = vsel %vm7679_vm12, %v7141_v6, %v7807_v51 }
 0x531   : > { %v13547_v32 = vpop.f32.mrf.mxu0  ;;  %v7146_v8 = vpop.f32.mrf.mxu1  ;;  %9329 = vmatprep.subr.bf16.mxu0 %v13517_v33  ;;  %v13562_v18 = vsel %vm6074_vm8, %v9001_v55, %v9002_v2  ;;  %v6962_v34 = vadd.f32 %v6961_v4, %v13487_v42  ;;  %v13576_v23 = vsel %vm13568_vm4, 0, %v8462_v11 }
 0x532   : > { %15758 = vst [vmem:[#allocation25_spill] sm:$0xff] %v13547_v32  ;;  %v7936_v10 = vsel %vm7680_vm14, %v7143_v52, %v7808_v20  ;;  %v7147_v1 = vadd.f32 %v7146_v8, %v6954_v39  ;;  %vm7683_vm3 = vcmp.gt.f32.partialorder %v7145_v21, 0.0  ;;  %v7811_v9 = vmul.f32 0.2, %v7145_v21  ;;  %15760 = vst [vmem:[#allocation27_spill] sm:$0xff] %v13562_v18 }
 0x533   : > { %v13554_v49 = vpack.i.bf16 %v7936_v10, %v7935_v53  ;;  %v6967_v54 = vpop.f32.mrf.mxu0  ;;  %v7150_v24 = vpop.f32.mrf.mxu1  ;;  %7432 = vmatmul.mubr.bf16.gmra.mxu0 %v13306_v5  ;;  %7615 = vmatmul.mubr.bf16.gmra.mxu1 %v13306_v5  ;;  %15764 = vst [vmem:[#allocation29_spill] sm:$0xff] %v13576_v23 }
 0x534   : > { %vm7684_vm15 = vcmp.gt.f32.partialorder %v7147_v1, 0.0  ;;  %v7812_v0 = vmul.f32 0.2, %v7147_v1  ;;  %v7151_v63 = vadd.f32 %v7150_v24, %v6958_v28  ;;  %7441 = vmatprep.mubr.bf16.mxu0 %v13425_v12  ;;  %7624 = vmatprep.mubr.bf16.mxu1 %v13425_v12  ;;  %v7939_v44 = vsel %vm7683_vm3, %v7145_v21, %v7811_v9 }
 0x535   : > { %15759 = vst [vmem:[#allocation26_spill] sm:$0xff] %v13554_v49  ;;  %v6969_v56 = vpop.f32.mrf.mxu0  ;;  %v7152_v62 = vpop.f32.mrf.mxu1  ;;  %v6968_v48 = vadd.f32 %v6967_v54, %v13487_v42 }
 0x536   : > { %v7940_v5 = vsel %vm7684_vm15, %v7147_v1, %v7812_v0  ;;  %v7815_v12 = vmul.f32 0.2, %v7151_v63  ;;  %v7153_v46 = vadd.f32 %v7152_v62, %v6960_v43  ;;  %vm7687_vm5 = vcmp.gt.f32.partialorder %v7151_v63, 0.0 }
 0x537   : > { %v13572_v37 = vpack.i.bf16 %v7940_v5, %v7939_v44  ;;  %v6971_v6 = vpop.f32.mrf.mxu0  ;;  %v7154_v7 = vpop.f32.mrf.mxu1  ;;  %v6970_v4 = vadd.f32 %v6969_v56, %v13491_v3 }
 0x538   : > { %v13578_v41 = vadd.f32 %v7154_v7, %v6962_v34  ;;  %9330 = vmatpush1.bf16.xpose.msra.mxu0 %v13576_v23  ;;  %vm7688_vm2 = vcmp.gt.f32.partialorder %v7153_v46, 0.0  ;;  %v7816_v38 = vmul.f32 0.2, %v7153_v46  ;;  %v7943_v22 = vsel %vm7687_vm5, %v7151_v63, %v7815_v12 }
 0x539   : > { %15763 = vst [vmem:[#allocation28_spill] sm:$0xff] %v13572_v37  ;;  %v13581_v36 = vpop.f32.mrf.mxu0  ;;  %v13583_v60 = vpop.f32.mrf.mxu1  ;;  %v6972_v21 = vadd.f32 %v6971_v6, %v13487_v42 }
 0x53a   : > { %15765 = vst [vmem:[#allocation30_spill] sm:$0xff] %v13578_v41  ;;  %15766 = vst [vmem:[#allocation31_spill] sm:$0xff] %v13581_v36  ;;  %v7944_v51 = vsel %vm7688_vm2, %v7153_v46, %v7816_v38  ;;  %v15818_v36 = vshrl.u32 %v13554_v49, 16 }
 0x53b   : > { %15767 = vst [vmem:[#allocation32_spill] sm:$0xff] %v13583_v60  ;;  %v6977_v52 = vpop.f32.mrf.mxu0  ;;  %v7160_v19 = vpop.f32.mrf.mxu1  ;;  %7442 = vmatmul.mubr.bf16.gmra.mxu0 %v13222_v45  ;;  %7625 = vmatmul.mubr.bf16.gmra.mxu1 %v13222_v45  ;;  %v13589_v14 = vpack.i.bf16 %v7944_v51, %v7943_v22 }
 0x53c   : > { %7451 = vmatprep.mubr.bf16.mxu0 %v13434_v40  ;;  %7634 = vmatprep.mubr.bf16.mxu1 %v13434_v40  ;;  %v7161_v2 = vadd.f32 %v7160_v19, %v6968_v48  ;;  %v6978_v40 = vadd.f32 %v6977_v52, %v13487_v42 }
 0x53d   : > { %15768 = vst [vmem:[#allocation33_spill] sm:$0xff] %v13589_v14  ;;  %v6979_v39 = vpop.f32.mrf.mxu0  ;;  %v7162_v20 = vpop.f32.mrf.mxu1  ;;  %v8519_v14 = vrot.slane %v15818_v36, 7 }
 0x53e   : > { %v7163_v8 = vadd.f32 %v7162_v20, %v6970_v4  ;;  %vm7695_vm9 = vcmp.gt.f32.partialorder %v7161_v2, 0.0  ;;  %v7823_v55 = vmul.f32 0.2, %v7161_v2  ;;  %v6980_v43 = vadd.f32 %v6979_v39, %v13491_v3 }
 0x53f   : > { %v6981_v28 = vpop.f32.mrf.mxu0  ;;  %v7164_v53 = vpop.f32.mrf.mxu1 }
 0x540   : > { %vm7696_vm10 = vcmp.gt.f32.partialorder %v7163_v8, 0.0  ;;  %v7824_v45 = vmul.f32 0.2, %v7163_v8  ;;  %v13594_v10 = vadd.f32 %v7164_v53, %v6972_v21  ;;  %v7951_v54 = vsel %vm7695_vm9, %v7161_v2, %v7823_v55 }
 0x541   : > { %v13596_v1 = vpop.f32.mrf.mxu0  ;;  %v13598_v9 = vpop.f32.mrf.mxu1  ;;  %v6982_v12 = vadd.f32 %v6981_v28, %v13487_v42 }
 0x542   : > { %15769 = vst [vmem:[#allocation34_spill] sm:$0xff] %v13594_v10  ;;  %15770 = vst [vmem:[#allocation35_spill] sm:$0xff] %v13596_v1  ;;  %v7952_v24 = vsel %vm7696_vm10, %v7163_v8, %v7824_v45  ;;  %v8434_v1 = vshrl.u32 %v13510_v13, 16 }
 0x543   : > { %15771 = vst [vmem:[#allocation36_spill] sm:$0xff] %v13598_v9  ;;  %v13601_v11 = vpack.i.bf16 %v7952_v24, %v7951_v54  ;;  %v6987_v0 = vpop.f32.mrf.mxu0  ;;  %v7170_v63 = vpop.f32.mrf.mxu1  ;;  %7452 = vmatmul.mubr.bf16.gmra.mxu0 %v13317_v25  ;;  %7635 = vmatmul.mubr.bf16.gmra.mxu1 %v13317_v25 }
 0x544   : > { %v7171_v56 = vadd.f32 %v7170_v63, %v6978_v40  ;;  %7644 = vmatprep.mubr.bf16.mxu1 %v13441_v58  ;;  %v6988_v22 = vadd.f32 %v6987_v0, %v13487_v42 }
 0x545   : > { %15772 = vst [vmem:[#allocation37_spill] sm:$0xff] %v13601_v11  ;;  %v6989_v62 = vpop.f32.mrf.mxu0  ;;  %v7172_v34 = vpop.f32.mrf.mxu1 }
 0x546   : > { %v7831_v44 = vmul.f32 0.2, %v7171_v56  ;;  %v7173_v5 = vadd.f32 %v7172_v34, %v6980_v43  ;;  %vm7703_vm6 = vcmp.gt.f32.partialorder %v7171_v56, 0.0  ;;  %v6990_v20 = vadd.f32 %v6989_v62, %v13491_v3 }
 0x547   : > { %v6991_v46 = vpop.f32.mrf.mxu0  ;;  %v7174_v6 = vpop.f32.mrf.mxu1 }
 0x548   : > { %vm7704_vm7 = vcmp.gt.f32.partialorder %v7173_v5, 0.0  ;;  %v7832_v7 = vmul.f32 0.2, %v7173_v5  ;;  %v13608_v38 = vadd.f32 %v7174_v6, %v6982_v12  ;;  %v7959_v51 = vsel %vm7703_vm6, %v7171_v56, %v7831_v44 }
 0x549   : > { %v13610_v48 = vpop.f32.mrf.mxu0  ;;  %v13612_v25 = vpop.f32.mrf.mxu1  ;;  %v6992_v55 = vadd.f32 %v6991_v46, %v13487_v42 }
 0x54a   : > { %15773 = vst [vmem:[#allocation38_spill] sm:$0xff] %v13608_v38  ;;  %15774 = vst [vmem:[#allocation39_spill] sm:$0xff] %v13610_v48  ;;  %v7960_v52 = vsel %vm7704_vm7, %v7173_v5, %v7832_v7 }
 0x54b   : > { %15775 = vst [vmem:[#allocation40_spill] sm:$0xff] %v13612_v25  ;;  %v13615_v19 = vpack.i.bf16 %v7960_v52, %v7959_v51  ;;  %v6997_v4 = vpop.f32.mrf.mxu0  ;;  %v7180_v2 = vpop.f32.mrf.mxu1  ;;  %7645 = vmatmul.mubr.bf16.gmra.mxu1 %v15748_v47 }
 0x54c   : > { %v7181_v39 = vadd.f32 %v7180_v2, %v6988_v22  ;;  %v6998_v43 = vadd.f32 %v6997_v4, %v13487_v42 }
 0x54d   : > { %15776 = vst [vmem:[#allocation41_spill] sm:$0xff] %v13615_v19  ;;  %v6999_v21 = vpop.f32.mrf.mxu0  ;;  %v7182_v8 = vpop.f32.mrf.mxu1 }
 0x54e   : > { %v7839_v28 = vmul.f32 0.2, %v7181_v39  ;;  %v7183_v53 = vadd.f32 %v7182_v8, %v6990_v20  ;;  %vm7711_vm11 = vcmp.gt.f32.partialorder %v7181_v39, 0.0  ;;  %v7000_v5 = vadd.f32 %v6999_v21, %v13491_v3 }
 0x54f   : > { %v7001_v45 = vpop.f32.mrf.mxu0  ;;  %v7184_v40 = vpop.f32.mrf.mxu1 }
 0x550   : > { %v13620_v54 = vadd.f32 %v7184_v40, %v6992_v55  ;;  %vm7712_vm12 = vcmp.gt.f32.partialorder %v7183_v53, 0.0  ;;  %v7840_v24 = vmul.f32 0.2, %v7183_v53  ;;  %v7967_v56 = vsel %vm7711_vm11, %v7181_v39, %v7839_v28 }
 0x551   : > { %v13622_v0 = vpop.f32.mrf.mxu0  ;;  %v13624_v63 = vpop.f32.mrf.mxu1  ;;  %v7002_v22 = vadd.f32 %v7001_v45, %v13487_v42 }
 0x552   : > { %15777 = vst [vmem:[#allocation42_spill] sm:$0xff] %v13620_v54  ;;  %15778 = vst [vmem:[#allocation43_spill] sm:$0xff] %v13622_v0  ;;  %v7968_v62 = vsel %vm7712_vm12, %v7183_v53, %v7840_v24  ;;  %v13702_v0 = vrot.slane %v13479_v29, %v12444_v15 }
 0x553   : > { %15779 = vst [vmem:[#allocation44_spill] sm:$0xff] %v13624_v63  ;;  %v7007_v34 = vpop.f32.mrf.mxu0  ;;  %v7190_v44 = vpop.f32.mrf.mxu1  ;;  %v13628_v12 = vpack.i.bf16 %v7968_v62, %v7967_v56 }
 0x554   : > { %v7191_v46 = vadd.f32 %v7190_v44, %v6998_v43  ;;  %v7008_v21 = vadd.f32 %v7007_v34, %v13487_v42 }
 0x555   : > { %15780 = vst [vmem:[#allocation45_spill] sm:$0xff] %v13628_v12  ;;  %v7009_v6 = vpop.f32.mrf.mxu0  ;;  %v7192_v7 = vpop.f32.mrf.mxu1 }
 0x556   : > { %v7193_v51 = vadd.f32 %v7192_v7, %v7000_v5  ;;  %vm7719_vm14 = vcmp.gt.f32.partialorder %v7191_v46, 0.0  ;;  %v7847_v52 = vmul.f32 0.2, %v7191_v46  ;;  %v7010_v43 = vadd.f32 %v7009_v6, %v13491_v3 }
 0x557   : > { %v7011_v2 = vpop.f32.mrf.mxu0  ;;  %v7194_v20 = vpop.f32.mrf.mxu1 }
 0x558   : > { %vm7720_vm0 = vcmp.gt.f32.partialorder %v7193_v51, 0.0  ;;  %v7848_v4 = vmul.f32 0.2, %v7193_v51  ;;  %v13631_v39 = vadd.f32 %v7194_v20, %v7002_v22  ;;  %v7975_v28 = vsel %vm7719_vm14, %v7191_v46, %v7847_v52 }
 0x559   : > { %v13633_v8 = vpop.f32.mrf.mxu0  ;;  %v13635_v55 = vpop.f32.mrf.mxu1  ;;  %v7012_v22 = vadd.f32 %v7011_v2, %v13487_v42 }
 0x55a   : > { %15781 = vst [vmem:[#allocation46_spill] sm:$0xff] %v13631_v39  ;;  %15782 = vst [vmem:[#allocation47_spill] sm:$0xff] %v13633_v8  ;;  %v7976_v53 = vsel %vm7720_vm0, %v7193_v51, %v7848_v4 }
 0x55b   : > { %15783 = vst [vmem:[#allocation48_spill] sm:$0xff] %v13635_v55  ;;  %v13638_v40 = vpack.i.bf16 %v7976_v53, %v7975_v28  ;;  %v7017_v45 = vpop.f32.mrf.mxu0  ;;  %v7200_v24 = vpop.f32.mrf.mxu1 }
 0x55c   : > { %v7201_v56 = vadd.f32 %v7200_v24, %v7008_v21  ;;  %v7018_v6 = vadd.f32 %v7017_v45, %v13487_v42 }
 0x55d   : > { %15784 = vst [vmem:[#allocation49_spill] sm:$0xff] %v13638_v40  ;;  %v7019_v62 = vpop.f32.mrf.mxu0  ;;  %v7202_v44 = vpop.f32.mrf.mxu1 }
 0x55e   : > { %v7855_v5 = vmul.f32 0.2, %v7201_v56  ;;  %v7203_v7 = vadd.f32 %v7202_v44, %v7010_v43  ;;  %vm7727_vm3 = vcmp.gt.f32.partialorder %v7201_v56, 0.0  ;;  %v7020_v43 = vadd.f32 %v7019_v62, %v13491_v3 }
 0x55f   : > { %v7021_v20 = vpop.f32.mrf.mxu0  ;;  %v7204_v8 = vpop.f32.mrf.mxu1 }
 0x560   : > { %vm7728_vm15 = vcmp.gt.f32.partialorder %v7203_v7, 0.0  ;;  %v7856_v34 = vmul.f32 0.2, %v7203_v7  ;;  %v13642_v46 = vadd.f32 %v7204_v8, %v7012_v22  ;;  %v7983_v4 = vsel %vm7727_vm3, %v7201_v56, %v7855_v5 }
 0x561   : > { %v13644_v51 = vpop.f32.mrf.mxu0  ;;  %v13646_v52 = vpop.f32.mrf.mxu1  ;;  %v7022_v8 = vadd.f32 %v7021_v20, %v13487_v42 }
 0x562   : > { %15785 = vst [vmem:[#allocation50_spill] sm:$0xff] %v13642_v46  ;;  %15786 = vst [vmem:[#allocation51_spill] sm:$0xff] %v13644_v51  ;;  %v7984_v21 = vsel %vm7728_vm15, %v7203_v7, %v7856_v34 }
 0x563   : > { %15787 = vst [vmem:[#allocation52_spill] sm:$0xff] %v13646_v52  ;;  %v13649_v28 = vpack.i.bf16 %v7984_v21, %v7983_v4  ;;  %v7027_v53 = vpop.f32.mrf.mxu0  ;;  %v7210_v24 = vpop.f32.mrf.mxu1 }
 0x564   : > { %v7211_v2 = vadd.f32 %v7210_v24, %v7018_v6  ;;  %v7028_v7 = vadd.f32 %v7027_v53, %v13487_v42 }
 0x565   : > { %15788 = vst [vmem:[#allocation53_spill] sm:$0xff] %v13649_v28  ;;  %v7029_v44 = vpop.f32.mrf.mxu0  ;;  %v7212_v40 = vpop.f32.mrf.mxu1 }
 0x566   : > { %v7863_v22 = vmul.f32 0.2, %v7211_v2  ;;  %v7213_v46 = vadd.f32 %v7212_v40, %v7020_v43  ;;  %vm7735_vm5 = vcmp.gt.f32.partialorder %v7211_v2, 0.0  ;;  %v7030_v20 = vadd.f32 %v7029_v44, %v13491_v3 }
 0x567   : > { %v7031_v51 = vpop.f32.mrf.mxu0  ;;  %v7214_v39 = vpop.f32.mrf.mxu1 }
 0x568   : > { %v13653_v52 = vadd.f32 %v7214_v39, %v7022_v8  ;;  %vm7736_vm2 = vcmp.gt.f32.partialorder %v7213_v46, 0.0  ;;  %v7864_v45 = vmul.f32 0.2, %v7213_v46  ;;  %v7991_v62 = vsel %vm7735_vm5, %v7211_v2, %v7863_v22 }
 0x569   : > { %v13655_v56 = vpop.f32.mrf.mxu0  ;;  %v13657_v5 = vpop.f32.mrf.mxu1  ;;  %v7032_v43 = vadd.f32 %v7031_v51, %v13487_v42 }
 0x56a   : > { %15789 = vst [vmem:[#allocation54_spill] sm:$0xff] %v13653_v52  ;;  %15790 = vst [vmem:[#allocation55_spill] sm:$0xff] %v13655_v56  ;;  %v7992_v34 = vsel %vm7736_vm2, %v7213_v46, %v7864_v45 }
 0x56b   : > { %15791 = vst [vmem:[#allocation56_spill] sm:$0xff] %v13657_v5  ;;  %v7037_v6 = vpop.f32.mrf.mxu0  ;;  %v7220_v4 = vpop.f32.mrf.mxu1  ;;  %v13661_v40 = vpack.i.bf16 %v7992_v34, %v7991_v62 }
 0x56c   : > { %v7221_v21 = vadd.f32 %v7220_v4, %v7028_v7  ;;  %v7038_v44 = vadd.f32 %v7037_v6, %v13487_v42 }
 0x56d   : > { %15792 = vst [vmem:[#allocation57_spill] sm:$0xff] %v13661_v40  ;;  %v7039_v24 = vpop.f32.mrf.mxu0  ;;  %v7222_v39 = vpop.f32.mrf.mxu1 }
 0x56e   : > { %v7223_v8 = vadd.f32 %v7222_v39, %v7030_v20  ;;  %vm7743_vm9 = vcmp.gt.f32.partialorder %v7221_v21, 0.0  ;;  %v7871_v52 = vmul.f32 0.2, %v7221_v21  ;;  %v7040_v4 = vadd.f32 %v7039_v24, %v13491_v3 }
 0x56f   : > { %v7041_v56 = vpop.f32.mrf.mxu0  ;;  %v7224_v5 = vpop.f32.mrf.mxu1 }
 0x570   : > { %vm7744_vm10 = vcmp.gt.f32.partialorder %v7223_v8, 0.0  ;;  %v7872_v53 = vmul.f32 0.2, %v7223_v8  ;;  %v13664_v2 = vadd.f32 %v7224_v5, %v7032_v43  ;;  %v7999_v45 = vsel %vm7743_vm9, %v7221_v21, %v7871_v52 }
 0x571   : > { %v13666_v46 = vpop.f32.mrf.mxu0  ;;  %v13668_v22 = vpop.f32.mrf.mxu1  ;;  %v7042_v43 = vadd.f32 %v7041_v56, %v13487_v42 }
 0x572   : > { %15793 = vst [vmem:[#allocation58_spill] sm:$0xff] %v13664_v2  ;;  %15794 = vst [vmem:[#allocation59_spill] sm:$0xff] %v13666_v46  ;;  %v8000_v7 = vsel %vm7744_vm10, %v7223_v8, %v7872_v53 }
 0x573   : > { %15795 = vst [vmem:[#allocation60_spill] sm:$0xff] %v13668_v22  ;;  %v13671_v62 = vpack.i.bf16 %v8000_v7, %v7999_v45  ;;  %v7047_v51 = vpop.f32.mrf.mxu0  ;;  %v7230_v34 = vpop.f32.mrf.mxu1 }
 0x574   : > { %v7231_v20 = vadd.f32 %v7230_v34, %v7038_v44  ;;  %v7048_v24 = vadd.f32 %v7047_v51, %v13487_v42 }
 0x575   : > { %15796 = vst [vmem:[#allocation61_spill] sm:$0xff] %v13671_v62  ;;  %v7049_v39 = vpop.f32.mrf.mxu0  ;;  %v7232_v40 = vpop.f32.mrf.mxu1 }
 0x576   : > { %v7879_v28 = vmul.f32 0.2, %v7231_v20  ;;  %v7233_v5 = vadd.f32 %v7232_v40, %v7040_v4  ;;  %vm7751_vm6 = vcmp.gt.f32.partialorder %v7231_v20, 0.0  ;;  %v7050_v34 = vadd.f32 %v7049_v39, %v13491_v3 }
 0x577   : > { %v7051_v46 = vpop.f32.mrf.mxu0  ;;  %v7234_v2 = vpop.f32.mrf.mxu1 }
 0x578   : > { %vm7752_vm7 = vcmp.gt.f32.partialorder %v7233_v5, 0.0  ;;  %v7880_v6 = vmul.f32 0.2, %v7233_v5  ;;  %v13675_v52 = vadd.f32 %v7234_v2, %v7042_v43  ;;  %v8007_v53 = vsel %vm7751_vm6, %v7231_v20, %v7879_v28 }
 0x579   : > { %v13677_v21 = vpop.f32.mrf.mxu0  ;;  %v13679_v8 = vpop.f32.mrf.mxu1  ;;  %v7052_v2 = vadd.f32 %v7051_v46, %v13487_v42 }
 0x57a   : > { %15797 = vst [vmem:[#allocation62_spill] sm:$0xff] %v13675_v52  ;;  %15798 = vst [vmem:[#allocation63_spill] sm:$0xff] %v13677_v21  ;;  %v8008_v44 = vsel %vm7752_vm7, %v7233_v5, %v7880_v6 }
 0x57b   : > { %15799 = vst [vmem:[#allocation64_spill] sm:$0xff] %v13679_v8  ;;  %v13682_v45 = vpack.i.bf16 %v8008_v44, %v8007_v53  ;;  %v7057_v40 = vpop.f32.mrf.mxu0  ;;  %v7240_v7 = vpop.f32.mrf.mxu1 }
 0x57c   : > { %v7241_v56 = vadd.f32 %v7240_v7, %v7048_v24  ;;  %v7058_v5 = vadd.f32 %v7057_v40, %v13487_v42 }
 0x57d   : > { %15800 = vst [vmem:[#allocation65_spill] sm:$0xff] %v13682_v45  ;;  %v7059_v4 = vpop.f32.mrf.mxu0  ;;  %v7242_v62 = vpop.f32.mrf.mxu1 }
 0x57e   : > { %v7887_v43 = vmul.f32 0.2, %v7241_v56  ;;  %v7243_v52 = vadd.f32 %v7242_v62, %v7050_v34  ;;  %vm7759_vm11 = vcmp.gt.f32.partialorder %v7241_v56, 0.0  ;;  %v7060_v46 = vadd.f32 %v7059_v4, %v13491_v3 }
 0x57f   : > { %v7061_v21 = vpop.f32.mrf.mxu0  ;;  %v7244_v22 = vpop.f32.mrf.mxu1 }
 0x580   : > { %v13686_v8 = vadd.f32 %v7244_v22, %v7052_v2  ;;  %vm7760_vm12 = vcmp.gt.f32.partialorder %v7243_v52, 0.0  ;;  %v7888_v28 = vmul.f32 0.2, %v7243_v52  ;;  %v8015_v6 = vsel %vm7759_vm11, %v7241_v56, %v7887_v43 }
 0x581   : > { %v7063_v51 = vpop.f32.mrf.mxu0  ;;  %v13688_v20 = vpop.f32.mrf.mxu1  ;;  %v7062_v22 = vadd.f32 %v7061_v21, %v13487_v42 }
 0x582   : > { %15801 = vst [vmem:[#allocation66_spill] sm:$0xff] %v13686_v8  ;;  %15802 = vst [vmem:[#allocation67_spill] sm:$0xff] %v13688_v20  ;;  %v8016_v39 = vsel %vm7760_vm12, %v7243_v52, %v7888_v28  ;;  %v7064_v52 = vadd.f32 %v7063_v51, %v13491_v3 }
 0x583   : > { %v7067_v24 = vpop.f32.mrf.mxu0  ;;  %v7250_v53 = vpop.f32.mrf.mxu1  ;;  %v13692_v44 = vpack.i.bf16 %v8016_v39, %v8015_v6 }
 0x584   : > { %v7251_v62 = vadd.f32 %v7250_v53, %v7058_v5  ;;  %v7068_v4 = vadd.f32 %v7067_v24, %v13487_v42 }
 0x585   : > { %15803 = vst [vmem:[#allocation68_spill] sm:$0xff] %v13692_v44  ;;  %v7069_v7 = vpop.f32.mrf.mxu0  ;;  %v7252_v34 = vpop.f32.mrf.mxu1 }
 0x586   : > { %v7253_v2 = vadd.f32 %v7252_v34, %v7060_v46  ;;  %vm7767_vm14 = vcmp.gt.f32.partialorder %v7251_v62, 0.0  ;;  %v7895_v8 = vmul.f32 0.2, %v7251_v62  ;;  %v7070_v44 = vadd.f32 %v7069_v7, %v13491_v3 }
 0x587   : > { %v7071_v45 = vpop.f32.mrf.mxu0  ;;  %v7254_v20 = vpop.f32.mrf.mxu1 }
 0x588   : > { %vm7768_vm0 = vcmp.gt.f32.partialorder %v7253_v2, 0.0  ;;  %v7896_v40 = vmul.f32 0.2, %v7253_v2  ;;  %v7255_v56 = vadd.f32 %v7254_v20, %v7062_v22  ;;  %v8023_v6 = vsel %vm7767_vm14, %v7251_v62, %v7895_v8 }
 0x589   : > { %v7073_v43 = vpop.f32.mrf.mxu0  ;;  %v7256_v28 = vpop.f32.mrf.mxu1  ;;  %v7072_v62 = vadd.f32 %v7071_v45, %v13487_v42 }
 0x58a   : > { %v8024_v5 = vsel %vm7768_vm0, %v7253_v2, %v7896_v40  ;;  %v7899_v53 = vmul.f32 0.2, %v7255_v56  ;;  %v7257_v21 = vadd.f32 %v7256_v28, %v7064_v52  ;;  %vm7771_vm3 = vcmp.gt.f32.partialorder %v7255_v56, 0.0 }
 0x58b   : > { %v13697_v39 = vpack.i.bf16 %v8024_v5, %v8023_v6  ;;  %v7260_v46 = vpop.f32.mrf.mxu1  ;;  %v7303_v34 = vpop.f32.mrf.mxu0  ;;  %v7074_v7 = vadd.f32 %v7073_v43, %v13491_v3  ;;  %v13710_v5 = vrot.slane %v13479_v29, %v12450_v16  ;;  %v8520_v3 = vshll.u32 %v13554_v49, 16 }
 0x58c   : > { %v7261_v55 = vadd.f32 %v7260_v46, %v7068_v4  ;;  %vm7772_vm15 = vcmp.gt.f32.partialorder %v7257_v21, 0.0  ;;  %v7900_v20 = vmul.f32 0.2, %v7257_v21  ;;  %v8027_v2 = vsel %vm7771_vm3, %v7255_v56, %v7899_v53 }
 0x58d   : > { %15804 = vst [vmem:[#allocation69_spill] sm:$0xff] %v13697_v39  ;;  %v7262_v22 = vpop.f32.mrf.mxu1  ;;  %v7305_v51 = vpop.f32.mrf.mxu0  ;;  %v7304_v42 = vadd.f32 %v7303_v34, %v13702_v0 }
 0x58e   : > { %v7903_v8 = vmul.f32 0.2, %v7261_v55  ;;  %v7263_v24 = vadd.f32 %v7262_v22, %v7070_v44  ;;  %v8028_v40 = vsel %vm7772_vm15, %v7257_v21, %v7900_v20  ;;  %vm7775_vm5 = vcmp.gt.f32.partialorder %v7261_v55, 0.0 }
 0x58f   : > { %v7264_v52 = vpop.f32.mrf.mxu1  ;;  %v7307_v28 = vpop.f32.mrf.mxu0  ;;  %v13706_v4 = vpack.i.bf16 %v8028_v40, %v8027_v2  ;;  %v7306_v16 = vadd.f32 %v7305_v51, %v13710_v5 }
 0x590   : > { %vm7776_vm2 = vcmp.gt.f32.partialorder %v7263_v24, 0.0  ;;  %v7904_v6 = vmul.f32 0.2, %v7263_v24  ;;  %v7265_v15 = vadd.f32 %v7264_v52, %v7072_v62  ;;  %v8031_v22 = vsel %vm7775_vm5, %v7261_v55, %v7903_v8 }
 0x591   : > { %15805 = vst [vmem:[#allocation70_spill] sm:$0xff] %v13706_v4  ;;  %v7266_v46 = vpop.f32.mrf.mxu1  ;;  %v7309_v44 = vpop.f32.mrf.mxu0  ;;  %v7308_v55 = vadd.f32 %v7307_v28, %v13702_v0 }
 0x592   : > { %v8032_v45 = vsel %vm7776_vm2, %v7263_v24, %v7904_v6  ;;  %v7267_v56 = vadd.f32 %v7266_v46, %v7074_v7  ;;  %vm7779_vm9 = vcmp.gt.f32.partialorder %v7265_v15, 0.0  ;;  %v7907_v43 = vmul.f32 0.2, %v7265_v15  ;;  %v13722_v46 = vld [vmem:[%s15580_s9] sm:$0xff] }
 0x593   : > { %v13713_v53 = vpack.i.bf16 %v8032_v45, %v8031_v22  ;;  %v7313_v21 = vpop.f32.mrf.mxu0  ;;  %v7496_v20 = vpop.f32.mrf.mxu1  ;;  %v7310_v22 = vadd.f32 %v7309_v44, %v13710_v5 }
 0x594   : > { %vm7780_vm10 = vcmp.gt.f32.partialorder %v7267_v56, 0.0  ;;  %v7908_v2 = vmul.f32 0.2, %v7267_v56  ;;  %v7497_v40 = vadd.f32 %v7496_v20, %v7304_v42  ;;  %v8035_v52 = vsel %vm7779_vm9, %v7265_v15, %v7907_v43 }
 0x595   : > { %15806 = vst [vmem:[#allocation71_spill] sm:$0xff] %v13713_v53  ;;  %v7315_v29 = vpop.f32.mrf.mxu0  ;;  %v7498_v62 = vpop.f32.mrf.mxu1  ;;  %v13727_v15 = vrot.slane %v13722_v46, %v12595_v17 }
 0x596   : > { %v8036_v8 = vsel %vm7780_vm10, %v7267_v56, %v7908_v2  ;;  %v7499_v24 = vadd.f32 %v7498_v62, %v7306_v16  ;;  %v7785_v42 = vmul.f32 0.2, %v7497_v40  ;;  %vm7657_vm6 = vcmp.gt.f32.partialorder %v7497_v40, 0.0 }
 0x597   : > { %v13717_v34 = vpack.i.bf16 %v8036_v8, %v8035_v52  ;;  %v7317_v7 = vpop.f32.mrf.mxu0  ;;  %v7500_v6 = vpop.f32.mrf.mxu1  ;;  %15808 = vst [vmem:[#allocation73_spill] sm:$0xff] %v13727_v15  ;;  %v7314_v2 = vadd.f32 %v7313_v21, %v13702_v0  ;;  %v13734_v52 = vcombine.high %v13727_v15, %v13727_v15  ;;  %v7316_v8 = vadd.f32 %v7315_v29, %v13710_v5 }
 0x598   : > { %v7501_v51 = vadd.f32 %v7500_v6, %v7308_v55  ;;  %vm7658_vm7 = vcmp.gt.f32.partialorder %v7499_v24, 0.0  ;;  %v7786_v28 = vmul.f32 0.2, %v7499_v24  ;;  %v7913_v55 = vsel %vm7657_vm6, %v7497_v40, %v7785_v42 }
 0x599   : > { %15807 = vst [vmem:[#allocation72_spill] sm:$0xff] %v13717_v34  ;;  %v7319_v45 = vpop.f32.mrf.mxu0  ;;  %v7502_v56 = vpop.f32.mrf.mxu1  ;;  %15809 = vst [vmem:[#allocation74_spill] sm:$0xff] %v13734_v52  ;;  %9359 = vmatprep.mubr.bf16.mxu0 %v13734_v52  ;;  %v8436_v52 = vrot.slane %v8434_v1, 7 }
 0x59a   : > { %v7789_v43 = vmul.f32 0.2, %v7501_v51  ;;  %v7503_v20 = vadd.f32 %v7502_v56, %v7310_v22  ;;  %v7914_v16 = vsel %vm7658_vm7, %v7499_v24, %v7786_v28  ;;  %vm7661_vm11 = vcmp.gt.f32.partialorder %v7501_v51, 0.0 }
 0x59b   : > { %v13730_v62 = vpop.f32.mrf.mxu0  ;;  %v7506_v44 = vpop.f32.mrf.mxu1  ;;  %v13737_v39 = vpack.i.bf16 %v7914_v16, %v7913_v55  ;;  %v7318_v24 = vadd.f32 %v7317_v7, %v13702_v0 }
 0x59c   : > { %vm7662_vm12 = vcmp.gt.f32.partialorder %v7503_v20, 0.0  ;;  %v7790_v6 = vmul.f32 0.2, %v7503_v20  ;;  %v7507_v4 = vadd.f32 %v7506_v44, %v7314_v2  ;;  %v7917_v28 = vsel %vm7661_vm11, %v7501_v51, %v7789_v43 }
 0x59d   : > { %15810 = vst [vmem:[#allocation75_spill] sm:$0xff] %v13737_v39  ;;  %v13739_v22 = vpop.f32.mrf.mxu0  ;;  %v7508_v21 = vpop.f32.mrf.mxu1  ;;  %v7320_v44 = vadd.f32 %v7319_v45, %v13710_v5 }
 0x59e   : > { %v7918_v56 = vsel %vm7662_vm12, %v7503_v20, %v7790_v6  ;;  %v7509_v53 = vadd.f32 %v7508_v21, %v7316_v8  ;;  %vm7665_vm14 = vcmp.gt.f32.partialorder %v7507_v4, 0.0  ;;  %v7793_v40 = vmul.f32 0.2, %v7507_v4 }
 0x59f   : > { %v13743_v34 = vpack.i.bf16 %v7918_v56, %v7917_v28  ;;  %v13745_v29 = vpop.f32.mrf.mxu0  ;;  %v7510_v42 = vpop.f32.mrf.mxu1 }
 0x5a0   : > { %vm7666_vm0 = vcmp.gt.f32.partialorder %v7509_v53, 0.0  ;;  %v7794_v16 = vmul.f32 0.2, %v7509_v53  ;;  %v7511_v2 = vadd.f32 %v7510_v42, %v7318_v24  ;;  %v7921_v43 = vsel %vm7665_vm14, %v7507_v4, %v7793_v40 }
 0x5a1   : > { %15811 = vst [vmem:[#allocation76_spill] sm:$0xff] %v13743_v34  ;;  %v13748_v55 = vpop.f32.mrf.mxu0  ;;  %v7512_v19 = vpop.f32.mrf.mxu1  ;;  %9331 = vmatprep.subr.bf16.mxu0 %v13743_v34  ;;  %v15602_v51 = vshrl.u32 %v13743_v34, 16  ;;  %v15604_v8 = vshll.u32 %v13743_v34, 16 }
 0x5a2   : > { %v7922_v20 = vsel %vm7666_vm0, %v7509_v53, %v7794_v16  ;;  %v7797_v21 = vmul.f32 0.2, %v7511_v2  ;;  %v7513_v28 = vadd.f32 %v7512_v19, %v7320_v44  ;;  %vm7669_vm3 = vcmp.gt.f32.partialorder %v7511_v2, 0.0 }
 0x5a3   : > { %v13754_v6 = vpack.i.bf16 %v7922_v20, %v7921_v43  ;;  %v13756_v24 = vpop.f32.mrf.mxu0  ;;  %v13758_v45 = vpop.f32.mrf.mxu1  ;;  %v8451_v56 = vrot.slane %v15602_v51, 7  ;;  %v15812_v53 = vshrl.u32 %v13737_v39, 16 }
 0x5a4   : > { %vm7670_vm15 = vcmp.gt.f32.partialorder %v7513_v28, 0.0  ;;  %v7798_v42 = vmul.f32 0.2, %v7513_v28  ;;  %v7925_v16 = vsel %vm7669_vm3, %v7511_v2, %v7797_v21  ;;  %v8437_v2 = vshll.u32 %v13510_v13, 16 }
 0x5a5   : > { %v13762_v7 = vpop.f32.mrf.mxu0  ;;  %v13764_v4 = vpop.f32.mrf.mxu1  ;;  %v8444_v40 = vrot.slane %v15812_v53, 7  ;;  %v8454_v19 = vor.u32 %v15604_v8, %v8451_v56  ;;  %v8427_v53 = vshrl.u32 %v13502_v31, 16  ;;  %v15612_v56 = vshll.u32 %v13737_v39, 16 }
 0x5a6   : > { %v7926_v44 = vsel %vm7670_vm15, %v7513_v28, %v7798_v42  ;;  %v15815_v54 = vshrl.u32 %v13754_v6, 16  ;;  %v8992_v11 = vrot.slane %v8437_v2, 1  ;;  %v8439_v57 = vor.u32 %v8437_v2, %v8436_v52 }
 0x5a7   : > { %v13770_v43 = vpop.f32.mrf.mxu0  ;;  %v13772_v20 = vpop.f32.mrf.mxu1  ;;  %v13775_v51 = vsel %vm1820_vm1, %v8444_v40, %v8454_v19  ;;  %v13778_v25 = vpack.i.bf16 %v7926_v44, %v7925_v16  ;;  %v8430_v16 = vshll.u32 %v13502_v31, 16  ;;  %v8447_v12 = vor.u32 %v15612_v56, %v8444_v40 }
 0x5a8   : > { %15813 = vst [vmem:[#allocation77_spill] sm:$0xff] %v13775_v51  ;;  %9332 = vmatpush1.bf16.xpose.msra.mxu0 %v13775_v51  ;;  %v8474_v63 = vrot.slane %v15815_v54, 7  ;;  %v8429_v48 = vrot.slane %v8427_v53, 7  ;;  %v15819_v56 = vshrl.u32 %v13572_v37, 16 }
 0x5a9   : > { %v7339_v21 = vpop.f32.mrf.mxu0  ;;  %v13784_v28 = vpop.f32.mrf.mxu1  ;;  %9333 = vmatprep.subr.bf16.mxu0 %v13737_v39  ;;  %v15817_v10 = vshrl.u32 %v13778_v25, 16  ;;  %v15620_v44 = vshll.u32 %v13778_v25, 16  ;;  %v8990_v40 = vrot.slane %v8430_v16, 1 }
 0x5aa   : > { %v8526_v54 = vrot.slane %v15819_v56, 7  ;;  %v8432_v36 = vor.u32 %v8430_v16, %v8429_v48  ;;  %v8527_v56 = vshll.u32 %v13572_v37, 16 }
 0x5ab   : > { %v13792_v8 = vpop.f32.mrf.mxu0  ;;  %v13794_v38 = vpop.f32.mrf.mxu1  ;;  %v8481_v9 = vrot.slane %v15817_v10, 7  ;;  %v8991_v52 = vor.u32 %v8990_v40, %v8427_v53  ;;  %v7336_v40 = vadd.f32 %v13762_v7, %v13710_v5 }
 0x5ac   : > { %15814 = vst [vmem:[#allocation78_spill] sm:$0xff] %v13792_v8  ;;  %v15621_v8 = vshll.u32 %v13754_v6, 16  ;;  %v8529_v16 = vor.u32 %v8527_v56, %v8526_v54  ;;  %v13850_v54 = vsel %vm1820_vm1, %v8429_v48, %v8439_v57  ;;  %v13869_v57 = vrot.slane %v8520_v3, 1 }
 0x5ad   : > { %v13800_v42 = vpop.f32.mrf.mxu0  ;;  %v7528_v19 = vpop.f32.mrf.mxu1  ;;  %v8484_v10 = vor.u32 %v15620_v44, %v8481_v9  ;;  %v8994_v9 = vor.u32 %v8992_v11, %v8434_v1  ;;  %v8522_v44 = vor.u32 %v8520_v3, %v8519_v14  ;;  %v13845_v1 = vsel %vm13568_vm4, 0, %v8432_v36 }
 0x5ae   : > { %15816 = vst [vmem:[#allocation79_spill] sm:$0xff] %v13800_v42  ;;  %v13814_v42 = vsel %vm13568_vm4, 0, %v8447_v12  ;;  %v8477_v32 = vor.u32 %v15621_v8, %v8474_v63  ;;  %v13833_v8 = vsel %vm13194_vm13, %v13550_v59, 0  ;;  %v7340_v36 = vadd.f32 %v7339_v21, %v13710_v5 }
 0x5af   : > { %v13810_v41 = vpop.f32.mrf.mxu0  ;;  %v7530_v60 = vpop.f32.mrf.mxu1  ;;  %15821 = vst [vmem:[#allocation81_spill] sm:$0xff] %v13814_v42  ;;  %15824 = vst [vmem:[#allocation84_spill] sm:$0xff] %v13833_v8  ;;  %v13861_v53 = vsel %vm13568_vm4, 0, %v8522_v44  ;;  %v7334_v48 = vadd.f32 %v13756_v24, %v13702_v0  ;;  %v7324_v21 = vadd.f32 %v13730_v62, %v13702_v0  ;;  %v7338_v3 = vadd.f32 %v13770_v43, %v13702_v0 }
 0x5b0   : > { %15820 = vst [vmem:[#allocation80_spill] sm:$0xff] %v13810_v41  ;;  %9334 = vmatpush1.bf16.xpose.msra.mxu0 %v13814_v42  ;;  %v13824_v41 = vsel %vm1820_vm1, %v8474_v63, %v8484_v10  ;;  %v13838_v63 = vsel %vm13568_vm4, 0, %v8477_v32  ;;  %v13854_v32 = vsel %vm13194_vm13, %v8994_v9, 0  ;;  %v7328_v24 = vadd.f32 %v13745_v29, %v13702_v0 }
 0x5b1   : > { %15822 = vst [vmem:[#allocation82_spill] sm:$0xff] %v13824_v41  ;;  %v13826_v33 = vpop.f32.mrf.mxu0  ;;  %v7532_v12 = vpop.f32.mrf.mxu1  ;;  %9335 = vmatprep.subr.bf16.mxu0 %v13510_v13  ;;  %9368 = vmatprep.subr.bf16.mxu1 %v13824_v41  ;;  %15825 = vst [vmem:[#allocation85_spill] sm:$0xff] %v13838_v63  ;;  %v13857_v13 = vsel %vm6074_vm8, %v8991_v52, %v8992_v11  ;;  %v13877_v52 = vrot.slane %v8527_v56, 1  ;;  %v7330_v56 = vadd.f32 %v13748_v55, %v13710_v5 }
 0x5b2   : > { %15823 = vst [vmem:[#allocation83_spill] sm:$0xff] %v13826_v33  ;;  %9369 = vmatpush1.bf16.xpose.msra.mxu1 %v13833_v8  ;;  %v7527_v44 = vadd.f32 %v13794_v38, %v7334_v48  ;;  %v15831_v62 = vshll.u32 %v13743_v34, 16  ;;  %v13904_v55 = vrot.slane %v15748_v47, 7  ;;  %v13907_v38 = vadd.f32 %v13758_v45, %v7324_v21 }
 0x5b3   : > { %v7353_v10 = vpop.f32.mrf.mxu0  ;;  %v13840_v33 = vpop.f32.mrf.mxu1  ;;  %9370 = vmatprep.subr.bf16.mxu1 %v13838_v63  ;;  %v15833_v48 = vshll.u32 %v13737_v39, 16 }
 0x5b4   : > { %15826 = vst [vmem:[#allocation86_spill] sm:$0xff] %v13840_v33  ;;  %v13867_v33 = vsel %vm1820_vm1, %v8519_v14, %v8529_v16  ;;  %v7529_v14 = vadd.f32 %v7528_v19, %v7336_v40  ;;  %v7533_v16 = vadd.f32 %v7532_v12, %v7340_v36  ;;  %v13898_v43 = vrot.slane %v15831_v62, 1  ;;  %15832 = vst [vmem:[#allocation91_spill] sm:$0xff] %v13904_v55 }
 0x5b5   : > { %v7355_v2 = vpop.f32.mrf.mxu0  ;;  %v13847_v59 = vpop.f32.mrf.mxu1  ;;  %15828 = vst [vmem:[#allocation88_spill] sm:$0xff] %v13867_v33  ;;  %v7326_v19 = vadd.f32 %v13739_v22, %v13710_v5  ;;  %v7531_v12 = vadd.f32 %v7530_v60, %v7338_v3  ;;  %v7354_v29 = vadd.f32 %v7353_v10, %v13702_v0  ;;  %v7521_v40 = vadd.f32 %v13772_v20, %v7328_v24 }
 0x5b6   : > { %15827 = vst [vmem:[#allocation87_spill] sm:$0xff] %v13847_v59  ;;  %v7523_v36 = vadd.f32 %v13784_v28, %v7330_v56  ;;  %v8995_v62 = vrot.slane %v15833_v48, 1  ;;  %v7810_v60 = vmul.f32 0.2, %v7529_v14  ;;  %v7814_v3 = vmul.f32 0.2, %v7533_v16 }
 0x5b7   : > { %v13873_v9 = vpop.f32.mrf.mxu0  ;;  %v13875_v11 = vpop.f32.mrf.mxu1  ;;  %v7356_v10 = vadd.f32 %v7355_v2, %v13710_v5  ;;  %v7809_v45 = vmul.f32 0.2, %v7527_v44  ;;  %vm7682_vm5 = vcmp.gt.f32.partialorder %v7529_v14, 0.0  ;;  %vm7686_vm2 = vcmp.gt.f32.partialorder %v7533_v16, 0.0 }
 0x5b8   : > { %15829 = vst [vmem:[#allocation89_spill] sm:$0xff] %v13875_v11  ;;  %9336 = vmatpush1.bf16.xpose.msra.mxu0 %v13850_v54  ;;  %v15834_v28 = vshrl.u32 %v13743_v34, 16  ;;  %vm7681_vm9 = vcmp.gt.f32.partialorder %v7527_v44, 0.0  ;;  %v7813_v56 = vmul.f32 0.2, %v7531_v12  ;;  %vm7677_vm10 = vcmp.gt.f32.partialorder %v7521_v40, 0.0 }
 0x5b9   : > { %v13891_v59 = vpop.f32.mrf.mxu0  ;;  %v13893_v7 = vpop.f32.mrf.mxu1  ;;  %9337 = vmatprep.subr.bf16.mxu0 %v13502_v31  ;;  %vm7685_vm6 = vcmp.gt.f32.partialorder %v7531_v12, 0.0  ;;  %v7806_v34 = vmul.f32 0.2, %v7523_v36  ;;  %v7937_v15 = vsel %vm7681_vm9, %v7527_v44, %v7809_v45  ;;  %vm7678_vm12 = vcmp.gt.f32.partialorder %v7523_v36, 0.0 }
 0x5ba   : > { %15830 = vst [vmem:[#allocation90_spill] sm:$0xff] %v13893_v7  ;;  %9371 = vmatpush1.bf16.xpose.msra.mxu1 %v13562_v18  ;;  %v8999_v24 = vor.u32 %v13898_v43, %v15834_v28  ;;  %v13920_v18 = vadd.f32 %v13764_v4, %v7326_v19  ;;  %v7805_v28 = vmul.f32 0.2, %v7521_v40  ;;  %v13944_v41 = vmul.f32 0.2, %v13907_v38 }
 0x5bb   : > { %v7363_v11 = vpop.f32.mrf.mxu0  ;;  %v7546_v22 = vpop.f32.mrf.mxu1  ;;  %9372 = vmatprep.subr.bf16.mxu1 %v13541_v26  ;;  %v7942_v26 = vsel %vm7686_vm2, %v7533_v16, %v7814_v3  ;;  %vm7673_vm15 = vcmp.gt.f32.partialorder %v13907_v38, 0.0 }
 0x5bc   : > { %v7547_v7 = vadd.f32 %v7546_v22, %v7354_v29  ;;  %v7938_v22 = vsel %vm7682_vm5, %v7529_v14, %v7810_v60  ;;  %v13930_v4 = vsel %vm13194_vm13, %v8999_v24, 0  ;;  %v7941_v14 = vsel %vm7685_vm6, %v7531_v12, %v7813_v56 }
 0x5bd   : > { %v7365_v20 = vpop.f32.mrf.mxu0  ;;  %v7548_v21 = vpop.f32.mrf.mxu1  ;;  %15835 = vst [vmem:[#allocation92_spill] sm:$0xff] %v13930_v4  ;;  %v7364_v16 = vadd.f32 %v7363_v11, %v13702_v0  ;;  %v13936_v3 = vpack.i.bf16 %v7938_v22, %v7937_v15  ;;  %v13938_v44 = vpack.i.bf16 %v7942_v26, %v7941_v14  ;;  %v13952_v26 = vsel %vm13568_vm4, 0, %v13904_v55 }
 0x5be   : > { %v7825_v48 = vmul.f32 0.2, %v7547_v7  ;;  %v7549_v31 = vadd.f32 %v7548_v21, %v7356_v10  ;;  %vm7697_vm7 = vcmp.gt.f32.partialorder %v7547_v7, 0.0  ;;  %15838 = vst [vmem:[#allocation94_spill] sm:$0xff] %v13952_v26  ;;  %v13955_v15 = vmul.f32 0.2, %v13920_v18 }
 0x5bf   : > { %v7367_v2 = vpop.f32.mrf.mxu0  ;;  %v13922_v29 = vpop.f32.mrf.mxu1  ;;  %v15839_v12 = vshll.u32 %v13754_v6, 16  ;;  %v7934_v14 = vsel %vm7678_vm12, %v7523_v36, %v7806_v34  ;;  %vm7674_vm14 = vcmp.gt.f32.partialorder %v13920_v18, 0.0 }
 0x5c0   : > { %vm7698_vm11 = vcmp.gt.f32.partialorder %v7549_v31, 0.0  ;;  %v7826_v8 = vmul.f32 0.2, %v7549_v31  ;;  %9338 = vmatpush1.bf16.xpose.msra.mxu0 %v13845_v1  ;;  %v7953_v19 = vsel %vm7697_vm7, %v7547_v7, %v7825_v48  ;;  %v15837_v7 = vshrl.u32 %v13737_v39, 16 }
 0x5c1   : > { %v7369_v10 = vpop.f32.mrf.mxu0  ;;  %v13926_v21 = vpop.f32.mrf.mxu1  ;;  %9339 = vmatprep.subr.bf16.mxu0 %v15748_v47  ;;  %v9005_v56 = vrot.slane %v15839_v12, 1  ;;  %v7366_v48 = vadd.f32 %v7365_v20, %v13710_v5  ;;  %v15843_v39 = vshrl.u32 %v13778_v25, 16 }
 0x5c2   : > { %v7954_v60 = vsel %vm7698_vm11, %v7549_v31, %v7826_v8  ;;  %9373 = vmatpush1.bf16.xpose.msra.mxu1 %v13930_v4  ;;  %v8996_v31 = vor.u32 %v8995_v62, %v15837_v7  ;;  %v7933_v8 = vsel %vm7677_vm10, %v7521_v40, %v7805_v28  ;;  %v7368_v62 = vadd.f32 %v7367_v2, %v13702_v0 }
 0x5c3   : > { %v13940_v45 = vpack.i.bf16 %v7954_v60, %v7953_v19  ;;  %v7373_v24 = vpop.f32.mrf.mxu0  ;;  %v7556_v63 = vpop.f32.mrf.mxu1  ;;  %9374 = vmatprep.subr.bf16.mxu1 %v13576_v23  ;;  %v7370_v12 = vadd.f32 %v7369_v10, %v13710_v5  ;;  %v15842_v7 = vshrl.u32 %v13754_v6, 16 }
 0x5c4   : > { %v7557_v11 = vadd.f32 %v7556_v63, %v7364_v16  ;;  %v13965_v19 = vsel %vm6074_vm8, %v8996_v31, %v13898_v43  ;;  %v7374_v10 = vadd.f32 %v7373_v24, %v13702_v0 }
 0x5c5   : > { %15836 = vst [vmem:[#allocation93_spill] sm:$0xff] %v13940_v45  ;;  %v7375_v22 = vpop.f32.mrf.mxu0  ;;  %v7558_v63 = vpop.f32.mrf.mxu1  ;;  %15840 = vst [vmem:[#allocation95_spill] sm:$0xff] %v13965_v19  ;;  %v9006_v20 = vor.u32 %v9005_v56, %v15842_v7 }
 0x5c6   : > { %v7833_v16 = vmul.f32 0.2, %v7557_v11  ;;  %vm7705_vm0 = vcmp.gt.f32.partialorder %v7557_v11, 0.0  ;;  %v7559_v40 = vadd.f32 %v7558_v63, %v7366_v48  ;;  %v15841_v48 = vshll.u32 %v13778_v25, 16 }
 0x5c7   : > { %v7377_v28 = vpop.f32.mrf.mxu0  ;;  %v7560_v60 = vpop.f32.mrf.mxu1  ;;  %v7376_v7 = vadd.f32 %v7375_v22, %v13710_v5 }
 0x5c8   : > { %v7561_v34 = vadd.f32 %v7560_v60, %v7368_v62  ;;  %9340 = vmatpush1.bf16.xpose.msra.mxu0 %v13904_v55  ;;  %vm7706_vm3 = vcmp.gt.f32.partialorder %v7559_v40, 0.0  ;;  %v7834_v2 = vmul.f32 0.2, %v7559_v40  ;;  %v9007_v63 = vrot.slane %v15841_v48, 1 }
 0x5c9   : > { %v7379_v31 = vpop.f32.mrf.mxu0  ;;  %v7562_v23 = vpop.f32.mrf.mxu1  ;;  %9341 = vmatprep.subr.bf16.mxu0 %v15748_v47  ;;  %v7961_v62 = vsel %vm7705_vm0, %v7557_v11, %v7833_v16 }
 0x5ca   : > { %v7837_v60 = vmul.f32 0.2, %v7561_v34  ;;  %v7563_v36 = vadd.f32 %v7562_v23, %v7370_v12  ;;  %v7962_v43 = vsel %vm7706_vm3, %v7559_v40, %v7834_v2  ;;  %vm7709_vm5 = vcmp.gt.f32.partialorder %v7561_v34, 0.0  ;;  %9375 = vmatpush1.bf16.xpose.msra.mxu1 %v13965_v19 }
 0x5cb   : > { %v7383_v55 = vpop.f32.mrf.mxu0  ;;  %v7566_v47 = vpop.f32.mrf.mxu1  ;;  %v13985_v48 = vor.u32 %v9007_v63, %v15843_v39  ;;  %v13988_v56 = vsel %vm6074_vm8, %v9006_v20, %v9007_v63  ;;  %v13991_v24 = vpack.i.bf16 %v7962_v43, %v7961_v62  ;;  %9376 = vmatprep.subr.bf16.mxu1 %v13775_v51  ;;  %v7378_v23 = vadd.f32 %v7377_v28, %v13702_v0 }
 0x5cc   : > { %vm7710_vm2 = vcmp.gt.f32.partialorder %v7563_v36, 0.0  ;;  %v7838_v11 = vmul.f32 0.2, %v7563_v36  ;;  %v7567_v16 = vadd.f32 %v7566_v47, %v7374_v10  ;;  %v15845_v2 = vshll.u32 %v13936_v3, 16 }
 0x5cd   : > { %15844 = vst [vmem:[#allocation96_spill] sm:$0xff] %v13991_v24  ;;  %v7385_v40 = vpop.f32.mrf.mxu0  ;;  %v7568_v12 = vpop.f32.mrf.mxu1  ;;  %v9277_v20 = vcombine.high %v13722_v46, %v13722_v46  ;;  %v7965_v63 = vsel %vm7709_vm5, %v7561_v34, %v7837_v60  ;;  %v15846_v62 = vshll.u32 %v13938_v44, 16  ;;  %v7380_v34 = vadd.f32 %v7379_v31, %v13710_v5 }
 0x5ce   : > { %v9025_v39 = vrot.slane %v15845_v2, 1  ;;  %v7966_v22 = vsel %vm7710_vm2, %v7563_v36, %v7838_v11  ;;  %v7569_v43 = vadd.f32 %v7568_v12, %v7376_v7  ;;  %vm7713_vm9 = vcmp.gt.f32.partialorder %v7567_v16, 0.0 }
 0x5cf   : > { %v9027_v24 = vrot.slane %v15846_v62, 1  ;;  %v14002_v19 = vpack.i.bf16 %v7966_v22, %v7965_v63  ;;  %v7841_v28 = vmul.f32 0.2, %v7567_v16  ;;  %v7387_v47 = vpop.f32.mrf.mxu0  ;;  %v7570_v10 = vpop.f32.mrf.mxu1  ;;  %v14005_v51 = vrot.slane %v9277_v20, %v12595_v17 }
 0x5d0   : > { %v14007_v2 = vpack.i.bf16 %v7934_v14, %v7933_v8  ;;  %vm7714_vm10 = vcmp.gt.f32.partialorder %v7569_v43, 0.0  ;;  %v7842_v46 = vmul.f32 0.2, %v7569_v43  ;;  %v7571_v4 = vadd.f32 %v7570_v10, %v7378_v23  ;;  %9342 = vmatpush1.bf16.xpose.msra.mxu0 %v13952_v26 }
 0x5d1   : > { %15847 = vst [vmem:[#allocation97_spill] sm:$0xff] %v14002_v19  ;;  %v7389_v36 = vpop.f32.mrf.mxu0  ;;  %v7572_v60 = vpop.f32.mrf.mxu1  ;;  %9343 = vmatprep.subr.bf16.mxu0 %v13572_v37  ;;  %v14014_v7 = vcombine.high %v14005_v51, %v14005_v51  ;;  %v15849_v11 = vshrl.u32 %v13938_v44, 16  ;;  %v15850_v8 = vshrl.u32 %v13936_v3, 16  ;;  %v7930_v31 = vsel %vm7674_vm14, %v13920_v18, %v13955_v15 }
 0x5d2   : > { %v7384_v23 = vadd.f32 %v7383_v55, %v13702_v0  ;;  %v7969_v20 = vsel %vm7713_vm9, %v7567_v16, %v7841_v28  ;;  %v7970_v63 = vsel %vm7714_vm10, %v7569_v43, %v7842_v46  ;;  %v7845_v62 = vmul.f32 0.2, %v7571_v4  ;;  %9377 = vmatpush1.bf16.xpose.msra.mxu1 %v13854_v32 }
 0x5d3   : > { %15848 = vst [vmem:[#allocation98_spill] sm:$0xff] %v14014_v7  ;;  %v14018_v12 = vor.u32 %v9027_v24, %v15849_v11  ;;  %v9026_v14 = vor.u32 %v9025_v39, %v15850_v8  ;;  %v14028_v22 = vpack.i.bf16 %v7970_v63, %v7969_v20  ;;  %v7573_v10 = vadd.f32 %v7572_v60, %v7380_v34  ;;  %v7393_v11 = vpop.f32.mrf.mxu0  ;;  %v7576_v26 = vpop.f32.mrf.mxu1 }
 0x5d4   : > { %9400 = vmatprep.mubr.bf16.mxu1 %v14014_v7  ;;  %v7386_v18 = vadd.f32 %v7385_v40, %v13710_v5  ;;  %vm7717_vm6 = vcmp.gt.f32.partialorder %v7571_v4, 0.0  ;;  %9378 = vmatprep.subr.bf16.mxu1 %v13814_v42  ;;  %v7577_v55 = vadd.f32 %v7576_v26, %v7384_v23  ;;  %v15851_v15 = vshrl.u32 %v13572_v37, 16 }
 0x5d5   : > { %v14033_v39 = vsel %vm6074_vm8, %v9026_v14, %v9027_v24  ;;  %v7929_v43 = vsel %vm7673_vm15, %v13907_v38, %v13944_v41  ;;  %vm7718_vm7 = vcmp.gt.f32.partialorder %v7573_v10, 0.0  ;;  %v7846_v28 = vmul.f32 0.2, %v7573_v10  ;;  %v7395_v46 = vpop.f32.mrf.mxu0  ;;  %v7578_v24 = vpop.f32.mrf.mxu1 }
 0x5d6   : > { %v9024_v16 = vor.u32 %v13877_v52, %v15851_v15  ;;  %v15652_v34 = vshrl.u32 %v14007_v2, 16  ;;  %v14045_v40 = vpack.i.bf16 %v7930_v31, %v7929_v43  ;;  %v7849_v60 = vmul.f32 0.2, %v7577_v55 }
 0x5d7   : > { %v7579_v8 = vadd.f32 %v7578_v24, %v7386_v18  ;;  %v15852_v26 = vshrl.u32 %v13531_v35, 16  ;;  %v7388_v23 = vadd.f32 %v7387_v47, %v13702_v0  ;;  %v7973_v20 = vsel %vm7717_vm6, %v7571_v4, %v7845_v62  ;;  %v7397_v41 = vpop.f32.mrf.mxu0  ;;  %v7580_v38 = vpop.f32.mrf.mxu1 }
 0x5d8   : > { %v7974_v63 = vsel %vm7718_vm7, %v7573_v10, %v7846_v28  ;;  %vm7721_vm11 = vcmp.gt.f32.partialorder %v7577_v55, 0.0  ;;  %v7390_v15 = vadd.f32 %v7389_v36, %v13710_v5  ;;  %9344 = vmatpush2.bf16.xpose.msra.mxu0 %v13867_v33  ;;  %v8511_v4 = vrot.slane %v15652_v34, 7 }
 0x5d9   : > { %v14049_v14 = vrot.slane %v15852_v26, 7  ;;  %v14053_v19 = vpack.i.bf16 %v7974_v63, %v7973_v20  ;;  %vm7722_vm12 = vcmp.gt.f32.partialorder %v7579_v8, 0.0  ;;  %v7850_v31 = vmul.f32 0.2, %v7579_v8  ;;  %v7399_v43 = vpop.f32.mrf.mxu0  ;;  %v7582_v24 = vpop.f32.mrf.mxu1  ;;  %9345 = vmatprep.subr.bf16.mxu0 %v13554_v49 }
 0x5da   : > { %v7581_v18 = vadd.f32 %v7580_v38, %v7388_v23  ;;  %v15853_v47 = vshrl.u32 %v13544_v27, 16  ;;  %v7394_v36 = vadd.f32 %v7393_v11, %v13702_v0  ;;  %v7977_v28 = vsel %vm7721_vm11, %v7577_v55, %v7849_v60  ;;  %9379 = vmatpush1.bf16.xpose.msra.mxu1 %v13857_v13 }
 0x5db   : > { %v7978_v26 = vsel %vm7722_vm12, %v7579_v8, %v7850_v31  ;;  %v7583_v20 = vadd.f32 %v7582_v24, %v7390_v15  ;;  %v7403_v38 = vpop.f32.mrf.mxu0  ;;  %v7586_v7 = vpop.f32.mrf.mxu1  ;;  %9380 = vmatprep.subr.bf16.mxu1 %v13850_v54  ;;  %v15657_v11 = vshll.u32 %v14007_v2, 16  ;;  %v7396_v55 = vadd.f32 %v7395_v46, %v13710_v5 }
 0x5dc   : > { %v8496_v62 = vrot.slane %v15853_v47, 7  ;;  %v14064_v63 = vpack.i.bf16 %v7978_v26, %v7977_v28  ;;  %vm7725_vm14 = vcmp.gt.f32.partialorder %v7581_v18, 0.0  ;;  %v7853_v23 = vmul.f32 0.2, %v7581_v18 }
 0x5dd   : > { %vm7726_vm0 = vcmp.gt.f32.partialorder %v7583_v20, 0.0  ;;  %v7854_v47 = vmul.f32 0.2, %v7583_v20  ;;  %v7587_v10 = vadd.f32 %v7586_v7, %v7394_v36  ;;  %v7405_v60 = vpop.f32.mrf.mxu0  ;;  %v7588_v8 = vpop.f32.mrf.mxu1  ;;  %v14073_v15 = vsel %vm13194_vm13, %v9024_v16, 0 }
 0x5de   : > { %15854 = vst [vmem:[#allocation99_spill] sm:$0xff] %v14064_v63  ;;  %v15855_v31 = vshll.u32 %v13544_v27, 16  ;;  %v15856_v28 = vshrl.u32 %v13554_v49, 16  ;;  %v7398_v54 = vadd.f32 %v7397_v41, %v13702_v0  ;;  %v7981_v7 = vsel %vm7725_vm14, %v7581_v18, %v7853_v23 }
 0x5df   : > { %v7982_v46 = vsel %vm7726_vm0, %v7583_v20, %v7854_v47  ;;  %v8514_v36 = vor.u32 %v15657_v11, %v8511_v4  ;;  %v7857_v16 = vmul.f32 0.2, %v7587_v10  ;;  %v7589_v63 = vadd.f32 %v7588_v8, %v7396_v55  ;;  %v7407_v42 = vpop.f32.mrf.mxu0 }
 0x5e0   : > { %v14077_v24 = vor.u32 %v15855_v31, %v8496_v62  ;;  %v14082_v26 = vor.u32 %v13869_v57, %v15856_v28  ;;  %v14088_v34 = vpack.i.bf16 %v7982_v46, %v7981_v7  ;;  %v7590_v62 = vpop.f32.mrf.mxu1  ;;  %v7400_v49 = vadd.f32 %v7399_v43, %v13710_v5  ;;  %9346 = vmatpush2.bf16.xpose.msra.mxu0 %v13861_v53 }
 0x5e1   : > { %vm7729_vm3 = vcmp.gt.f32.partialorder %v7587_v10, 0.0  ;;  %v7591_v57 = vadd.f32 %v7590_v62, %v7398_v54  ;;  %v15858_v41 = vshrl.u32 %v14045_v40, 16  ;;  %v7358_v4 = vadd.f32 %v13873_v9, %v13702_v0  ;;  %v7409_v23 = vpop.f32.mrf.mxu0  ;;  %9347 = vmatprep.subr.bf16.mxu0 %v14007_v2 }
 0x5e2   : > { %15857 = vst [vmem:[#allocation100_spill] sm:$0xff] %v14088_v34  ;;  %vm7730_vm15 = vcmp.gt.f32.partialorder %v7589_v63, 0.0  ;;  %v7858_v20 = vmul.f32 0.2, %v7589_v63  ;;  %v7592_v47 = vpop.f32.mrf.mxu1  ;;  %v15859_v55 = vshrl.u32 %v13938_v44, 16  ;;  %v7360_v43 = vadd.f32 %v13891_v59, %v13710_v5  ;;  %9381 = vmatpush1.bf16.xpose.msra.mxu1 %v13441_v58 }
 0x5e3   : > { %v8504_v18 = vrot.slane %v15858_v41, 7  ;;  %v7861_v28 = vmul.f32 0.2, %v7591_v57  ;;  %v7593_v54 = vadd.f32 %v7592_v47, %v7400_v49  ;;  %v7404_v46 = vadd.f32 %v7403_v38, %v13702_v0  ;;  %v7413_v41 = vpop.f32.mrf.mxu0  ;;  %9382 = vmatprep.subr.bf16.mxu1 %v13845_v1 }
 0x5e4   : > { %v8541_v8 = vrot.slane %v15859_v55, 7  ;;  %v7985_v9 = vsel %vm7729_vm3, %v7587_v10, %v7857_v16  ;;  %v7986_v62 = vsel %vm7730_vm15, %v7589_v63, %v7858_v20  ;;  %vm7733_vm5 = vcmp.gt.f32.partialorder %v7591_v57, 0.0  ;;  %v7596_v11 = vpop.f32.mrf.mxu1 }
 0x5e5   : > { %v14103_v7 = vsel %vm1820_vm1, %v8504_v18, %v8514_v36  ;;  %v7406_v55 = vadd.f32 %v7405_v60, %v13710_v5  ;;  %v14109_v31 = vpack.i.bf16 %v7986_v62, %v7985_v9  ;;  %vm7734_vm2 = vcmp.gt.f32.partialorder %v7593_v54, 0.0  ;;  %v7415_v36 = vpop.f32.mrf.mxu0 }
 0x5e6   : > { %v7862_v59 = vmul.f32 0.2, %v7593_v54  ;;  %v7597_v49 = vadd.f32 %v7596_v11, %v7404_v46  ;;  %v7598_v47 = vpop.f32.mrf.mxu1  ;;  %v15861_v38 = vshrl.u32 %v13936_v3, 16  ;;  %v15862_v63 = vshll.u32 %v13938_v44, 16 }
 0x5e7   : > { %15860 = vst [vmem:[#allocation101_spill] sm:$0xff] %v14109_v31  ;;  %v15662_v20 = vshll.u32 %v14045_v40, 16  ;;  %v7408_v58 = vadd.f32 %v7407_v42, %v13702_v0  ;;  %v7989_v60 = vsel %vm7733_vm5, %v7591_v57, %v7861_v28  ;;  %v7599_v62 = vadd.f32 %v7598_v47, %v7406_v55  ;;  %v7417_v11 = vpop.f32.mrf.mxu0 }
 0x5e8   : > { %v8534_v10 = vrot.slane %v15861_v38, 7  ;;  %v8544_v16 = vor.u32 %v15862_v63, %v8541_v8  ;;  %v7990_v9 = vsel %vm7734_vm2, %v7593_v54, %v7862_v59  ;;  %vm7737_vm9 = vcmp.gt.f32.partialorder %v7597_v49, 0.0  ;;  %v7600_v46 = vpop.f32.mrf.mxu1  ;;  %9348 = vmatpush2.bf16.xpose.msra.mxu0 %v14103_v7 }
 0x5e9   : > { %v14119_v34 = vpack.i.bf16 %v7990_v9, %v7989_v60  ;;  %v7865_v1 = vmul.f32 0.2, %v7597_v49  ;;  %v8507_v38 = vor.u32 %v15662_v20, %v8504_v18  ;;  %v14124_v37 = vadd.f32 %v13922_v29, %v7358_v4  ;;  %v7419_v28 = vpop.f32.mrf.mxu0  ;;  %9349 = vmatprep.subr.bf16.mxu0 %v14045_v40 }
 0x5ea   : > { %vm7738_vm10 = vcmp.gt.f32.partialorder %v7599_v62, 0.0  ;;  %v7866_v8 = vmul.f32 0.2, %v7599_v62  ;;  %v7601_v63 = vadd.f32 %v7600_v46, %v7408_v58  ;;  %v7553_v42 = vadd.f32 %v13926_v21, %v7360_v43  ;;  %v7602_v54 = vpop.f32.mrf.mxu1  ;;  %9383 = vmatpush1.bf16.xpose.msra.mxu1 %v12558_v61 }
 0x5eb   : > { %15863 = vst [vmem:[#allocation102_spill] sm:$0xff] %v14119_v34  ;;  %v7410_v57 = vadd.f32 %v7409_v23, %v13710_v5  ;;  %v14133_v18 = vsel %vm1820_vm1, %v14049_v14, %v14077_v24  ;;  %v15864_v29 = vshll.u32 %v13531_v35, 16  ;;  %v7414_v58 = vadd.f32 %v7413_v41, %v13702_v0  ;;  %v7423_v24 = vpop.f32.mrf.mxu0 }
 0x5ec   : > { %v7993_v21 = vsel %vm7737_vm9, %v7597_v49, %v7865_v1  ;;  %v7994_v43 = vsel %vm7738_vm10, %v7599_v62, %v7866_v8  ;;  %v14143_v23 = vsel %vm1820_vm1, %v8534_v10, %v8544_v16  ;;  %v7869_v59 = vmul.f32 0.2, %v7601_v63  ;;  %v7606_v60 = vpop.f32.mrf.mxu1 }
 0x5ed   : > { %v14138_v4 = vor.u32 %v15864_v29, %v14049_v14  ;;  %15865 = vst [vmem:[#allocation103_spill] sm:$0xff] %v14143_v23  ;;  %v14145_v55 = vpack.i.bf16 %v7994_v43, %v7993_v21  ;;  %v7603_v47 = vadd.f32 %v7602_v54, %v7410_v57  ;;  %v14150_v14 = vsel %vm13568_vm4, 0, %v8507_v38  ;;  %9384 = vmatprep.subr.bf16.mxu1 %v14143_v23  ;;  %v7425_v1 = vpop.f32.mrf.mxu0 }
 0x5ee   : > { %v7829_v41 = vmul.f32 0.2, %v14124_v37  ;;  %v7416_v49 = vadd.f32 %v7415_v36, %v13710_v5  ;;  %vm7741_vm6 = vcmp.gt.f32.partialorder %v7601_v63, 0.0  ;;  %v7607_v16 = vadd.f32 %v7606_v60, %v7414_v58  ;;  %v7608_v46 = vpop.f32.mrf.mxu1 }
 0x5ef   : > { %15866 = vst [vmem:[#allocation104_spill] sm:$0xff] %v14145_v55  ;;  %v7830_v9 = vmul.f32 0.2, %v7553_v42  ;;  %vm7742_vm7 = vcmp.gt.f32.partialorder %v7603_v47, 0.0  ;;  %v7870_v62 = vmul.f32 0.2, %v7603_v47  ;;  %v7418_v36 = vadd.f32 %v7417_v11, %v13702_v0  ;;  %v7427_v58 = vpop.f32.mrf.mxu0 }
 0x5f0   : > { %v15867_v8 = vshll.u32 %v14007_v2, 16  ;;  %vm7702_vm11 = vcmp.gt.f32.partialorder %v7553_v42, 0.0  ;;  %v7873_v38 = vmul.f32 0.2, %v7607_v16  ;;  %v7609_v54 = vadd.f32 %v7608_v46, %v7416_v49  ;;  %v7610_v60 = vpop.f32.mrf.mxu1  ;;  %9350 = vmatpush2.bf16.xpose.msra.mxu0 %v14150_v14 }
 0x5f1   : > { %v15868_v29 = vshll.u32 %v13936_v3, 16  ;;  %v7997_v43 = vsel %vm7741_vm6, %v7601_v63, %v7869_v59  ;;  %v7998_v20 = vsel %vm7742_vm7, %v7603_v47, %v7870_v62  ;;  %vm7745_vm12 = vcmp.gt.f32.partialorder %v7607_v16, 0.0  ;;  %v7429_v46 = vpop.f32.mrf.mxu0  ;;  %9351 = vmatprep.subr.bf16.mxu0 %v13544_v27 }
 0x5f2   : > { %v14157_v57 = vrot.slane %v15867_v8, 1  ;;  %v7420_v61 = vadd.f32 %v7419_v28, %v13710_v5  ;;  %v14163_v55 = vpack.i.bf16 %v7998_v20, %v7997_v43  ;;  %vm7746_vm14 = vcmp.gt.f32.partialorder %v7609_v54, 0.0  ;;  %v7612_v11 = vpop.f32.mrf.mxu1  ;;  %9385 = vmatpush2.bf16.xpose.msra.mxu1 %v14073_v15 }
 0x5f3   : > { %v8537_v21 = vor.u32 %v15868_v29, %v8534_v10  ;;  %v7874_v8 = vmul.f32 0.2, %v7609_v54  ;;  %vm7701_vm0 = vcmp.gt.f32.partialorder %v14124_v37, 0.0  ;;  %v7958_v49 = vsel %vm7702_vm11, %v7553_v42, %v7830_v9  ;;  %v7433_v9 = vpop.f32.mrf.mxu0 }
 0x5f4   : > { %15869 = vst [vmem:[#allocation105_spill] sm:$0xff] %v14163_v55  ;;  %v7611_v10 = vadd.f32 %v7610_v60, %v7418_v36  ;;  %v15870_v63 = vshrl.u32 %v14007_v2, 16  ;;  %v7424_v20 = vadd.f32 %v7423_v24, %v13702_v0  ;;  %v8001_v28 = vsel %vm7745_vm12, %v7607_v16, %v7873_v38  ;;  %v7616_v36 = vpop.f32.mrf.mxu1  ;;  %v9268_v38 = vld [vmem:[%s15581_s10] sm:$0x7] }
 0x5f5   : > { %v8002_v47 = vsel %vm7746_vm14, %v7609_v54, %v7874_v8  ;;  %v7613_v62 = vadd.f32 %v7612_v11, %v7420_v61  ;;  %v14179_v42 = vsel %vm13568_vm4, 0, %v8537_v21  ;;  %v7957_v24 = vsel %vm7701_vm0, %v14124_v37, %v7829_v41  ;;  %v7435_v60 = vpop.f32.mrf.mxu0  ;;  %9271 = vperm.xlu0 %11187, %v9268_v38  }
 0x5f6   : > { %v9019_v59 = vor.u32 %v14157_v57, %v15870_v63  ;;  %v14174_v29 = vpack.i.bf16 %v8002_v47, %v8001_v28  ;;  %vm7749_vm3 = vcmp.gt.f32.partialorder %v7611_v10, 0.0  ;;  %v7877_v43 = vmul.f32 0.2, %v7611_v10  ;;  %15872 = vst [vmem:[#allocation107_spill] sm:$0xff] %v14179_v42  ;;  %9386 = vmatprep.subr.bf16.mxu1 %v14179_v42  ;;  %v7618_v8 = vpop.f32.mrf.mxu1 }
 0x5f7   : > { %vm7750_vm15 = vcmp.gt.f32.partialorder %v7613_v62, 0.0  ;;  %v7878_v16 = vmul.f32 0.2, %v7613_v62  ;;  %v7617_v61 = vadd.f32 %v7616_v36, %v7424_v20  ;;  %v14188_v54 = vpack.i.bf16 %v7958_v49, %v7957_v24 }
 0x5f8   : > { %15871 = vst [vmem:[#allocation106_spill] sm:$0xff] %v14174_v29  ;;  %v7426_v21 = vadd.f32 %v7425_v1, %v13710_v5  ;;  %v14194_v11 = vsel %vm6074_vm8, %v14082_v26, %v13877_v52  ;;  %v14199_v37 = vsel %vm13568_vm4, 0, %v14138_v4  ;;  %v7428_v41 = vadd.f32 %v7427_v58, %v13702_v0  ;;  %v7437_v26 = vpop.f32.mrf.mxu0  ;;  %v7620_v36 = vpop.f32.mrf.mxu1  ;;  %9352 = vmatpush2.bf16.xpose.msra.mxu0 %v14133_v18 }
 0x5f9   : > { %v8005_v49 = vsel %vm7749_vm3, %v7611_v10, %v7877_v43  ;;  %v15873_v63 = vshll.u32 %v14045_v40, 16  ;;  %v8006_v20 = vsel %vm7750_vm15, %v7613_v62, %v7878_v16  ;;  %v7881_v47 = vmul.f32 0.2, %v7617_v61  ;;  %9353 = vmatprep.subr.bf16.mxu0 %v13531_v35 }
 0x5fa   : > { %v14207_v28 = vpack.i.bf16 %v8006_v20, %v8005_v49  ;;  %v7619_v52 = vadd.f32 %v7618_v8, %v7426_v21  ;;  %v14211_v4 = vsel %vm13194_vm13, %v9019_v59, 0  ;;  %v7430_v24 = vadd.f32 %v7429_v46, %v13710_v5  ;;  %v7439_v43 = vpop.f32.mrf.mxu0  ;;  %v7622_v16 = vpop.f32.mrf.mxu1  ;;  %9387 = vmatpush2.bf16.xpose.msra.mxu1 %v14194_v11 }
 0x5fb   : > { %v14205_v1 = vrot.slane %v15873_v63, 1  ;;  %vm7753_vm5 = vcmp.gt.f32.partialorder %v7617_v61, 0.0  ;;  %v7621_v58 = vadd.f32 %v7620_v36, %v7428_v41  ;;  %v15670_v21 = vshll.u32 %v13940_v45, 16  ;;  %9388 = vmatprep.subr.bf16.mxu1 %v13867_v33 }
 0x5fc   : > { %15874 = vst [vmem:[#allocation108_spill] sm:$0xff] %v14207_v28  ;;  %vm7754_vm2 = vcmp.gt.f32.partialorder %v7619_v52, 0.0  ;;  %v7882_v62 = vmul.f32 0.2, %v7619_v52  ;;  %v7434_v59 = vadd.f32 %v7433_v9, %v13702_v0  ;;  %v7623_v46 = vadd.f32 %v7622_v16, %v7430_v24  ;;  %v7443_v36 = vpop.f32.mrf.mxu0  ;;  %v7626_v10 = vpop.f32.mrf.mxu1 }
 0x5fd   : > { %v7885_v8 = vmul.f32 0.2, %v7621_v58  ;;  %v8009_v49 = vsel %vm7753_vm5, %v7617_v61, %v7881_v47  ;;  %v7436_v63 = vadd.f32 %v7435_v60, %v13710_v5  ;;  %vm7757_vm9 = vcmp.gt.f32.partialorder %v7621_v58, 0.0 }
 0x5fe   : > { %v8010_v20 = vsel %vm7754_vm2, %v7619_v52, %v7882_v62  ;;  %vm7758_vm10 = vcmp.gt.f32.partialorder %v7623_v46, 0.0  ;;  %v7886_v38 = vmul.f32 0.2, %v7623_v46  ;;  %v7627_v24 = vadd.f32 %v7626_v10, %v7434_v59  ;;  %v7445_v16 = vpop.f32.mrf.mxu0  ;;  %v7628_v41 = vpop.f32.mrf.mxu1 }
 0x5ff   : > { %v14223_v55 = vpack.i.bf16 %v8010_v20, %v8009_v49  ;;  %v9045_v61 = vrot.slane %v15670_v21, 1  ;;  %v15876_v47 = vshll.u32 %v14188_v54, 16  ;;  %v7438_v62 = vadd.f32 %v7437_v26, %v13702_v0 }
 0x600   : > { %v8013_v49 = vsel %vm7757_vm9, %v7621_v58, %v7885_v8  ;;  %v8014_v20 = vsel %vm7758_vm10, %v7623_v46, %v7886_v38  ;;  %vm7761_vm6 = vcmp.gt.f32.partialorder %v7627_v24, 0.0  ;;  %v7889_v10 = vmul.f32 0.2, %v7627_v24  ;;  %v7447_v59 = vpop.f32.mrf.mxu0  ;;  %v7630_v9 = vpop.f32.mrf.mxu1  ;;  %9354 = vmatpush2.bf16.xpose.msra.mxu0 %v14199_v37 }
 0x601   : > { %15875 = vst [vmem:[#allocation109_spill] sm:$0xff] %v14223_v55  ;;  %v9047_v52 = vrot.slane %v15876_v47, 1  ;;  %v7629_v55 = vadd.f32 %v7628_v41, %v7436_v63  ;;  %v14234_v33 = vpack.i.bf16 %v8014_v20, %v8013_v49  ;;  %v15878_v42 = vshrl.u32 %v14188_v54, 16  ;;  %9355 = vmatprep.subr.bf16.mxu0 %v13778_v25 }
 0x602   : > { %v7631_v23 = vadd.f32 %v7630_v9, %v7438_v62  ;;  %v15880_v26 = vshll.u32 %v14028_v22, 16  ;;  %v7440_v38 = vadd.f32 %v7439_v43, %v13710_v5  ;;  %v7449_v8 = vpop.f32.mrf.mxu0  ;;  %v7632_v46 = vpop.f32.mrf.mxu1  ;;  %v7444_v9 = vadd.f32 %v7443_v36, %v13702_v0  ;;  %9389 = vmatpush2.bf16.xpose.msra.mxu1 %v14211_v4 }
 0x603   : > { %15877 = vst [vmem:[#allocation110_spill] sm:$0xff] %v14234_v33  ;;  %v14238_v21 = vor.u32 %v9047_v52, %v15878_v42  ;;  %vm7762_vm7 = vcmp.gt.f32.partialorder %v7629_v55, 0.0  ;;  %v7890_v60 = vmul.f32 0.2, %v7629_v55  ;;  %v15881_v42 = vshrl.u32 %v13940_v45, 16  ;;  %9390 = vmatprep.subr.bf16.mxu1 %v13861_v53 }
 0x604   : > { %v9065_v58 = vrot.slane %v15880_v26, 1  ;;  %v8017_v62 = vsel %vm7761_vm6, %v7627_v24, %v7889_v10  ;;  %v7893_v20 = vmul.f32 0.2, %v7631_v23  ;;  %v7633_v43 = vadd.f32 %v7632_v46, %v7440_v38  ;;  %v7453_v33 = vpop.f32.mrf.mxu0 }
 0x605   : > { %15879 = vst [vmem:[#allocation111_spill] sm:$0xff] %v14238_v21  ;;  %v9046_v47 = vor.u32 %v9045_v61, %v15881_v42  ;;  %v8018_v49 = vsel %vm7762_vm7, %v7629_v55, %v7890_v60  ;;  %v7636_v21 = vpop.f32.mrf.mxu1  ;;  %v15883_v63 = vshll.u32 %v14053_v19, 16  ;;  %v7446_v61 = vadd.f32 %v7445_v16, %v13710_v5 }
 0x606   : > { %v14251_v26 = vpack.i.bf16 %v8018_v49, %v8017_v62  ;;  %vm7765_vm11 = vcmp.gt.f32.partialorder %v7631_v23, 0.0  ;;  %v7637_v55 = vadd.f32 %v7636_v21, %v7444_v9  ;;  %v15884_v36 = vshrl.u32 %v14028_v22, 16 }
 0x607   : > { %v14255_v41 = vsel %vm6074_vm8, %v9046_v47, %v9047_v52  ;;  %v9067_v45 = vrot.slane %v15883_v63, 1  ;;  %vm7766_vm12 = vcmp.gt.f32.partialorder %v7633_v43, 0.0  ;;  %v7894_v60 = vmul.f32 0.2, %v7633_v43  ;;  %v7638_v10 = vpop.f32.mrf.mxu1  ;;  %v7455_v63 = vpop.f32.mrf.mxu0 }
 0x608   : > { %15882 = vst [vmem:[#allocation112_spill] sm:$0xff] %v14251_v26  ;;  %v9066_v24 = vor.u32 %v9065_v58, %v15884_v36  ;;  %v15885_v38 = vshrl.u32 %v14053_v19, 16  ;;  %v7448_v52 = vadd.f32 %v7447_v59, %v13702_v0  ;;  %v7897_v42 = vmul.f32 0.2, %v7637_v55 }
 0x609   : > { %v7639_v47 = vadd.f32 %v7638_v10, %v7446_v61  ;;  %v15887_v16 = vshrl.u32 %v14045_v40, 16  ;;  %v8021_v21 = vsel %vm7765_vm11, %v7631_v23, %v7893_v20  ;;  %v8022_v9 = vsel %vm7766_vm12, %v7633_v43, %v7894_v60  ;;  %v7640_v58 = vpop.f32.mrf.mxu1 }
 0x60a   : > { %v14265_v46 = vor.u32 %v9067_v45, %v15885_v38  ;;  %vm7769_vm14 = vcmp.gt.f32.partialorder %v7637_v55, 0.0  ;;  %v14272_v49 = vsel %vm6074_vm8, %v9066_v24, %v9067_v45  ;;  %v7450_v36 = vadd.f32 %v7449_v8, %v13710_v5  ;;  %v7457_v24 = vpop.f32.mrf.mxu0 }
 0x60b   : > { %v9016_v62 = vor.u32 %v14205_v1, %v15887_v16  ;;  %v14275_v38 = vpack.i.bf16 %v8022_v9, %v8021_v21  ;;  %vm7770_vm0 = vcmp.gt.f32.partialorder %v7639_v47, 0.0  ;;  %v7898_v59 = vmul.f32 0.2, %v7639_v47  ;;  %v7642_v10 = vpop.f32.mrf.mxu1 }
 0x60c   : > { %15886 = vst [vmem:[#allocation113_spill] sm:$0xff] %v14265_v46  ;;  %v15889_v46 = vld [vmem:[#allocation82_spill] sm:$0xff]  ;;  %v7641_v61 = vadd.f32 %v7640_v58, %v7448_v52  ;;  %v15890_v1 = vshll.u32 %v13544_v27, 16  ;;  %v7454_v20 = vadd.f32 %v7453_v33, %v13702_v0  ;;  %v8025_v8 = vsel %vm7769_vm14, %v7637_v55, %v7897_v42 }
 0x60d   : > { %15888 = vst [vmem:[#allocation114_spill] sm:$0xff] %v14275_v38  ;;  %9356 = vmatpush2.bf16.xpose.msra.mxu0 %v15889_v46  ;;  %v14281_v23 = vsel %vm6074_vm8, %v9016_v62, %v14157_v57  ;;  %v8026_v43 = vsel %vm7770_vm0, %v7639_v47, %v7898_v59  ;;  %v7643_v60 = vadd.f32 %v7642_v10, %v7450_v36  ;;  %v7646_v21 = vpop.f32.mrf.mxu1  ;;  %v15892_v42 = vshrl.u32 %v13544_v27, 16 }
 0x60e   : > { %9357 = vmatprep.subr.bf16.mxu0 %v13754_v6  ;;  %v9012_v45 = vrot.slane %v15890_v1, 1  ;;  %v14286_v16 = vpack.i.bf16 %v8026_v43, %v8025_v8  ;;  %vm7773_vm3 = vcmp.gt.f32.partialorder %v7641_v61, 0.0  ;;  %v7901_v52 = vmul.f32 0.2, %v7641_v61  ;;  %9391 = vmatpush2.bf16.xpose.msra.mxu1 %v14281_v23 }
 0x60f   : > { %v7456_v9 = vadd.f32 %v7455_v63, %v13710_v5  ;;  %vm7774_vm15 = vcmp.gt.f32.partialorder %v7643_v60, 0.0  ;;  %v7902_v57 = vmul.f32 0.2, %v7643_v60  ;;  %9392 = vmatprep.subr.bf16.mxu1 %v14103_v7  ;;  %v7647_v62 = vadd.f32 %v7646_v21, %v7454_v20  ;;  %v7648_v55 = vpop.f32.mrf.mxu1 }
 0x610   : > { %15891 = vst [vmem:[#allocation82_spill] sm:$0xff] %v14286_v16  ;;  %v7458_v33 = vadd.f32 %v7457_v24, %v13702_v0  ;;  %v9014_v47 = vor.u32 %v9012_v45, %v15892_v42  ;;  %v8029_v58 = vsel %vm7773_vm3, %v7641_v61, %v7901_v52  ;;  %v15894_v16 = vld [vmem:[#allocation85_spill] sm:$0xff]  ;;  %v14302_v20 = vsel %vm13194_vm13, %v13985_v48, 0 }
 0x611   : > { %v8030_v36 = vsel %vm7774_vm15, %v7643_v60, %v7902_v57  ;;  %v7905_v59 = vmul.f32 0.2, %v7647_v62  ;;  %v7649_v10 = vadd.f32 %v7648_v55, %v7456_v9  ;;  %vm7777_vm5 = vcmp.gt.f32.partialorder %v7647_v62, 0.0  ;;  %v7650_v8 = vpop.f32.mrf.mxu1  ;;  %v9266_v48 = vld [vmem:[%s15580_s9 + $0x8] sm:$0xff] }
 0x612   : > { %v14294_v1 = vpack.i.bf16 %v8030_v36, %v8029_v58  ;;  %v14296_v43 = vadd.f32 %v7650_v8, %v7458_v33  ;;  %v14307_v60 = vsel %vm13194_vm13, %v9014_v47, 0  ;;  %v15896_v21 = vshll.u32 %v13531_v35, 16 }
 0x613   : > { %vm7778_vm2 = vcmp.gt.f32.partialorder %v7649_v10, 0.0  ;;  %v7906_v63 = vmul.f32 0.2, %v7649_v10  ;;  %v8033_v61 = vsel %vm7777_vm5, %v7647_v62, %v7905_v59  ;;  %v14319_v57 = vrot.slane %v9266_v48, %v12595_v17  ;;  %v15898_v62 = vld [vmem:[#allocation73_spill] sm:$0xff]  ;;  %v15900_v59 = vld [vmem:[#allocation84_spill] sm:$0xff] }
 0x614   : > { %15893 = vst [vmem:[#allocation115_spill] sm:$0xff] %v14294_v1  ;;  %v9010_v9 = vrot.slane %v15896_v21, 1  ;;  %v15899_v55 = vshrl.u32 %v13531_v35, 16  ;;  %v15677_v58 = vshll.u32 %v14109_v31, 16  ;;  %v15678_v36 = vshll.u32 %v14119_v34, 16 }
 0x615   : > { %9358 = vmatpush2.bf16.xpose.msra.mxu0 %v15894_v16  ;;  %v8034_v24 = vsel %vm7778_vm2, %v7649_v10, %v7906_v63  ;;  %15897 = vst [vmem:[#allocation116_spill] sm:$0xff] %v14319_v57  ;;  %v14324_v33 = vcombine.high %v14319_v57, %v14319_v57  ;;  %v15680_v8 = vshrl.u32 %v14119_v34, 16  ;;  %v15685_v1 = vshll.u32 %v14207_v28, 16  ;;  %v15912_v34 = vld [vmem:[#allocation75_spill] sm:$0xff] }
 0x616   : > { %9409 = vmatprep.subr.bf16.mxu0 %v14302_v20  ;;  %v14309_v52 = vpack.i.bf16 %v8034_v24, %v8033_v61  ;;  %9393 = vmatpush2.bf16.xpose.msra.mxu1 %v14307_v60  ;;  %v9011_v42 = vor.u32 %v9010_v9, %v15899_v55  ;;  %v9085_v10 = vrot.slane %v15677_v58, 1  ;;  %v9087_v63 = vrot.slane %v15678_v36, 1  ;;  %v15903_v55 = vld [vmem:[#allocation23_spill] sm:$0xff] }
 0x617   : > { %9394 = vmatprep.subr.bf16.mxu1 %v14150_v14  ;;  %v15681_v61 = vshll.u32 %v14174_v29, 16  ;;  %v15904_v58 = vld [vmem:[#allocation27_spill] sm:$0xff]  ;;  %v15684_v36 = vshrl.u32 %v14174_v29, 16  ;;  %vm7781_vm10 = vcmp.gt.f32.partialorder %v14296_v43, 0.0 }
 0x618   : > { %15895 = vst [vmem:[#allocation85_spill] sm:$0xff] %v14309_v52  ;;  %v14332_v47 = vsel %vm6074_vm8, %v9011_v42, %v9012_v45  ;;  %v15682_v45 = vshrl.u32 %v14109_v31, 16  ;;  %v14351_v24 = vor.u32 %v9087_v63, %v15680_v8  ;;  %v9294_v8 = vcombine.high %v9266_v48, %v9266_v48 }
 0x619   : > { %v9105_v42 = vrot.slane %v15681_v61, 1  ;;  %v9107_v61 = vrot.slane %v15685_v1, 1  ;;  %v15696_v1 = vshll.u32 %v14251_v26, 16 }
 0x61a   : > { %15901 = vst [vmem:[#allocation73_spill] sm:$0xff] %v14351_v24  ;;  %v9086_v21 = vor.u32 %v9085_v10, %v15682_v45  ;;  %v15906_v45 = vld [vmem:[#allocation22_spill] sm:$0xff] }
 0x61b   : > { %v9106_v10 = vor.u32 %v9105_v42, %v15684_v36  ;;  %v15910_v36 = vld [vmem:[#allocation76_spill] sm:$0xff] }
 0x61c   : > { %9360 = vmatmul.mubr.bf16.vlgmr.msra.gmra.mxu0 %v15898_v62  ;;  %v14356_v9 = vsel %vm6074_vm8, %v9086_v21, %v9087_v63  ;;  %v14369_v63 = vrot.slane %v9294_v8, %v12595_v17  ;;  %v15686_v21 = vshrl.u32 %v14207_v28, 16  ;;  %v15909_v17 = vld [vmem:[#allocation92_spill] sm:$0xff]  ;;  %v7459_v8 = vpop.f32.mrf.mxu0  ;;  %v15703_v28 = vshrl.u32 %v14275_v38, 16 }
 0x61d   : > { %9410 = vmatpush1.bf16.xpose.msra.mxu0 %v13778_v25  ;;  %9441 = vmatprep.mubr.bf16.mxu0 %v14324_v33  ;;  %15902 = vst [vmem:[#allocation84_spill] sm:$0xff] %v14356_v9  ;;  %v14384_v42 = vsel %vm6074_vm8, %v9106_v10, %v9107_v61  ;;  %v9125_v10 = vrot.slane %v15696_v1, 1 }
 0x61e   : > { %9411 = vmatprep.subr.bf16.mxu0 %v13988_v56  ;;  %9395 = vmatpush2.bf16.xpose.msra.mxu1 %v14332_v47  ;;  %15905 = vst [vmem:[#allocation23_spill] sm:$0xff] %v14369_v63  ;;  %v14377_v9 = vcombine.high %v14369_v63, %v14369_v63  ;;  %v14381_v48 = vor.u32 %v9107_v61, %v15686_v21  ;;  %15908 = vst [vmem:[#allocation22_spill] sm:$0xff] %v14384_v42  ;;  %v15911_v21 = vld [vmem:[#allocation95_spill] sm:$0xff]  ;;  %v15697_v61 = vshrl.u32 %v14251_v26, 16 }
 0x61f   : > { %9396 = vmatprep.subr.bf16.mxu1 %v14133_v18  ;;  %v7460_v42 = vadd.f32 %v7459_v8, %v13710_v5 }
 0x620   : > { %15907 = vst [vmem:[#allocation27_spill] sm:$0xff] %v14381_v48  ;;  %v7652_v48 = vpop.f32.mrf.mxu1  ;;  %v9126_v24 = vor.u32 %v9125_v10, %v15697_v61  ;;  %v15916_v61 = vld [vmem:[#allocation21_spill] sm:$0xff] }
 0x621   : > { %v7653_v29 = vadd.f32 %v7652_v48, %v7460_v42  ;;  %v7909_v48 = vmul.f32 0.2, %v14296_v43 }
 0x623   : > { %vm7782_vm9 = vcmp.gt.f32.partialorder %v7653_v29, 0.0  ;;  %v8037_v10 = vsel %vm7781_vm10, %v14296_v43, %v7909_v48  ;;  %v15921_v48 = vld [vmem:[#allocation19_spill] sm:$0xff] }
 0x625   : > { %9412 = vmatpush1.bf16.xpose.msra.mxu0 %v13754_v6 }
 0x626   : > { %9413 = vmatprep.subr.bf16.mxu0 %v15900_v59  ;;  %9397 = vmatpush2.bf16.xpose.msra.mxu1 %v14302_v20 }
 0x627   : > { %9398 = vmatprep.subr.bf16.mxu1 %v14199_v37 }
 0x62d   : > { %9414 = vmatpush1.bf16.xpose.msra.mxu0 %v15903_v55 }
 0x62e   : > { %9415 = vmatprep.subr.bf16.mxu0 %v15904_v58  ;;  %9399 = vmatpush2.bf16.xpose.msra.mxu1 %v13988_v56 }
 0x62f   : > { %9450 = vmatprep.subr.bf16.mxu1 %v13544_v27 }
 0x635   : > { %9416 = vmatpush1.bf16.xpose.msra.mxu0 %v15906_v45  ;;  %9401 = vmatmul.mubr.bf16.vlgmr.msra.gmra.mxu1 %v14005_v51 }
 0x636   : > { %9417 = vmatprep.subr.bf16.mxu0 %v15909_v17  ;;  %9451 = vmatpush1.bf16.xpose.msra.mxu1 %v14133_v18  ;;  %v15702_v18 = vshll.u32 %v14275_v38, 16 }
 0x637   : > { %9482 = vmatprep.mubr.bf16.mxu1 %v14377_v9  ;;  %9452 = vmatprep.subr.bf16.mxu1 %v13531_v35 }
 0x638   : > { %v9127_v31 = vrot.slane %v15702_v18, 1 }
 0x63a   : > { %v14409_v8 = vor.u32 %v9127_v31, %v15703_v28  ;;  %v15933_v28 = vld [vmem:[#allocation88_spill] sm:$0xff] }
 0x63c   : > { %15913 = vst [vmem:[#allocation92_spill] sm:$0xff] %v14409_v8 }
 0x63d   : > { %9418 = vmatpush1.bf16.xpose.msra.mxu0 %v15910_v36 }
 0x63e   : > { %9419 = vmatprep.subr.bf16.mxu0 %v15911_v21  ;;  %9453 = vmatpush1.bf16.xpose.msra.mxu1 %v14199_v37  ;;  %v7910_v37 = vmul.f32 0.2, %v7653_v29 }
 0x63f   : > { %9454 = vmatprep.subr.bf16.mxu1 %v13778_v25  ;;  %v14413_v25 = vsel %vm6074_vm8, %v9126_v24, %v9127_v31  ;;  %v15699_v31 = vshrl.u32 %v14309_v52, 16 }
 0x640   : > { %15914 = vst [vmem:[#allocation76_spill] sm:$0xff] %v14413_v25  ;;  %v8038_v42 = vsel %vm7782_vm9, %v7653_v29, %v7910_v37  ;;  %v15920_v37 = vld [vmem:[#allocation24_spill] sm:$0xff] }
 0x641   : > { %v14420_v1 = vpack.i.bf16 %v8038_v42, %v8037_v10  ;;  %v15922_v42 = vld [vmem:[#allocation25_spill] sm:$0xff] }
 0x642   : > { %v6964_v10 = vadd.f32 %v15922_v42, %v15921_v48 }
 0x643   : > { %15915 = vst [vmem:[#allocation95_spill] sm:$0xff] %v14420_v1  ;;  %v15701_v43 = vshrl.u32 %v14420_v1, 16 }
 0x645   : > { %9420 = vmatpush1.bf16.xpose.msra.mxu0 %v15912_v34 }
 0x646   : > { %9421 = vmatprep.subr.bf16.mxu0 %v13854_v32  ;;  %9455 = vmatpush1.bf16.xpose.msra.mxu1 %v15889_v46  ;;  %v15698_v32 = vshll.u32 %v14309_v52, 16 }
 0x647   : > { %9456 = vmatprep.subr.bf16.mxu1 %v13754_v6  ;;  %v15700_v6 = vshll.u32 %v14420_v1, 16 }
 0x648   : > { %v9257_v46 = vrot.slane %v15698_v32, 1  ;;  %v15924_v32 = vld [vmem:[#allocation29_spill] sm:$0xff] }
 0x649   : > { %v9259_v24 = vrot.slane %v15700_v6, 1  ;;  %v15932_v6 = vld [vmem:[#allocation107_spill] sm:$0xff] }
 0x64a   : > { %v9258_v29 = vor.u32 %v9257_v46, %v15699_v31  ;;  %v15923_v46 = vld [vmem:[#allocation32_spill] sm:$0xff] }
 0x64d   : > { %9422 = vmatpush1.bf16.xpose.msra.mxu0 %v15916_v61  ;;  %v14440_v61 = vsel %vm13194_vm13, %v14018_v12, 0 }
 0x64e   : > { %9423 = vmatprep.subr.bf16.mxu0 %v13857_v13  ;;  %9457 = vmatpush1.bf16.xpose.msra.mxu1 %v15894_v16  ;;  %v15917_v13 = vld [vmem:[#allocation20_spill] sm:$0xff]  ;;  %v14444_v16 = vor.u32 %v9259_v24, %v15701_v43 }
 0x64f   : > { %9458 = vmatprep.subr.bf16.mxu1 %v15903_v55  ;;  %v14447_v55 = vsel %vm6074_vm8, %v9258_v29, %v9259_v24  ;;  %v15925_v29 = vld [vmem:[#allocation30_spill] sm:$0xff] }
 0x650   : > { %15918 = vst [vmem:[#allocation75_spill] sm:$0xff] %v14444_v16  ;;  %15919 = vst [vmem:[#allocation21_spill] sm:$0xff] %v14447_v55  ;;  %v7819_v24 = vmul.f32 0.2, %v15925_v29  ;;  %vm7691_vm7 = vcmp.gt.f32.partialorder %v15925_v29, 0.0 }
 0x655   : > { %9424 = vmatpush1.bf16.xpose.msra.mxu0 %v15917_v13  ;;  %v7157_v13 = vadd.f32 %v15923_v46, %v6964_v10  ;;  %v15926_v10 = vld [vmem:[#allocation77_spill] sm:$0xff] }
 0x656   : > { %9425 = vmatprep.subr.bf16.mxu0 %v14440_v61  ;;  %9459 = vmatpush1.bf16.xpose.msra.mxu1 %v15920_v37  ;;  %v7947_v37 = vsel %vm7691_vm7, %v15925_v29, %v7819_v24 }
 0x657   : > { %9460 = vmatprep.subr.bf16.mxu1 %v15906_v45  ;;  %v7820_v12 = vmul.f32 0.2, %v7157_v13  ;;  %vm7692_vm6 = vcmp.gt.f32.partialorder %v7157_v13, 0.0 }
 0x659   : > { %v7948_v45 = vsel %vm7692_vm6, %v7157_v13, %v7820_v12  ;;  %v15928_v13 = vld [vmem:[#allocation81_spill] sm:$0xff] }
 0x65a   : > { %v14464_v42 = vpack.i.bf16 %v7948_v45, %v7947_v37  ;;  %v15929_v12 = vld [vmem:[#allocation33_spill] sm:$0xff]  ;;  %v15930_v37 = vld [vmem:[#allocation26_spill] sm:$0xff] }
 0x65b   : > { %v8547_v29 = vshrl.u32 %v15929_v12, 16 }
 0x65c   : > { %v8557_v24 = vshll.u32 %v14464_v42, 16 }
 0x65d   : > { %9426 = vmatpush2.bf16.xpose.msra.mxu0 %v13938_v44 }
 0x65e   : > { %9427 = vmatprep.subr.bf16.mxu0 %v14033_v39  ;;  %9461 = vmatpush1.bf16.xpose.msra.mxu1 %v15924_v32  ;;  %v8554_v32 = vshrl.u32 %v14464_v42, 16 }
 0x65f   : > { %9462 = vmatprep.subr.bf16.mxu1 %v15910_v36  ;;  %v15927_v36 = vld [vmem:[#allocation28_spill] sm:$0xff] }
 0x660   : > { %v8556_v46 = vrot.slane %v8554_v32, 7 }
 0x662   : > { %v8559_v45 = vor.u32 %v8557_v24, %v8556_v46 }
 0x665   : > { %9428 = vmatpush2.bf16.xpose.msra.mxu0 %v13936_v3 }
 0x666   : > { %9429 = vmatprep.subr.bf16.mxu0 %v14073_v15  ;;  %9463 = vmatpush1.bf16.xpose.msra.mxu1 %v15926_v10  ;;  %v8549_v10 = vrot.slane %v8547_v29, 7 }
 0x667   : > { %9464 = vmatprep.subr.bf16.mxu1 %v15912_v34 }
 0x668   : > { %v14478_v34 = vsel %vm1820_vm1, %v8549_v10, %v8559_v45  ;;  %v15931_v45 = vld [vmem:[#allocation103_spill] sm:$0xff] }
 0x66d   : > { %9430 = vmatpush2.bf16.xpose.msra.mxu0 %v15927_v36 }
 0x66e   : > { %9431 = vmatprep.subr.bf16.mxu0 %v14194_v11  ;;  %9465 = vmatpush1.bf16.xpose.msra.mxu1 %v15928_v13  ;;  %v8550_v13 = vshll.u32 %v15929_v12, 16 }
 0x66f   : > { %9466 = vmatprep.subr.bf16.mxu1 %v14464_v42 }
 0x670   : > { %v8552_v31 = vor.u32 %v8550_v13, %v8549_v10  ;;  %v9032_v10 = vrot.slane %v8557_v24, 1  ;;  %v9030_v18 = vrot.slane %v8550_v13, 1 }
 0x672   : > { %v14487_v46 = vsel %vm13568_vm4, 0, %v8552_v31  ;;  %v9034_v31 = vor.u32 %v9032_v10, %v8554_v32  ;;  %v14512_v32 = vld.sshfl [vmem:[%s15580_s9 + $0x10] sm:$0x3 pattern:$0x76325410] }
 0x673   : > { %15935 = vst [vmem:[#allocation20_spill] sm:$0xff] %v14512_v32 }
 0x674   : > { %v14502_v43 = vsel %vm13194_vm13, %v9034_v31, 0 }
 0x675   : > { %9432 = vmatpush2.bf16.xpose.msra.mxu0 %v15930_v37 }
 0x676   : > { %9433 = vmatprep.subr.bf16.mxu0 %v14211_v4  ;;  %9467 = vmatpush2.bf16.xpose.msra.mxu1 %v14478_v34 }
 0x677   : > { %9468 = vmatprep.subr.bf16.mxu1 %v15929_v12 }
 0x67d   : > { %9434 = vmatpush2.bf16.xpose.msra.mxu0 %v14007_v2 }
 0x67e   : > { %9435 = vmatprep.subr.bf16.mxu0 %v14281_v23  ;;  %9469 = vmatpush2.bf16.xpose.msra.mxu1 %v14487_v46 }
 0x67f   : > { %9470 = vmatprep.subr.bf16.mxu1 %v13938_v44 }
 0x685   : > { %9436 = vmatpush2.bf16.xpose.msra.mxu0 %v14045_v40 }
 0x686   : > { %9437 = vmatprep.subr.bf16.mxu0 %v14307_v60  ;;  %9471 = vmatpush2.bf16.xpose.msra.mxu1 %v15931_v45 }
 0x687   : > { %9472 = vmatprep.subr.bf16.mxu1 %v13936_v3 }
 0x68d   : > { %9438 = vmatpush2.bf16.xpose.msra.mxu0 %v13544_v27  ;;  %v15934_v27 = vld [vmem:[#allocation31_spill] sm:$0xff] }
 0x68e   : > { %9439 = vmatprep.subr.bf16.mxu0 %v14332_v47  ;;  %9473 = vmatpush2.bf16.xpose.msra.mxu1 %v15932_v6  ;;  %v6974_v24 = vadd.f32 %v15934_v27, %v15921_v48  ;;  %v15939_v27 = vld [vmem:[#allocation80_spill] sm:$0xff] }
 0x68f   : > { %9474 = vmatprep.subr.bf16.mxu1 %v15927_v36  ;;  %v15936_v36 = vld [vmem:[#allocation36_spill] sm:$0xff] }
 0x690   : > { %v7167_v55 = vadd.f32 %v15936_v36, %v6974_v24  ;;  %v15940_v24 = vld [vmem:[#allocation90_spill] sm:$0xff] }
 0x692   : > { %vm7700_vm11 = vcmp.gt.f32.partialorder %v7167_v55, 0.0 }
 0x695   : > { %9440 = vmatpush2.bf16.xpose.msra.mxu0 %v13531_v35  ;;  %v9031_v35 = vor.u32 %v9030_v18, %v8547_v29  ;;  %v15937_v18 = vld [vmem:[#allocation34_spill] sm:$0xff] }
 0x696   : > { %11029 = vmatprep.subr.bf16.mxu0 %v14502_v43  ;;  %9475 = vmatpush2.bf16.xpose.msra.mxu1 %v15933_v28  ;;  %v7828_v28 = vmul.f32 0.2, %v7167_v55  ;;  %v7827_v29 = vmul.f32 0.2, %v15937_v18  ;;  %vm7699_vm12 = vcmp.gt.f32.partialorder %v15937_v18, 0.0 }
 0x697   : > { %9476 = vmatprep.subr.bf16.mxu1 %v15930_v37  ;;  %v14518_v13 = vsel %vm6074_vm8, %v9031_v35, %v9032_v10  ;;  %v15941_v35 = vld [vmem:[#allocation89_spill] sm:$0xff] }
 0x698   : > { %v7956_v37 = vsel %vm7700_vm11, %v7167_v55, %v7828_v28  ;;  %v7348_v55 = vadd.f32 %v15939_v27, %v13702_v0 }
 0x69a   : > { %v7541_v36 = vadd.f32 %v15941_v35, %v7348_v55  ;;  %v15946_v35 = vld [vmem:[#allocation86_spill] sm:$0xff] }
 0x69c   : > { %9442 = vmatmul.mubr.bf16.vlgmr.msra.gmra.mxu0 %v14319_v57  ;;  %v7821_v55 = vmul.f32 0.2, %v7541_v36  ;;  %vm7693_vm0 = vcmp.gt.f32.partialorder %v7541_v36, 0.0 }
 0x69d   : > { %11030 = vmatpush3.bf16.xpose.msra.mxu0 %v14307_v60  ;;  %11045 = vmatprep.mubr.bf16.mxu0 %v14512_v32  ;;  %v7955_v60 = vsel %vm7699_vm12, %v15937_v18, %v7827_v29  ;;  %v15943_v29 = vld [vmem:[#allocation37_spill] sm:$0xff] }
 0x69e   : > { %11031 = vmatprep.subr.bf16.mxu0 %v14518_v13  ;;  %9477 = vmatpush2.bf16.xpose.msra.mxu1 %v13861_v53  ;;  %v14529_v10 = vpack.i.bf16 %v7956_v37, %v7955_v60  ;;  %v15938_v53 = vld [vmem:[#allocation83_spill] sm:$0xff]  ;;  %v8577_v37 = vshrl.u32 %v15943_v29, 16  ;;  %v15944_v60 = vld [vmem:[#allocation78_spill] sm:$0xff]  ;;  %v7949_v16 = vsel %vm7693_vm0, %v7541_v36, %v7821_v55 }
 0x69f   : > { %9478 = vmatprep.subr.bf16.mxu1 %v14007_v2  ;;  %v7350_v2 = vadd.f32 %v15938_v53, %v13710_v5  ;;  %v7344_v53 = vadd.f32 %v15944_v60, %v13702_v0 }
 0x6a0   : > { %v15705_v31 = vshrl.u32 %v14529_v10, 16 }
 0x6a5   : > { %11032 = vmatpush3.bf16.xpose.msra.mxu0 %v14332_v47  ;;  %v7543_v47 = vadd.f32 %v15940_v24, %v7350_v2  ;;  %v15945_v2 = vld [vmem:[#allocation87_spill] sm:$0xff] }
 0x6a6   : > { %11033 = vmatprep.subr.bf16.mxu0 %v14440_v61  ;;  %9479 = vmatpush2.bf16.xpose.msra.mxu1 %v14103_v7  ;;  %v8586_v7 = vrot.slane %v15705_v31, 7 }
 0x6a7   : > { %9480 = vmatprep.subr.bf16.mxu1 %v14045_v40  ;;  %v15942_v40 = vld [vmem:[#allocation79_spill] sm:$0xff]  ;;  %v7822_v18 = vmul.f32 0.2, %v7543_v47  ;;  %vm7694_vm14 = vcmp.gt.f32.partialorder %v7543_v47, 0.0 }
 0x6a8   : > { %v7346_v28 = vadd.f32 %v15942_v40, %v13710_v5  ;;  %v7537_v5 = vadd.f32 %v15946_v35, %v7344_v53  ;;  %v15948_v35 = vshrl.u32 %v14188_v54, 16 }
 0x6a9   : > { %v7950_v40 = vsel %vm7694_vm14, %v7543_v47, %v7822_v18  ;;  %v15947_v47 = vld [vmem:[#allocation74_spill] sm:$0xff] }
 0x6aa   : > { %v7539_v27 = vadd.f32 %v15945_v2, %v7346_v28  ;;  %v14558_v25 = vpack.i.bf16 %v7950_v40, %v7949_v16  ;;  %vm7689_vm15 = vcmp.gt.f32.partialorder %v7537_v5, 0.0 }
 0x6ac   : > { %v7818_v31 = vmul.f32 0.2, %v7539_v27  ;;  %vm7690_vm3 = vcmp.gt.f32.partialorder %v7539_v27, 0.0  ;;  %v8569_v16 = vshrl.u32 %v14558_v25, 16  ;;  %v8572_v2 = vshll.u32 %v14558_v25, 16 }
 0x6ad   : > { %11034 = vmatpush3.bf16.xpose.msra.mxu0 %v14302_v20  ;;  %v8587_v20 = vshll.u32 %v14529_v10, 16 }
 0x6ae   : > { %11035 = vmatprep.subr.bf16.mxu0 %v14033_v39  ;;  %9481 = vmatpush2.bf16.xpose.msra.mxu1 %v14150_v14  ;;  %v8579_v14 = vrot.slane %v8577_v37, 7  ;;  %v7946_v36 = vsel %vm7690_vm3, %v7539_v27, %v7818_v31  ;;  %v8571_v53 = vrot.slane %v8569_v16, 7 }
 0x6af   : > { %9532 = vmatprep.subr.bf16.mxu1 %v14529_v10  ;;  %v8589_v24 = vor.u32 %v8587_v20, %v8586_v7  ;;  %v7817_v7 = vmul.f32 0.2, %v7537_v5 }
 0x6b0   : > { %v8574_v27 = vor.u32 %v8572_v2, %v8571_v53 }
 0x6b1   : > { %v14562_v0 = vsel %vm1820_vm1, %v8579_v14, %v8589_v24  ;;  %v7945_v28 = vsel %vm7689_vm15, %v7537_v5, %v7817_v7  ;;  %v15949_v5 = vshll.u32 %v14188_v54, 16 }
 0x6b2   : > { %v14569_v18 = vpack.i.bf16 %v7946_v36, %v7945_v28 }
 0x6b4   : > { %v15707_v31 = vshrl.u32 %v14569_v18, 16  ;;  %v8565_v55 = vshll.u32 %v14569_v18, 16 }
 0x6b5   : > { %11036 = vmatpush3.bf16.xpose.msra.mxu0 %v13988_v56  ;;  %9483 = vmatmul.mubr.bf16.vlgmr.msra.gmra.mxu1 %v14369_v63  ;;  %v8580_v56 = vshll.u32 %v15943_v29, 16 }
 0x6b6   : > { %11037 = vmatprep.subr.bf16.mxu0 %v14073_v15  ;;  %9533 = vmatpush1.bf16.xpose.msra.mxu1 %v14562_v0 }
 0x6b7   : > { %9564 = vmatprep.mubr.bf16.mxu1 %v15947_v47  ;;  %9534 = vmatprep.subr.bf16.mxu1 %v15943_v29  ;;  %v8582_v15 = vor.u32 %v8580_v56, %v8579_v14  ;;  %v15950_v14 = vld [vmem:[#allocation93_spill] sm:$0xff] }
 0x6b8   : > { %v15951_v7 = vshrl.u32 %v15950_v14, 16  ;;  %v15953_v53 = vshll.u32 %v15950_v14, 16 }
 0x6b9   : > { %v14575_v60 = vsel %vm13568_vm4, 0, %v8582_v15 }
 0x6ba   : > { %v8594_v36 = vrot.slane %v15951_v7, 7  ;;  %v9040_v7 = vrot.slane %v8580_v56, 1 }
 0x6bd   : > { %11038 = vmatpush3.bf16.xpose.msra.mxu0 %v15900_v59 }
 0x6be   : > { %11039 = vmatprep.subr.bf16.mxu0 %v14194_v11  ;;  %9535 = vmatpush1.bf16.xpose.msra.mxu1 %v14575_v60  ;;  %v8564_v11 = vrot.slane %v15707_v31, 7  ;;  %v9037_v31 = vrot.slane %v8572_v2, 1 }
 0x6bf   : > { %9536 = vmatprep.subr.bf16.mxu1 %v14558_v25 }
 0x6c0   : > { %v14588_v59 = vsel %vm1820_vm1, %v8564_v11, %v8574_v27  ;;  %v8567_v24 = vor.u32 %v8565_v55, %v8564_v11  ;;  %v8597_v27 = vor.u32 %v15953_v53, %v8594_v36  ;;  %v15954_v11 = vld [vmem:[#allocation39_spill] sm:$0xff] }
 0x6c5   : > { %11040 = vmatpush3.bf16.xpose.msra.mxu0 %v15904_v58  ;;  %v8601_v58 = vrot.slane %v15948_v35, 7 }
 0x6c6   : > { %11041 = vmatprep.subr.bf16.mxu0 %v14211_v4  ;;  %9537 = vmatpush1.bf16.xpose.msra.mxu1 %v14588_v59  ;;  %v14599_v4 = vsel %vm13568_vm4, 0, %v8567_v24  ;;  %v15955_v24 = vld [vmem:[#allocation44_spill] sm:$0xff] }
 0x6c7   : > { %9538 = vmatprep.subr.bf16.mxu1 %v14569_v18  ;;  %v8604_v40 = vor.u32 %v15949_v5, %v8601_v58  ;;  %v14629_v5 = vsel %vm13568_vm4, 0, %v8597_v27 }
 0x6c9   : > { %v14609_v15 = vsel %vm1820_vm1, %v8594_v36, %v8604_v40  ;;  %v15956_v40 = vld [vmem:[#allocation98_spill] sm:$0xff] }
 0x6cd   : > { %11042 = vmatpush3.bf16.xpose.msra.mxu0 %v15909_v17  ;;  %v9042_v17 = vrot.slane %v8587_v20, 1  ;;  %v6994_v20 = vadd.f32 %v15954_v11, %v15921_v48 }
 0x6ce   : > { %11043 = vmatprep.subr.bf16.mxu0 %v14281_v23  ;;  %9539 = vmatpush1.bf16.xpose.msra.mxu1 %v14599_v4  ;;  %v15952_v23 = vshrl.u32 %v14529_v10, 16 }
 0x6cf   : > { %9540 = vmatprep.subr.bf16.mxu1 %v14464_v42 }
 0x6d0   : > { %v9044_v28 = vor.u32 %v9042_v17, %v15952_v23 }
 0x6d2   : > { %v14624_v35 = vsel %vm13194_vm13, %v9044_v28, 0  ;;  %v15957_v28 = vld [vmem:[#allocation42_spill] sm:$0xff] }
 0x6d3   : > { %v7843_v11 = vmul.f32 0.2, %v15957_v28  ;;  %vm7715_vm2 = vcmp.gt.f32.partialorder %v15957_v28, 0.0 }
 0x6d5   : > { %11044 = vmatpush3.bf16.xpose.msra.mxu0 %v15911_v21  ;;  %v7187_v21 = vadd.f32 %v15955_v24, %v6994_v20  ;;  %v9041_v20 = vor.u32 %v9040_v7, %v8577_v37  ;;  %v9039_v37 = vor.u32 %v9037_v31, %v8569_v16 }
 0x6d6   : > { %9573 = vmatprep.subr.bf16.mxu0 %v14609_v15  ;;  %9541 = vmatpush1.bf16.xpose.msra.mxu1 %v14478_v34 }
 0x6d7   : > { %9542 = vmatprep.subr.bf16.mxu1 %v15929_v12  ;;  %v7844_v23 = vmul.f32 0.2, %v7187_v21  ;;  %vm7716_vm5 = vcmp.gt.f32.partialorder %v7187_v21, 0.0  ;;  %v14640_v56 = vsel %vm6074_vm8, %v9041_v20, %v9042_v17  ;;  %v14654_v2 = vsel %vm13194_vm13, %v9039_v37, 0 }
 0x6d8   : > { %v9035_v17 = vrot.slane %v8565_v55, 1 }
 0x6d9   : > { %v7972_v24 = vsel %vm7716_vm5, %v7187_v21, %v7844_v23 }
 0x6dc   : > { %11046 = vmatmul.mubr.bf16.vlgmr.msra.gmra.mxu0 %v14512_v32  ;;  %v9361_v58 = vpop.f32.mrf.mxu0 }
 0x6dd   : > { %9574 = vmatpush1.bf16.xpose.msra.mxu0 %v14624_v35  ;;  %9605 = vmatprep.mubr.bf16.mxu0 %v15956_v40 }
 0x6de   : > { %9575 = vmatprep.subr.bf16.mxu0 %v14629_v5  ;;  %v9363_v36 = vpop.f32.mrf.mxu0  ;;  %9543 = vmatpush1.bf16.xpose.msra.mxu1 %v14487_v46 }
 0x6df   : > { %9544 = vmatprep.subr.bf16.mxu1 %v13938_v44 }
 0x6e0   : > { %v9365_v53 = vpop.f32.mrf.mxu0 }
 0x6e1   : > { %v7971_v53 = vsel %vm7715_vm2, %v15957_v28, %v7843_v11  ;;  %v15960_v28 = vshrl.u32 %v14569_v18, 16 }
 0x6e2   : > { %v9366_v27 = vpop.f32.mrf.mxu0  ;;  %v14645_v44 = vpack.i.bf16 %v7972_v24, %v7971_v53 }
 0x6e3   : > { %v9036_v11 = vor.u32 %v9035_v17, %v15960_v28 }
 0x6e4   : > { %v15709_v21 = vshrl.u32 %v14645_v44, 16  ;;  %v8647_v23 = vshll.u32 %v14645_v44, 16  ;;  %v15970_v32 = vshrl.u32 %v14645_v44, 16 }
 0x6e5   : > { %9576 = vmatpush1.bf16.xpose.msra.mxu0 %v14640_v56  ;;  %v14670_v27 = vsel %vm6074_vm8, %v9036_v11, %v9037_v31 }
 0x6e6   : > { %9577 = vmatprep.subr.bf16.mxu0 %v14562_v0  ;;  %9545 = vmatpush1.bf16.xpose.msra.mxu1 %v15931_v45  ;;  %v8646_v7 = vrot.slane %v15709_v21, 7  ;;  %v14662_v45 = vpop.permute.xlu0 %9271  ;;  %v15962_v21 = vld [vmem:[#allocation97_spill] sm:$0xff]  ;;  %v9062_v40 = vrot.slane %v8647_v23, 1 }
 0x6e7   : > { %9546 = vmatprep.subr.bf16.mxu1 %v13936_v3  ;;  %15958 = vst [vmem:[#allocation24_spill] sm:$0xff] %v14662_v45  ;;  %v15959_v3 = vld [vmem:[#allocation45_spill] sm:$0xff]  ;;  %v9362_v55 = vadd.f32 %v9361_v58, %v14662_v45  ;;  %v9364_v24 = vadd.f32 %v9363_v36, %v14662_v45  ;;  %v15712_v8 = vshrl.u32 %v15962_v21, 16 }
 0x6e8   : > { %v15708_v16 = vshrl.u32 %v15959_v3, 16  ;;  %v8649_v20 = vor.u32 %v8647_v23, %v8646_v7  ;;  %v8640_v31 = vshll.u32 %v15959_v3, 16  ;;  %v15961_v7 = vld [vmem:[#allocation35_spill] sm:$0xff]  ;;  %v9064_v57 = vor.u32 %v9062_v40, %v15970_v32 }
 0x6e9   : > { %v6984_v28 = vadd.f32 %v15961_v7, %v15921_v48  ;;  %v8631_v7 = vrot.slane %v15712_v8, 7  ;;  %v15971_v23 = vshll.u32 %v14028_v22, 16 }
 0x6ed   : > { %9578 = vmatpush1.bf16.xpose.msra.mxu0 %v14654_v2 }
 0x6ee   : > { %9579 = vmatprep.subr.bf16.mxu0 %v14575_v60  ;;  %9547 = vmatpush1.bf16.xpose.msra.mxu1 %v15932_v6  ;;  %v8639_v6 = vrot.slane %v15708_v16, 7 }
 0x6ef   : > { %9548 = vmatprep.subr.bf16.mxu1 %v14645_v44 }
 0x6f0   : > { %v14678_v37 = vsel %vm1820_vm1, %v8639_v6, %v8649_v20  ;;  %v8642_v36 = vor.u32 %v8640_v31, %v8639_v6  ;;  %v15963_v20 = vld [vmem:[#allocation40_spill] sm:$0xff] }
 0x6f1   : > { %v7177_v52 = vadd.f32 %v15963_v20, %v6984_v28  ;;  %v15965_v28 = vld [vmem:[#allocation38_spill] sm:$0xff] }
 0x6f2   : > { %v7835_v20 = vmul.f32 0.2, %v15965_v28  ;;  %vm7707_vm10 = vcmp.gt.f32.partialorder %v15965_v28, 0.0 }
 0x6f3   : > { %vm7708_vm9 = vcmp.gt.f32.partialorder %v7177_v52, 0.0 }
 0x6f4   : > { %v7963_v1 = vsel %vm7707_vm10, %v15965_v28, %v7835_v20  ;;  %v15966_v28 = vshrl.u32 %v14053_v19, 16 }
 0x6f5   : > { %9580 = vmatpush1.bf16.xpose.msra.mxu0 %v14670_v27  ;;  %v9402_v53 = vpop.f32.mrf.mxu1 }
 0x6f6   : > { %9581 = vmatprep.subr.bf16.mxu0 %v14588_v59  ;;  %v14680_v17 = vadd.f32 %v9402_v53, %v9362_v55  ;;  %9549 = vmatpush2.bf16.xpose.msra.mxu1 %v14678_v37  ;;  %v14695_v53 = vsel %vm13568_vm4, 0, %v8642_v36  ;;  %v8661_v20 = vrot.slane %v15966_v28, 7  ;;  %v15969_v28 = vshrl.u32 %v14028_v22, 16 }
 0x6f7   : > { %v9404_v58 = vpop.f32.mrf.mxu1  ;;  %9550 = vmatprep.subr.bf16.mxu1 %v15959_v3 }
 0x6f8   : > { %v14687_v11 = vadd.f32 %v9404_v58, %v9364_v24  ;;  %v7836_v24 = vmul.f32 0.2, %v7177_v52  ;;  %v8632_v58 = vshll.u32 %v15962_v21, 16 }
 0x6f9   : > { %v9406_v16 = vpop.f32.mrf.mxu1 }
 0x6fa   : > { %v15964_v16 = vld [vmem:[#allocation96_spill] sm:$0xff]  ;;  %v7964_v36 = vsel %vm7708_vm9, %v7177_v52, %v7836_v24 }
 0x6fb   : > { %v9407_v55 = vpop.f32.mrf.mxu1  ;;  %v15719_v6 = vshrl.u32 %v15964_v16, 16  ;;  %v14710_v26 = vpack.i.bf16 %v7964_v36, %v7963_v1  ;;  %v8625_v52 = vshll.u32 %v15964_v16, 16 }
 0x6fc   : > { %v8634_v55 = vor.u32 %v8632_v58, %v8631_v7 }
 0x6fd   : > { %9582 = vmatpush1.bf16.xpose.msra.mxu0 %v14502_v43  ;;  %v8624_v8 = vrot.slane %v15719_v6, 7  ;;  %v8614_v24 = vshrl.u32 %v14710_v26, 16  ;;  %v8617_v36 = vshll.u32 %v14710_v26, 16 }
 0x6fe   : > { %9583 = vmatprep.subr.bf16.mxu0 %v14599_v4  ;;  %9551 = vmatpush2.bf16.xpose.msra.mxu1 %v14695_v53 }
 0x6ff   : > { %9552 = vmatprep.subr.bf16.mxu1 %v15962_v21  ;;  %v14713_v38 = vsel %vm1820_vm1, %v8624_v8, %v8634_v55  ;;  %v8627_v7 = vor.u32 %v8625_v52, %v8624_v8  ;;  %v15967_v55 = vld [vmem:[#allocation41_spill] sm:$0xff] }
 0x700   : > { %v8607_v8 = vshrl.u32 %v15967_v55, 16 }
 0x701   : > { %v14725_v1 = vsel %vm13568_vm4, 0, %v8627_v7 }
 0x702   : > { %v8609_v7 = vrot.slane %v8607_v8, 7 }
 0x705   : > { %9584 = vmatpush1.bf16.xpose.msra.mxu0 %v14518_v13 }
 0x706   : > { %9585 = vmatprep.subr.bf16.mxu0 %v14478_v34  ;;  %9553 = vmatpush2.bf16.xpose.msra.mxu1 %v14713_v38  ;;  %v8616_v34 = vrot.slane %v8614_v24, 7 }
 0x707   : > { %9554 = vmatprep.subr.bf16.mxu1 %v15964_v16 }
 0x708   : > { %v8619_v45 = vor.u32 %v8617_v36, %v8616_v34 }
 0x70a   : > { %v8620_v63 = vsel %vm1820_vm1, %v8609_v7, %v8619_v45 }
 0x70d   : > { %9586 = vmatpush1.bf16.xpose.msra.mxu0 %v14440_v61  ;;  %v15968_v61 = vshll.u32 %v14053_v19, 16 }
 0x70e   : > { %9587 = vmatprep.subr.bf16.mxu0 %v14487_v46  ;;  %9555 = vmatpush2.bf16.xpose.msra.mxu1 %v14725_v1  ;;  %v8654_v46 = vrot.slane %v15969_v28, 7  ;;  %v15972_v28 = vshrl.u32 %v15959_v3, 16 }
 0x70f   : > { %9556 = vmatprep.subr.bf16.mxu1 %v14710_v26  ;;  %v8664_v6 = vor.u32 %v15968_v61, %v8661_v20  ;;  %v8610_v20 = vshll.u32 %v15967_v55, 16  ;;  %v9060_v61 = vrot.slane %v8640_v31, 1  ;;  %v15973_v31 = vshrl.u32 %v15962_v21, 16 }
 0x710   : > { %v8657_v34 = vor.u32 %v15971_v23, %v8654_v46 }
 0x711   : > { %v14737_v47 = vsel %vm1820_vm1, %v8654_v46, %v8664_v6  ;;  %v14749_v6 = vsel %vm13194_vm13, %v9064_v57, 0  ;;  %v9061_v46 = vor.u32 %v9060_v61, %v15972_v28  ;;  %v15975_v61 = vshrl.u32 %v15964_v16, 16 }
 0x712   : > { %v14754_v45 = vsel %vm13568_vm4, 0, %v8657_v34 }
 0x713   : > { %v14763_v57 = vsel %vm6074_vm8, %v9061_v46, %v9062_v40  ;;  %v9055_v40 = vrot.slane %v8625_v52, 1 }
 0x715   : > { %9588 = vmatpush1.bf16.xpose.msra.mxu0 %v14033_v39  ;;  %v8612_v39 = vor.u32 %v8610_v20, %v8609_v7  ;;  %v9057_v7 = vrot.slane %v8632_v58, 1  ;;  %v15974_v58 = vld [vmem:[#allocation111_spill] sm:$0xff]  ;;  %v9056_v28 = vor.u32 %v9055_v40, %v15975_v61 }
 0x716   : > { %9589 = vmatprep.subr.bf16.mxu0 %v14737_v47  ;;  %9557 = vmatpush2.bf16.xpose.msra.mxu1 %v8620_v63 }
 0x717   : > { %9558 = vmatprep.subr.bf16.mxu1 %v15967_v55  ;;  %v8970_v32 = vsel %vm13568_vm4, 0, %v8612_v39  ;;  %v9059_v23 = vor.u32 %v9057_v7, %v15973_v31  ;;  %v14781_v39 = vsel %vm13194_vm13, %v15974_v58, 0  ;;  %v14787_v46 = vsel %vm6074_vm8, %v9056_v28, %v9057_v7 }
 0x718   : > { %v9052_v31 = vrot.slane %v8617_v36, 1  ;;  %v9050_v36 = vrot.slane %v8610_v20, 1 }
 0x719   : > { %v14773_v34 = vsel %vm13194_vm13, %v9059_v23, 0 }
 0x71a   : > { %v9054_v52 = vor.u32 %v9052_v31, %v8614_v24  ;;  %v9051_v7 = vor.u32 %v9050_v36, %v8607_v8 }
 0x71c   : > { %v14797_v23 = vsel %vm13194_vm13, %v9054_v52, 0  ;;  %v14804_v24 = vsel %vm6074_vm8, %v9051_v7, %v9052_v31  ;;  %v15980_v52 = vld [vmem:[#allocation49_spill] sm:$0xff] }
 0x71d   : > { %9590 = vmatpush2.bf16.xpose.msra.mxu0 %v14749_v6  ;;  %v8667_v36 = vshrl.u32 %v15980_v52, 16 }
 0x71e   : > { %9591 = vmatprep.subr.bf16.mxu0 %v14754_v45  ;;  %9559 = vmatpush2.bf16.xpose.msra.mxu1 %v8970_v32 }
 0x71f   : > { %9560 = vmatprep.subr.bf16.mxu1 %v14188_v54 }
 0x725   : > { %9592 = vmatpush2.bf16.xpose.msra.mxu0 %v14763_v57 }
 0x726   : > { %9593 = vmatprep.subr.bf16.mxu0 %v14678_v37  ;;  %9561 = vmatpush2.bf16.xpose.msra.mxu1 %v14609_v15 }
 0x727   : > { %9562 = vmatprep.subr.bf16.mxu1 %v15950_v14 }
 0x72d   : > { %9594 = vmatpush2.bf16.xpose.msra.mxu0 %v14773_v34 }
 0x72e   : > { %9595 = vmatprep.subr.bf16.mxu0 %v14695_v53  ;;  %9563 = vmatpush2.bf16.xpose.msra.mxu1 %v14629_v5 }
 0x72f   : > { %9614 = vmatprep.subr.bf16.mxu1 %v14781_v39 }
 0x735   : > { %9596 = vmatpush2.bf16.xpose.msra.mxu0 %v14787_v46  ;;  %9565 = vmatmul.mubr.bf16.vlgmr.msra.gmra.mxu1 %v15898_v62 }
 0x736   : > { %9597 = vmatprep.subr.bf16.mxu0 %v14713_v38  ;;  %9615 = vmatpush1.bf16.xpose.msra.mxu1 %v14188_v54 }
 0x737   : > { %9646 = vmatprep.mubr.bf16.mxu1 %v14324_v33  ;;  %9616 = vmatprep.subr.bf16.mxu1 %v14255_v41 }
 0x73d   : > { %9598 = vmatpush2.bf16.xpose.msra.mxu0 %v14797_v23 }
 0x73e   : > { %9599 = vmatprep.subr.bf16.mxu0 %v14725_v1  ;;  %9617 = vmatpush1.bf16.xpose.msra.mxu1 %v15950_v14 }
 0x73f   : > { %9618 = vmatprep.subr.bf16.mxu1 %v14624_v35 }
 0x745   : > { %9600 = vmatpush2.bf16.xpose.msra.mxu0 %v14804_v24 }
 0x746   : > { %9601 = vmatprep.subr.bf16.mxu0 %v8620_v63  ;;  %9619 = vmatpush1.bf16.xpose.msra.mxu1 %v14529_v10 }
 0x747   : > { %9620 = vmatprep.subr.bf16.mxu1 %v14640_v56 }
 0x74d   : > { %9602 = vmatpush2.bf16.xpose.msra.mxu0 %v14781_v39 }
 0x74e   : > { %9603 = vmatprep.subr.bf16.mxu0 %v8970_v32  ;;  %9621 = vmatpush1.bf16.xpose.msra.mxu1 %v15943_v29 }
 0x74f   : > { %9622 = vmatprep.subr.bf16.mxu1 %v14654_v2 }
 0x755   : > { %9604 = vmatpush2.bf16.xpose.msra.mxu0 %v14255_v41 }
 0x756   : > { %9655 = vmatprep.subr.bf16.mxu0 %v14710_v26  ;;  %9623 = vmatpush1.bf16.xpose.msra.mxu1 %v14558_v25 }
 0x757   : > { %9624 = vmatprep.subr.bf16.mxu1 %v14670_v27 }
 0x75c   : > { %v9443_v8 = vpop.f32.mrf.mxu0  ;;  %9606 = vmatmul.mubr.bf16.vlgmr.msra.gmra.mxu0 %v14005_v51 }
 0x75d   : > { %9656 = vmatpush1.bf16.xpose.msra.mxu0 %v8620_v63  ;;  %9687 = vmatprep.mubr.bf16.mxu0 %v14377_v9  ;;  %v15976_v63 = vld [vmem:[#allocation113_spill] sm:$0xff] }
 0x75e   : > { %v9445_v20 = vpop.f32.mrf.mxu0  ;;  %9657 = vmatprep.subr.bf16.mxu0 %v15967_v55  ;;  %9625 = vmatpush1.bf16.xpose.msra.mxu1 %v14569_v18  ;;  %v14830_v61 = vsel %vm13194_vm13, %v15976_v63, 0 }
 0x75f   : > { %9626 = vmatprep.subr.bf16.mxu1 %v14502_v43 }
 0x760   : > { %v9447_v40 = vpop.f32.mrf.mxu0 }
 0x761   : > { %v8669_v40 = vrot.slane %v8667_v36, 7 }
 0x762   : > { %v9448_v58 = vpop.f32.mrf.mxu0 }
 0x763   : > { %v9446_v58 = vadd.f32 %v9445_v20, %v14687_v11 }
 0x765   : > { %9658 = vmatpush1.bf16.xpose.msra.mxu0 %v8970_v32  ;;  %v15979_v32 = vld [vmem:[#allocation46_spill] sm:$0xff] }
 0x766   : > { %9659 = vmatprep.subr.bf16.mxu0 %v14188_v54  ;;  %9627 = vmatpush1.bf16.xpose.msra.mxu1 %v14464_v42  ;;  %v7851_v28 = vmul.f32 0.2, %v15979_v32  ;;  %vm7723_vm7 = vcmp.gt.f32.partialorder %v15979_v32, 0.0 }
 0x767   : > { %9628 = vmatprep.subr.bf16.mxu1 %v14518_v13 }
 0x76d   : > { %9660 = vmatpush1.bf16.xpose.msra.mxu0 %v14609_v15  ;;  %v15978_v15 = vld [vmem:[#allocation48_spill] sm:$0xff] }
 0x76e   : > { %9661 = vmatprep.subr.bf16.mxu0 %v15950_v14  ;;  %9629 = vmatpush1.bf16.xpose.msra.mxu1 %v15929_v12  ;;  %v15977_v12 = vld [vmem:[#allocation43_spill] sm:$0xff] }
 0x76f   : > { %9630 = vmatprep.subr.bf16.mxu1 %v14830_v61  ;;  %v7004_v14 = vadd.f32 %v15977_v12, %v15921_v48 }
 0x775   : > { %9662 = vmatpush1.bf16.xpose.msra.mxu0 %v14629_v5  ;;  %v9484_v54 = vpop.f32.mrf.mxu1  ;;  %v7197_v5 = vadd.f32 %v15978_v15, %v7004_v14 }
 0x776   : > { %9663 = vmatprep.subr.bf16.mxu0 %v14529_v10  ;;  %9631 = vmatpush2.bf16.xpose.msra.mxu1 %v14053_v19 }
 0x777   : > { %v9486_v43 = vpop.f32.mrf.mxu1  ;;  %9632 = vmatprep.subr.bf16.mxu1 %v14272_v49  ;;  %v7852_v10 = vmul.f32 0.2, %v7197_v5  ;;  %vm7724_vm6 = vcmp.gt.f32.partialorder %v7197_v5, 0.0 }
 0x779   : > { %v9488_v42 = vpop.f32.mrf.mxu1 }
 0x77b   : > { %v9489_v13 = vpop.f32.mrf.mxu1 }
 0x77c   : > { %v9487_v13 = vadd.f32 %v9486_v43, %v9446_v58 }
 0x77d   : > { %9664 = vmatpush1.bf16.xpose.msra.mxu0 %v14562_v0  ;;  %v7979_v0 = vsel %vm7723_vm7, %v15979_v32, %v7851_v28 }
 0x77e   : > { %9665 = vmatprep.subr.bf16.mxu0 %v15943_v29  ;;  %9633 = vmatpush2.bf16.xpose.msra.mxu1 %v14028_v22  ;;  %v7980_v29 = vsel %vm7724_vm6, %v7197_v5, %v7852_v10 }
 0x77f   : > { %9634 = vmatprep.subr.bf16.mxu1 %v14749_v6  ;;  %v14851_v31 = vpack.i.bf16 %v7980_v29, %v7979_v0 }
 0x781   : > { %v8677_v7 = vshll.u32 %v14851_v31, 16 }
 0x783   : > { %v9072_v15 = vrot.slane %v8677_v7, 1 }
 0x785   : > { %9666 = vmatpush1.bf16.xpose.msra.mxu0 %v14575_v60 }
 0x786   : > { %9667 = vmatprep.subr.bf16.mxu0 %v14558_v25  ;;  %9635 = vmatpush2.bf16.xpose.msra.mxu1 %v14645_v44  ;;  %v8674_v25 = vshrl.u32 %v14851_v31, 16 }
 0x787   : > { %9636 = vmatprep.subr.bf16.mxu1 %v14763_v57 }
 0x788   : > { %v8676_v60 = vrot.slane %v8674_v25, 7  ;;  %v9074_v5 = vor.u32 %v9072_v15, %v8674_v25  ;;  %v15981_v25 = vld [vmem:[#allocation116_spill] sm:$0xff] }
 0x78d   : > { %9668 = vmatpush1.bf16.xpose.msra.mxu0 %v14588_v59  ;;  %v8679_v59 = vor.u32 %v8677_v7, %v8676_v60  ;;  %v15983_v7 = vld [vmem:[#allocation47_spill] sm:$0xff] }
 0x78e   : > { %9669 = vmatprep.subr.bf16.mxu0 %v14569_v18  ;;  %9637 = vmatpush2.bf16.xpose.msra.mxu1 %v15959_v3  ;;  %v9444_v18 = vadd.f32 %v9443_v8, %v14680_v17  ;;  %v8670_v17 = vshll.u32 %v15980_v52, 16 }
 0x78f   : > { %9638 = vmatprep.subr.bf16.mxu1 %v14773_v34 }
 0x790   : > { %v9485_v63 = vadd.f32 %v9484_v54, %v9444_v18  ;;  %v8672_v11 = vor.u32 %v8670_v17, %v8669_v40  ;;  %v9070_v29 = vrot.slane %v8670_v17, 1  ;;  %v15985_v18 = vld [vmem:[#allocation50_spill] sm:$0xff]  ;;  %v15990_v17 = vld [vmem:[#allocation99_spill] sm:$0xff] }
 0x791   : > { %vm7731_vm12 = vcmp.gt.f32.partialorder %v15985_v18, 0.0 }
 0x792   : > { %v14876_v43 = vsel %vm13568_vm4, 0, %v8672_v11  ;;  %v9071_v0 = vor.u32 %v9070_v29, %v8667_v36 }
 0x794   : > { %v14902_v60 = vsel %vm6074_vm8, %v9071_v0, %v9072_v15  ;;  %v8685_v0 = vshll.u32 %v15990_v17, 16 }
 0x795   : > { %9670 = vmatpush1.bf16.xpose.msra.mxu0 %v14599_v4  ;;  %v14867_v4 = vsel %vm1820_vm1, %v8669_v40, %v8679_v59  ;;  %v7014_v59 = vadd.f32 %v15983_v7, %v15921_v48  ;;  %v7859_v40 = vmul.f32 0.2, %v15985_v18 }
 0x796   : > { %9671 = vmatprep.subr.bf16.mxu0 %v14851_v31  ;;  %9639 = vmatpush2.bf16.xpose.msra.mxu1 %v15962_v21 }
 0x797   : > { %9640 = vmatprep.subr.bf16.mxu1 %v14787_v46 }
 0x79c   : > { %v9525_v42 = vpop.f32.mrf.mxu0 }
 0x79d   : > { %v9526_v12 = vadd.f32 %v9525_v42, %v9485_v63  ;;  %9672 = vmatpush2.bf16.xpose.msra.mxu0 %v14867_v4 }
 0x79e   : > { %v9527_v14 = vpop.f32.mrf.mxu0  ;;  %9673 = vmatprep.subr.bf16.mxu0 %v15980_v52  ;;  %9641 = vmatpush2.bf16.xpose.msra.mxu1 %v15964_v16 }
 0x79f   : > { %v9528_v8 = vadd.f32 %v9527_v14, %v9487_v13  ;;  %11958 = vtanh.f32 %v9526_v12  ;;  %9642 = vmatprep.subr.bf16.mxu1 %v14797_v23  ;;  %v15989_v13 = vld [vmem:[#allocation100_spill] sm:$0xff] }
 0x7a0   : > { %v9529_v20 = vpop.f32.mrf.mxu0  ;;  %v8689_v12 = vshrl.u32 %v15989_v13, 16  ;;  %v8692_v11 = vshll.u32 %v15989_v13, 16 }
 0x7a1   : > { %11960 = vtanh.f32 %v9528_v8  ;;  %v8682_v8 = vshrl.u32 %v15990_v17, 16  ;;  %v15991_v20 = vld [vmem:[#allocation102_spill] sm:$0xff] }
 0x7a2   : > { %v9530_v54 = vpop.f32.mrf.mxu0  ;;  %v8691_v14 = vrot.slane %v8689_v12, 7 }
 0x7a3   : > { %v15992_v54 = vshrl.u32 %v15991_v20, 16 }
 0x7a5   : > { %9674 = vmatpush2.bf16.xpose.msra.mxu0 %v14876_v43  ;;  %v8721_v15 = vrot.slane %v15992_v54, 7 }
 0x7a6   : > { %9675 = vmatprep.subr.bf16.mxu0 %v14053_v19  ;;  %9643 = vmatpush2.bf16.xpose.msra.mxu1 %v14710_v26  ;;  %v14893_v26 = vsel %vm13194_vm13, %v9074_v5, 0 }
 0x7a7   : > { %9644 = vmatprep.subr.bf16.mxu1 %v14804_v24 }
 0x7ac   : > { %v11959_v10 = vpop.eup %11958 }
 0x7ad   : > { %9676 = vmatpush2.bf16.xpose.msra.mxu0 %v14737_v47 }
 0x7ae   : > { %v11961_v32 = vpop.eup %11960  ;;  %9677 = vmatprep.subr.bf16.mxu0 %v14028_v22  ;;  %9645 = vmatpush2.bf16.xpose.msra.mxu1 %v15967_v55  ;;  %v15982_v55 = vld [vmem:[#allocation20_spill] sm:$0xff] }
 0x7af   : > { %v10163_v28 = vcombine.low %v11959_v10, %v11961_v32  ;;  %11047 = vmatprep.subr.bf16.mxu1 %v14893_v26  ;;  %v15993_v10 = vshll.u32 %v15991_v20, 16 }
 0x7b1   : > { %10171 = vst [vmem:[%s14887_s26] sm:$0x77] %v10163_v28  ;;  %v8724_v32 = vor.u32 %v15993_v10, %v8721_v15  ;;  %v15994_v28 = vld [vmem:[#allocation101_spill] sm:$0xff] }
 0x7b2   : > { %v15995_v29 = vshrl.u32 %v15994_v28, 16 }
 0x7b5   : > { %9678 = vmatpush2.bf16.xpose.msra.mxu0 %v14754_v45  ;;  %9647 = vmatmul.mubr.bf16.vlgmr.msra.gmra.mxu1 %v15981_v25 }
 0x7b6   : > { %9679 = vmatprep.subr.bf16.mxu0 %v14645_v44  ;;  %11048 = vmatpush3.bf16.xpose.msra.mxu1 %v14797_v23  ;;  %v15984_v44 = vld [vmem:[#allocation52_spill] sm:$0xff] }
 0x7b7   : > { %11063 = vmatprep.mubr.bf16.mxu1 %v15982_v55  ;;  %11049 = vmatprep.subr.bf16.mxu1 %v14902_v60  ;;  %v7207_v36 = vadd.f32 %v15984_v44, %v7014_v59 }
 0x7b9   : > { %v7860_v23 = vmul.f32 0.2, %v7207_v36  ;;  %vm7732_vm11 = vcmp.gt.f32.partialorder %v7207_v36, 0.0 }
 0x7bd   : > { %9680 = vmatpush2.bf16.xpose.msra.mxu0 %v14678_v37  ;;  %v7987_v37 = vsel %vm7731_vm12, %v15985_v18, %v7859_v40 }
 0x7be   : > { %9681 = vmatprep.subr.bf16.mxu0 %v15959_v3  ;;  %11050 = vmatpush3.bf16.xpose.msra.mxu1 %v14804_v24  ;;  %v7988_v3 = vsel %vm7732_vm11, %v7207_v36, %v7860_v23  ;;  %v15996_v23 = vshll.u32 %v15994_v28, 16 }
 0x7bf   : > { %11051 = vmatprep.subr.bf16.mxu1 %v14830_v61  ;;  %v14920_v24 = vpack.i.bf16 %v7988_v3, %v7987_v37  ;;  %v15997_v37 = vld [vmem:[#allocation98_spill] sm:$0xff] }
 0x7c1   : > { %v8707_v63 = vshll.u32 %v14920_v24, 16 }
 0x7c3   : > { %v9082_v7 = vrot.slane %v8707_v63, 1 }
 0x7c5   : > { %9682 = vmatpush2.bf16.xpose.msra.mxu0 %v14695_v53 }
 0x7c6   : > { %9683 = vmatprep.subr.bf16.mxu0 %v15962_v21  ;;  %11052 = vmatpush3.bf16.xpose.msra.mxu1 %v14781_v39  ;;  %v8704_v21 = vshrl.u32 %v14920_v24, 16  ;;  %v15986_v39 = vld [vmem:[#allocation53_spill] sm:$0xff] }
 0x7c7   : > { %11053 = vmatprep.subr.bf16.mxu1 %v14272_v49  ;;  %v8697_v58 = vshrl.u32 %v15986_v39, 16 }
 0x7c8   : > { %v8706_v53 = vrot.slane %v8704_v21, 7  ;;  %v9084_v44 = vor.u32 %v9082_v7, %v8704_v21 }
 0x7cd   : > { %9684 = vmatpush2.bf16.xpose.msra.mxu0 %v14713_v38  ;;  %v8709_v38 = vor.u32 %v8707_v63, %v8706_v53 }
 0x7ce   : > { %9685 = vmatprep.subr.bf16.mxu0 %v15964_v16  ;;  %11054 = vmatpush3.bf16.xpose.msra.mxu1 %v14255_v41  ;;  %v8699_v16 = vrot.slane %v8697_v58, 7  ;;  %v15987_v41 = vld [vmem:[#allocation23_spill] sm:$0xff] }
 0x7cf   : > { %11055 = vmatprep.subr.bf16.mxu1 %v14749_v6  ;;  %v8700_v6 = vshll.u32 %v15986_v39, 16 }
 0x7d0   : > { %v14935_v42 = vsel %vm1820_vm1, %v8699_v16, %v8709_v38 }
 0x7d1   : > { %v9080_v21 = vrot.slane %v8700_v6, 1 }
 0x7d5   : > { %9686 = vmatpush2.bf16.xpose.msra.mxu0 %v14725_v1  ;;  %v15988_v1 = vld [vmem:[#allocation74_spill] sm:$0xff] }
 0x7d6   : > { %9737 = vmatprep.subr.bf16.mxu0 %v14920_v24  ;;  %11056 = vmatpush3.bf16.xpose.msra.mxu1 %v14624_v35  ;;  %v8702_v35 = vor.u32 %v8700_v6, %v8699_v16  ;;  %v15998_v16 = vld [vmem:[#allocation55_spill] sm:$0xff]  ;;  %v15999_v6 = vld [vmem:[#allocation60_spill] sm:$0xff] }
 0x7d7   : > { %11057 = vmatprep.subr.bf16.mxu1 %v14763_v57 }
 0x7d8   : > { %v14946_v57 = vsel %vm13568_vm4, 0, %v8702_v35  ;;  %v7034_v35 = vadd.f32 %v15998_v16, %v15921_v48 }
 0x7da   : > { %v7227_v54 = vadd.f32 %v15999_v6, %v7034_v35 }
 0x7dc   : > { %9688 = vmatmul.mubr.bf16.vlgmr.msra.gmra.mxu0 %v15987_v41  ;;  %vm7748_vm14 = vcmp.gt.f32.partialorder %v7227_v54, 0.0 }
 0x7dd   : > { %9738 = vmatpush1.bf16.xpose.msra.mxu0 %v14935_v42  ;;  %9769 = vmatprep.mubr.bf16.mxu0 %v15988_v1 }
 0x7de   : > { %9739 = vmatprep.subr.bf16.mxu0 %v15986_v39  ;;  %11058 = vmatpush3.bf16.xpose.msra.mxu1 %v14640_v56  ;;  %v8694_v56 = vor.u32 %v8692_v11, %v8691_v14 }
 0x7df   : > { %11059 = vmatprep.subr.bf16.mxu1 %v14773_v34  ;;  %v8684_v34 = vrot.slane %v8682_v8, 7 }
 0x7e1   : > { %v14957_v5 = vsel %vm1820_vm1, %v8684_v34, %v8694_v56  ;;  %v8687_v59 = vor.u32 %v8685_v0, %v8684_v34  ;;  %v9077_v56 = vrot.slane %v8692_v11, 1  ;;  %v7876_v34 = vmul.f32 0.2, %v7227_v54 }
 0x7e3   : > { %v14973_v36 = vsel %vm13568_vm4, 0, %v8687_v59  ;;  %v9079_v15 = vor.u32 %v9077_v56, %v8689_v12  ;;  %v8004_v11 = vsel %vm7748_vm14, %v7227_v54, %v7876_v34 }
 0x7e5   : > { %9740 = vmatpush1.bf16.xpose.msra.mxu0 %v14946_v57 }
 0x7e6   : > { %9741 = vmatprep.subr.bf16.mxu0 %v15989_v13  ;;  %11060 = vmatpush3.bf16.xpose.msra.mxu1 %v14654_v2  ;;  %v8714_v2 = vrot.slane %v15995_v29, 7  ;;  %v9075_v29 = vrot.slane %v8685_v0, 1 }
 0x7e7   : > { %11061 = vmatprep.subr.bf16.mxu1 %v14787_v46 }
 0x7e8   : > { %v14968_v46 = vsel %vm1820_vm1, %v8714_v2, %v8724_v32  ;;  %v8717_v18 = vor.u32 %v15996_v23, %v8714_v2  ;;  %v15006_v32 = vsel %vm13194_vm13, %v9079_v15, 0  ;;  %v16004_v15 = vld [vmem:[#allocation105_spill] sm:$0xff] }
 0x7e9   : > { %v8749_v34 = vshrl.u32 %v16004_v15, 16 }
 0x7ea   : > { %v14987_v3 = vsel %vm13568_vm4, 0, %v8717_v18  ;;  %v16002_v18 = vld [vmem:[#allocation24_spill] sm:$0xff] }
 0x7ed   : > { %9742 = vmatpush1.bf16.xpose.msra.mxu0 %v14957_v5 }
 0x7ee   : > { %9743 = vmatprep.subr.bf16.mxu0 %v15990_v17  ;;  %11062 = vmatpush3.bf16.xpose.msra.mxu1 %v14670_v27  ;;  %v14982_v27 = vsel %vm13194_vm13, %v9084_v44, 0  ;;  %v16001_v44 = vld [vmem:[#allocation61_spill] sm:$0xff] }
 0x7ef   : > { %9778 = vmatprep.subr.bf16.mxu1 %v14968_v46  ;;  %v15728_v23 = vshrl.u32 %v16001_v44, 16  ;;  %v8760_v35 = vshll.u32 %v16001_v44, 16 }
 0x7f5   : > { %9744 = vmatpush1.bf16.xpose.msra.mxu0 %v14973_v36  ;;  %v9566_v40 = vpop.f32.mrf.mxu1  ;;  %11064 = vmatmul.mubr.bf16.vlgmr.msra.gmra.mxu1 %v15982_v55  ;;  %v9081_v55 = vor.u32 %v9080_v21, %v8697_v58  ;;  %v16000_v58 = vld [vmem:[#allocation58_spill] sm:$0xff] }
 0x7f6   : > { %9745 = vmatprep.subr.bf16.mxu0 %v14851_v31  ;;  %9779 = vmatpush1.bf16.xpose.msra.mxu1 %v14982_v27  ;;  %v7875_v10 = vmul.f32 0.2, %v16000_v58  ;;  %vm7747_vm0 = vcmp.gt.f32.partialorder %v16000_v58, 0.0  ;;  %v9567_v21 = vadd.f32 %v9566_v40, %v16002_v18 }
 0x7f7   : > { %9810 = vmatprep.mubr.bf16.mxu1 %v15997_v37  ;;  %v9568_v53 = vpop.f32.mrf.mxu1  ;;  %9780 = vmatprep.subr.bf16.mxu1 %v14987_v3  ;;  %v14996_v14 = vsel %vm6074_vm8, %v9081_v55, %v9082_v7  ;;  %v16015_v37 = vshrl.u32 %v16001_v44, 16 }
 0x7f8   : > { %v8003_v12 = vsel %vm7747_vm0, %v16000_v58, %v7875_v10  ;;  %v16005_v58 = vld [vmem:[#allocation56_spill] sm:$0xff] }
 0x7f9   : > { %v9570_v63 = vpop.f32.mrf.mxu1  ;;  %v15012_v2 = vpack.i.bf16 %v8004_v11, %v8003_v12  ;;  %v8751_v12 = vrot.slane %v8749_v34, 7 }
 0x7fb   : > { %v9571_v38 = vpop.f32.mrf.mxu1  ;;  %v8764_v59 = vshrl.u32 %v15012_v2, 16 }
 0x7fd   : > { %9746 = vmatpush1.bf16.xpose.msra.mxu0 %v14867_v4  ;;  %v8766_v0 = vrot.slane %v8764_v59, 7 }
 0x7fe   : > { %9747 = vmatprep.subr.bf16.mxu0 %v15980_v52  ;;  %9781 = vmatpush1.bf16.xpose.msra.mxu1 %v14996_v14 }
 0x7ff   : > { %9782 = vmatprep.subr.bf16.mxu1 %v14935_v42 }
 0x805   : > { %9748 = vmatpush1.bf16.xpose.msra.mxu0 %v14876_v43 }
 0x806   : > { %9749 = vmatprep.subr.bf16.mxu0 %v14053_v19  ;;  %9783 = vmatpush1.bf16.xpose.msra.mxu1 %v15006_v32  ;;  %v9076_v19 = vor.u32 %v9075_v29, %v8682_v8  ;;  %v8759_v8 = vrot.slane %v15728_v23, 7 }
 0x807   : > { %9784 = vmatprep.subr.bf16.mxu1 %v14946_v57 }
 0x808   : > { %v15017_v7 = vsel %vm6074_vm8, %v9076_v19, %v9077_v56  ;;  %v16003_v56 = vld [vmem:[#allocation51_spill] sm:$0xff]  ;;  %v8762_v40 = vor.u32 %v8760_v35, %v8759_v8 }
 0x809   : > { %v7024_v6 = vadd.f32 %v16003_v56, %v15921_v48 }
 0x80a   : > { %v15050_v29 = vsel %vm13568_vm4, 0, %v8762_v40 }
 0x80b   : > { %v7217_v10 = vadd.f32 %v16005_v58, %v7024_v6 }
 0x80d   : > { %9750 = vmatpush1.bf16.xpose.msra.mxu0 %v14737_v47  ;;  %v8767_v47 = vshll.u32 %v15012_v2, 16  ;;  %v7868_v19 = vmul.f32 0.2, %v7217_v10  ;;  %vm7740_vm3 = vcmp.gt.f32.partialorder %v7217_v10, 0.0 }
 0x80e   : > { %9751 = vmatprep.subr.bf16.mxu0 %v14028_v22  ;;  %9785 = vmatpush1.bf16.xpose.msra.mxu1 %v15017_v7 }
 0x80f   : > { %9786 = vmatprep.subr.bf16.mxu1 %v14957_v5  ;;  %v8769_v22 = vor.u32 %v8767_v47, %v8766_v0  ;;  %v16006_v0 = vld [vmem:[#allocation104_spill] sm:$0xff]  ;;  %v7996_v6 = vsel %vm7740_vm3, %v7217_v10, %v7868_v19  ;;  %v9102_v19 = vrot.slane %v8767_v47, 1 }
 0x811   : > { %v15032_v38 = vsel %vm1820_vm1, %v8759_v8, %v8769_v22  ;;  %v8742_v22 = vshrl.u32 %v16006_v0, 16  ;;  %v8752_v8 = vshll.u32 %v16004_v15, 16 }
 0x813   : > { %v8744_v40 = vrot.slane %v8742_v22, 7 }
 0x815   : > { %9752 = vmatpush1.bf16.xpose.msra.mxu0 %v14754_v45  ;;  %v9569_v45 = vadd.f32 %v9568_v53, %v16002_v18 }
 0x816   : > { %9753 = vmatprep.subr.bf16.mxu0 %v15012_v2  ;;  %9787 = vmatpush1.bf16.xpose.msra.mxu1 %v14893_v26 }
 0x817   : > { %9788 = vmatprep.subr.bf16.mxu1 %v14973_v36 }
 0x81c   : > { %v9607_v63 = vpop.f32.mrf.mxu0 }
 0x81d   : > { %v15035_v55 = vadd.f32 %v9607_v63, %v9567_v21  ;;  %9754 = vmatpush2.bf16.xpose.msra.mxu0 %v15032_v38  ;;  %v16007_v21 = vld [vmem:[#allocation54_spill] sm:$0xff] }
 0x81e   : > { %v9609_v16 = vpop.f32.mrf.mxu0  ;;  %9755 = vmatprep.subr.bf16.mxu0 %v16001_v44  ;;  %9789 = vmatpush1.bf16.xpose.msra.mxu1 %v14902_v60  ;;  %v7867_v63 = vmul.f32 0.2, %v16007_v21  ;;  %vm7739_vm15 = vcmp.gt.f32.partialorder %v16007_v21, 0.0 }
 0x81f   : > { %v15042_v54 = vadd.f32 %v9609_v16, %v9569_v45  ;;  %9790 = vmatprep.subr.bf16.mxu1 %v14867_v4  ;;  %v8754_v4 = vor.u32 %v8752_v8, %v8751_v12  ;;  %v16008_v45 = vld [vmem:[#allocation108_spill] sm:$0xff] }
 0x820   : > { %v9611_v53 = vpop.f32.mrf.mxu0  ;;  %v16009_v16 = vshrl.u32 %v16008_v45, 16  ;;  %v16010_v23 = vshll.u32 %v16008_v45, 16 }
 0x821   : > { %v7995_v53 = vsel %vm7739_vm15, %v16007_v21, %v7867_v63 }
 0x822   : > { %v9612_v11 = vpop.f32.mrf.mxu0  ;;  %v8781_v56 = vrot.slane %v16009_v16, 7  ;;  %v15063_v58 = vpack.i.bf16 %v7996_v6, %v7995_v53 }
 0x823   : > { %v15066_v11 = vsel %vm1820_vm1, %v8744_v40, %v8754_v4 }
 0x824   : > { %v8784_v18 = vor.u32 %v16010_v23, %v8781_v56  ;;  %v8734_v4 = vshrl.u32 %v15063_v58, 16  ;;  %v9104_v23 = vor.u32 %v9102_v19, %v8764_v59 }
 0x825   : > { %9756 = vmatpush2.bf16.xpose.msra.mxu0 %v15050_v29 }
 0x826   : > { %9757 = vmatprep.subr.bf16.mxu0 %v16004_v15  ;;  %9791 = vmatpush1.bf16.xpose.msra.mxu1 %v14830_v61  ;;  %v16011_v61 = vld [vmem:[#allocation106_spill] sm:$0xff]  ;;  %v8736_v53 = vrot.slane %v8734_v4, 7 }
 0x827   : > { %9792 = vmatprep.subr.bf16.mxu1 %v14876_v43  ;;  %v16012_v12 = vshrl.u32 %v16011_v61, 16  ;;  %v8745_v43 = vshll.u32 %v16006_v0, 16  ;;  %v16013_v56 = vshll.u32 %v16011_v61, 16 }
 0x829   : > { %v8774_v10 = vrot.slane %v16012_v12, 7  ;;  %v8747_v63 = vor.u32 %v8745_v43, %v8744_v40  ;;  %v15093_v40 = vsel %vm13194_vm13, %v9104_v23, 0 }
 0x82b   : > { %v15077_v21 = vsel %vm1820_vm1, %v8774_v10, %v8784_v18  ;;  %v15083_v16 = vsel %vm13568_vm4, 0, %v8747_v63  ;;  %v8777_v6 = vor.u32 %v16013_v56, %v8774_v10  ;;  %v8737_v18 = vshll.u32 %v15063_v58, 16 }
 0x82c   : > { %v9100_v10 = vrot.slane %v8760_v35, 1 }
 0x82d   : > { %9758 = vmatpush2.bf16.xpose.msra.mxu0 %v15066_v11  ;;  %v15098_v59 = vsel %vm13568_vm4, 0, %v8777_v6  ;;  %v8739_v12 = vor.u32 %v8737_v18, %v8736_v53  ;;  %v9097_v6 = vrot.slane %v8752_v8, 1 }
 0x82e   : > { %9759 = vmatprep.subr.bf16.mxu0 %v16006_v0  ;;  %9793 = vmatpush1.bf16.xpose.msra.mxu1 %v14272_v49  ;;  %v16014_v49 = vld [vmem:[#allocation57_spill] sm:$0xff]  ;;  %v9101_v1 = vor.u32 %v9100_v10, %v16015_v37 }
 0x82f   : > { %9794 = vmatprep.subr.bf16.mxu1 %v15077_v21  ;;  %v8727_v47 = vshrl.u32 %v16014_v49, 16  ;;  %v8730_v23 = vshll.u32 %v16014_v49, 16  ;;  %v9099_v53 = vor.u32 %v9097_v6, %v8749_v34 }
 0x830   : > { %v15107_v41 = vsel %vm6074_vm8, %v9101_v1, %v9102_v19  ;;  %v9095_v1 = vrot.slane %v8745_v43, 1  ;;  %v9092_v19 = vrot.slane %v8737_v18, 1 }
 0x831   : > { %v8729_v63 = vrot.slane %v8727_v47, 7  ;;  %v15116_v37 = vsel %vm13194_vm13, %v9099_v53, 0  ;;  %v9090_v18 = vrot.slane %v8730_v23, 1 }
 0x832   : > { %v9096_v8 = vor.u32 %v9095_v1, %v8742_v22  ;;  %v9094_v10 = vor.u32 %v9092_v19, %v8734_v4 }
 0x833   : > { %v8740_v56 = vsel %vm1820_vm1, %v8729_v63, %v8739_v12  ;;  %v8732_v35 = vor.u32 %v8730_v23, %v8729_v63  ;;  %v16016_v63 = vld [vmem:[#allocation73_spill] sm:$0xff]  ;;  %v9091_v4 = vor.u32 %v9090_v18, %v8727_v47 }
 0x834   : > { %v15123_v34 = vsel %vm6074_vm8, %v9096_v8, %v9097_v6  ;;  %v15131_v43 = vsel %vm13194_vm13, %v16016_v63, 0  ;;  %v15136_v22 = vsel %vm13194_vm13, %v9094_v10, 0  ;;  %v16017_v6 = vld [vmem:[#allocation84_spill] sm:$0xff]  ;;  %v16023_v18 = vld [vmem:[#allocation65_spill] sm:$0xff] }
 0x835   : > { %9760 = vmatpush2.bf16.xpose.msra.mxu0 %v15083_v16  ;;  %v8978_v12 = vsel %vm13568_vm4, 0, %v8732_v35  ;;  %v15145_v35 = vsel %vm6074_vm8, %v9091_v4, %v9092_v19  ;;  %v8787_v4 = vshrl.u32 %v16023_v18, 16 }
 0x836   : > { %9761 = vmatprep.subr.bf16.mxu0 %v15063_v58  ;;  %9795 = vmatpush2.bf16.xpose.msra.mxu1 %v15093_v40 }
 0x837   : > { %9796 = vmatprep.subr.bf16.mxu1 %v15098_v59 }
 0x83d   : > { %9762 = vmatpush2.bf16.xpose.msra.mxu0 %v8740_v56 }
 0x83e   : > { %9763 = vmatprep.subr.bf16.mxu0 %v16014_v49  ;;  %9797 = vmatpush2.bf16.xpose.msra.mxu1 %v15107_v41 }
 0x83f   : > { %9798 = vmatprep.subr.bf16.mxu1 %v15032_v38 }
 0x845   : > { %9764 = vmatpush2.bf16.xpose.msra.mxu0 %v8978_v12 }
 0x846   : > { %9765 = vmatprep.subr.bf16.mxu0 %v15991_v20  ;;  %9799 = vmatpush2.bf16.xpose.msra.mxu1 %v15116_v37 }
 0x847   : > { %9800 = vmatprep.subr.bf16.mxu1 %v15050_v29 }
 0x84d   : > { %9766 = vmatpush2.bf16.xpose.msra.mxu0 %v14968_v46 }
 0x84e   : > { %9767 = vmatprep.subr.bf16.mxu0 %v15994_v28  ;;  %9801 = vmatpush2.bf16.xpose.msra.mxu1 %v15123_v34 }
 0x84f   : > { %9802 = vmatprep.subr.bf16.mxu1 %v15066_v11 }
 0x855   : > { %9768 = vmatpush2.bf16.xpose.msra.mxu0 %v14987_v3 }
 0x856   : > { %9819 = vmatprep.subr.bf16.mxu0 %v15131_v43  ;;  %9803 = vmatpush2.bf16.xpose.msra.mxu1 %v15136_v22 }
 0x857   : > { %9804 = vmatprep.subr.bf16.mxu1 %v15083_v16 }
 0x85c   : > { %9770 = vmatmul.mubr.bf16.vlgmr.msra.gmra.mxu0 %v15898_v62 }
 0x85d   : > { %9820 = vmatpush1.bf16.xpose.msra.mxu0 %v15991_v20  ;;  %9851 = vmatprep.mubr.bf16.mxu0 %v14324_v33 }
 0x85e   : > { %9821 = vmatprep.subr.bf16.mxu0 %v16017_v6  ;;  %9805 = vmatpush2.bf16.xpose.msra.mxu1 %v15145_v35 }
 0x85f   : > { %9806 = vmatprep.subr.bf16.mxu1 %v8740_v56 }
 0x865   : > { %9822 = vmatpush1.bf16.xpose.msra.mxu0 %v15994_v28 }
 0x866   : > { %9823 = vmatprep.subr.bf16.mxu0 %v14982_v27  ;;  %9807 = vmatpush2.bf16.xpose.msra.mxu1 %v15131_v43 }
 0x867   : > { %9808 = vmatprep.subr.bf16.mxu1 %v8978_v12 }
 0x86d   : > { %9824 = vmatpush1.bf16.xpose.msra.mxu0 %v14920_v24 }
 0x86e   : > { %9825 = vmatprep.subr.bf16.mxu0 %v14996_v14  ;;  %9809 = vmatpush2.bf16.xpose.msra.mxu1 %v16017_v6 }
 0x86f   : > { %9860 = vmatprep.subr.bf16.mxu1 %v15063_v58 }
 0x875   : > { %9826 = vmatpush1.bf16.xpose.msra.mxu0 %v15986_v39  ;;  %v9648_v47 = vpop.f32.mrf.mxu1  ;;  %9811 = vmatmul.mubr.bf16.vlgmr.msra.gmra.mxu1 %v14005_v51 }
 0x876   : > { %9827 = vmatprep.subr.bf16.mxu0 %v15006_v32  ;;  %9861 = vmatpush1.bf16.xpose.msra.mxu1 %v8740_v56  ;;  %v16018_v56 = vld [vmem:[#allocation27_spill] sm:$0xff] }
 0x877   : > { %9892 = vmatprep.mubr.bf16.mxu1 %v14377_v9  ;;  %v9650_v23 = vpop.f32.mrf.mxu1  ;;  %9862 = vmatprep.subr.bf16.mxu1 %v16014_v49 }
 0x879   : > { %v9652_v53 = vpop.f32.mrf.mxu1 }
 0x87b   : > { %v9653_v1 = vpop.f32.mrf.mxu1 }
 0x87d   : > { %9828 = vmatpush1.bf16.xpose.msra.mxu0 %v15989_v13 }
 0x87e   : > { %9829 = vmatprep.subr.bf16.mxu0 %v15017_v7  ;;  %9863 = vmatpush1.bf16.xpose.msra.mxu1 %v8978_v12 }
 0x87f   : > { %9864 = vmatprep.subr.bf16.mxu1 %v15991_v20  ;;  %v15175_v20 = vsel %vm13194_vm13, %v16018_v56, 0  ;;  %v9651_v56 = vadd.f32 %v9650_v23, %v15042_v54 }
 0x885   : > { %9830 = vmatpush1.bf16.xpose.msra.mxu0 %v15990_v17 }
 0x886   : > { %9831 = vmatprep.subr.bf16.mxu0 %v14893_v26  ;;  %9865 = vmatpush1.bf16.xpose.msra.mxu1 %v14968_v46 }
 0x887   : > { %9866 = vmatprep.subr.bf16.mxu1 %v15994_v28 }
 0x88d   : > { %9832 = vmatpush1.bf16.xpose.msra.mxu0 %v14851_v31  ;;  %v16019_v31 = vld [vmem:[#allocation59_spill] sm:$0xff] }
 0x88e   : > { %9833 = vmatprep.subr.bf16.mxu0 %v14902_v60  ;;  %9867 = vmatpush1.bf16.xpose.msra.mxu1 %v14987_v3  ;;  %v7044_v26 = vadd.f32 %v16019_v31, %v15921_v48  ;;  %v16020_v60 = vld [vmem:[#allocation64_spill] sm:$0xff] }
 0x88f   : > { %9868 = vmatprep.subr.bf16.mxu1 %v14920_v24  ;;  %v16021_v24 = vld [vmem:[#allocation22_spill] sm:$0xff] }
 0x890   : > { %v7237_v28 = vadd.f32 %v16020_v60, %v7044_v26 }
 0x892   : > { %v7884_v3 = vmul.f32 0.2, %v7237_v28  ;;  %vm7756_vm5 = vcmp.gt.f32.partialorder %v7237_v28, 0.0 }
 0x894   : > { %v8012_v19 = vsel %vm7756_vm5, %v7237_v28, %v7884_v3 }
 0x895   : > { %9834 = vmatpush1.bf16.xpose.msra.mxu0 %v15980_v52 }
 0x896   : > { %9835 = vmatprep.subr.bf16.mxu0 %v15175_v20  ;;  %9869 = vmatpush1.bf16.xpose.msra.mxu1 %v14935_v42  ;;  %v16022_v42 = vld [vmem:[#allocation62_spill] sm:$0xff] }
 0x897   : > { %9870 = vmatprep.subr.bf16.mxu1 %v15986_v39  ;;  %v7883_v39 = vmul.f32 0.2, %v16022_v42  ;;  %vm7755_vm2 = vcmp.gt.f32.partialorder %v16022_v42, 0.0 }
 0x899   : > { %v8011_v10 = vsel %vm7755_vm2, %v16022_v42, %v7883_v39 }
 0x89a   : > { %v15192_v63 = vpack.i.bf16 %v8012_v19, %v8011_v10 }
 0x89c   : > { %v9689_v46 = vpop.f32.mrf.mxu0  ;;  %v8797_v53 = vshll.u32 %v15192_v63, 16 }
 0x89d   : > { %9836 = vmatpush2.bf16.xpose.msra.mxu0 %v16008_v45 }
 0x89e   : > { %v9691_v52 = vpop.f32.mrf.mxu0  ;;  %9837 = vmatprep.subr.bf16.mxu0 %v16021_v24  ;;  %9871 = vmatpush1.bf16.xpose.msra.mxu1 %v14946_v57 }
 0x89f   : > { %9872 = vmatprep.subr.bf16.mxu1 %v15989_v13  ;;  %v8794_v13 = vshrl.u32 %v15192_v63, 16  ;;  %v9692_v60 = vadd.f32 %v9691_v52, %v9651_v56 }
 0x8a0   : > { %v9693_v12 = vpop.f32.mrf.mxu0 }
 0x8a1   : > { %v8796_v57 = vrot.slane %v8794_v13, 7 }
 0x8a2   : > { %v9694_v8 = vpop.f32.mrf.mxu0 }
 0x8a3   : > { %v8799_v1 = vor.u32 %v8797_v53, %v8796_v57  ;;  %v9112_v8 = vrot.slane %v8797_v53, 1 }
 0x8a5   : > { %9838 = vmatpush2.bf16.xpose.msra.mxu0 %v16011_v61  ;;  %v9114_v19 = vor.u32 %v9112_v8, %v8794_v13  ;;  %v15249_v13 = vld.sshfl [vmem:[%s15580_s9 + $0x10] sm:$0x3 pattern:$0x76325410] }
 0x8a6   : > { %9839 = vmatprep.subr.bf16.mxu0 %v15093_v40  ;;  %9873 = vmatpush1.bf16.xpose.msra.mxu1 %v14957_v5  ;;  %v9649_v5 = vadd.f32 %v9648_v47, %v15035_v55  ;;  %v8790_v55 = vshll.u32 %v16023_v18, 16  ;;  %16026 = vst [vmem:[#allocation19_spill] sm:$0xff] %v15249_v13 }
 0x8a7   : > { %9874 = vmatprep.subr.bf16.mxu1 %v15990_v17  ;;  %v8789_v17 = vrot.slane %v8787_v4, 7  ;;  %v15233_v10 = vsel %vm13194_vm13, %v9114_v19, 0 }
 0x8a8   : > { %v9690_v31 = vadd.f32 %v9689_v46, %v9649_v5  ;;  %v9110_v57 = vrot.slane %v8790_v55, 1  ;;  %v16025_v5 = vld [vmem:[#allocation67_spill] sm:$0xff] }
 0x8a9   : > { %v8792_v54 = vor.u32 %v8790_v55, %v8789_v17 }
 0x8ab   : > { %v15217_v46 = vsel %vm13568_vm4, 0, %v8792_v54 }
 0x8ad   : > { %9840 = vmatpush2.bf16.xpose.msra.mxu0 %v15012_v2 }
 0x8ae   : > { %9841 = vmatprep.subr.bf16.mxu0 %v15107_v41  ;;  %9875 = vmatpush1.bf16.xpose.msra.mxu1 %v14973_v36  ;;  %v15208_v36 = vsel %vm1820_vm1, %v8789_v17, %v8799_v1  ;;  %v9111_v1 = vor.u32 %v9110_v57, %v8787_v4 }
 0x8af   : > { %9876 = vmatprep.subr.bf16.mxu1 %v15192_v63 }
 0x8b5   : > { %9842 = vmatpush2.bf16.xpose.msra.mxu0 %v16001_v44  ;;  %v9730_v26 = vpop.f32.mrf.mxu1 }
 0x8b6   : > { %9843 = vmatprep.subr.bf16.mxu0 %v15116_v37  ;;  %v9731_v28 = vadd.f32 %v9730_v26, %v9690_v31  ;;  %9877 = vmatpush2.bf16.xpose.msra.mxu1 %v15208_v36 }
 0x8b7   : > { %v9732_v3 = vpop.f32.mrf.mxu1  ;;  %9878 = vmatprep.subr.bf16.mxu1 %v16023_v18 }
 0x8b8   : > { %v9733_v47 = vadd.f32 %v9732_v3, %v9692_v60  ;;  %11962 = vtanh.f32 %v9731_v28  ;;  %v16031_v3 = vld [vmem:[#allocation110_spill] sm:$0xff] }
 0x8b9   : > { %v9734_v12 = vpop.f32.mrf.mxu1  ;;  %v8809_v55 = vshrl.u32 %v16031_v3, 16  ;;  %v8812_v54 = vshll.u32 %v16031_v3, 16 }
 0x8ba   : > { %11964 = vtanh.f32 %v9733_v47  ;;  %v16032_v47 = vld [vmem:[#allocation109_spill] sm:$0xff] }
 0x8bb   : > { %v9735_v23 = vpop.f32.mrf.mxu1  ;;  %v8802_v12 = vshrl.u32 %v16032_v47, 16 }
 0x8bd   : > { %9844 = vmatpush2.bf16.xpose.msra.mxu0 %v16004_v15 }
 0x8be   : > { %9845 = vmatprep.subr.bf16.mxu0 %v15123_v34  ;;  %9879 = vmatpush2.bf16.xpose.msra.mxu1 %v15217_v46 }
 0x8bf   : > { %9880 = vmatprep.subr.bf16.mxu1 %v16008_v45 }
 0x8c5   : > { %9846 = vmatpush2.bf16.xpose.msra.mxu0 %v16006_v0  ;;  %v11963_v52 = vpop.eup %11962 }
 0x8c6   : > { %9847 = vmatprep.subr.bf16.mxu0 %v15136_v22  ;;  %9881 = vmatpush2.bf16.xpose.msra.mxu1 %v15077_v21 }
 0x8c7   : > { %v11965_v42 = vpop.eup %11964  ;;  %9882 = vmatprep.subr.bf16.mxu1 %v16011_v61 }
 0x8c8   : > { %v10164_v39 = vcombine.low %v11963_v52, %v11965_v42  ;;  %v8804_v52 = vrot.slane %v8802_v12, 7 }
 0x8ca   : > { %10172 = vst [vmem:[%s14887_s26 + $0x8] sm:$0x77] %v10164_v39  ;;  %v16033_v39 = vld [vmem:[#allocation114_spill] sm:$0xff] }
 0x8cd   : > { %9848 = vmatpush2.bf16.xpose.msra.mxu0 %v15063_v58  ;;  %v16024_v58 = vld [vmem:[#allocation63_spill] sm:$0xff] }
 0x8ce   : > { %9849 = vmatprep.subr.bf16.mxu0 %v15145_v35  ;;  %9883 = vmatpush2.bf16.xpose.msra.mxu1 %v15098_v59  ;;  %v7054_v53 = vadd.f32 %v16024_v58, %v15921_v48  ;;  %v16036_v58 = vld [vmem:[#allocation112_spill] sm:$0xff] }
 0x8cf   : > { %9884 = vmatprep.subr.bf16.mxu1 %v15012_v2 }
 0x8d0   : > { %v7247_v2 = vadd.f32 %v16025_v5, %v7054_v53  ;;  %v16037_v53 = vshrl.u32 %v16036_v58, 16 }
 0x8d2   : > { %v7892_v48 = vmul.f32 0.2, %v7247_v2  ;;  %vm7764_vm9 = vcmp.gt.f32.partialorder %v7247_v2, 0.0 }
 0x8d5   : > { %9850 = vmatpush2.bf16.xpose.msra.mxu0 %v16014_v49  ;;  %v15244_v49 = vsel %vm6074_vm8, %v9111_v1, %v9112_v8  ;;  %v16034_v8 = vshrl.u32 %v16033_v39, 16  ;;  %v8834_v1 = vrot.slane %v16037_v53, 7 }
 0x8d6   : > { %11065 = vmatprep.subr.bf16.mxu0 %v15233_v10  ;;  %9885 = vmatpush2.bf16.xpose.msra.mxu1 %v15032_v38 }
 0x8d7   : > { %9886 = vmatprep.subr.bf16.mxu1 %v16001_v44  ;;  %v16027_v44 = vld [vmem:[#allocation66_spill] sm:$0xff]  ;;  %v8841_v19 = vrot.slane %v16034_v8, 7 }
 0x8d8   : > { %v7891_v38 = vmul.f32 0.2, %v16027_v44  ;;  %vm7763_vm10 = vcmp.gt.f32.partialorder %v16027_v44, 0.0 }
 0x8da   : > { %v8019_v4 = vsel %vm7763_vm10, %v16027_v44, %v7891_v38 }
 0x8dc   : > { %9852 = vmatmul.mubr.bf16.vlgmr.msra.gmra.mxu0 %v15981_v25 }
 0x8dd   : > { %11066 = vmatpush3.bf16.xpose.msra.mxu0 %v15136_v22  ;;  %11081 = vmatprep.mubr.bf16.mxu0 %v15249_v13  ;;  %v8020_v22 = vsel %vm7764_vm9, %v7247_v2, %v7892_v48  ;;  %v16038_v2 = vshll.u32 %v16036_v58, 16 }
 0x8de   : > { %11067 = vmatprep.subr.bf16.mxu0 %v15244_v49  ;;  %9887 = vmatpush2.bf16.xpose.msra.mxu1 %v15050_v29  ;;  %v15260_v17 = vpack.i.bf16 %v8020_v22, %v8019_v4  ;;  %v16039_v22 = vld [vmem:[#allocation98_spill] sm:$0xff] }
 0x8df   : > { %9888 = vmatprep.subr.bf16.mxu1 %v16004_v15  ;;  %v8837_v48 = vor.u32 %v16038_v2, %v8834_v1 }
 0x8e0   : > { %v8824_v29 = vshrl.u32 %v15260_v17, 16  ;;  %v8827_v31 = vshll.u32 %v15260_v17, 16 }
 0x8e1   : > { %v15331_v38 = vsel %vm13568_vm4, 0, %v8837_v48  ;;  %v16043_v48 = vld [vmem:[#allocation115_spill] sm:$0xff] }
 0x8e2   : > { %v8826_v15 = vrot.slane %v8824_v29, 7 }
 0x8e4   : > { %v8829_v26 = vor.u32 %v8827_v31, %v8826_v15 }
 0x8e5   : > { %11068 = vmatpush3.bf16.xpose.msra.mxu0 %v15145_v35  ;;  %v16028_v35 = vld [vmem:[#allocation68_spill] sm:$0xff] }
 0x8e6   : > { %11069 = vmatprep.subr.bf16.mxu0 %v15175_v20  ;;  %9889 = vmatpush2.bf16.xpose.msra.mxu1 %v15066_v11  ;;  %v8817_v56 = vshrl.u32 %v16028_v35, 16  ;;  %v8820_v60 = vshll.u32 %v16028_v35, 16 }
 0x8e7   : > { %9890 = vmatprep.subr.bf16.mxu1 %v16006_v0  ;;  %v16029_v0 = vld [vmem:[#allocation23_spill] sm:$0xff] }
 0x8e8   : > { %v8819_v11 = vrot.slane %v8817_v56, 7  ;;  %v9120_v4 = vrot.slane %v8820_v60, 1 }
 0x8ea   : > { %v8822_v28 = vor.u32 %v8820_v60, %v8819_v11 }
 0x8ed   : > { %11070 = vmatpush3.bf16.xpose.msra.mxu0 %v15131_v43  ;;  %v15275_v43 = vsel %vm1820_vm1, %v8819_v11, %v8829_v26 }
 0x8ee   : > { %11071 = vmatprep.subr.bf16.mxu0 %v16021_v24  ;;  %9891 = vmatpush2.bf16.xpose.msra.mxu1 %v15083_v16  ;;  %v16030_v16 = vld [vmem:[#allocation74_spill] sm:$0xff] }
 0x8ef   : > { %9942 = vmatprep.subr.bf16.mxu1 %v15260_v17 }
 0x8f5   : > { %11072 = vmatpush3.bf16.xpose.msra.mxu0 %v16017_v6  ;;  %9893 = vmatmul.mubr.bf16.vlgmr.msra.gmra.mxu1 %v16029_v0  ;;  %v8811_v6 = vrot.slane %v8809_v55, 7 }
 0x8f6   : > { %11073 = vmatprep.subr.bf16.mxu0 %v15093_v40  ;;  %9943 = vmatpush1.bf16.xpose.msra.mxu1 %v15275_v43  ;;  %v15286_v40 = vsel %vm13568_vm4, 0, %v8822_v28  ;;  %v16040_v28 = vld [vmem:[#allocation72_spill] sm:$0xff] }
 0x8f7   : > { %9974 = vmatprep.mubr.bf16.mxu1 %v16030_v16  ;;  %9944 = vmatprep.subr.bf16.mxu1 %v16028_v35  ;;  %v8814_v23 = vor.u32 %v8812_v54, %v8811_v6  ;;  %v9117_v16 = vrot.slane %v8812_v54, 1  ;;  %v15731_v6 = vshrl.u32 %v16040_v28, 16  ;;  %v16052_v0 = vshrl.u32 %v16040_v28, 16 }
 0x8f9   : > { %v9119_v60 = vor.u32 %v9117_v16, %v8809_v55  ;;  %v8886_v54 = vrot.slane %v15731_v6, 7  ;;  %v8887_v55 = vshll.u32 %v16040_v28, 16 }
 0x8fd   : > { %11074 = vmatpush3.bf16.xpose.msra.mxu0 %v14982_v27  ;;  %v8805_v27 = vshll.u32 %v16032_v47, 16 }
 0x8fe   : > { %11075 = vmatprep.subr.bf16.mxu0 %v15107_v41  ;;  %9945 = vmatpush1.bf16.xpose.msra.mxu1 %v15286_v40  ;;  %v15295_v41 = vsel %vm1820_vm1, %v8804_v52, %v8814_v23 }
 0x8ff   : > { %9946 = vmatprep.subr.bf16.mxu1 %v16031_v3  ;;  %v8807_v42 = vor.u32 %v8805_v27, %v8804_v52  ;;  %v8889_v52 = vor.u32 %v8887_v55, %v8886_v54 }
 0x905   : > { %11076 = vmatpush3.bf16.xpose.msra.mxu0 %v14996_v14  ;;  %v15306_v14 = vsel %vm13568_vm4, 0, %v8807_v42  ;;  %v16042_v42 = vld [vmem:[#allocation24_spill] sm:$0xff] }
 0x906   : > { %11077 = vmatprep.subr.bf16.mxu0 %v15116_v37  ;;  %9947 = vmatpush1.bf16.xpose.msra.mxu1 %v15295_v41  ;;  %v16035_v37 = vshll.u32 %v16033_v39, 16 }
 0x907   : > { %9948 = vmatprep.subr.bf16.mxu1 %v16032_v47 }
 0x908   : > { %v8844_v57 = vor.u32 %v16035_v37, %v8841_v19 }
 0x90a   : > { %v15316_v5 = vsel %vm1820_vm1, %v8834_v1, %v8844_v57 }
 0x90d   : > { %11078 = vmatpush3.bf16.xpose.msra.mxu0 %v15006_v32  ;;  %v9122_v32 = vrot.slane %v8827_v31, 1  ;;  %v9121_v31 = vor.u32 %v9120_v4, %v8817_v56  ;;  %v9115_v56 = vrot.slane %v8805_v27, 1 }
 0x90e   : > { %11079 = vmatprep.subr.bf16.mxu0 %v15123_v34  ;;  %9949 = vmatpush1.bf16.xpose.msra.mxu1 %v15306_v14 }
 0x90f   : > { %9950 = vmatprep.subr.bf16.mxu1 %v15192_v63  ;;  %v9124_v34 = vor.u32 %v9122_v32, %v8824_v29  ;;  %v15338_v11 = vsel %vm6074_vm8, %v9121_v31, %v9122_v32  ;;  %v9116_v23 = vor.u32 %v9115_v56, %v8802_v12 }
 0x911   : > { %v15326_v44 = vsel %vm13194_vm13, %v9124_v34, 0  ;;  %v15359_v19 = vsel %vm6074_vm8, %v9116_v23, %v9117_v16 }
 0x915   : > { %11080 = vmatpush3.bf16.xpose.msra.mxu0 %v15017_v7 }
 0x916   : > { %9983 = vmatprep.subr.bf16.mxu0 %v15316_v5  ;;  %9951 = vmatpush1.bf16.xpose.msra.mxu1 %v15208_v36 }
 0x917   : > { %9952 = vmatprep.subr.bf16.mxu1 %v16023_v18 }
 0x91c   : > { %11082 = vmatmul.mubr.bf16.vlgmr.msra.gmra.mxu0 %v15249_v13  ;;  %v9771_v7 = vpop.f32.mrf.mxu0 }
 0x91d   : > { %9984 = vmatpush1.bf16.xpose.msra.mxu0 %v15326_v44  ;;  %10015 = vmatprep.mubr.bf16.mxu0 %v16039_v22  ;;  %v9772_v8 = vadd.f32 %v9771_v7, %v16042_v42  ;;  %v8869_v7 = vshrl.u32 %v16043_v48, 16 }
 0x91e   : > { %9985 = vmatprep.subr.bf16.mxu0 %v15331_v38  ;;  %v9773_v29 = vpop.f32.mrf.mxu0  ;;  %9953 = vmatpush1.bf16.xpose.msra.mxu1 %v15217_v46 }
 0x91f   : > { %9954 = vmatprep.subr.bf16.mxu1 %v16008_v45  ;;  %v15347_v45 = vsel %vm13194_vm13, %v9119_v60, 0 }
 0x920   : > { %v9775_v15 = vpop.f32.mrf.mxu0 }
 0x921   : > { %v16044_v15 = vld [vmem:[#allocation82_spill] sm:$0xff] }
 0x922   : > { %v9776_v26 = vpop.f32.mrf.mxu0  ;;  %v8862_v31 = vshrl.u32 %v16044_v15, 16  ;;  %v8865_v54 = vshll.u32 %v16044_v15, 16 }
 0x923   : > { %v8872_v26 = vshll.u32 %v16043_v48, 16 }
 0x924   : > { %v8864_v60 = vrot.slane %v8862_v31, 7 }
 0x925   : > { %9986 = vmatpush1.bf16.xpose.msra.mxu0 %v15338_v11 }
 0x926   : > { %9987 = vmatprep.subr.bf16.mxu0 %v15275_v43  ;;  %9955 = vmatpush1.bf16.xpose.msra.mxu1 %v15077_v21  ;;  %v16041_v21 = vld [vmem:[#allocation71_spill] sm:$0xff]  ;;  %v8867_v23 = vor.u32 %v8865_v54, %v8864_v60 }
 0x927   : > { %9956 = vmatprep.subr.bf16.mxu1 %v16011_v61  ;;  %v15730_v61 = vshrl.u32 %v16041_v21, 16  ;;  %v8880_v1 = vshll.u32 %v16041_v21, 16 }
 0x929   : > { %v8879_v27 = vrot.slane %v15730_v61, 7  ;;  %v9142_v61 = vrot.slane %v8887_v55, 1 }
 0x92b   : > { %v15367_v57 = vsel %vm1820_vm1, %v8879_v27, %v8889_v52  ;;  %v8882_v2 = vor.u32 %v8880_v1, %v8879_v27  ;;  %v16045_v52 = vld [vmem:[#allocation70_spill] sm:$0xff]  ;;  %v16046_v27 = vld [vmem:[#allocation95_spill] sm:$0xff]  ;;  %v9144_v13 = vor.u32 %v9142_v61, %v16052_v0 }
 0x92d   : > { %9988 = vmatpush1.bf16.xpose.msra.mxu0 %v15347_v45  ;;  %v15381_v4 = vsel %vm13568_vm4, 0, %v8882_v2 }
 0x92e   : > { %9989 = vmatprep.subr.bf16.mxu0 %v15286_v40  ;;  %9957 = vmatpush1.bf16.xpose.msra.mxu1 %v15098_v59  ;;  %v9774_v59 = vadd.f32 %v9773_v29, %v16042_v42  ;;  %v8871_v29 = vrot.slane %v8869_v7, 7 }
 0x92f   : > { %9958 = vmatprep.subr.bf16.mxu1 %v16040_v28 }
 0x930   : > { %v8874_v16 = vor.u32 %v8872_v26, %v8871_v29 }
 0x932   : > { %v15390_v56 = vsel %vm1820_vm1, %v8864_v60, %v8874_v16  ;;  %v16050_v60 = vld [vmem:[#allocation85_spill] sm:$0xff] }
 0x933   : > { %v16053_v55 = vshll.u32 %v16050_v60, 16 }
 0x935   : > { %9990 = vmatpush1.bf16.xpose.msra.mxu0 %v15359_v19  ;;  %v9812_v37 = vpop.f32.mrf.mxu1 }
 0x936   : > { %9991 = vmatprep.subr.bf16.mxu0 %v15295_v41  ;;  %v15369_v12 = vadd.f32 %v9812_v37, %v9772_v8  ;;  %9959 = vmatpush2.bf16.xpose.msra.mxu1 %v15367_v57  ;;  %v8854_v8 = vshrl.u32 %v16045_v52, 16 }
 0x937   : > { %v9814_v53 = vpop.f32.mrf.mxu1  ;;  %9960 = vmatprep.subr.bf16.mxu1 %v16041_v21 }
 0x938   : > { %v15374_v32 = vadd.f32 %v9814_v53, %v9774_v59  ;;  %v16047_v59 = vshrl.u32 %v16046_v27, 16  ;;  %v8856_v53 = vrot.slane %v8854_v8, 7 }
 0x939   : > { %v9816_v34 = vpop.f32.mrf.mxu1 }
 0x93a   : > { %v9249_v37 = vrot.slane %v16047_v59, 7  ;;  %v16048_v34 = vld [vmem:[#allocation69_spill] sm:$0xff]  ;;  %v16051_v59 = vshrl.u32 %v16050_v60, 16 }
 0x93b   : > { %v9817_v22 = vpop.f32.mrf.mxu1  ;;  %v8847_v2 = vshrl.u32 %v16048_v34, 16 }
 0x93c   : > { %v8857_v22 = vshll.u32 %v16045_v52, 16 }
 0x93d   : > { %9992 = vmatpush1.bf16.xpose.msra.mxu0 %v15233_v10 }
 0x93e   : > { %9993 = vmatprep.subr.bf16.mxu0 %v15306_v14  ;;  %9961 = vmatpush2.bf16.xpose.msra.mxu1 %v15381_v4  ;;  %v8859_v16 = vor.u32 %v8857_v22, %v8856_v53 }
 0x93f   : > { %9962 = vmatprep.subr.bf16.mxu1 %v16043_v48 }
 0x945   : > { %9994 = vmatpush1.bf16.xpose.msra.mxu0 %v15244_v49 }
 0x946   : > { %9995 = vmatprep.subr.bf16.mxu0 %v15208_v36  ;;  %9963 = vmatpush2.bf16.xpose.msra.mxu1 %v15390_v56  ;;  %v15402_v36 = vsel %vm13568_vm4, 0, %v8867_v23  ;;  %v8849_v23 = vrot.slane %v8847_v2, 7 }
 0x947   : > { %9964 = vmatprep.subr.bf16.mxu1 %v16044_v15 }
 0x948   : > { %v8860_v42 = vsel %vm1820_vm1, %v8849_v23, %v8859_v16  ;;  %v9140_v16 = vrot.slane %v8880_v1, 1 }
 0x94d   : > { %9996 = vmatpush1.bf16.xpose.msra.mxu0 %v15175_v20  ;;  %v16049_v20 = vshll.u32 %v16046_v27, 16 }
 0x94e   : > { %9997 = vmatprep.subr.bf16.mxu0 %v15217_v46  ;;  %9965 = vmatpush2.bf16.xpose.msra.mxu1 %v15402_v36  ;;  %v9242_v46 = vrot.slane %v16051_v59, 7  ;;  %v16054_v59 = vshrl.u32 %v16041_v21, 16 }
 0x94f   : > { %9966 = vmatprep.subr.bf16.mxu1 %v16045_v52  ;;  %v9252_v29 = vor.u32 %v16049_v20, %v9249_v37  ;;  %v8850_v37 = vshll.u32 %v16048_v34, 16  ;;  %v15426_v20 = vsel %vm13194_vm13, %v9144_v13, 0 }
 0x950   : > { %v9245_v53 = vor.u32 %v16053_v55, %v9242_v46  ;;  %v9135_v55 = vrot.slane %v8865_v54, 1 }
 0x951   : > { %v15414_v6 = vsel %vm1820_vm1, %v9242_v46, %v9252_v29  ;;  %v9141_v46 = vor.u32 %v9140_v16, %v16054_v59  ;;  %v16056_v16 = vld [vmem:[#allocation76_spill] sm:$0xff] }
 0x952   : > { %v15431_v29 = vsel %vm13568_vm4, 0, %v9245_v53 }
 0x953   : > { %v15440_v13 = vsel %vm6074_vm8, %v9141_v46, %v9142_v61  ;;  %v16055_v61 = vld [vmem:[#allocation92_spill] sm:$0xff]  ;;  %v16062_v46 = vld [vmem:[#allocation18_spill] sm:$0xff] }
 0x955   : > { %9998 = vmatpush1.bf16.xpose.msra.mxu0 %v16021_v24  ;;  %v8852_v24 = vor.u32 %v8850_v37, %v8849_v23  ;;  %v9137_v23 = vrot.slane %v8872_v26, 1  ;;  %v15456_v26 = vsel %vm13194_vm13, %v16055_v61, 0 }
 0x956   : > { %9999 = vmatprep.subr.bf16.mxu0 %v15414_v6  ;;  %9967 = vmatpush2.bf16.xpose.msra.mxu1 %v8860_v42 }
 0x957   : > { %9968 = vmatprep.subr.bf16.mxu1 %v16048_v34  ;;  %v8986_v0 = vsel %vm13568_vm4, 0, %v8852_v24  ;;  %v9139_v1 = vor.u32 %v9137_v23, %v8869_v7  ;;  %v9136_v7 = vor.u32 %v9135_v55, %v8862_v31  ;;  %v9132_v24 = vrot.slane %v8857_v22, 1 }
 0x958   : > { %v9130_v22 = vrot.slane %v8850_v37, 1 }
 0x959   : > { %v15448_v30 = vsel %vm13194_vm13, %v9139_v1, 0  ;;  %v15460_v53 = vsel %vm6074_vm8, %v9136_v7, %v9137_v23  ;;  %v9134_v54 = vor.u32 %v9132_v24, %v8854_v8 }
 0x95b   : > { %v15470_v31 = vsel %vm13194_vm13, %v9134_v54, 0 }
 0x95d   : > { %10000 = vmatpush2.bf16.xpose.msra.mxu0 %v15426_v20 }
 0x95e   : > { %10001 = vmatprep.subr.bf16.mxu0 %v15431_v29  ;;  %9969 = vmatpush2.bf16.xpose.msra.mxu1 %v8986_v0 }
 0x95f   : > { %9970 = vmatprep.subr.bf16.mxu1 %v16033_v39 }
 0x965   : > { %10002 = vmatpush2.bf16.xpose.msra.mxu0 %v15440_v13 }
 0x966   : > { %10003 = vmatprep.subr.bf16.mxu0 %v15367_v57  ;;  %9971 = vmatpush2.bf16.xpose.msra.mxu1 %v15316_v5 }
 0x967   : > { %9972 = vmatprep.subr.bf16.mxu1 %v16036_v58 }
 0x96d   : > { %10004 = vmatpush2.bf16.xpose.msra.mxu0 %v15448_v30 }
 0x96e   : > { %10005 = vmatprep.subr.bf16.mxu0 %v15381_v4  ;;  %9973 = vmatpush2.bf16.xpose.msra.mxu1 %v15331_v38 }
 0x96f   : > { %10024 = vmatprep.subr.bf16.mxu1 %v15456_v26 }
 0x975   : > { %10006 = vmatpush2.bf16.xpose.msra.mxu0 %v15460_v53  ;;  %9975 = vmatmul.mubr.bf16.vlgmr.msra.gmra.mxu1 %v15898_v62  ;;  %v9131_v62 = vor.u32 %v9130_v22, %v8847_v2 }
 0x976   : > { %10007 = vmatprep.subr.bf16.mxu0 %v15390_v56  ;;  %10025 = vmatpush1.bf16.xpose.msra.mxu1 %v16033_v39 }
 0x977   : > { %10056 = vmatprep.mubr.bf16.mxu1 %v14324_v33  ;;  %10026 = vmatprep.subr.bf16.mxu1 %v16056_v16  ;;  %v15477_v8 = vsel %vm6074_vm8, %v9131_v62, %v9132_v24 }
 0x97d   : > { %10008 = vmatpush2.bf16.xpose.msra.mxu0 %v15470_v31 }
 0x97e   : > { %10009 = vmatprep.subr.bf16.mxu0 %v15402_v36  ;;  %10027 = vmatpush1.bf16.xpose.msra.mxu1 %v16036_v58 }
 0x97f   : > { %10028 = vmatprep.subr.bf16.mxu1 %v15326_v44 }
 0x985   : > { %10010 = vmatpush2.bf16.xpose.msra.mxu0 %v15477_v8 }
 0x986   : > { %10011 = vmatprep.subr.bf16.mxu0 %v8860_v42  ;;  %10029 = vmatpush1.bf16.xpose.msra.mxu1 %v15260_v17 }
 0x987   : > { %10030 = vmatprep.subr.bf16.mxu1 %v15338_v11 }
 0x98d   : > { %10012 = vmatpush2.bf16.xpose.msra.mxu0 %v15456_v26 }
 0x98e   : > { %10013 = vmatprep.subr.bf16.mxu0 %v8986_v0  ;;  %10031 = vmatpush1.bf16.xpose.msra.mxu1 %v16028_v35 }
 0x98f   : > { %10032 = vmatprep.subr.bf16.mxu1 %v15347_v45 }
 0x995   : > { %10014 = vmatpush2.bf16.xpose.msra.mxu0 %v16056_v16 }
 0x996   : > { %10065 = vmatprep.subr.bf16.mxu0 %v16045_v52  ;;  %10033 = vmatpush1.bf16.xpose.msra.mxu1 %v16031_v3 }
 0x997   : > { %10034 = vmatprep.subr.bf16.mxu1 %v15359_v19 }
 0x99c   : > { %v9853_v33 = vpop.f32.mrf.mxu0  ;;  %10016 = vmatmul.mubr.bf16.vlgmr.msra.gmra.mxu0 %v14005_v51  ;;  %v16057_v51 = vld [vmem:[#allocation75_spill] sm:$0xff] }
 0x99d   : > { %10066 = vmatpush1.bf16.xpose.msra.mxu0 %v8860_v42  ;;  %10097 = vmatprep.mubr.bf16.mxu0 %v14377_v9  ;;  %v9264_v9 = vsel %vm13194_vm13, %v16057_v51, 0  ;;  %v16061_v42 = vld [vmem:[#allocation94_spill] sm:$0xff] }
 0x99e   : > { %v9855_v2 = vpop.f32.mrf.mxu0  ;;  %10067 = vmatprep.subr.bf16.mxu0 %v16048_v34  ;;  %10035 = vmatpush1.bf16.xpose.msra.mxu1 %v16032_v47 }
 0x99f   : > { %10036 = vmatprep.subr.bf16.mxu1 %v15233_v10 }
 0x9a0   : > { %v9857_v37 = vpop.f32.mrf.mxu0 }
 0x9a2   : > { %v9858_v59 = vpop.f32.mrf.mxu0 }
 0x9a5   : > { %10068 = vmatpush1.bf16.xpose.msra.mxu0 %v8986_v0 }
 0x9a6   : > { %10069 = vmatprep.subr.bf16.mxu0 %v16033_v39  ;;  %10037 = vmatpush1.bf16.xpose.msra.mxu1 %v15192_v63 }
 0x9a7   : > { %10038 = vmatprep.subr.bf16.mxu1 %v15244_v49  ;;  %v16058_v49 = vld [vmem:[#allocation21_spill] sm:$0xff] }
 0x9ad   : > { %10070 = vmatpush1.bf16.xpose.msra.mxu0 %v15316_v5 }
 0x9ae   : > { %10071 = vmatprep.subr.bf16.mxu0 %v16036_v58  ;;  %10039 = vmatpush1.bf16.xpose.msra.mxu1 %v16023_v18  ;;  %v9854_v18 = vadd.f32 %v9853_v33, %v15369_v12 }
 0x9af   : > { %10040 = vmatprep.subr.bf16.mxu1 %v9264_v9 }
 0x9b5   : > { %10072 = vmatpush1.bf16.xpose.msra.mxu0 %v15331_v38  ;;  %v9894_v10 = vpop.f32.mrf.mxu1 }
 0x9b6   : > { %10073 = vmatprep.subr.bf16.mxu0 %v15260_v17  ;;  %10041 = vmatpush2.bf16.xpose.msra.mxu1 %v16046_v27  ;;  %v9856_v17 = vadd.f32 %v9855_v2, %v15374_v32 }
 0x9b7   : > { %v9896_v63 = vpop.f32.mrf.mxu1  ;;  %10042 = vmatprep.subr.bf16.mxu1 %v16058_v49 }
 0x9b9   : > { %v9898_v39 = vpop.f32.mrf.mxu1 }
 0x9bb   : > { %v9899_v5 = vpop.f32.mrf.mxu1 }
 0x9bd   : > { %10074 = vmatpush1.bf16.xpose.msra.mxu0 %v15275_v43 }
 0x9be   : > { %10075 = vmatprep.subr.bf16.mxu0 %v16028_v35  ;;  %10043 = vmatpush2.bf16.xpose.msra.mxu1 %v16050_v60  ;;  %v9895_v35 = vadd.f32 %v9894_v10, %v9854_v18 }
 0x9bf   : > { %10044 = vmatprep.subr.bf16.mxu1 %v15426_v20 }
 0x9c5   : > { %10076 = vmatpush1.bf16.xpose.msra.mxu0 %v15286_v40 }
 0x9c6   : > { %10077 = vmatprep.subr.bf16.mxu0 %v16031_v3  ;;  %10045 = vmatpush2.bf16.xpose.msra.mxu1 %v16040_v28  ;;  %v9897_v3 = vadd.f32 %v9896_v63, %v9856_v17 }
 0x9c7   : > { %10046 = vmatprep.subr.bf16.mxu1 %v15440_v13 }
 0x9cd   : > { %10078 = vmatpush1.bf16.xpose.msra.mxu0 %v15295_v41 }
 0x9ce   : > { %10079 = vmatprep.subr.bf16.mxu0 %v16032_v47  ;;  %10047 = vmatpush2.bf16.xpose.msra.mxu1 %v16041_v21  ;;  %v16060_v47 = vld [vmem:[#allocation91_spill] sm:$0xff] }
 0x9cf   : > { %10048 = vmatprep.subr.bf16.mxu1 %v15448_v30 }
 0x9d5   : > { %10080 = vmatpush1.bf16.xpose.msra.mxu0 %v15306_v14 }
 0x9d6   : > { %10081 = vmatprep.subr.bf16.mxu0 %v16059_v50  ;;  %10049 = vmatpush2.bf16.xpose.msra.mxu1 %v16043_v48 }
 0x9d7   : > { %10050 = vmatprep.subr.bf16.mxu1 %v15460_v53 }
 0x9dc   : > { %v9935_v43 = vpop.f32.mrf.mxu0 }
 0x9dd   : > { %v9936_v40 = vadd.f32 %v9935_v43, %v9895_v35  ;;  %10082 = vmatpush2.bf16.xpose.msra.mxu0 %v16060_v47 }
 0x9de   : > { %v9937_v41 = vpop.f32.mrf.mxu0  ;;  %10083 = vmatprep.subr.bf16.mxu0 %v16059_v50  ;;  %10051 = vmatpush2.bf16.xpose.msra.mxu1 %v16044_v15 }
 0x9df   : > { %v9938_v14 = vadd.f32 %v9937_v41, %v9897_v3  ;;  %11966 = vtanh.f32 %v9936_v40  ;;  %10052 = vmatprep.subr.bf16.mxu1 %v15470_v31 }
 0x9e0   : > { %v9939_v58 = vpop.f32.mrf.mxu0 }
 0x9e1   : > { %11968 = vtanh.f32 %v9938_v14 }
 0x9e2   : > { %v9940_v38 = vpop.f32.mrf.mxu0 }
 0x9e5   : > { %10084 = vmatpush2.bf16.xpose.msra.mxu0 %v16061_v42 }
 0x9e6   : > { %10085 = vmatprep.subr.bf16.mxu0 %v16046_v27  ;;  %10053 = vmatpush2.bf16.xpose.msra.mxu1 %v16045_v52  ;;  %v16063_v52 = vld [vmem:[#allocation19_spill] sm:$0xff] }
 0x9e7   : > { %10054 = vmatprep.subr.bf16.mxu1 %v15477_v8 }
 0x9ec   : > { %v11967_v12 = vpop.eup %11966 }
 0x9ed   : > { %10086 = vmatpush2.bf16.xpose.msra.mxu0 %v15414_v6  ;;  %v16064_v6 = vld [vmem:[#allocation17_spill] sm:$0xff] }
 0x9ee   : > { %v11969_v32 = vpop.eup %11968  ;;  %10087 = vmatprep.subr.bf16.mxu0 %v16050_v60  ;;  %10055 = vmatpush2.bf16.xpose.msra.mxu1 %v16048_v34 }
 0x9ef   : > { %v10165_v0 = vcombine.low %v11967_v12, %v11969_v32  ;;  %11083 = vmatprep.subr.bf16.mxu1 %v16062_v46 }
 0x9f1   : > { %10173 = vst [vmem:[%s14887_s26 + $0x10] sm:$0x77] %v10165_v0 }
 0x9f5   : > { %10088 = vmatpush2.bf16.xpose.msra.mxu0 %v15431_v29  ;;  %10057 = vmatmul.mubr.bf16.vlgmr.msra.gmra.mxu1 %v15981_v25  ;;  %v16065_v25 = vld [vmem:[#allocation23_spill] sm:$0xff] }
 0x9f6   : > { %10089 = vmatprep.subr.bf16.mxu0 %v16040_v28  ;;  %11084 = vmatpush3.bf16.xpose.msra.mxu1 %v15470_v31 }
 0x9f7   : > { %11099 = vmatprep.mubr.bf16.mxu1 %v16063_v52  ;;  %11085 = vmatprep.subr.bf16.mxu1 %v16064_v6 }
 0x9fd   : > { %10090 = vmatpush2.bf16.xpose.msra.mxu0 %v15367_v57 }
 0x9fe   : > { %10091 = vmatprep.subr.bf16.mxu0 %v16041_v21  ;;  %11086 = vmatpush3.bf16.xpose.msra.mxu1 %v15477_v8 }
 0x9ff   : > { %11087 = vmatprep.subr.bf16.mxu1 %v9264_v9 }
 0xa05   : > { %10092 = vmatpush2.bf16.xpose.msra.mxu0 %v15381_v4 }
 0xa06   : > { %10093 = vmatprep.subr.bf16.mxu0 %v16043_v48  ;;  %11088 = vmatpush3.bf16.xpose.msra.mxu1 %v15456_v26  ;;  %v16066_v48 = vld [vmem:[#allocation24_spill] sm:$0xff] }
 0xa07   : > { %11089 = vmatprep.subr.bf16.mxu1 %v16058_v49 }
 0xa0d   : > { %10094 = vmatpush2.bf16.xpose.msra.mxu0 %v15390_v56 }
 0xa0e   : > { %10095 = vmatprep.subr.bf16.mxu0 %v16044_v15  ;;  %11090 = vmatpush3.bf16.xpose.msra.mxu1 %v16056_v16 }
 0xa0f   : > { %11091 = vmatprep.subr.bf16.mxu1 %v15426_v20 }
 0xa15   : > { %10096 = vmatpush2.bf16.xpose.msra.mxu0 %v15402_v36 }
 0xa16   : > { %11092 = vmatpush3.bf16.xpose.msra.mxu1 %v15326_v44 }
 0xa17   : > { %11093 = vmatprep.subr.bf16.mxu1 %v15440_v13 }
 0xa1c   : > { %10098 = vmatmul.mubr.bf16.vlgmr.msra.gmra.mxu0 %v16065_v25 }
 0xa1e   : > { %11094 = vmatpush3.bf16.xpose.msra.mxu1 %v15338_v11 }
 0xa1f   : > { %11095 = vmatprep.subr.bf16.mxu1 %v15448_v30 }
 0xa26   : > { %11096 = vmatpush3.bf16.xpose.msra.mxu1 %v15347_v45 }
 0xa27   : > { %11097 = vmatprep.subr.bf16.mxu1 %v15460_v53 }
 0xa2e   : > { %11098 = vmatpush3.bf16.xpose.msra.mxu1 %v15359_v19 }
 0xa35   : > { %v9976_v28 = vpop.f32.mrf.mxu1  ;;  %11100 = vmatmul.mubr.bf16.vlgmr.msra.gmra.mxu1 %v16063_v52 }
 0xa36   : > { %v9977_v4 = vadd.f32 %v9976_v28, %v16066_v48 }
 0xa37   : > { %v9978_v21 = vpop.f32.mrf.mxu1 }
 0xa38   : > { %v9979_v56 = vadd.f32 %v9978_v21, %v16066_v48 }
 0xa39   : > { %v9980_v57 = vpop.f32.mrf.mxu1 }
 0xa3b   : > { %v9981_v44 = vpop.f32.mrf.mxu1 }
 0xa5c   : > { %v10017_v15 = vpop.f32.mrf.mxu0 }
 0xa5d   : > { %v10018_v11 = vadd.f32 %v10017_v15, %v9977_v4 }
 0xa5e   : > { %v10019_v27 = vpop.f32.mrf.mxu0 }
 0xa5f   : > { %v10020_v36 = vadd.f32 %v10019_v27, %v9979_v56 }
 0xa60   : > { %v10021_v34 = vpop.f32.mrf.mxu0 }
 0xa62   : > { %v10022_v45 = vpop.f32.mrf.mxu0 }
 0xab5   : > { %v10058_v60 = vpop.f32.mrf.mxu1 }
 0xab6   : > { %v10059_v55 = vadd.f32 %v10058_v60, %v10018_v11 }
 0xab7   : > { %v10060_v20 = vpop.f32.mrf.mxu1 }
 0xab8   : > { %v10061_v61 = vadd.f32 %v10060_v20, %v10020_v36 }
 0xab9   : > { %v10062_v29 = vpop.f32.mrf.mxu1 }
 0xabb   : > { %v10063_v19 = vpop.f32.mrf.mxu1 }
 0xadc   : > { %v10099_v13 = vpop.f32.mrf.mxu0 }
 0xadd   : > { %v10100_v26 = vadd.f32 %v10099_v13, %v10059_v55 }
 0xade   : > { %v10101_v23 = vpop.f32.mrf.mxu0 }
 0xadf   : > { %v10102_v53 = vadd.f32 %v10101_v23, %v10061_v61 }
 0xae0   : > { %v10103_v1 = vpop.f32.mrf.mxu0 }
 0xae2   : > { %v10104_v30 = vpop.f32.mrf.mxu0 }
 0xaf5   : > { %v10140_v7 = vpop.f32.mrf.mxu1 }
 0xaf6   : > { %v10141_v24 = vadd.f32 %v10140_v7, %v10100_v26 }
 0xaf7   : > { %v10142_v54 = vpop.f32.mrf.mxu1 }
 0xaf8   : > { %v10143_v16 = vadd.f32 %v10142_v54, %v10102_v53  ;;  %11970 = vtanh.f32 %v10141_v24 }
 0xaf9   : > { %v10144_v31 = vpop.f32.mrf.mxu1 }
 0xafa   : > { %11972 = vtanh.f32 %v10143_v16 }
 0xafb   : > { %v10145_v22 = vpop.f32.mrf.mxu1 }
 0xb05   : > { %v11971_v62 = vpop.eup %11970 }
 0xb07   : > { %v11973_v8 = vpop.eup %11972 }
 0xb08   : > { %v10166_v33 = vcombine.low %v11971_v62, %v11973_v8 }
 0xb0a   : > { %10174 = vst [vmem:[%s14887_s26 + $0x18] sm:$0x77] %v10166_v33 }
 0xb0b PF: > { %s25_s17 = sadd.s32 1, %s12179_s17  }
 0xb0c   : > { %p22_p2 = scmp.ge.s32.totalorder %s25_s17, 4  }
 0xb0e   :  { %24 = sbr.rel (!%p22_p2) target bundleno = 4 (0x4), region = 123 }
 0xb13   :  { %10196 = vsyncpa [#allocation3], 1 }
 0xb14   :  { %10198 = vsyncpa [#allocation3 + $0x1], 1 }
 0xb15   :  { %10199 = vsyncpa [#allocation5], 1 }
 0xb16   :  { %10200 = vsyncpa [#allocation8], 1 }
 0xb17   :  { %10201 = vsyncpa [#allocation11], 1 }

</bundles_post_ra>
